<compile_context>
chip_gen: v7x
topology: tpu7x:2x2x1
jax: 0.10.0
libtpu: 0.0.40
codegen_flags: <defaults>
</compile_context>

<pallas_src>
import functools
import math

import jax
import jax.numpy as jnp
import numpy as np
from jax.experimental import pallas as pl
from jax.experimental.pallas import tpu as pltpu

_LOG_2PI = math.log(2.0 * math.pi)


# ----------------------------------------------------------------------------
# The single fused Pallas kernel
# ----------------------------------------------------------------------------
def _forward_kernel(
    x_ref,                                            # (B*H, W*nc) f32
    s16_ref, s8_ref, s4_ref, sd16_ref, sd8_ref,       # row-selection matrices
    su4_ref, su8_ref,
    wstem_ref, wconv_ref, wsc_ref, wencfc_ref,        # banded weights (bf16)
    wdecfc_ref, wd3_ref,
    bias_ref, bdecfc_ref, bd3_ref,                    # biases (f32)
    prow_ref, erep_ref,                               # pool / replicate selectors
    resx_ref, loss_ref, lemb_ref,                     # outputs
    *, md, D, h0_spatial):
    f32 = jnp.float32
    bf16 = jnp.bfloat16

    def relu(v):
        return jnp.maximum(v, 0.0)

    def conv3(x_b16, s_ref, wget, bias, mid_identity):
        """3x3 conv as   sum_dh (S_dh @ X) @ Wband_dh  + bias   (f32 result)."""
        acc = None
        for dh in range(3):
            if mid_identity and dh == 1:             # S_1 == I for stride-1 convs
                lhs = x_b16
            else:
                lhs = jnp.dot(s_ref[dh], x_b16,
                              preferred_element_type=f32).astype(bf16)
            t = jnp.dot(lhs, wget(dh), preferred_element_type=f32)
            acc = t if acc is None else acc + t
        return acc + bias

    x32 = x_ref[...]                                  # (B*16, 64) f32
    xb = x32.astype(bf16)

    # ------------------------- encoder -------------------------
    h = relu(conv3(xb, s16_ref, lambda dh: wstem_ref[dh], bias_ref[0], True))
    hb = h.astype(bf16)

    # block 1 (16 -> 16, identity shortcut)
    c = relu(conv3(hb, s16_ref, lambda dh: wconv_ref[0, dh], bias_ref[1], True))
    c = conv3(c.astype(bf16), s16_ref, lambda dh: wconv_ref[1, dh],
              bias_ref[2], True) + h
    y1 = relu(c)
    y1b = y1.astype(bf16)

    # block 2 (16 -> 32, stride 2, 1x1 projection shortcut fused in)
    c = relu(conv3(y1b, sd16_ref, lambda dh: wconv_ref[2, dh], bias_ref[3], False))
    sc = jnp.dot(jnp.dot(sd16_ref[1], y1b, preferred_element_type=f32).astype(bf16),
                 wsc_ref[0], preferred_element_type=f32)
    c = conv3(c.astype(bf16), s8_ref, lambda dh: wconv_ref[3, dh],
              bias_ref[4], True) + sc
    y2 = relu(c)
    y2b = y2.astype(bf16)

    # block 3 (32 -> 64, stride 2, 1x1 projection shortcut fused in)
    c = relu(conv3(y2b, sd8_ref, lambda dh: wconv_ref[4, dh], bias_ref[5], False))
    sc = jnp.dot(jnp.dot(sd8_ref[1], y2b, preferred_element_type=f32).astype(bf16),
                 wsc_ref[1], preferred_element_type=f32)
    c = conv3(c.astype(bf16), s4_ref, lambda dh: wconv_ref[5, dh],
              bias_ref[6], True) + sc
    y3 = relu(c)
    y3b = y3.astype(bf16)                             # (B*4, 4*64)

    # global average pool + encoder fc (pooling folded into w_encfc)
    rows = jnp.dot(prow_ref[...], y3b, preferred_element_type=f32).astype(bf16)
    ambient = jnp.dot(rows, wencfc_ref[...], preferred_element_type=f32) + bias_ref[7]

    # ------------------------- latent losses -------------------------
    col = jax.lax.broadcasted_iota(jnp.int32, ambient.shape, 1)
    sq = ambient * ambient
    tail_sq = jnp.sum(jnp.where(col >= md, sq, 0.0))
    lat_sq = jnp.sum(jnp.where(col < md, sq, 0.0))
    n_lat = ambient.shape[0] * md
    loss_emb = jnp.sqrt(tail_sq) / float(D - md)
    logprob_mean = -0.5 * _LOG_2PI - 0.5 * lat_sq / float(n_lat)
    loss_emb = loss_emb - logprob_mean / 100.0

    # ------------------------- decoder fc -------------------------
    # latent slice is encoded by zero rows of w_decfc; output rows are built by
    # a row-phase mask so the result lands directly in (B*H0, H0*64) layout.
    amb_b = ambient.astype(bf16)
    lhs_rep = jnp.dot(erep_ref[...], amb_b, preferred_element_type=f32).astype(bf16)
    nrow = lhs_rep.shape[0]
    ncol = wdecfc_ref.shape[-1]
    row_phase = jnp.bitwise_and(
        jax.lax.broadcasted_iota(jnp.int32, (nrow, ncol), 0), h0_spatial - 1)
    acc = jnp.zeros((nrow, ncol), f32)
    for hh in range(h0_spatial):
        piece = jnp.dot(lhs_rep, wdecfc_ref[hh],
                        preferred_element_type=f32) + bdecfc_ref[hh]
        acc = acc + jnp.where(row_phase == hh, piece, 0.0)
    h0 = relu(acc)
    h0b = h0.astype(bf16)                             # (B*4, 4*64)

    # ------------------------- decoder convs -------------------------
    # 2x nearest upsample is folded into the selection / banded weights.
    d = relu(conv3(h0b, su4_ref, lambda dh: wconv_ref[6, dh], bias_ref[8], False))
    d = relu(conv3(d.astype(bf16), su8_ref, lambda dh: wconv_ref[7, dh],
                   bias_ref[9], False))
    d = conv3(d.astype(bf16), s16_ref, lambda dh: wd3_ref[dh], bd3_ref[...], True)
    resx = jnp.tanh(d)                                # (B*16, 16*nc) f32

    # ------------------------- reconstruction loss -------------------------
    diff = x32 - resx
    mse = jnp.sum(diff * diff) / float(diff.size)
    loss = loss_emb + mse

    resx_ref[...] = resx
    loss_ref[0, 0] = loss
    lemb_ref[0, 0] = loss_emb


# ----------------------------------------------------------------------------
# Forward wrapper
# ----------------------------------------------------------------------------
def manifold_forward(x_nchw, prep, *, nc, imsize, md):
    B = x_nchw.shape[0]
    H0 = imsize // 4
    D = imsize * imsize
    x2d = jnp.transpose(x_nchw, (0, 2, 3, 1)).reshape(B * imsize, imsize * nc)

    kernel = functools.partial(_forward_kernel, md=md, D=D, h0_spatial=H0)
    out_shape = (
        jax.ShapeDtypeStruct((B * imsize, imsize * nc), jnp.float32),  # resx (NHWC rows)
        jax.ShapeDtypeStruct((1, 1), jnp.float32),                     # loss
        jax.ShapeDtypeStruct((1, 1), jnp.float32),                     # loss_embedding
    )
    out_specs = (
        pl.BlockSpec(memory_space=pltpu.MemorySpace.VMEM),
        pl.BlockSpec(memory_space=pltpu.MemorySpace.SMEM),
        pl.BlockSpec(memory_space=pltpu.MemorySpace.SMEM),
    )
    args = [
        x2d,
        prep["s16"], prep["s8"], prep["s4"], prep["sd16"], prep["sd8"],
        prep["su4"], prep["su8"],
        prep["w_stem"], prep["w_conv"], prep["w_sc"], prep["w_encfc"],
        prep["w_decfc"], prep["w_d3"],
        prep["bias"], prep["b_decfc"], prep["b_d3"],
        prep["p_rows"], prep["e_rep"],
    ]
    resx2d, loss, lemb = pl.pallas_call(
        kernel,
        out_shape=out_shape,
        out_specs=out_specs,
    )(*args)

    resx = resx2d.reshape(B, imsize, imsize, nc).transpose(0, 3, 1, 2)  # NCHW
    return loss[0, 0], lemb[0, 0], resx


# ----------------------------------------------------------------------------
# Parameter construction (logical weights) and Pallas-side preprocessing
# (banded weights / selection matrices, built once outside jit).
# ----------------------------------------------------------------------------
def init_params(key, nc, imsize, md):
    ks = iter(jax.random.split(key, 40))
    H0 = imsize // 4

    def conv(cin, cout):
        return jax.random.normal(next(ks), (3, 3, cin, cout), jnp.float32) / np.sqrt(9 * cin)

    def lin(cin, cout):
        return jax.random.normal(next(ks), (cin, cout), jnp.float32) / np.sqrt(cin)

    def bias(c):
        return jnp.zeros((c,), jnp.float32)

    return dict(
        stem_w=conv(nc, 16), stem_b=bias(16),
        b1c1_w=conv(16, 16), b1c1_b=bias(16),
        b1c2_w=conv(16, 16), b1c2_b=bias(16),
        b2c1_w=conv(16, 32), b2c1_b=bias(32),
        b2c2_w=conv(32, 32), b2c2_b=bias(32),
        b2sc_w=lin(16, 32), b2sc_b=bias(32),
        b3c1_w=conv(32, 64), b3c1_b=bias(64),
        b3c2_w=conv(64, 64), b3c2_b=bias(64),
        b3sc_w=lin(32, 64), b3sc_b=bias(64),
        encfc_w=lin(64, imsize * imsize), encfc_b=bias(imsize * imsize),
        decfc_w=lin(md, H0 * H0 * 64), decfc_b=bias(H0 * H0 * 64),
        d1_w=conv(64, 32), d1_b=bias(32),
        d2_w=conv(32, 16), d2_b=bias(16),
        d3_w=conv(16, nc), d3_b=bias(nc),
    )


def _band_conv(w, win, wout, stride):
    """3x3 conv (pad=1, given W-stride) as 3 banded (win*C, wout*O) matrices."""
    kh, kw, C, O = w.shape
    out = np.zeros((kh, win * C, wout * O), np.float32)
    for dh in range(kh):
        for ow in range(wout):
            for dw in range(kw):
                iw = stride * ow + dw - 1
                if 0 <= iw < win:
                    out[dh, iw * C:(iw + 1) * C, ow * O:(ow + 1) * O] += w[dh, dw]
    return out


def _band_upconv(w, win):
    """2x nearest W-upsample followed by 3x3 conv (pad=1) as banded matrices."""
    kh, kw, C, O = w.shape
    wout = 2 * win
    out = np.zeros((kh, win * C, wout * O), np.float32)
    for dh in range(kh):
        for ow in range(wout):
            for dw in range(kw):
                iwu = ow + dw - 1
                if 0 <= iwu < 2 * win:
                    iw = iwu // 2
                    out[dh, iw * C:(iw + 1) * C, ow * O:(ow + 1) * O] += w[dh, dw]
    return out


def _band_1x1(ws, win, wout, stride):
    C, O = ws.shape
    out = np.zeros((win * C, wout * O), np.float32)
    for ow in range(wout):
        iw = stride * ow
        out[iw * C:(iw + 1) * C, ow * O:(ow + 1) * O] = ws
    return out


def _sel(hout, hin, stride=1, upsample=False, batch=1):
    """Row-selection matrices S_dh (encode H-padding / stride / upsample)."""
    S = np.zeros((3, hout, hin), np.float32)
    for dh in range(3):
        for oh in range(hout):
            if upsample:
                ihu = oh + dh - 1
                if not (0 <= ihu < 2 * hin):
                    continue
                ih = ihu // 2
            else:
                ih = stride * oh + dh - 1
                if not (0 <= ih < hin):
                    continue
            S[dh, oh, ih] = 1.0
    eye = np.eye(batch, dtype=np.float32)
    return np.stack([np.kron(eye, S[dh]) for dh in range(3)])


def _tile_bias(b, wout):
    return np.tile(np.asarray(b, np.float32), wout)[None, :]


def prepare_pallas_params(p, *, nc, imsize, md, batch):
    H0 = imsize // 4
    assert H0 & (H0 - 1) == 0, "decoder base spatial must be a power of two"
    g = lambda k: np.asarray(p[k], np.float32)
    D = imsize * imsize
    blk = H0 * 64

    w_conv = np.stack([
        _band_conv(g("b1c1_w"), imsize, imsize, 1),
        _band_conv(g("b1c2_w"), imsize, imsize, 1),
        _band_conv(g("b2c1_w"), imsize, imsize // 2, 2),
        _band_conv(g("b2c2_w"), imsize // 2, imsize // 2, 1),
        _band_conv(g("b3c1_w"), imsize // 2, H0, 2),
        _band_conv(g("b3c2_w"), H0, H0, 1),
        _band_upconv(g("d1_w"), H0),
        _band_upconv(g("d2_w"), imsize // 2),
    ])                                                      # (8, 3, 256, 256)
    w_sc = np.stack([
        _band_1x1(g("b2sc_w"), imsize, imsize // 2, 2),
        _band_1x1(g("b3sc_w"), imsize // 2, H0, 2),
    ])                                                      # (2, 256, 256)
    bias = np.stack([
        _tile_bias(g("stem_b"), imsize),
        _tile_bias(g("b1c1_b"), imsize),
        _tile_bias(g("b1c2_b"), imsize),
        _tile_bias(g("b2c1_b"), imsize // 2),
        _tile_bias(g("b2c2_b") + g("b2sc_b"), imsize // 2),
        _tile_bias(g("b3c1_b"), H0),
        _tile_bias(g("b3c2_b") + g("b3sc_b"), H0),
        g("encfc_b")[None, :],
        _tile_bias(g("d1_b"), imsize // 2),
        _tile_bias(g("d2_b"), imsize),
    ])                                                      # (10, 1, 256)

    # global-mean-pool folded into the encoder fc weight
    w_encfc = np.concatenate([g("encfc_w")] * H0, axis=0) / float(H0 * H0)

    # decoder fc: latent slice encoded by zero rows, split per output spatial row
    dec_w, dec_b = g("decfc_w"), g("decfc_b")
    w_decfc = np.zeros((H0, D, blk), np.float32)
    b_decfc = np.zeros((H0, 1, blk), np.float32)
    for h in range(H0):
        w_decfc[h, :md, :] = dec_w[:, h * blk:(h + 1) * blk]
        b_decfc[h, 0, :] = dec_b[h * blk:(h + 1) * blk]

    raw = dict(
        s16=_sel(imsize, imsize, 1, False, batch),
        s8=_sel(imsize // 2, imsize // 2, 1, False, batch),
        s4=_sel(H0, H0, 1, False, batch),
        sd16=_sel(imsize // 2, imsize, 2, False, batch),
        sd8=_sel(H0, imsize // 2, 2, False, batch),
        su4=_sel(2 * H0, H0, 1, True, batch),
        su8=_sel(imsize, imsize // 2, 1, True, batch),
        w_stem=_band_conv(g("stem_w"), imsize, imsize, 1),
        w_conv=w_conv,
        w_sc=w_sc,
        w_encfc=w_encfc,
        w_decfc=w_decfc,
        w_d3=_band_conv(g("d3_w"), imsize, imsize, 1),
        bias=bias,
        b_decfc=b_decfc,
        b_d3=_tile_bias(g("d3_b"), imsize),
        p_rows=np.kron(np.eye(batch, dtype=np.float32), np.ones((1, H0), np.float32)),
        e_rep=np.kron(np.eye(batch, dtype=np.float32), np.ones((H0, 1), np.float32)),
    )
    bf16_keys = {"s16", "s8", "s4", "sd16", "sd8", "su4", "su8", "w_stem",
                 "w_conv", "w_sc", "w_encfc", "w_decfc", "w_d3", "p_rows", "e_rep"}
    return {k: jnp.asarray(v, jnp.bfloat16 if k in bf16_keys else jnp.float32)
            for k, v in raw.items()}


# ----------------------------------------------------------------------------
if __name__ == "__main__":
    nc, imsize, md, batch = 4, 16, 8, 2

    key = jax.random.PRNGKey(0)
    k_x, k_p = jax.random.split(key)
    x = jax.random.normal(k_x, (batch, nc, imsize, imsize), jnp.float32)

    params = init_params(k_p, nc, imsize, md)
    prep = prepare_pallas_params(params, nc=nc, imsize=imsize, md=md, batch=batch)

    fwd = jax.jit(functools.partial(manifold_forward, nc=nc, imsize=imsize, md=md))
    loss, loss_emb, resx = fwd(x, prep)
    jax.block_until_ready((loss, loss_emb, resx))

    assert resx.shape == (batch, nc, imsize, imsize)
    assert loss.shape == () and loss_emb.shape == ()
    print("KERNEL_OK")
</pallas_src>

<mosaic_0001>
module attributes {stable_mosaic.version = 11 : i64} {
  func.func @_forward_kernel(%arg0: memref<32x64xf32, #tpu.memory_space<vmem>>, %arg1: memref<3x32x32xbf16, #tpu.memory_space<vmem>>, %arg2: memref<3x16x16xbf16, #tpu.memory_space<vmem>>, %arg3: memref<3x8x8xbf16, #tpu.memory_space<vmem>>, %arg4: memref<3x16x32xbf16, #tpu.memory_space<vmem>>, %arg5: memref<3x8x16xbf16, #tpu.memory_space<vmem>>, %arg6: memref<3x16x8xbf16, #tpu.memory_space<vmem>>, %arg7: memref<3x32x16xbf16, #tpu.memory_space<vmem>>, %arg8: memref<3x64x256xbf16, #tpu.memory_space<vmem>>, %arg9: memref<8x3x256x256xbf16, #tpu.memory_space<vmem>>, %arg10: memref<2x256x256xbf16, #tpu.memory_space<vmem>>, %arg11: memref<256x256xbf16, #tpu.memory_space<vmem>>, %arg12: memref<4x256x256xbf16, #tpu.memory_space<vmem>>, %arg13: memref<3x256x64xbf16, #tpu.memory_space<vmem>>, %arg14: memref<10x1x256xf32, #tpu.memory_space<vmem>>, %arg15: memref<4x1x256xf32, #tpu.memory_space<vmem>>, %arg16: memref<1x64xf32, #tpu.memory_space<vmem>>, %arg17: memref<2x8xbf16, #tpu.memory_space<vmem>>, %arg18: memref<8x2xbf16, #tpu.memory_space<vmem>>, %arg19: memref<32x64xf32, #tpu.memory_space<vmem>>, %arg20: memref<1x1xf32, #tpu.memory_space<smem>>, %arg21: memref<1x1xf32, #tpu.memory_space<smem>>) attributes {dimension_semantics = [], scalar_prefetch = 0 : i64, scratch_operands = 0 : i64, tpu.core_type = #tpu.core_type<tc>} {
    %c0 = arith.constant 0 : index
    %c0_0 = arith.constant 0 : index
    %0 = vector.load %arg0[%c0, %c0_0] : memref<32x64xf32, #tpu.memory_space<vmem>>, vector<32x64xf32>
    %1 = arith.truncf %0 : vector<32x64xf32> to vector<32x64xbf16>
    %c0_1 = arith.constant 0 : index
    %c0_2 = arith.constant 0 : index
    %c0_3 = arith.constant 0 : index
    %2 = vector.load %arg14[%c0_1, %c0_2, %c0_3] : memref<10x1x256xf32, #tpu.memory_space<vmem>>, vector<1x1x256xf32>
    %3 = vector.shape_cast %2 : vector<1x1x256xf32> to vector<1x256xf32>
    %c0_4 = arith.constant 0 : index
    %c0_5 = arith.constant 0 : index
    %c0_6 = arith.constant 0 : index
    %4 = vector.load %arg1[%c0_4, %c0_5, %c0_6] : memref<3x32x32xbf16, #tpu.memory_space<vmem>>, vector<1x32x32xbf16>
    %5 = vector.shape_cast %4 : vector<1x32x32xbf16> to vector<32x32xbf16>
    %cst = arith.constant dense<0.000000e+00> : vector<32x64xf32>
    %6 = tpu.matmul %5, %1, %cst {dimension_numbers = #tpu.dot_dimension_numbers<[1], [0], [0], [1], [0, 0, 1, 1], [], []>} : vector<32x32xbf16>, vector<32x64xbf16>, vector<32x64xf32> -> vector<32x64xf32>
    %7 = arith.truncf %6 : vector<32x64xf32> to vector<32x64xbf16>
    %c0_7 = arith.constant 0 : index
    %c0_8 = arith.constant 0 : index
    %c0_9 = arith.constant 0 : index
    %8 = vector.load %arg8[%c0_7, %c0_8, %c0_9] : memref<3x64x256xbf16, #tpu.memory_space<vmem>>, vector<1x64x256xbf16>
    %9 = vector.shape_cast %8 : vector<1x64x256xbf16> to vector<64x256xbf16>
    %cst_10 = arith.constant dense<0.000000e+00> : vector<32x256xf32>
    %10 = tpu.matmul %7, %9, %cst_10 {dimension_numbers = #tpu.dot_dimension_numbers<[1], [0], [0], [1], [0, 0, 1, 1], [], []>} : vector<32x64xbf16>, vector<64x256xbf16>, vector<32x256xf32> -> vector<32x256xf32>
    %c1 = arith.constant 1 : index
    %c0_11 = arith.constant 0 : index
    %c0_12 = arith.constant 0 : index
    %11 = vector.load %arg8[%c1, %c0_11, %c0_12] : memref<3x64x256xbf16, #tpu.memory_space<vmem>>, vector<1x64x256xbf16>
    %12 = vector.shape_cast %11 : vector<1x64x256xbf16> to vector<64x256xbf16>
    %cst_13 = arith.constant dense<0.000000e+00> : vector<32x256xf32>
    %13 = tpu.matmul %1, %12, %cst_13 {dimension_numbers = #tpu.dot_dimension_numbers<[1], [0], [0], [1], [0, 0, 1, 1], [], []>} : vector<32x64xbf16>, vector<64x256xbf16>, vector<32x256xf32> -> vector<32x256xf32>
    %14 = arith.addf %10, %13 : vector<32x256xf32>
    %c2 = arith.constant 2 : index
    %c0_14 = arith.constant 0 : index
    %c0_15 = arith.constant 0 : index
    %15 = vector.load %arg1[%c2, %c0_14, %c0_15] : memref<3x32x32xbf16, #tpu.memory_space<vmem>>, vector<1x32x32xbf16>
    %16 = vector.shape_cast %15 : vector<1x32x32xbf16> to vector<32x32xbf16>
    %cst_16 = arith.constant dense<0.000000e+00> : vector<32x64xf32>
    %17 = tpu.matmul %16, %1, %cst_16 {dimension_numbers = #tpu.dot_dimension_numbers<[1], [0], [0], [1], [0, 0, 1, 1], [], []>} : vector<32x32xbf16>, vector<32x64xbf16>, vector<32x64xf32> -> vector<32x64xf32>
    %18 = arith.truncf %17 : vector<32x64xf32> to vector<32x64xbf16>
    %c2_17 = arith.constant 2 : index
    %c0_18 = arith.constant 0 : index
    %c0_19 = arith.constant 0 : index
    %19 = vector.load %arg8[%c2_17, %c0_18, %c0_19] : memref<3x64x256xbf16, #tpu.memory_space<vmem>>, vector<1x64x256xbf16>
    %20 = vector.shape_cast %19 : vector<1x64x256xbf16> to vector<64x256xbf16>
    %cst_20 = arith.constant dense<0.000000e+00> : vector<32x256xf32>
    %21 = tpu.matmul %18, %20, %cst_20 {dimension_numbers = #tpu.dot_dimension_numbers<[1], [0], [0], [1], [0, 0, 1, 1], [], []>} : vector<32x64xbf16>, vector<64x256xbf16>, vector<32x256xf32> -> vector<32x256xf32>
    %22 = arith.addf %14, %21 : vector<32x256xf32>
    %23 = vector.broadcast %3 : vector<1x256xf32> to vector<32x256xf32>
    %24 = arith.addf %22, %23 : vector<32x256xf32>
    %cst_21 = arith.constant 0.000000e+00 : f32
    %25 = vector.broadcast %cst_21 : f32 to vector<32x256xf32>
    %26 = arith.maximumf %24, %25 : vector<32x256xf32>
    %27 = arith.truncf %26 : vector<32x256xf32> to vector<32x256xbf16>
    %c1_22 = arith.constant 1 : index
    %c0_23 = arith.constant 0 : index
    %c0_24 = arith.constant 0 : index
    %28 = vector.load %arg14[%c1_22, %c0_23, %c0_24] : memref<10x1x256xf32, #tpu.memory_space<vmem>>, vector<1x1x256xf32>
    %29 = vector.shape_cast %28 : vector<1x1x256xf32> to vector<1x256xf32>
    %c0_25 = arith.constant 0 : index
    %c0_26 = arith.constant 0 : index
    %c0_27 = arith.constant 0 : index
    %30 = vector.load %arg1[%c0_25, %c0_26, %c0_27] : memref<3x32x32xbf16, #tpu.memory_space<vmem>>, vector<1x32x32xbf16>
    %31 = vector.shape_cast %30 : vector<1x32x32xbf16> to vector<32x32xbf16>
    %cst_28 = arith.constant dense<0.000000e+00> : vector<32x256xf32>
    %32 = tpu.matmul %31, %27, %cst_28 {dimension_numbers = #tpu.dot_dimension_numbers<[1], [0], [0], [1], [0, 0, 1, 1], [], []>} : vector<32x32xbf16>, vector<32x256xbf16>, vector<32x256xf32> -> vector<32x256xf32>
    %33 = arith.truncf %32 : vector<32x256xf32> to vector<32x256xbf16>
    %c0_29 = arith.constant 0 : index
    %c0_30 = arith.constant 0 : index
    %c0_31 = arith.constant 0 : index
    %c0_32 = arith.constant 0 : index
    %34 = vector.load %arg9[%c0_29, %c0_30, %c0_31, %c0_32] : memref<8x3x256x256xbf16, #tpu.memory_space<vmem>>, vector<1x1x256x256xbf16>
    %35 = vector.shape_cast %34 : vector<1x1x256x256xbf16> to vector<256x256xbf16>
    %cst_33 = arith.constant dense<0.000000e+00> : vector<32x256xf32>
    %36 = tpu.matmul %33, %35, %cst_33 {dimension_numbers = #tpu.dot_dimension_numbers<[1], [0], [0], [1], [0, 0, 1, 1], [], []>} : vector<32x256xbf16>, vector<256x256xbf16>, vector<32x256xf32> -> vector<32x256xf32>
    %c0_34 = arith.constant 0 : index
    %c1_35 = arith.constant 1 : index
    %c0_36 = arith.constant 0 : index
    %c0_37 = arith.constant 0 : index
    %37 = vector.load %arg9[%c0_34, %c1_35, %c0_36, %c0_37] : memref<8x3x256x256xbf16, #tpu.memory_space<vmem>>, vector<1x1x256x256xbf16>
    %38 = vector.shape_cast %37 : vector<1x1x256x256xbf16> to vector<256x256xbf16>
    %cst_38 = arith.constant dense<0.000000e+00> : vector<32x256xf32>
    %39 = tpu.matmul %27, %38, %cst_38 {dimension_numbers = #tpu.dot_dimension_numbers<[1], [0], [0], [1], [0, 0, 1, 1], [], []>} : vector<32x256xbf16>, vector<256x256xbf16>, vector<32x256xf32> -> vector<32x256xf32>
    %40 = arith.addf %36, %39 : vector<32x256xf32>
    %c2_39 = arith.constant 2 : index
    %c0_40 = arith.constant 0 : index
    %c0_41 = arith.constant 0 : index
    %41 = vector.load %arg1[%c2_39, %c0_40, %c0_41] : memref<3x32x32xbf16, #tpu.memory_space<vmem>>, vector<1x32x32xbf16>
    %42 = vector.shape_cast %41 : vector<1x32x32xbf16> to vector<32x32xbf16>
    %cst_42 = arith.constant dense<0.000000e+00> : vector<32x256xf32>
    %43 = tpu.matmul %42, %27, %cst_42 {dimension_numbers = #tpu.dot_dimension_numbers<[1], [0], [0], [1], [0, 0, 1, 1], [], []>} : vector<32x32xbf16>, vector<32x256xbf16>, vector<32x256xf32> -> vector<32x256xf32>
    %44 = arith.truncf %43 : vector<32x256xf32> to vector<32x256xbf16>
    %c0_43 = arith.constant 0 : index
    %c2_44 = arith.constant 2 : index
    %c0_45 = arith.constant 0 : index
    %c0_46 = arith.constant 0 : index
    %45 = vector.load %arg9[%c0_43, %c2_44, %c0_45, %c0_46] : memref<8x3x256x256xbf16, #tpu.memory_space<vmem>>, vector<1x1x256x256xbf16>
    %46 = vector.shape_cast %45 : vector<1x1x256x256xbf16> to vector<256x256xbf16>
    %cst_47 = arith.constant dense<0.000000e+00> : vector<32x256xf32>
    %47 = tpu.matmul %44, %46, %cst_47 {dimension_numbers = #tpu.dot_dimension_numbers<[1], [0], [0], [1], [0, 0, 1, 1], [], []>} : vector<32x256xbf16>, vector<256x256xbf16>, vector<32x256xf32> -> vector<32x256xf32>
    %48 = arith.addf %40, %47 : vector<32x256xf32>
    %49 = vector.broadcast %29 : vector<1x256xf32> to vector<32x256xf32>
    %50 = arith.addf %48, %49 : vector<32x256xf32>
    %cst_48 = arith.constant 0.000000e+00 : f32
    %51 = vector.broadcast %cst_48 : f32 to vector<32x256xf32>
    %52 = arith.maximumf %50, %51 : vector<32x256xf32>
    %53 = arith.truncf %52 : vector<32x256xf32> to vector<32x256xbf16>
    %c2_49 = arith.constant 2 : index
    %c0_50 = arith.constant 0 : index
    %c0_51 = arith.constant 0 : index
    %54 = vector.load %arg14[%c2_49, %c0_50, %c0_51] : memref<10x1x256xf32, #tpu.memory_space<vmem>>, vector<1x1x256xf32>
    %55 = vector.shape_cast %54 : vector<1x1x256xf32> to vector<1x256xf32>
    %c0_52 = arith.constant 0 : index
    %c0_53 = arith.constant 0 : index
    %c0_54 = arith.constant 0 : index
    %56 = vector.load %arg1[%c0_52, %c0_53, %c0_54] : memref<3x32x32xbf16, #tpu.memory_space<vmem>>, vector<1x32x32xbf16>
    %57 = vector.shape_cast %56 : vector<1x32x32xbf16> to vector<32x32xbf16>
    %cst_55 = arith.constant dense<0.000000e+00> : vector<32x256xf32>
    %58 = tpu.matmul %57, %53, %cst_55 {dimension_numbers = #tpu.dot_dimension_numbers<[1], [0], [0], [1], [0, 0, 1, 1], [], []>} : vector<32x32xbf16>, vector<32x256xbf16>, vector<32x256xf32> -> vector<32x256xf32>
    %59 = arith.truncf %58 : vector<32x256xf32> to vector<32x256xbf16>
    %c1_56 = arith.constant 1 : index
    %c0_57 = arith.constant 0 : index
    %c0_58 = arith.constant 0 : index
    %c0_59 = arith.constant 0 : index
    %60 = vector.load %arg9[%c1_56, %c0_57, %c0_58, %c0_59] : memref<8x3x256x256xbf16, #tpu.memory_space<vmem>>, vector<1x1x256x256xbf16>
    %61 = vector.shape_cast %60 : vector<1x1x256x256xbf16> to vector<256x256xbf16>
    %cst_60 = arith.constant dense<0.000000e+00> : vector<32x256xf32>
    %62 = tpu.matmul %59, %61, %cst_60 {dimension_numbers = #tpu.dot_dimension_numbers<[1], [0], [0], [1], [0, 0, 1, 1], [], []>} : vector<32x256xbf16>, vector<256x256xbf16>, vector<32x256xf32> -> vector<32x256xf32>
    %c1_61 = arith.constant 1 : index
    %c1_62 = arith.constant 1 : index
    %c0_63 = arith.constant 0 : index
    %c0_64 = arith.constant 0 : index
    %63 = vector.load %arg9[%c1_61, %c1_62, %c0_63, %c0_64] : memref<8x3x256x256xbf16, #tpu.memory_space<vmem>>, vector<1x1x256x256xbf16>
    %64 = vector.shape_cast %63 : vector<1x1x256x256xbf16> to vector<256x256xbf16>
    %cst_65 = arith.constant dense<0.000000e+00> : vector<32x256xf32>
    %65 = tpu.matmul %53, %64, %cst_65 {dimension_numbers = #tpu.dot_dimension_numbers<[1], [0], [0], [1], [0, 0, 1, 1], [], []>} : vector<32x256xbf16>, vector<256x256xbf16>, vector<32x256xf32> -> vector<32x256xf32>
    %66 = arith.addf %62, %65 : vector<32x256xf32>
    %c2_66 = arith.constant 2 : index
    %c0_67 = arith.constant 0 : index
    %c0_68 = arith.constant 0 : index
    %67 = vector.load %arg1[%c2_66, %c0_67, %c0_68] : memref<3x32x32xbf16, #tpu.memory_space<vmem>>, vector<1x32x32xbf16>
    %68 = vector.shape_cast %67 : vector<1x32x32xbf16> to vector<32x32xbf16>
    %cst_69 = arith.constant dense<0.000000e+00> : vector<32x256xf32>
    %69 = tpu.matmul %68, %53, %cst_69 {dimension_numbers = #tpu.dot_dimension_numbers<[1], [0], [0], [1], [0, 0, 1, 1], [], []>} : vector<32x32xbf16>, vector<32x256xbf16>, vector<32x256xf32> -> vector<32x256xf32>
    %70 = arith.truncf %69 : vector<32x256xf32> to vector<32x256xbf16>
    %c1_70 = arith.constant 1 : index
    %c2_71 = arith.constant 2 : index
    %c0_72 = arith.constant 0 : index
    %c0_73 = arith.constant 0 : index
    %71 = vector.load %arg9[%c1_70, %c2_71, %c0_72, %c0_73] : memref<8x3x256x256xbf16, #tpu.memory_space<vmem>>, vector<1x1x256x256xbf16>
    %72 = vector.shape_cast %71 : vector<1x1x256x256xbf16> to vector<256x256xbf16>
    %cst_74 = arith.constant dense<0.000000e+00> : vector<32x256xf32>
    %73 = tpu.matmul %70, %72, %cst_74 {dimension_numbers = #tpu.dot_dimension_numbers<[1], [0], [0], [1], [0, 0, 1, 1], [], []>} : vector<32x256xbf16>, vector<256x256xbf16>, vector<32x256xf32> -> vector<32x256xf32>
    %74 = arith.addf %66, %73 : vector<32x256xf32>
    %75 = vector.broadcast %55 : vector<1x256xf32> to vector<32x256xf32>
    %76 = arith.addf %74, %75 : vector<32x256xf32>
    %77 = arith.addf %76, %26 : vector<32x256xf32>
    %cst_75 = arith.constant 0.000000e+00 : f32
    %78 = vector.broadcast %cst_75 : f32 to vector<32x256xf32>
    %79 = arith.maximumf %77, %78 : vector<32x256xf32>
    %80 = arith.truncf %79 : vector<32x256xf32> to vector<32x256xbf16>
    %c3 = arith.constant 3 : index
    %c0_76 = arith.constant 0 : index
    %c0_77 = arith.constant 0 : index
    %81 = vector.load %arg14[%c3, %c0_76, %c0_77] : memref<10x1x256xf32, #tpu.memory_space<vmem>>, vector<1x1x256xf32>
    %82 = vector.shape_cast %81 : vector<1x1x256xf32> to vector<1x256xf32>
    %c0_78 = arith.constant 0 : index
    %c0_79 = arith.constant 0 : index
    %c0_80 = arith.constant 0 : index
    %83 = vector.load %arg4[%c0_78, %c0_79, %c0_80] : memref<3x16x32xbf16, #tpu.memory_space<vmem>>, vector<1x16x32xbf16>
    %84 = vector.shape_cast %83 : vector<1x16x32xbf16> to vector<16x32xbf16>
    %cst_81 = arith.constant dense<0.000000e+00> : vector<16x256xf32>
    %85 = tpu.matmul %84, %80, %cst_81 {dimension_numbers = #tpu.dot_dimension_numbers<[1], [0], [0], [1], [0, 0, 1, 1], [], []>} : vector<16x32xbf16>, vector<32x256xbf16>, vector<16x256xf32> -> vector<16x256xf32>
    %86 = arith.truncf %85 : vector<16x256xf32> to vector<16x256xbf16>
    %c2_82 = arith.constant 2 : index
    %c0_83 = arith.constant 0 : index
    %c0_84 = arith.constant 0 : index
    %c0_85 = arith.constant 0 : index
    %87 = vector.load %arg9[%c2_82, %c0_83, %c0_84, %c0_85] : memref<8x3x256x256xbf16, #tpu.memory_space<vmem>>, vector<1x1x256x256xbf16>
    %88 = vector.shape_cast %87 : vector<1x1x256x256xbf16> to vector<256x256xbf16>
    %cst_86 = arith.constant dense<0.000000e+00> : vector<16x256xf32>
    %89 = tpu.matmul %86, %88, %cst_86 {dimension_numbers = #tpu.dot_dimension_numbers<[1], [0], [0], [1], [0, 0, 1, 1], [], []>} : vector<16x256xbf16>, vector<256x256xbf16>, vector<16x256xf32> -> vector<16x256xf32>
    %c1_87 = arith.constant 1 : index
    %c0_88 = arith.constant 0 : index
    %c0_89 = arith.constant 0 : index
    %90 = vector.load %arg4[%c1_87, %c0_88, %c0_89] : memref<3x16x32xbf16, #tpu.memory_space<vmem>>, vector<1x16x32xbf16>
    %91 = vector.shape_cast %90 : vector<1x16x32xbf16> to vector<16x32xbf16>
    %cst_90 = arith.constant dense<0.000000e+00> : vector<16x256xf32>
    %92 = tpu.matmul %91, %80, %cst_90 {dimension_numbers = #tpu.dot_dimension_numbers<[1], [0], [0], [1], [0, 0, 1, 1], [], []>} : vector<16x32xbf16>, vector<32x256xbf16>, vector<16x256xf32> -> vector<16x256xf32>
    %93 = arith.truncf %92 : vector<16x256xf32> to vector<16x256xbf16>
    %c2_91 = arith.constant 2 : index
    %c1_92 = arith.constant 1 : index
    %c0_93 = arith.constant 0 : index
    %c0_94 = arith.constant 0 : index
    %94 = vector.load %arg9[%c2_91, %c1_92, %c0_93, %c0_94] : memref<8x3x256x256xbf16, #tpu.memory_space<vmem>>, vector<1x1x256x256xbf16>
    %95 = vector.shape_cast %94 : vector<1x1x256x256xbf16> to vector<256x256xbf16>
    %cst_95 = arith.constant dense<0.000000e+00> : vector<16x256xf32>
    %96 = tpu.matmul %93, %95, %cst_95 {dimension_numbers = #tpu.dot_dimension_numbers<[1], [0], [0], [1], [0, 0, 1, 1], [], []>} : vector<16x256xbf16>, vector<256x256xbf16>, vector<16x256xf32> -> vector<16x256xf32>
    %97 = arith.addf %89, %96 : vector<16x256xf32>
    %c2_96 = arith.constant 2 : index
    %c0_97 = arith.constant 0 : index
    %c0_98 = arith.constant 0 : index
    %98 = vector.load %arg4[%c2_96, %c0_97, %c0_98] : memref<3x16x32xbf16, #tpu.memory_space<vmem>>, vector<1x16x32xbf16>
    %99 = vector.shape_cast %98 : vector<1x16x32xbf16> to vector<16x32xbf16>
    %cst_99 = arith.constant dense<0.000000e+00> : vector<16x256xf32>
    %100 = tpu.matmul %99, %80, %cst_99 {dimension_numbers = #tpu.dot_dimension_numbers<[1], [0], [0], [1], [0, 0, 1, 1], [], []>} : vector<16x32xbf16>, vector<32x256xbf16>, vector<16x256xf32> -> vector<16x256xf32>
    %101 = arith.truncf %100 : vector<16x256xf32> to vector<16x256xbf16>
    %c2_100 = arith.constant 2 : index
    %c2_101 = arith.constant 2 : index
    %c0_102 = arith.constant 0 : index
    %c0_103 = arith.constant 0 : index
    %102 = vector.load %arg9[%c2_100, %c2_101, %c0_102, %c0_103] : memref<8x3x256x256xbf16, #tpu.memory_space<vmem>>, vector<1x1x256x256xbf16>
    %103 = vector.shape_cast %102 : vector<1x1x256x256xbf16> to vector<256x256xbf16>
    %cst_104 = arith.constant dense<0.000000e+00> : vector<16x256xf32>
    %104 = tpu.matmul %101, %103, %cst_104 {dimension_numbers = #tpu.dot_dimension_numbers<[1], [0], [0], [1], [0, 0, 1, 1], [], []>} : vector<16x256xbf16>, vector<256x256xbf16>, vector<16x256xf32> -> vector<16x256xf32>
    %105 = arith.addf %97, %104 : vector<16x256xf32>
    %106 = vector.broadcast %82 : vector<1x256xf32> to vector<16x256xf32>
    %107 = arith.addf %105, %106 : vector<16x256xf32>
    %cst_105 = arith.constant 0.000000e+00 : f32
    %108 = vector.broadcast %cst_105 : f32 to vector<16x256xf32>
    %109 = arith.maximumf %107, %108 : vector<16x256xf32>
    %c1_106 = arith.constant 1 : index
    %c0_107 = arith.constant 0 : index
    %c0_108 = arith.constant 0 : index
    %110 = vector.load %arg4[%c1_106, %c0_107, %c0_108] : memref<3x16x32xbf16, #tpu.memory_space<vmem>>, vector<1x16x32xbf16>
    %111 = vector.shape_cast %110 : vector<1x16x32xbf16> to vector<16x32xbf16>
    %cst_109 = arith.constant dense<0.000000e+00> : vector<16x256xf32>
    %112 = tpu.matmul %111, %80, %cst_109 {dimension_numbers = #tpu.dot_dimension_numbers<[1], [0], [0], [1], [0, 0, 1, 1], [], []>} : vector<16x32xbf16>, vector<32x256xbf16>, vector<16x256xf32> -> vector<16x256xf32>
    %113 = arith.truncf %112 : vector<16x256xf32> to vector<16x256xbf16>
    %c0_110 = arith.constant 0 : index
    %c0_111 = arith.constant 0 : index
    %c0_112 = arith.constant 0 : index
    %114 = vector.load %arg10[%c0_110, %c0_111, %c0_112] : memref<2x256x256xbf16, #tpu.memory_space<vmem>>, vector<1x256x256xbf16>
    %115 = vector.shape_cast %114 : vector<1x256x256xbf16> to vector<256x256xbf16>
    %cst_113 = arith.constant dense<0.000000e+00> : vector<16x256xf32>
    %116 = tpu.matmul %113, %115, %cst_113 {dimension_numbers = #tpu.dot_dimension_numbers<[1], [0], [0], [1], [0, 0, 1, 1], [], []>} : vector<16x256xbf16>, vector<256x256xbf16>, vector<16x256xf32> -> vector<16x256xf32>
    %117 = arith.truncf %109 : vector<16x256xf32> to vector<16x256xbf16>
    %c4 = arith.constant 4 : index
    %c0_114 = arith.constant 0 : index
    %c0_115 = arith.constant 0 : index
    %118 = vector.load %arg14[%c4, %c0_114, %c0_115] : memref<10x1x256xf32, #tpu.memory_space<vmem>>, vector<1x1x256xf32>
    %119 = vector.shape_cast %118 : vector<1x1x256xf32> to vector<1x256xf32>
    %c0_116 = arith.constant 0 : index
    %c0_117 = arith.constant 0 : index
    %c0_118 = arith.constant 0 : index
    %120 = vector.load %arg2[%c0_116, %c0_117, %c0_118] : memref<3x16x16xbf16, #tpu.memory_space<vmem>>, vector<1x16x16xbf16>
    %121 = vector.shape_cast %120 : vector<1x16x16xbf16> to vector<16x16xbf16>
    %cst_119 = arith.constant dense<0.000000e+00> : vector<16x256xf32>
    %122 = tpu.matmul %121, %117, %cst_119 {dimension_numbers = #tpu.dot_dimension_numbers<[1], [0], [0], [1], [0, 0, 1, 1], [], []>} : vector<16x16xbf16>, vector<16x256xbf16>, vector<16x256xf32> -> vector<16x256xf32>
    %123 = arith.truncf %122 : vector<16x256xf32> to vector<16x256xbf16>
    %c3_120 = arith.constant 3 : index
    %c0_121 = arith.constant 0 : index
    %c0_122 = arith.constant 0 : index
    %c0_123 = arith.constant 0 : index
    %124 = vector.load %arg9[%c3_120, %c0_121, %c0_122, %c0_123] : memref<8x3x256x256xbf16, #tpu.memory_space<vmem>>, vector<1x1x256x256xbf16>
    %125 = vector.shape_cast %124 : vector<1x1x256x256xbf16> to vector<256x256xbf16>
    %cst_124 = arith.constant dense<0.000000e+00> : vector<16x256xf32>
    %126 = tpu.matmul %123, %125, %cst_124 {dimension_numbers = #tpu.dot_dimension_numbers<[1], [0], [0], [1], [0, 0, 1, 1], [], []>} : vector<16x256xbf16>, vector<256x256xbf16>, vector<16x256xf32> -> vector<16x256xf32>
    %c3_125 = arith.constant 3 : index
    %c1_126 = arith.constant 1 : index
    %c0_127 = arith.constant 0 : index
    %c0_128 = arith.constant 0 : index
    %127 = vector.load %arg9[%c3_125, %c1_126, %c0_127, %c0_128] : memref<8x3x256x256xbf16, #tpu.memory_space<vmem>>, vector<1x1x256x256xbf16>
    %128 = vector.shape_cast %127 : vector<1x1x256x256xbf16> to vector<256x256xbf16>
    %cst_129 = arith.constant dense<0.000000e+00> : vector<16x256xf32>
    %129 = tpu.matmul %117, %128, %cst_129 {dimension_numbers = #tpu.dot_dimension_numbers<[1], [0], [0], [1], [0, 0, 1, 1], [], []>} : vector<16x256xbf16>, vector<256x256xbf16>, vector<16x256xf32> -> vector<16x256xf32>
    %130 = arith.addf %126, %129 : vector<16x256xf32>
    %c2_130 = arith.constant 2 : index
    %c0_131 = arith.constant 0 : index
    %c0_132 = arith.constant 0 : index
    %131 = vector.load %arg2[%c2_130, %c0_131, %c0_132] : memref<3x16x16xbf16, #tpu.memory_space<vmem>>, vector<1x16x16xbf16>
    %132 = vector.shape_cast %131 : vector<1x16x16xbf16> to vector<16x16xbf16>
    %cst_133 = arith.constant dense<0.000000e+00> : vector<16x256xf32>
    %133 = tpu.matmul %132, %117, %cst_133 {dimension_numbers = #tpu.dot_dimension_numbers<[1], [0], [0], [1], [0, 0, 1, 1], [], []>} : vector<16x16xbf16>, vector<16x256xbf16>, vector<16x256xf32> -> vector<16x256xf32>
    %134 = arith.truncf %133 : vector<16x256xf32> to vector<16x256xbf16>
    %c3_134 = arith.constant 3 : index
    %c2_135 = arith.constant 2 : index
    %c0_136 = arith.constant 0 : index
    %c0_137 = arith.constant 0 : index
    %135 = vector.load %arg9[%c3_134, %c2_135, %c0_136, %c0_137] : memref<8x3x256x256xbf16, #tpu.memory_space<vmem>>, vector<1x1x256x256xbf16>
    %136 = vector.shape_cast %135 : vector<1x1x256x256xbf16> to vector<256x256xbf16>
    %cst_138 = arith.constant dense<0.000000e+00> : vector<16x256xf32>
    %137 = tpu.matmul %134, %136, %cst_138 {dimension_numbers = #tpu.dot_dimension_numbers<[1], [0], [0], [1], [0, 0, 1, 1], [], []>} : vector<16x256xbf16>, vector<256x256xbf16>, vector<16x256xf32> -> vector<16x256xf32>
    %138 = arith.addf %130, %137 : vector<16x256xf32>
    %139 = vector.broadcast %119 : vector<1x256xf32> to vector<16x256xf32>
    %140 = arith.addf %138, %139 : vector<16x256xf32>
    %141 = arith.addf %140, %116 : vector<16x256xf32>
    %cst_139 = arith.constant 0.000000e+00 : f32
    %142 = vector.broadcast %cst_139 : f32 to vector<16x256xf32>
    %143 = arith.maximumf %141, %142 : vector<16x256xf32>
    %144 = arith.truncf %143 : vector<16x256xf32> to vector<16x256xbf16>
    %c5 = arith.constant 5 : index
    %c0_140 = arith.constant 0 : index
    %c0_141 = arith.constant 0 : index
    %145 = vector.load %arg14[%c5, %c0_140, %c0_141] : memref<10x1x256xf32, #tpu.memory_space<vmem>>, vector<1x1x256xf32>
    %146 = vector.shape_cast %145 : vector<1x1x256xf32> to vector<1x256xf32>
    %c0_142 = arith.constant 0 : index
    %c0_143 = arith.constant 0 : index
    %c0_144 = arith.constant 0 : index
    %147 = vector.load %arg5[%c0_142, %c0_143, %c0_144] : memref<3x8x16xbf16, #tpu.memory_space<vmem>>, vector<1x8x16xbf16>
    %148 = vector.shape_cast %147 : vector<1x8x16xbf16> to vector<8x16xbf16>
    %cst_145 = arith.constant dense<0.000000e+00> : vector<8x256xf32>
    %149 = tpu.matmul %148, %144, %cst_145 {dimension_numbers = #tpu.dot_dimension_numbers<[1], [0], [0], [1], [0, 0, 1, 1], [], []>} : vector<8x16xbf16>, vector<16x256xbf16>, vector<8x256xf32> -> vector<8x256xf32>
    %150 = arith.truncf %149 : vector<8x256xf32> to vector<8x256xbf16>
    %c4_146 = arith.constant 4 : index
    %c0_147 = arith.constant 0 : index
    %c0_148 = arith.constant 0 : index
    %c0_149 = arith.constant 0 : index
    %151 = vector.load %arg9[%c4_146, %c0_147, %c0_148, %c0_149] : memref<8x3x256x256xbf16, #tpu.memory_space<vmem>>, vector<1x1x256x256xbf16>
    %152 = vector.shape_cast %151 : vector<1x1x256x256xbf16> to vector<256x256xbf16>
    %cst_150 = arith.constant dense<0.000000e+00> : vector<8x256xf32>
    %153 = tpu.matmul %150, %152, %cst_150 {dimension_numbers = #tpu.dot_dimension_numbers<[1], [0], [0], [1], [0, 0, 1, 1], [], []>} : vector<8x256xbf16>, vector<256x256xbf16>, vector<8x256xf32> -> vector<8x256xf32>
    %c1_151 = arith.constant 1 : index
    %c0_152 = arith.constant 0 : index
    %c0_153 = arith.constant 0 : index
    %154 = vector.load %arg5[%c1_151, %c0_152, %c0_153] : memref<3x8x16xbf16, #tpu.memory_space<vmem>>, vector<1x8x16xbf16>
    %155 = vector.shape_cast %154 : vector<1x8x16xbf16> to vector<8x16xbf16>
    %cst_154 = arith.constant dense<0.000000e+00> : vector<8x256xf32>
    %156 = tpu.matmul %155, %144, %cst_154 {dimension_numbers = #tpu.dot_dimension_numbers<[1], [0], [0], [1], [0, 0, 1, 1], [], []>} : vector<8x16xbf16>, vector<16x256xbf16>, vector<8x256xf32> -> vector<8x256xf32>
    %157 = arith.truncf %156 : vector<8x256xf32> to vector<8x256xbf16>
    %c4_155 = arith.constant 4 : index
    %c1_156 = arith.constant 1 : index
    %c0_157 = arith.constant 0 : index
    %c0_158 = arith.constant 0 : index
    %158 = vector.load %arg9[%c4_155, %c1_156, %c0_157, %c0_158] : memref<8x3x256x256xbf16, #tpu.memory_space<vmem>>, vector<1x1x256x256xbf16>
    %159 = vector.shape_cast %158 : vector<1x1x256x256xbf16> to vector<256x256xbf16>
    %cst_159 = arith.constant dense<0.000000e+00> : vector<8x256xf32>
    %160 = tpu.matmul %157, %159, %cst_159 {dimension_numbers = #tpu.dot_dimension_numbers<[1], [0], [0], [1], [0, 0, 1, 1], [], []>} : vector<8x256xbf16>, vector<256x256xbf16>, vector<8x256xf32> -> vector<8x256xf32>
    %161 = arith.addf %153, %160 : vector<8x256xf32>
    %c2_160 = arith.constant 2 : index
    %c0_161 = arith.constant 0 : index
    %c0_162 = arith.constant 0 : index
    %162 = vector.load %arg5[%c2_160, %c0_161, %c0_162] : memref<3x8x16xbf16, #tpu.memory_space<vmem>>, vector<1x8x16xbf16>
    %163 = vector.shape_cast %162 : vector<1x8x16xbf16> to vector<8x16xbf16>
    %cst_163 = arith.constant dense<0.000000e+00> : vector<8x256xf32>
    %164 = tpu.matmul %163, %144, %cst_163 {dimension_numbers = #tpu.dot_dimension_numbers<[1], [0], [0], [1], [0, 0, 1, 1], [], []>} : vector<8x16xbf16>, vector<16x256xbf16>, vector<8x256xf32> -> vector<8x256xf32>
    %165 = arith.truncf %164 : vector<8x256xf32> to vector<8x256xbf16>
    %c4_164 = arith.constant 4 : index
    %c2_165 = arith.constant 2 : index
    %c0_166 = arith.constant 0 : index
    %c0_167 = arith.constant 0 : index
    %166 = vector.load %arg9[%c4_164, %c2_165, %c0_166, %c0_167] : memref<8x3x256x256xbf16, #tpu.memory_space<vmem>>, vector<1x1x256x256xbf16>
    %167 = vector.shape_cast %166 : vector<1x1x256x256xbf16> to vector<256x256xbf16>
    %cst_168 = arith.constant dense<0.000000e+00> : vector<8x256xf32>
    %168 = tpu.matmul %165, %167, %cst_168 {dimension_numbers = #tpu.dot_dimension_numbers<[1], [0], [0], [1], [0, 0, 1, 1], [], []>} : vector<8x256xbf16>, vector<256x256xbf16>, vector<8x256xf32> -> vector<8x256xf32>
    %169 = arith.addf %161, %168 : vector<8x256xf32>
    %170 = vector.broadcast %146 : vector<1x256xf32> to vector<8x256xf32>
    %171 = arith.addf %169, %170 : vector<8x256xf32>
    %cst_169 = arith.constant 0.000000e+00 : f32
    %172 = vector.broadcast %cst_169 : f32 to vector<8x256xf32>
    %173 = arith.maximumf %171, %172 : vector<8x256xf32>
    %c1_170 = arith.constant 1 : index
    %c0_171 = arith.constant 0 : index
    %c0_172 = arith.constant 0 : index
    %174 = vector.load %arg5[%c1_170, %c0_171, %c0_172] : memref<3x8x16xbf16, #tpu.memory_space<vmem>>, vector<1x8x16xbf16>
    %175 = vector.shape_cast %174 : vector<1x8x16xbf16> to vector<8x16xbf16>
    %cst_173 = arith.constant dense<0.000000e+00> : vector<8x256xf32>
    %176 = tpu.matmul %175, %144, %cst_173 {dimension_numbers = #tpu.dot_dimension_numbers<[1], [0], [0], [1], [0, 0, 1, 1], [], []>} : vector<8x16xbf16>, vector<16x256xbf16>, vector<8x256xf32> -> vector<8x256xf32>
    %177 = arith.truncf %176 : vector<8x256xf32> to vector<8x256xbf16>
    %c1_174 = arith.constant 1 : index
    %c0_175 = arith.constant 0 : index
    %c0_176 = arith.constant 0 : index
    %178 = vector.load %arg10[%c1_174, %c0_175, %c0_176] : memref<2x256x256xbf16, #tpu.memory_space<vmem>>, vector<1x256x256xbf16>
    %179 = vector.shape_cast %178 : vector<1x256x256xbf16> to vector<256x256xbf16>
    %cst_177 = arith.constant dense<0.000000e+00> : vector<8x256xf32>
    %180 = tpu.matmul %177, %179, %cst_177 {dimension_numbers = #tpu.dot_dimension_numbers<[1], [0], [0], [1], [0, 0, 1, 1], [], []>} : vector<8x256xbf16>, vector<256x256xbf16>, vector<8x256xf32> -> vector<8x256xf32>
    %181 = arith.truncf %173 : vector<8x256xf32> to vector<8x256xbf16>
    %c6 = arith.constant 6 : index
    %c0_178 = arith.constant 0 : index
    %c0_179 = arith.constant 0 : index
    %182 = vector.load %arg14[%c6, %c0_178, %c0_179] : memref<10x1x256xf32, #tpu.memory_space<vmem>>, vector<1x1x256xf32>
    %183 = vector.shape_cast %182 : vector<1x1x256xf32> to vector<1x256xf32>
    %c0_180 = arith.constant 0 : index
    %c0_181 = arith.constant 0 : index
    %c0_182 = arith.constant 0 : index
    %184 = vector.load %arg3[%c0_180, %c0_181, %c0_182] : memref<3x8x8xbf16, #tpu.memory_space<vmem>>, vector<1x8x8xbf16>
    %185 = vector.shape_cast %184 : vector<1x8x8xbf16> to vector<8x8xbf16>
    %cst_183 = arith.constant dense<0.000000e+00> : vector<8x256xf32>
    %186 = tpu.matmul %185, %181, %cst_183 {dimension_numbers = #tpu.dot_dimension_numbers<[1], [0], [0], [1], [0, 0, 1, 1], [], []>} : vector<8x8xbf16>, vector<8x256xbf16>, vector<8x256xf32> -> vector<8x256xf32>
    %187 = arith.truncf %186 : vector<8x256xf32> to vector<8x256xbf16>
    %c5_184 = arith.constant 5 : index
    %c0_185 = arith.constant 0 : index
    %c0_186 = arith.constant 0 : index
    %c0_187 = arith.constant 0 : index
    %188 = vector.load %arg9[%c5_184, %c0_185, %c0_186, %c0_187] : memref<8x3x256x256xbf16, #tpu.memory_space<vmem>>, vector<1x1x256x256xbf16>
    %189 = vector.shape_cast %188 : vector<1x1x256x256xbf16> to vector<256x256xbf16>
    %cst_188 = arith.constant dense<0.000000e+00> : vector<8x256xf32>
    %190 = tpu.matmul %187, %189, %cst_188 {dimension_numbers = #tpu.dot_dimension_numbers<[1], [0], [0], [1], [0, 0, 1, 1], [], []>} : vector<8x256xbf16>, vector<256x256xbf16>, vector<8x256xf32> -> vector<8x256xf32>
    %c5_189 = arith.constant 5 : index
    %c1_190 = arith.constant 1 : index
    %c0_191 = arith.constant 0 : index
    %c0_192 = arith.constant 0 : index
    %191 = vector.load %arg9[%c5_189, %c1_190, %c0_191, %c0_192] : memref<8x3x256x256xbf16, #tpu.memory_space<vmem>>, vector<1x1x256x256xbf16>
    %192 = vector.shape_cast %191 : vector<1x1x256x256xbf16> to vector<256x256xbf16>
    %cst_193 = arith.constant dense<0.000000e+00> : vector<8x256xf32>
    %193 = tpu.matmul %181, %192, %cst_193 {dimension_numbers = #tpu.dot_dimension_numbers<[1], [0], [0], [1], [0, 0, 1, 1], [], []>} : vector<8x256xbf16>, vector<256x256xbf16>, vector<8x256xf32> -> vector<8x256xf32>
    %194 = arith.addf %190, %193 : vector<8x256xf32>
    %c2_194 = arith.constant 2 : index
    %c0_195 = arith.constant 0 : index
    %c0_196 = arith.constant 0 : index
    %195 = vector.load %arg3[%c2_194, %c0_195, %c0_196] : memref<3x8x8xbf16, #tpu.memory_space<vmem>>, vector<1x8x8xbf16>
    %196 = vector.shape_cast %195 : vector<1x8x8xbf16> to vector<8x8xbf16>
    %cst_197 = arith.constant dense<0.000000e+00> : vector<8x256xf32>
    %197 = tpu.matmul %196, %181, %cst_197 {dimension_numbers = #tpu.dot_dimension_numbers<[1], [0], [0], [1], [0, 0, 1, 1], [], []>} : vector<8x8xbf16>, vector<8x256xbf16>, vector<8x256xf32> -> vector<8x256xf32>
    %198 = arith.truncf %197 : vector<8x256xf32> to vector<8x256xbf16>
    %c5_198 = arith.constant 5 : index
    %c2_199 = arith.constant 2 : index
    %c0_200 = arith.constant 0 : index
    %c0_201 = arith.constant 0 : index
    %199 = vector.load %arg9[%c5_198, %c2_199, %c0_200, %c0_201] : memref<8x3x256x256xbf16, #tpu.memory_space<vmem>>, vector<1x1x256x256xbf16>
    %200 = vector.shape_cast %199 : vector<1x1x256x256xbf16> to vector<256x256xbf16>
    %cst_202 = arith.constant dense<0.000000e+00> : vector<8x256xf32>
    %201 = tpu.matmul %198, %200, %cst_202 {dimension_numbers = #tpu.dot_dimension_numbers<[1], [0], [0], [1], [0, 0, 1, 1], [], []>} : vector<8x256xbf16>, vector<256x256xbf16>, vector<8x256xf32> -> vector<8x256xf32>
    %202 = arith.addf %194, %201 : vector<8x256xf32>
    %203 = vector.broadcast %183 : vector<1x256xf32> to vector<8x256xf32>
    %204 = arith.addf %202, %203 : vector<8x256xf32>
    %205 = arith.addf %204, %180 : vector<8x256xf32>
    %cst_203 = arith.constant 0.000000e+00 : f32
    %206 = vector.broadcast %cst_203 : f32 to vector<8x256xf32>
    %207 = arith.maximumf %205, %206 : vector<8x256xf32>
    %208 = arith.truncf %207 : vector<8x256xf32> to vector<8x256xbf16>
    %c0_204 = arith.constant 0 : index
    %c0_205 = arith.constant 0 : index
    %209 = vector.load %arg17[%c0_204, %c0_205] : memref<2x8xbf16, #tpu.memory_space<vmem>>, vector<2x8xbf16>
    %cst_206 = arith.constant dense<0.000000e+00> : vector<2x256xf32>
    %210 = tpu.matmul %209, %208, %cst_206 {dimension_numbers = #tpu.dot_dimension_numbers<[1], [0], [0], [1], [0, 0, 1, 1], [], []>} : vector<2x8xbf16>, vector<8x256xbf16>, vector<2x256xf32> -> vector<2x256xf32>
    %211 = arith.truncf %210 : vector<2x256xf32> to vector<2x256xbf16>
    %c0_207 = arith.constant 0 : index
    %c0_208 = arith.constant 0 : index
    %212 = vector.load %arg11[%c0_207, %c0_208] : memref<256x256xbf16, #tpu.memory_space<vmem>>, vector<256x256xbf16>
    %cst_209 = arith.constant dense<0.000000e+00> : vector<2x256xf32>
    %213 = tpu.matmul %211, %212, %cst_209 {dimension_numbers = #tpu.dot_dimension_numbers<[1], [0], [0], [1], [0, 0, 1, 1], [], []>} : vector<2x256xbf16>, vector<256x256xbf16>, vector<2x256xf32> -> vector<2x256xf32>
    %c7 = arith.constant 7 : index
    %c0_210 = arith.constant 0 : index
    %c0_211 = arith.constant 0 : index
    %214 = vector.load %arg14[%c7, %c0_210, %c0_211] : memref<10x1x256xf32, #tpu.memory_space<vmem>>, vector<1x1x256xf32>
    %215 = vector.shape_cast %214 : vector<1x1x256xf32> to vector<1x256xf32>
    %216 = vector.broadcast %215 : vector<1x256xf32> to vector<2x256xf32>
    %217 = arith.addf %213, %216 : vector<2x256xf32>
    %218 = tpu.iota {dimensions = array<i32: 1>} : vector<2x256xi32>
    %219 = arith.mulf %217, %217 : vector<2x256xf32>
    %c8_i32 = arith.constant 8 : i32
    %220 = vector.broadcast %c8_i32 : i32 to vector<2x256xi32>
    %221 = arith.cmpi sge, %218, %220 : vector<2x256xi32>
    %cst_212 = arith.constant 0.000000e+00 : f32
    %222 = vector.broadcast %cst_212 : f32 to vector<2x256xf32>
    %223 = arith.select %221, %219, %222 : vector<2x256xi1>, vector<2x256xf32>
    %224 = vector.shape_cast %223 : vector<2x256xf32> to vector<1x2x256xf32>
    %cst_213 = arith.constant dense<0.000000e+00> : vector<1xf32>
    %225 = vector.multi_reduction <add>, %224, %cst_213 [1, 2] : vector<1x2x256xf32> to vector<1xf32>
    %226 = vector.shape_cast %225 : vector<1xf32> to vector<1x1x1xf32>
    %227 = vector.extract %226[0, 0, 0] : f32 from vector<1x1x1xf32>
    %c8_i32_214 = arith.constant 8 : i32
    %228 = vector.broadcast %c8_i32_214 : i32 to vector<2x256xi32>
    %229 = arith.cmpi slt, %218, %228 : vector<2x256xi32>
    %cst_215 = arith.constant 0.000000e+00 : f32
    %230 = vector.broadcast %cst_215 : f32 to vector<2x256xf32>
    %231 = arith.select %229, %219, %230 : vector<2x256xi1>, vector<2x256xf32>
    %232 = vector.shape_cast %231 : vector<2x256xf32> to vector<1x2x256xf32>
    %cst_216 = arith.constant dense<0.000000e+00> : vector<1xf32>
    %233 = vector.multi_reduction <add>, %232, %cst_216 [1, 2] : vector<1x2x256xf32> to vector<1xf32>
    %234 = vector.shape_cast %233 : vector<1xf32> to vector<1x1x1xf32>
    %235 = vector.extract %234[0, 0, 0] : f32 from vector<1x1x1xf32>
    %236 = math.sqrt %227 : f32
    %cst_217 = arith.constant 2.480000e+02 : f32
    %237 = arith.divf %236, %cst_217 : f32
    %cst_218 = arith.constant 5.000000e-01 : f32
    %238 = arith.mulf %cst_218, %235 : f32
    %cst_219 = arith.constant 1.600000e+01 : f32
    %239 = arith.divf %238, %cst_219 : f32
    %cst_220 = arith.constant -0.918938517 : f32
    %240 = arith.subf %cst_220, %239 : f32
    %cst_221 = arith.constant 1.000000e+02 : f32
    %241 = arith.divf %240, %cst_221 : f32
    %242 = arith.subf %237, %241 : f32
    %243 = arith.truncf %217 : vector<2x256xf32> to vector<2x256xbf16>
    %c0_222 = arith.constant 0 : index
    %c0_223 = arith.constant 0 : index
    %244 = vector.load %arg18[%c0_222, %c0_223] : memref<8x2xbf16, #tpu.memory_space<vmem>>, vector<8x2xbf16>
    %cst_224 = arith.constant dense<0.000000e+00> : vector<8x256xf32>
    %245 = tpu.matmul %244, %243, %cst_224 {dimension_numbers = #tpu.dot_dimension_numbers<[1], [0], [0], [1], [0, 0, 1, 1], [], []>} : vector<8x2xbf16>, vector<2x256xbf16>, vector<8x256xf32> -> vector<8x256xf32>
    %246 = arith.truncf %245 : vector<8x256xf32> to vector<8x256xbf16>
    %247 = tpu.iota {dimensions = array<i32: 0>} : vector<8x256xi32>
    %c3_i32 = arith.constant 3 : i32
    %248 = vector.broadcast %c3_i32 : i32 to vector<8x256xi32>
    %249 = arith.andi %247, %248 : vector<8x256xi32>
    %cst_225 = arith.constant 0.000000e+00 : f32
    %250 = vector.broadcast %cst_225 : f32 to vector<8x256xf32>
    %c0_226 = arith.constant 0 : index
    %c0_227 = arith.constant 0 : index
    %c0_228 = arith.constant 0 : index
    %251 = vector.load %arg12[%c0_226, %c0_227, %c0_228] : memref<4x256x256xbf16, #tpu.memory_space<vmem>>, vector<1x256x256xbf16>
    %252 = vector.shape_cast %251 : vector<1x256x256xbf16> to vector<256x256xbf16>
    %cst_229 = arith.constant dense<0.000000e+00> : vector<8x256xf32>
    %253 = tpu.matmul %246, %252, %cst_229 {dimension_numbers = #tpu.dot_dimension_numbers<[1], [0], [0], [1], [0, 0, 1, 1], [], []>} : vector<8x256xbf16>, vector<256x256xbf16>, vector<8x256xf32> -> vector<8x256xf32>
    %c0_230 = arith.constant 0 : index
    %c0_231 = arith.constant 0 : index
    %c0_232 = arith.constant 0 : index
    %254 = vector.load %arg15[%c0_230, %c0_231, %c0_232] : memref<4x1x256xf32, #tpu.memory_space<vmem>>, vector<1x1x256xf32>
    %255 = vector.shape_cast %254 : vector<1x1x256xf32> to vector<1x256xf32>
    %256 = vector.broadcast %255 : vector<1x256xf32> to vector<8x256xf32>
    %257 = arith.addf %253, %256 : vector<8x256xf32>
    %c0_i32 = arith.constant 0 : i32
    %258 = vector.broadcast %c0_i32 : i32 to vector<8x256xi32>
    %259 = arith.cmpi eq, %249, %258 : vector<8x256xi32>
    %cst_233 = arith.constant 0.000000e+00 : f32
    %260 = vector.broadcast %cst_233 : f32 to vector<8x256xf32>
    %261 = arith.select %259, %257, %260 : vector<8x256xi1>, vector<8x256xf32>
    %262 = arith.addf %250, %261 : vector<8x256xf32>
    %c1_234 = arith.constant 1 : index
    %c0_235 = arith.constant 0 : index
    %c0_236 = arith.constant 0 : index
    %263 = vector.load %arg12[%c1_234, %c0_235, %c0_236] : memref<4x256x256xbf16, #tpu.memory_space<vmem>>, vector<1x256x256xbf16>
    %264 = vector.shape_cast %263 : vector<1x256x256xbf16> to vector<256x256xbf16>
    %cst_237 = arith.constant dense<0.000000e+00> : vector<8x256xf32>
    %265 = tpu.matmul %246, %264, %cst_237 {dimension_numbers = #tpu.dot_dimension_numbers<[1], [0], [0], [1], [0, 0, 1, 1], [], []>} : vector<8x256xbf16>, vector<256x256xbf16>, vector<8x256xf32> -> vector<8x256xf32>
    %c1_238 = arith.constant 1 : index
    %c0_239 = arith.constant 0 : index
    %c0_240 = arith.constant 0 : index
    %266 = vector.load %arg15[%c1_238, %c0_239, %c0_240] : memref<4x1x256xf32, #tpu.memory_space<vmem>>, vector<1x1x256xf32>
    %267 = vector.shape_cast %266 : vector<1x1x256xf32> to vector<1x256xf32>
    %268 = vector.broadcast %267 : vector<1x256xf32> to vector<8x256xf32>
    %269 = arith.addf %265, %268 : vector<8x256xf32>
    %c1_i32 = arith.constant 1 : i32
    %270 = vector.broadcast %c1_i32 : i32 to vector<8x256xi32>
    %271 = arith.cmpi eq, %249, %270 : vector<8x256xi32>
    %cst_241 = arith.constant 0.000000e+00 : f32
    %272 = vector.broadcast %cst_241 : f32 to vector<8x256xf32>
    %273 = arith.select %271, %269, %272 : vector<8x256xi1>, vector<8x256xf32>
    %274 = arith.addf %262, %273 : vector<8x256xf32>
    %c2_242 = arith.constant 2 : index
    %c0_243 = arith.constant 0 : index
    %c0_244 = arith.constant 0 : index
    %275 = vector.load %arg12[%c2_242, %c0_243, %c0_244] : memref<4x256x256xbf16, #tpu.memory_space<vmem>>, vector<1x256x256xbf16>
    %276 = vector.shape_cast %275 : vector<1x256x256xbf16> to vector<256x256xbf16>
    %cst_245 = arith.constant dense<0.000000e+00> : vector<8x256xf32>
    %277 = tpu.matmul %246, %276, %cst_245 {dimension_numbers = #tpu.dot_dimension_numbers<[1], [0], [0], [1], [0, 0, 1, 1], [], []>} : vector<8x256xbf16>, vector<256x256xbf16>, vector<8x256xf32> -> vector<8x256xf32>
    %c2_246 = arith.constant 2 : index
    %c0_247 = arith.constant 0 : index
    %c0_248 = arith.constant 0 : index
    %278 = vector.load %arg15[%c2_246, %c0_247, %c0_248] : memref<4x1x256xf32, #tpu.memory_space<vmem>>, vector<1x1x256xf32>
    %279 = vector.shape_cast %278 : vector<1x1x256xf32> to vector<1x256xf32>
    %280 = vector.broadcast %279 : vector<1x256xf32> to vector<8x256xf32>
    %281 = arith.addf %277, %280 : vector<8x256xf32>
    %c2_i32 = arith.constant 2 : i32
    %282 = vector.broadcast %c2_i32 : i32 to vector<8x256xi32>
    %283 = arith.cmpi eq, %249, %282 : vector<8x256xi32>
    %cst_249 = arith.constant 0.000000e+00 : f32
    %284 = vector.broadcast %cst_249 : f32 to vector<8x256xf32>
    %285 = arith.select %283, %281, %284 : vector<8x256xi1>, vector<8x256xf32>
    %286 = arith.addf %274, %285 : vector<8x256xf32>
    %c3_250 = arith.constant 3 : index
    %c0_251 = arith.constant 0 : index
    %c0_252 = arith.constant 0 : index
    %287 = vector.load %arg12[%c3_250, %c0_251, %c0_252] : memref<4x256x256xbf16, #tpu.memory_space<vmem>>, vector<1x256x256xbf16>
    %288 = vector.shape_cast %287 : vector<1x256x256xbf16> to vector<256x256xbf16>
    %cst_253 = arith.constant dense<0.000000e+00> : vector<8x256xf32>
    %289 = tpu.matmul %246, %288, %cst_253 {dimension_numbers = #tpu.dot_dimension_numbers<[1], [0], [0], [1], [0, 0, 1, 1], [], []>} : vector<8x256xbf16>, vector<256x256xbf16>, vector<8x256xf32> -> vector<8x256xf32>
    %c3_254 = arith.constant 3 : index
    %c0_255 = arith.constant 0 : index
    %c0_256 = arith.constant 0 : index
    %290 = vector.load %arg15[%c3_254, %c0_255, %c0_256] : memref<4x1x256xf32, #tpu.memory_space<vmem>>, vector<1x1x256xf32>
    %291 = vector.shape_cast %290 : vector<1x1x256xf32> to vector<1x256xf32>
    %292 = vector.broadcast %291 : vector<1x256xf32> to vector<8x256xf32>
    %293 = arith.addf %289, %292 : vector<8x256xf32>
    %c3_i32_257 = arith.constant 3 : i32
    %294 = vector.broadcast %c3_i32_257 : i32 to vector<8x256xi32>
    %295 = arith.cmpi eq, %249, %294 : vector<8x256xi32>
    %cst_258 = arith.constant 0.000000e+00 : f32
    %296 = vector.broadcast %cst_258 : f32 to vector<8x256xf32>
    %297 = arith.select %295, %293, %296 : vector<8x256xi1>, vector<8x256xf32>
    %298 = arith.addf %286, %297 : vector<8x256xf32>
    %cst_259 = arith.constant 0.000000e+00 : f32
    %299 = vector.broadcast %cst_259 : f32 to vector<8x256xf32>
    %300 = arith.maximumf %298, %299 : vector<8x256xf32>
    %301 = arith.truncf %300 : vector<8x256xf32> to vector<8x256xbf16>
    %c8 = arith.constant 8 : index
    %c0_260 = arith.constant 0 : index
    %c0_261 = arith.constant 0 : index
    %302 = vector.load %arg14[%c8, %c0_260, %c0_261] : memref<10x1x256xf32, #tpu.memory_space<vmem>>, vector<1x1x256xf32>
    %303 = vector.shape_cast %302 : vector<1x1x256xf32> to vector<1x256xf32>
    %c0_262 = arith.constant 0 : index
    %c0_263 = arith.constant 0 : index
    %c0_264 = arith.constant 0 : index
    %304 = vector.load %arg6[%c0_262, %c0_263, %c0_264] : memref<3x16x8xbf16, #tpu.memory_space<vmem>>, vector<1x16x8xbf16>
    %305 = vector.shape_cast %304 : vector<1x16x8xbf16> to vector<16x8xbf16>
    %cst_265 = arith.constant dense<0.000000e+00> : vector<16x256xf32>
    %306 = tpu.matmul %305, %301, %cst_265 {dimension_numbers = #tpu.dot_dimension_numbers<[1], [0], [0], [1], [0, 0, 1, 1], [], []>} : vector<16x8xbf16>, vector<8x256xbf16>, vector<16x256xf32> -> vector<16x256xf32>
    %307 = arith.truncf %306 : vector<16x256xf32> to vector<16x256xbf16>
    %c6_266 = arith.constant 6 : index
    %c0_267 = arith.constant 0 : index
    %c0_268 = arith.constant 0 : index
    %c0_269 = arith.constant 0 : index
    %308 = vector.load %arg9[%c6_266, %c0_267, %c0_268, %c0_269] : memref<8x3x256x256xbf16, #tpu.memory_space<vmem>>, vector<1x1x256x256xbf16>
    %309 = vector.shape_cast %308 : vector<1x1x256x256xbf16> to vector<256x256xbf16>
    %cst_270 = arith.constant dense<0.000000e+00> : vector<16x256xf32>
    %310 = tpu.matmul %307, %309, %cst_270 {dimension_numbers = #tpu.dot_dimension_numbers<[1], [0], [0], [1], [0, 0, 1, 1], [], []>} : vector<16x256xbf16>, vector<256x256xbf16>, vector<16x256xf32> -> vector<16x256xf32>
    %c1_271 = arith.constant 1 : index
    %c0_272 = arith.constant 0 : index
    %c0_273 = arith.constant 0 : index
    %311 = vector.load %arg6[%c1_271, %c0_272, %c0_273] : memref<3x16x8xbf16, #tpu.memory_space<vmem>>, vector<1x16x8xbf16>
    %312 = vector.shape_cast %311 : vector<1x16x8xbf16> to vector<16x8xbf16>
    %cst_274 = arith.constant dense<0.000000e+00> : vector<16x256xf32>
    %313 = tpu.matmul %312, %301, %cst_274 {dimension_numbers = #tpu.dot_dimension_numbers<[1], [0], [0], [1], [0, 0, 1, 1], [], []>} : vector<16x8xbf16>, vector<8x256xbf16>, vector<16x256xf32> -> vector<16x256xf32>
    %314 = arith.truncf %313 : vector<16x256xf32> to vector<16x256xbf16>
    %c6_275 = arith.constant 6 : index
    %c1_276 = arith.constant 1 : index
    %c0_277 = arith.constant 0 : index
    %c0_278 = arith.constant 0 : index
    %315 = vector.load %arg9[%c6_275, %c1_276, %c0_277, %c0_278] : memref<8x3x256x256xbf16, #tpu.memory_space<vmem>>, vector<1x1x256x256xbf16>
    %316 = vector.shape_cast %315 : vector<1x1x256x256xbf16> to vector<256x256xbf16>
    %cst_279 = arith.constant dense<0.000000e+00> : vector<16x256xf32>
    %317 = tpu.matmul %314, %316, %cst_279 {dimension_numbers = #tpu.dot_dimension_numbers<[1], [0], [0], [1], [0, 0, 1, 1], [], []>} : vector<16x256xbf16>, vector<256x256xbf16>, vector<16x256xf32> -> vector<16x256xf32>
    %318 = arith.addf %310, %317 : vector<16x256xf32>
    %c2_280 = arith.constant 2 : index
    %c0_281 = arith.constant 0 : index
    %c0_282 = arith.constant 0 : index
    %319 = vector.load %arg6[%c2_280, %c0_281, %c0_282] : memref<3x16x8xbf16, #tpu.memory_space<vmem>>, vector<1x16x8xbf16>
    %320 = vector.shape_cast %319 : vector<1x16x8xbf16> to vector<16x8xbf16>
    %cst_283 = arith.constant dense<0.000000e+00> : vector<16x256xf32>
    %321 = tpu.matmul %320, %301, %cst_283 {dimension_numbers = #tpu.dot_dimension_numbers<[1], [0], [0], [1], [0, 0, 1, 1], [], []>} : vector<16x8xbf16>, vector<8x256xbf16>, vector<16x256xf32> -> vector<16x256xf32>
    %322 = arith.truncf %321 : vector<16x256xf32> to vector<16x256xbf16>
    %c6_284 = arith.constant 6 : index
    %c2_285 = arith.constant 2 : index
    %c0_286 = arith.constant 0 : index
    %c0_287 = arith.constant 0 : index
    %323 = vector.load %arg9[%c6_284, %c2_285, %c0_286, %c0_287] : memref<8x3x256x256xbf16, #tpu.memory_space<vmem>>, vector<1x1x256x256xbf16>
    %324 = vector.shape_cast %323 : vector<1x1x256x256xbf16> to vector<256x256xbf16>
    %cst_288 = arith.constant dense<0.000000e+00> : vector<16x256xf32>
    %325 = tpu.matmul %322, %324, %cst_288 {dimension_numbers = #tpu.dot_dimension_numbers<[1], [0], [0], [1], [0, 0, 1, 1], [], []>} : vector<16x256xbf16>, vector<256x256xbf16>, vector<16x256xf32> -> vector<16x256xf32>
    %326 = arith.addf %318, %325 : vector<16x256xf32>
    %327 = vector.broadcast %303 : vector<1x256xf32> to vector<16x256xf32>
    %328 = arith.addf %326, %327 : vector<16x256xf32>
    %cst_289 = arith.constant 0.000000e+00 : f32
    %329 = vector.broadcast %cst_289 : f32 to vector<16x256xf32>
    %330 = arith.maximumf %328, %329 : vector<16x256xf32>
    %331 = arith.truncf %330 : vector<16x256xf32> to vector<16x256xbf16>
    %c9 = arith.constant 9 : index
    %c0_290 = arith.constant 0 : index
    %c0_291 = arith.constant 0 : index
    %332 = vector.load %arg14[%c9, %c0_290, %c0_291] : memref<10x1x256xf32, #tpu.memory_space<vmem>>, vector<1x1x256xf32>
    %333 = vector.shape_cast %332 : vector<1x1x256xf32> to vector<1x256xf32>
    %c0_292 = arith.constant 0 : index
    %c0_293 = arith.constant 0 : index
    %c0_294 = arith.constant 0 : index
    %334 = vector.load %arg7[%c0_292, %c0_293, %c0_294] : memref<3x32x16xbf16, #tpu.memory_space<vmem>>, vector<1x32x16xbf16>
    %335 = vector.shape_cast %334 : vector<1x32x16xbf16> to vector<32x16xbf16>
    %cst_295 = arith.constant dense<0.000000e+00> : vector<32x256xf32>
    %336 = tpu.matmul %335, %331, %cst_295 {dimension_numbers = #tpu.dot_dimension_numbers<[1], [0], [0], [1], [0, 0, 1, 1], [], []>} : vector<32x16xbf16>, vector<16x256xbf16>, vector<32x256xf32> -> vector<32x256xf32>
    %337 = arith.truncf %336 : vector<32x256xf32> to vector<32x256xbf16>
    %c7_296 = arith.constant 7 : index
    %c0_297 = arith.constant 0 : index
    %c0_298 = arith.constant 0 : index
    %c0_299 = arith.constant 0 : index
    %338 = vector.load %arg9[%c7_296, %c0_297, %c0_298, %c0_299] : memref<8x3x256x256xbf16, #tpu.memory_space<vmem>>, vector<1x1x256x256xbf16>
    %339 = vector.shape_cast %338 : vector<1x1x256x256xbf16> to vector<256x256xbf16>
    %cst_300 = arith.constant dense<0.000000e+00> : vector<32x256xf32>
    %340 = tpu.matmul %337, %339, %cst_300 {dimension_numbers = #tpu.dot_dimension_numbers<[1], [0], [0], [1], [0, 0, 1, 1], [], []>} : vector<32x256xbf16>, vector<256x256xbf16>, vector<32x256xf32> -> vector<32x256xf32>
    %c1_301 = arith.constant 1 : index
    %c0_302 = arith.constant 0 : index
    %c0_303 = arith.constant 0 : index
    %341 = vector.load %arg7[%c1_301, %c0_302, %c0_303] : memref<3x32x16xbf16, #tpu.memory_space<vmem>>, vector<1x32x16xbf16>
    %342 = vector.shape_cast %341 : vector<1x32x16xbf16> to vector<32x16xbf16>
    %cst_304 = arith.constant dense<0.000000e+00> : vector<32x256xf32>
    %343 = tpu.matmul %342, %331, %cst_304 {dimension_numbers = #tpu.dot_dimension_numbers<[1], [0], [0], [1], [0, 0, 1, 1], [], []>} : vector<32x16xbf16>, vector<16x256xbf16>, vector<32x256xf32> -> vector<32x256xf32>
    %344 = arith.truncf %343 : vector<32x256xf32> to vector<32x256xbf16>
    %c7_305 = arith.constant 7 : index
    %c1_306 = arith.constant 1 : index
    %c0_307 = arith.constant 0 : index
    %c0_308 = arith.constant 0 : index
    %345 = vector.load %arg9[%c7_305, %c1_306, %c0_307, %c0_308] : memref<8x3x256x256xbf16, #tpu.memory_space<vmem>>, vector<1x1x256x256xbf16>
    %346 = vector.shape_cast %345 : vector<1x1x256x256xbf16> to vector<256x256xbf16>
    %cst_309 = arith.constant dense<0.000000e+00> : vector<32x256xf32>
    %347 = tpu.matmul %344, %346, %cst_309 {dimension_numbers = #tpu.dot_dimension_numbers<[1], [0], [0], [1], [0, 0, 1, 1], [], []>} : vector<32x256xbf16>, vector<256x256xbf16>, vector<32x256xf32> -> vector<32x256xf32>
    %348 = arith.addf %340, %347 : vector<32x256xf32>
    %c2_310 = arith.constant 2 : index
    %c0_311 = arith.constant 0 : index
    %c0_312 = arith.constant 0 : index
    %349 = vector.load %arg7[%c2_310, %c0_311, %c0_312] : memref<3x32x16xbf16, #tpu.memory_space<vmem>>, vector<1x32x16xbf16>
    %350 = vector.shape_cast %349 : vector<1x32x16xbf16> to vector<32x16xbf16>
    %cst_313 = arith.constant dense<0.000000e+00> : vector<32x256xf32>
    %351 = tpu.matmul %350, %331, %cst_313 {dimension_numbers = #tpu.dot_dimension_numbers<[1], [0], [0], [1], [0, 0, 1, 1], [], []>} : vector<32x16xbf16>, vector<16x256xbf16>, vector<32x256xf32> -> vector<32x256xf32>
    %352 = arith.truncf %351 : vector<32x256xf32> to vector<32x256xbf16>
    %c7_314 = arith.constant 7 : index
    %c2_315 = arith.constant 2 : index
    %c0_316 = arith.constant 0 : index
    %c0_317 = arith.constant 0 : index
    %353 = vector.load %arg9[%c7_314, %c2_315, %c0_316, %c0_317] : memref<8x3x256x256xbf16, #tpu.memory_space<vmem>>, vector<1x1x256x256xbf16>
    %354 = vector.shape_cast %353 : vector<1x1x256x256xbf16> to vector<256x256xbf16>
    %cst_318 = arith.constant dense<0.000000e+00> : vector<32x256xf32>
    %355 = tpu.matmul %352, %354, %cst_318 {dimension_numbers = #tpu.dot_dimension_numbers<[1], [0], [0], [1], [0, 0, 1, 1], [], []>} : vector<32x256xbf16>, vector<256x256xbf16>, vector<32x256xf32> -> vector<32x256xf32>
    %356 = arith.addf %348, %355 : vector<32x256xf32>
    %357 = vector.broadcast %333 : vector<1x256xf32> to vector<32x256xf32>
    %358 = arith.addf %356, %357 : vector<32x256xf32>
    %cst_319 = arith.constant 0.000000e+00 : f32
    %359 = vector.broadcast %cst_319 : f32 to vector<32x256xf32>
    %360 = arith.maximumf %358, %359 : vector<32x256xf32>
    %361 = arith.truncf %360 : vector<32x256xf32> to vector<32x256xbf16>
    %c0_320 = arith.constant 0 : index
    %c0_321 = arith.constant 0 : index
    %362 = vector.load %arg16[%c0_320, %c0_321] : memref<1x64xf32, #tpu.memory_space<vmem>>, vector<1x64xf32>
    %c0_322 = arith.constant 0 : index
    %c0_323 = arith.constant 0 : index
    %c0_324 = arith.constant 0 : index
    %363 = vector.load %arg1[%c0_322, %c0_323, %c0_324] : memref<3x32x32xbf16, #tpu.memory_space<vmem>>, vector<1x32x32xbf16>
    %364 = vector.shape_cast %363 : vector<1x32x32xbf16> to vector<32x32xbf16>
    %cst_325 = arith.constant dense<0.000000e+00> : vector<32x256xf32>
    %365 = tpu.matmul %364, %361, %cst_325 {dimension_numbers = #tpu.dot_dimension_numbers<[1], [0], [0], [1], [0, 0, 1, 1], [], []>} : vector<32x32xbf16>, vector<32x256xbf16>, vector<32x256xf32> -> vector<32x256xf32>
    %366 = arith.truncf %365 : vector<32x256xf32> to vector<32x256xbf16>
    %c0_326 = arith.constant 0 : index
    %c0_327 = arith.constant 0 : index
    %c0_328 = arith.constant 0 : index
    %367 = vector.load %arg13[%c0_326, %c0_327, %c0_328] : memref<3x256x64xbf16, #tpu.memory_space<vmem>>, vector<1x256x64xbf16>
    %368 = vector.shape_cast %367 : vector<1x256x64xbf16> to vector<256x64xbf16>
    %cst_329 = arith.constant dense<0.000000e+00> : vector<32x64xf32>
    %369 = tpu.matmul %366, %368, %cst_329 {dimension_numbers = #tpu.dot_dimension_numbers<[1], [0], [0], [1], [0, 0, 1, 1], [], []>} : vector<32x256xbf16>, vector<256x64xbf16>, vector<32x64xf32> -> vector<32x64xf32>
    %c1_330 = arith.constant 1 : index
    %c0_331 = arith.constant 0 : index
    %c0_332 = arith.constant 0 : index
    %370 = vector.load %arg13[%c1_330, %c0_331, %c0_332] : memref<3x256x64xbf16, #tpu.memory_space<vmem>>, vector<1x256x64xbf16>
    %371 = vector.shape_cast %370 : vector<1x256x64xbf16> to vector<256x64xbf16>
    %cst_333 = arith.constant dense<0.000000e+00> : vector<32x64xf32>
    %372 = tpu.matmul %361, %371, %cst_333 {dimension_numbers = #tpu.dot_dimension_numbers<[1], [0], [0], [1], [0, 0, 1, 1], [], []>} : vector<32x256xbf16>, vector<256x64xbf16>, vector<32x64xf32> -> vector<32x64xf32>
    %373 = arith.addf %369, %372 : vector<32x64xf32>
    %c2_334 = arith.constant 2 : index
    %c0_335 = arith.constant 0 : index
    %c0_336 = arith.constant 0 : index
    %374 = vector.load %arg1[%c2_334, %c0_335, %c0_336] : memref<3x32x32xbf16, #tpu.memory_space<vmem>>, vector<1x32x32xbf16>
    %375 = vector.shape_cast %374 : vector<1x32x32xbf16> to vector<32x32xbf16>
    %cst_337 = arith.constant dense<0.000000e+00> : vector<32x256xf32>
    %376 = tpu.matmul %375, %361, %cst_337 {dimension_numbers = #tpu.dot_dimension_numbers<[1], [0], [0], [1], [0, 0, 1, 1], [], []>} : vector<32x32xbf16>, vector<32x256xbf16>, vector<32x256xf32> -> vector<32x256xf32>
    %377 = arith.truncf %376 : vector<32x256xf32> to vector<32x256xbf16>
    %c2_338 = arith.constant 2 : index
    %c0_339 = arith.constant 0 : index
    %c0_340 = arith.constant 0 : index
    %378 = vector.load %arg13[%c2_338, %c0_339, %c0_340] : memref<3x256x64xbf16, #tpu.memory_space<vmem>>, vector<1x256x64xbf16>
    %379 = vector.shape_cast %378 : vector<1x256x64xbf16> to vector<256x64xbf16>
    %cst_341 = arith.constant dense<0.000000e+00> : vector<32x64xf32>
    %380 = tpu.matmul %377, %379, %cst_341 {dimension_numbers = #tpu.dot_dimension_numbers<[1], [0], [0], [1], [0, 0, 1, 1], [], []>} : vector<32x256xbf16>, vector<256x64xbf16>, vector<32x64xf32> -> vector<32x64xf32>
    %381 = arith.addf %373, %380 : vector<32x64xf32>
    %382 = vector.broadcast %362 : vector<1x64xf32> to vector<32x64xf32>
    %383 = arith.addf %381, %382 : vector<32x64xf32>
    %384 = math.tanh %383 : vector<32x64xf32>
    %385 = arith.subf %0, %384 : vector<32x64xf32>
    %386 = arith.mulf %385, %385 : vector<32x64xf32>
    %387 = vector.shape_cast %386 : vector<32x64xf32> to vector<1x32x64xf32>
    %cst_342 = arith.constant dense<0.000000e+00> : vector<1xf32>
    %388 = vector.multi_reduction <add>, %387, %cst_342 [1, 2] : vector<1x32x64xf32> to vector<1xf32>
    %389 = vector.shape_cast %388 : vector<1xf32> to vector<1x1x1xf32>
    %390 = vector.extract %389[0, 0, 0] : f32 from vector<1x1x1xf32>
    %cst_343 = arith.constant 2.048000e+03 : f32
    %391 = arith.divf %390, %cst_343 : f32
    %392 = arith.addf %242, %391 : f32
    %c0_344 = arith.constant 0 : index
    %c0_345 = arith.constant 0 : index
    %393 = vector.load %arg19[%c0_344, %c0_345] : memref<32x64xf32, #tpu.memory_space<vmem>>, vector<32x64xf32>
    tpu.vector_store %arg19[%c0_344, %c0_345], %384 {strides = array<i32>} : memref<32x64xf32, #tpu.memory_space<vmem>>, vector<32x64xf32>,
    %c0_346 = arith.constant 0 : index
    %c0_347 = arith.constant 0 : index
    %394 = memref.load %arg20[%c0_346, %c0_347] : memref<1x1xf32, #tpu.memory_space<smem>>
    memref.store %392, %arg20[%c0_346, %c0_347] : memref<1x1xf32, #tpu.memory_space<smem>>
    %c0_348 = arith.constant 0 : index
    %c0_349 = arith.constant 0 : index
    %395 = memref.load %arg21[%c0_348, %c0_349] : memref<1x1xf32, #tpu.memory_space<smem>>
    memref.store %242, %arg21[%c0_348, %c0_349] : memref<1x1xf32, #tpu.memory_space<smem>>
    return
  }
}

</mosaic_0001>

<bundles_post_ra>
// kernel: manifold_forward.1
= control target key start
LH: loop header
LB: loop body
LE: loop exit
PB: predicated region body
PF: predicated region fallthrough
CT: control target
= control target key end

     0   :  { %s14973_s0 = inlined_call_operand.vmem [shape: f32[32,64], index: 0, kind: input, shape index: {}]   ;;  %s14974_s1 = inlined_call_operand.hbm [shape: bf16[3,32,32], index: 1, kind: input, shape index: {}]   ;;  %s14975_s2 = inlined_call_operand.hbm [shape: bf16[3,16,16], index: 2, kind: input, shape index: {}]   ;;  %s14976_s3 = inlined_call_operand.hbm [shape: bf16[3,8,8], index: 3, kind: input, shape index: {}]   ;;  %s14977_s4 = inlined_call_operand.hbm [shape: bf16[3,16,32], index: 4, kind: input, shape index: {}]   ;;  %s14978_s5 = inlined_call_operand.hbm [shape: bf16[3,8,16], index: 5, kind: input, shape index: {}]   ;;  %s14979_s6 = inlined_call_operand.vmem [shape: bf16[3,16,8], index: 6, kind: input, shape index: {}]   ;;  %s14980_s7 = inlined_call_operand.vmem [shape: bf16[3,32,16], index: 7, kind: input, shape index: {}]   ;;  %s14981_s8 = inlined_call_operand.hbm [shape: bf16[3,64,256], index: 8, kind: input, shape index: {}]   ;;  %s14982_s9 = inlined_call_operand.hbm [shape: bf16[8,3,256,256], index: 9, kind: input, shape index: {}]   ;;  %s14983_s10 = inlined_call_operand.hbm [shape: bf16[2,256,256], index: 10, kind: input, shape index: {}]   ;;  %s14984_s11 = inlined_call_operand.hbm [shape: bf16[256,256], index: 11, kind: input, shape index: {}]   ;;  %s14985_s12 = inlined_call_operand.hbm [shape: bf16[4,256,256], index: 12, kind: input, shape index: {}]   ;;  %s14986_s13 = inlined_call_operand.vmem [shape: bf16[3,256,64], index: 13, kind: input, shape index: {}]   ;;  %s14987_s14 = inlined_call_operand.hbm [shape: f32[10,1,256], index: 14, kind: input, shape index: {}]   ;;  %s14988_s15 = inlined_call_operand.hbm [shape: f32[4,1,256], index: 15, kind: input, shape index: {}]   ;;  %s14989_s16 = inlined_call_operand.hbm [shape: f32[1,64], index: 16, kind: input, shape index: {}]   ;;  %s14990_s17 = inlined_call_operand.hbm [shape: bf16[2,8], index: 17, kind: input, shape index: {}]   ;;  %s14991_s18 = inlined_call_operand.vmem [shape: bf16[8,2], index: 18, kind: input, shape index: {}]   ;;  %s14992_s19 = inlined_call_operand.vmem [shape: f32[32,64], index: 19, kind: output, shape index: {0}]   ;;  %s14993_s20 = inlined_call_operand.hbm [shape: f32[1,1], index: 20, kind: output, shape index: {1}]   ;;  %s14994_s21 = inlined_call_operand.hbm [shape: f32[1,1], index: 21, kind: output, shape index: {2}]  }
   0x1   :  { %15008 = sst [smem:[#allocation38_spill]] %s14973_s0 }
   0x2   :  { %15009 = sst [smem:[#allocation39_spill]] %s14974_s1 }
   0x3   :  { %15010 = sst [smem:[#allocation40_spill]] %s14975_s2 }
   0x4   :  { %15011 = sst [smem:[#allocation41_spill]] %s14976_s3 }
   0x5   :  { %15012 = sst [smem:[#allocation42_spill]] %s14977_s4 }
   0x6   :  { %15013 = sst [smem:[#allocation43_spill]] %s14978_s5 }
   0x7   :  { %15014 = sst [smem:[#allocation44_spill]] %s14993_s20 }
   0x8   :  { %27 = vsyncpa [#allocation3], 0 }
   0x9   :  { %28 = vsyncpa [#allocation6], 0 }
   0xa   :  { %29 = vsyncpa [#allocation9], 0 }
   0xb   :  { %30 = vsyncpa [#allocation12], 0 }
   0xc   :  { %31 = vsyncpa [#allocation15], 0 }
   0xd   :  { %32 = vsyncpa [#allocation18], 0 }
   0xe   :  { %33 = vsyncpa [#allocation21], 0 }
   0xf   :  { %34 = vsyncpa [#allocation24], 0 }
  0x10   :  { %35 = vsyncpa [#allocation4], 0 }
  0x11   :  { %36 = vsyncpa [#allocation27], 0  ;;  %s13982_s2 = smov [#allocation5]   ;;  %s13983_s26 = smov [#allocation8]  }
  0x12   :  { %s56_s25 = sshll.u32 %s13982_s2, 4  ;;  %s80_s27 = sshll.u32 %s13983_s26, 4  ;;  %s57_s25 = int_to_ptr.vmem [resolvable:$true] %s56_s25  ;;  %s14115_s27 = int_to_ptr.vmem [resolvable:$true] %s80_s27 }
  0x13   :  { %s15015_s29 = sld [smem:[#allocation40_spill]] }
  0x19   :  { %s13634_s0 = scalar_lea.hbm %s15015_s29, 384 }
  0x1a   :  { %p13635_p0 = scmp.ne.s32.totalorder %s15015_s29, %s13634_s0  ;;  %p13638_p1 = scmp.lt.u32.totalorder %s13634_s0, %s15015_s29 }
  0x1c   :  { %p13640_p2 = pnand %p13638_p1, %p13635_p0 }
  0x1e   :  { %13643 = shalt.err (!%p13640_p2)
}
  0x1f   :  { %s13644_s23 = scalar_lea.vmem %s57_s25, 384  ;;  %p13649_p4 = scmp.lt.s32.totalorder %s57_s25, %s57_s25 }
  0x20   :  { %p13645_p3 = scmp.ne.s32.totalorder %s57_s25, %s13644_s23  ;;  %p13650_p5 = scmp.lt.s32.totalorder %s13644_s23, %s13644_s23 }
  0x22   :  { %p13651_p6 = por %p13650_p5, %p13649_p4 }
  0x24   :  { %p13652_p7 = pnand %p13651_p6, %p13645_p3 }
  0x26   :  { %13655 = shalt.err (!%p13652_p7)
}
  0x27   :  { %s15002_s1 = smov 64   ;;  %s15004_s24 = smov 4  }
  0x28   :  { %62 = dma.hbm_to_vmem [thread:$0]  %s15015_s29, 384, %s57_s25, [#allocation6], %s15002_s1, %s15002_s1, %s15004_s24  }
  0x29   :  { %s15016_s0 = sld [smem:[#allocation42_spill]] }
  0x2f   :  { %s13656_s4 = scalar_lea.hbm %s15016_s0, 384 }
  0x30   :  { %p13657_p8 = scmp.ne.s32.totalorder %s15016_s0, %s13656_s4  ;;  %p13660_p9 = scmp.lt.u32.totalorder %s13656_s4, %s15016_s0 }
  0x32   :  { %p13662_p10 = pnand %p13660_p9, %p13657_p8 }
  0x34   :  { %13665 = shalt.err (!%p13662_p10)
}
  0x35   :  { %s13666_s20 = scalar_lea.vmem %s14115_s27, 384  ;;  %p13671_p12 = scmp.lt.s32.totalorder %s14115_s27, %s14115_s27 }
  0x36   :  { %p13667_p11 = scmp.ne.s32.totalorder %s14115_s27, %s13666_s20  ;;  %p13672_p13 = scmp.lt.s32.totalorder %s13666_s20, %s13666_s20 }
  0x38   :  { %p13673_p0 = por %p13672_p13, %p13671_p12 }
  0x3a   :  { %p13674_p1 = pnand %p13673_p0, %p13667_p11 }
  0x3c   :  { %13677 = shalt.err (!%p13674_p1)
}
  0x3d   :  { %86 = dma.hbm_to_vmem [thread:$0]  %s15016_s0, 384, %s14115_s27, [#allocation9], %s15002_s1, %s15002_s1, %s15004_s24  }
  0x3e   :  { %s13986_s2 = smov [#allocation11]   ;;  %s13678_s4 = scalar_lea.hbm %s14981_s8, 3072 }
  0x3f   :  { %s108_s26 = sshll.u32 %s13986_s2, 4  ;;  %p13679_p2 = scmp.ne.s32.totalorder %s14981_s8, %s13678_s4  ;;  %s109_s26 = int_to_ptr.vmem [resolvable:$true] %s108_s26 }
  0x40   :  { %p13682_p3 = scmp.lt.u32.totalorder %s13678_s4, %s14981_s8 }
  0x42   :  { %p13684_p4 = pnand %p13682_p3, %p13679_p2 }
  0x44   :  { %13687 = shalt.err (!%p13684_p4)
}
  0x45   :  { %s13688_s23 = scalar_lea.vmem %s109_s26, 3072  ;;  %p13693_p6 = scmp.lt.s32.totalorder %s109_s26, %s109_s26 }
  0x46   :  { %p13689_p5 = scmp.ne.s32.totalorder %s109_s26, %s13688_s23  ;;  %p13694_p7 = scmp.lt.s32.totalorder %s13688_s23, %s13688_s23 }
  0x48   :  { %p13695_p8 = por %p13694_p7, %p13693_p6 }
  0x4a   :  { %p13696_p9 = pnand %p13695_p8, %p13689_p5 }
  0x4c   :  { %13699 = shalt.err (!%p13696_p9)
}
  0x4d   :  { %s13987_s27 = smov 128   ;;  %s13988_s0 = smov 8  }
  0x4e   :  { %114 = dma.hbm_to_vmem [thread:$0]  %s14981_s8, 3072, %s109_s26, [#allocation12], %s13987_s27, %s13987_s27, %s13988_s0  }
  0x4f   :  { %s13989_s2 = smov [#allocation14]   ;;  %s13990_s28 = smov [#allocation17]  }
  0x50   :  { %s132_s3 = sshll.u32 %s13989_s2, 4  ;;  %s156_s4 = sshll.u32 %s13990_s28, 4  ;;  %s133_s3 = int_to_ptr.vmem [resolvable:$true] %s132_s3  ;;  %s157_s4 = int_to_ptr.vmem [resolvable:$true] %s156_s4 }
  0x51   :  { %s13700_s5 = scalar_lea.hbm %s14983_s10, 8192 }
  0x52   :  { %p13701_p10 = scmp.ne.s32.totalorder %s14983_s10, %s13700_s5  ;;  %p13704_p11 = scmp.lt.u32.totalorder %s13700_s5, %s14983_s10 }
  0x54   :  { %p13706_p12 = pnand %p13704_p11, %p13701_p10 }
  0x56   :  { %13709 = shalt.err (!%p13706_p12)
}
  0x57   :  { %s13710_s8 = scalar_lea.vmem %s133_s3, 8192  ;;  %p13715_p0 = scmp.lt.s32.totalorder %s133_s3, %s133_s3 }
  0x58   :  { %p13711_p13 = scmp.ne.s32.totalorder %s133_s3, %s13710_s8  ;;  %p13716_p1 = scmp.lt.s32.totalorder %s13710_s8, %s13710_s8 }
  0x5a   :  { %p13717_p2 = por %p13716_p1, %p13715_p0 }
  0x5c   :  { %p13718_p3 = pnand %p13717_p2, %p13711_p13 }
  0x5e   :  { %13721 = shalt.err (!%p13718_p3)
}
  0x5f   :  { %138 = dma.hbm_to_vmem [thread:$0]  %s14983_s10, 8192, %s133_s3, [#allocation15], %s13987_s27, %s13987_s27, %s13988_s0  }
  0x60   :  { %s13722_s24 = scalar_lea.hbm %s14985_s12, 16384 }
  0x61   :  { %p13723_p4 = scmp.ne.s32.totalorder %s14985_s12, %s13722_s24  ;;  %p13726_p5 = scmp.lt.u32.totalorder %s13722_s24, %s14985_s12 }
  0x63   :  { %p13728_p6 = pnand %p13726_p5, %p13723_p4 }
  0x65   :  { %13731 = shalt.err (!%p13728_p6)
}
  0x66   :  { %s13732_s5 = scalar_lea.vmem %s157_s4, 16384  ;;  %p13737_p8 = scmp.lt.s32.totalorder %s157_s4, %s157_s4 }
  0x67   :  { %p13733_p7 = scmp.ne.s32.totalorder %s157_s4, %s13732_s5  ;;  %p13738_p9 = scmp.lt.s32.totalorder %s13732_s5, %s13732_s5 }
  0x69   :  { %p13739_p10 = por %p13738_p9, %p13737_p8 }
  0x6b   :  { %p13740_p11 = pnand %p13739_p10, %p13733_p7 }
  0x6d   :  { %13743 = shalt.err (!%p13740_p11)
}
  0x6e   :  { %162 = dma.hbm_to_vmem [thread:$0]  %s14985_s12, 16384, %s157_s4, [#allocation18], %s13987_s27, %s13987_s27, %s13988_s0  }
  0x6f   :  { %s13991_s22 = smov [#allocation20]   ;;  %s13992_s8 = smov [#allocation2]  }
  0x70   :  { %s182_s23 = sshll.u32 %s13991_s22, 4  ;;  %s44_s26 = sshll.u32 %s13992_s8, 4  ;;  %s183_s23 = int_to_ptr.vmem [resolvable:$true] %s182_s23  ;;  %s45_s26 = int_to_ptr.vmem [resolvable:$true] %s44_s26 }
  0x71   :  { %s13744_s1 = scalar_lea.hbm %s14988_s15, 128 }
  0x72   :  { %p13745_p12 = scmp.ne.s32.totalorder %s14988_s15, %s13744_s1  ;;  %p13748_p13 = scmp.lt.u32.totalorder %s13744_s1, %s14988_s15 }
  0x74   :  { %p13750_p0 = pnand %p13748_p13, %p13745_p12 }
  0x76   :  { %13753 = shalt.err (!%p13750_p0)
}
  0x77   :  { %s13754_s12 = scalar_lea.vmem %s183_s23, 128  ;;  %p13759_p2 = scmp.lt.s32.totalorder %s183_s23, %s183_s23 }
  0x78   :  { %p13755_p1 = scmp.ne.s32.totalorder %s183_s23, %s13754_s12  ;;  %p13760_p3 = scmp.lt.s32.totalorder %s13754_s12, %s13754_s12 }
  0x7a   :  { %p13761_p4 = por %p13760_p3, %p13759_p2 }
  0x7c   :  { %p13762_p5 = pnand %p13761_p4, %p13755_p1 }
  0x7e   :  { %13765 = shalt.err (!%p13762_p5)
}
  0x7f   :  { %s15006_s4 = smov 32   ;;  %s15007_s20 = smov 2  }
  0x80   :  { %188 = dma.hbm_to_vmem [thread:$0]  %s14988_s15, 128, %s183_s23, [#allocation21], %s15006_s4, %s15006_s4, %s15007_s20  }
  0x81   :  { %s15017_s8 = sld [smem:[#allocation39_spill]] }
  0x87   :  { %s13766_s25 = scalar_lea.hbm %s15017_s8, 768 }
  0x88   :  { %p13767_p6 = scmp.ne.s32.totalorder %s15017_s8, %s13766_s25  ;;  %p13770_p7 = scmp.lt.u32.totalorder %s13766_s25, %s15017_s8 }
  0x8a   :  { %p13772_p8 = pnand %p13770_p7, %p13767_p6 }
  0x8c   :  { %13775 = shalt.err (!%p13772_p8)
}
  0x8d   :  { %s13776_s28 = scalar_lea.vmem %s45_s26, 768  ;;  %p13781_p10 = scmp.lt.s32.totalorder %s45_s26, %s45_s26 }
  0x8e   :  { %p13777_p9 = scmp.ne.s32.totalorder %s45_s26, %s13776_s28  ;;  %p13782_p11 = scmp.lt.s32.totalorder %s13776_s28, %s13776_s28 }
  0x90   :  { %p13783_p12 = por %p13782_p11, %p13781_p10 }
  0x92   :  { %p13784_p13 = pnand %p13783_p12, %p13777_p9 }
  0x94   :  { %13787 = shalt.err (!%p13784_p13)
}
  0x95   :  { %s15018_s15 = smov 4   ;;  %s15019_s23 = smov 64  }
  0x96   :  { %50 = dma.hbm_to_vmem [thread:$0]  %s15017_s8, 768, %s45_s26, [#allocation3], %s15019_s23, %s15019_s23, %s15018_s15  }
  0x97   :  { %s13995_s5 = smov [#allocation7]   ;;  %s13996_s3 = smov [#allocation10]  }
  0x98   :  { %s68_s10 = sshll.u32 %s13995_s5, 4  ;;  %s92_s22 = sshll.u32 %s13996_s3, 4  ;;  %s69_s10 = int_to_ptr.vmem [resolvable:$true] %s68_s10  ;;  %s93_s22 = int_to_ptr.vmem [resolvable:$true] %s92_s22 }
  0x99   :  { %s15020_s1 = sld [smem:[#allocation41_spill]] }
  0x9f   :  { %s13788_s24 = scalar_lea.hbm %s15020_s1, 192 }
  0xa0   :  { %p13789_p0 = scmp.ne.s32.totalorder %s15020_s1, %s13788_s24  ;;  %p13792_p1 = scmp.lt.u32.totalorder %s13788_s24, %s15020_s1 }
  0xa2   :  { %p13794_p2 = pnand %p13792_p1, %p13789_p0 }
  0xa4   :  { %13797 = shalt.err (!%p13794_p2)
}
  0xa5   :  { %s13798_s26 = scalar_lea.vmem %s69_s10, 192  ;;  %p13803_p4 = scmp.lt.s32.totalorder %s69_s10, %s69_s10 }
  0xa6   :  { %p13799_p3 = scmp.ne.s32.totalorder %s69_s10, %s13798_s26  ;;  %p13804_p5 = scmp.lt.s32.totalorder %s13798_s26, %s13798_s26 }
  0xa8   :  { %p13805_p6 = por %p13804_p5, %p13803_p4 }
  0xaa   :  { %p13806_p7 = pnand %p13805_p6, %p13799_p3 }
  0xac   :  { %13809 = shalt.err (!%p13806_p7)
}
  0xad   :  { %74 = dma.hbm_to_vmem [thread:$0]  %s15020_s1, 192, %s69_s10, [#allocation6], %s15019_s23, %s15019_s23, %s15018_s15  }
  0xae   :  { %s15021_s20 = sld [smem:[#allocation43_spill]] }
  0xb4   :  { %s13810_s5 = scalar_lea.hbm %s15021_s20, 192 }
  0xb5   :  { %p13811_p8 = scmp.ne.s32.totalorder %s15021_s20, %s13810_s5  ;;  %p13814_p9 = scmp.lt.u32.totalorder %s13810_s5, %s15021_s20 }
  0xb7   :  { %p13816_p10 = pnand %p13814_p9, %p13811_p8 }
  0xb9   :  { %13819 = shalt.err (!%p13816_p10)
}
  0xba   :  { %s13820_s2 = scalar_lea.vmem %s93_s22, 192  ;;  %p13825_p12 = scmp.lt.s32.totalorder %s93_s22, %s93_s22 }
  0xbb   :  { %p13821_p11 = scmp.ne.s32.totalorder %s93_s22, %s13820_s2  ;;  %p13826_p13 = scmp.lt.s32.totalorder %s13820_s2, %s13820_s2 }
  0xbd   :  { %p13827_p0 = por %p13826_p13, %p13825_p12 }
  0xbf   :  { %p13828_p1 = pnand %p13827_p0, %p13821_p11 }
  0xc1   :  { %13831 = shalt.err (!%p13828_p1)
}
  0xc2   :  { %98 = dma.hbm_to_vmem [thread:$0]  %s15021_s20, 192, %s93_s22, [#allocation9], %s15019_s23, %s15019_s23, %s15018_s15  }
  0xc3   :  { %s13997_s28 = smov [#allocation13]   ;;  %s13998_s8 = smov [#allocation16]  }
  0xc4   :  { %s120_s26 = sshll.u32 %s13997_s28, 4  ;;  %s144_s30 = sshll.u32 %s13998_s8, 4  ;;  %s121_s26 = int_to_ptr.vmem [resolvable:$true] %s120_s26  ;;  %s145_s30 = int_to_ptr.vmem [resolvable:$true] %s144_s30 }
  0xc5   :  { %s13832_s5 = scalar_lea.hbm %s14982_s9, 98304 }
  0xc6   :  { %p13833_p2 = scmp.ne.s32.totalorder %s14982_s9, %s13832_s5  ;;  %p13836_p3 = scmp.lt.u32.totalorder %s13832_s5, %s14982_s9 }
  0xc8   :  { %p13838_p4 = pnand %p13836_p3, %p13833_p2 }
  0xca   :  { %13841 = shalt.err (!%p13838_p4)
}
  0xcb   :  { %s13842_s15 = scalar_lea.vmem %s121_s26, 98304  ;;  %p13847_p6 = scmp.lt.s32.totalorder %s121_s26, %s121_s26 }
  0xcc   :  { %p13843_p5 = scmp.ne.s32.totalorder %s121_s26, %s13842_s15  ;;  %p13848_p7 = scmp.lt.s32.totalorder %s13842_s15, %s13842_s15 }
  0xce   :  { %p13849_p8 = por %p13848_p7, %p13847_p6 }
  0xd0   :  { %p13850_p9 = pnand %p13849_p8, %p13843_p5 }
  0xd2   :  { %13853 = shalt.err (!%p13850_p9)
}
  0xd3   :  { %126 = dma.hbm_to_vmem [thread:$0]  %s14982_s9, 98304, %s121_s26, [#allocation12], %s13987_s27, %s13987_s27, %s13988_s0  }
  0xd4   :  { %s13854_s10 = scalar_lea.hbm %s14984_s11, 4096 }
  0xd5   :  { %p13855_p10 = scmp.ne.s32.totalorder %s14984_s11, %s13854_s10  ;;  %p13858_p11 = scmp.lt.u32.totalorder %s13854_s10, %s14984_s11 }
  0xd7   :  { %p13860_p12 = pnand %p13858_p11, %p13855_p10 }
  0xd9   :  { %13863 = shalt.err (!%p13860_p12)
}
  0xda   :  { %s13864_s4 = scalar_lea.vmem %s145_s30, 4096  ;;  %p13869_p0 = scmp.lt.s32.totalorder %s145_s30, %s145_s30 }
  0xdb   :  { %p13865_p13 = scmp.ne.s32.totalorder %s145_s30, %s13864_s4  ;;  %p13870_p1 = scmp.lt.s32.totalorder %s13864_s4, %s13864_s4 }
  0xdd   :  { %p13871_p2 = por %p13870_p1, %p13869_p0 }
  0xdf   :  { %p13872_p3 = pnand %p13871_p2, %p13865_p13 }
  0xe1   :  { %13875 = shalt.err (!%p13872_p3)
}
  0xe2   :  { %150 = dma.hbm_to_vmem [thread:$0]  %s14984_s11, 4096, %s145_s30, [#allocation15], %s13987_s27, %s13987_s27, %s13988_s0  }
  0xe3   :  { %s13999_s5 = smov [#allocation19]   ;;  %s14000_s25 = smov [#allocation22]  }
  0xe4   :  { %s170_s3 = sshll.u32 %s13999_s5, 4  ;;  %s195_s29 = sshll.u32 %s14000_s25, 4  ;;  %s171_s3 = int_to_ptr.vmem [resolvable:$true] %s170_s3  ;;  %s196_s29 = int_to_ptr.vmem [resolvable:$true] %s195_s29 }
  0xe5   :  { %s13876_s23 = scalar_lea.hbm %s14987_s14, 320 }
  0xe6   :  { %p13877_p4 = scmp.ne.s32.totalorder %s14987_s14, %s13876_s23  ;;  %p13880_p5 = scmp.lt.u32.totalorder %s13876_s23, %s14987_s14 }
  0xe8   :  { %p13882_p6 = pnand %p13880_p5, %p13877_p4 }
  0xea   :  { %13885 = shalt.err (!%p13882_p6)
}
  0xeb   :  { %s13886_s11 = scalar_lea.vmem %s171_s3, 320  ;;  %p13891_p8 = scmp.lt.s32.totalorder %s171_s3, %s171_s3 }
  0xec   :  { %p13887_p7 = scmp.ne.s32.totalorder %s171_s3, %s13886_s11  ;;  %p13892_p9 = scmp.lt.s32.totalorder %s13886_s11, %s13886_s11 }
  0xee   :  { %p13893_p10 = por %p13892_p9, %p13891_p8 }
  0xf0   :  { %p13894_p11 = pnand %p13893_p10, %p13887_p7 }
  0xf2   :  { %13897 = shalt.err (!%p13894_p11)
}
  0xf3   :  { %s15022_s27 = smov 2   ;;  %s15023_s0 = smov 32  }
  0xf4   :  { %176 = dma.hbm_to_vmem [thread:$0]  %s14987_s14, 320, %s171_s3, [#allocation18], %s15023_s0, %s15023_s0, %s15022_s27  }
  0xf5   :  { %s13898_s12 = scalar_lea.hbm %s14989_s16, 16 }
  0xf6   :  { %p13899_p12 = scmp.ne.s32.totalorder %s14989_s16, %s13898_s12  ;;  %p13902_p13 = scmp.lt.u32.totalorder %s13898_s12, %s14989_s16 }
  0xf8   :  { %p13904_p0 = pnand %p13902_p13, %p13899_p12 }
  0xfa   :  { %13907 = shalt.err (!%p13904_p0)
}
  0xfb   :  { %s13908_s25 = scalar_lea.vmem %s196_s29, 16  ;;  %s13912_s24 = scalar_lea.vmem %s196_s29, 32 }
  0xfc   :  { %p13909_p1 = scmp.ne.s32.totalorder %s196_s29, %s13908_s25  ;;  %p13913_p2 = scmp.lt.s32.totalorder %s196_s29, %s196_s29 }
  0xfd   :  { %p13914_p3 = scmp.lt.s32.totalorder %s13912_s24, %s13908_s25 }
  0xff   :  { %p13915_p4 = por %p13914_p3, %p13913_p2 }
 0x101   :  { %p13916_p5 = pnand %p13915_p4, %p13909_p1 }
 0x103   :  { %13919 = shalt.err (!%p13916_p5)
}
 0x104   :  { %198 = dma.hbm_to_vmem [thread:$0]  %s14989_s16, 16, %s196_s29, [#allocation21]  }
 0x105   :  { %s14001_s15 = smov [#allocation23]   ;;  %s13920_s2 = scalar_lea.hbm %s14990_s17, 16 }
 0x106   :  { %s205_s23 = sshll.u32 %s14001_s15, 4  ;;  %p13921_p6 = scmp.ne.s32.totalorder %s14990_s17, %s13920_s2  ;;  %s206_s23 = int_to_ptr.vmem [resolvable:$true] %s205_s23 }
 0x107   :  { %p13924_p7 = scmp.lt.u32.totalorder %s13920_s2, %s14990_s17 }
 0x109   :  { %p13926_p8 = pnand %p13924_p7, %p13921_p6 }
 0x10b   :  { %13929 = shalt.err (!%p13926_p8)
}
 0x10c   :  { %s13930_s30 = scalar_lea.vmem %s206_s23, 16  ;;  %s13934_s16 = scalar_lea.vmem %s206_s23, 32 }
 0x10d   :  { %p13931_p9 = scmp.ne.s32.totalorder %s206_s23, %s13930_s30  ;;  %p13935_p10 = scmp.lt.s32.totalorder %s206_s23, %s206_s23 }
 0x10e   :  { %p13936_p11 = scmp.lt.s32.totalorder %s13934_s16, %s13930_s30 }
 0x110   :  { %p13937_p12 = por %p13936_p11, %p13935_p10 }
 0x112   :  { %p13938_p13 = pnand %p13937_p12, %p13931_p9 }
 0x114   :  { %13941 = shalt.err (!%p13938_p13)
}
 0x115   :  { %208 = dma.hbm_to_vmem [thread:$0]  %s14990_s17, 16, %s206_s23, [#allocation24]  }
 0x116   :  { %13962 = dma.done.wait [#allocation3], 768  }
 0x117   :  { %13963 = vsyncadd [#allocation3], 4294966528 }
 0x118   :  { %13964 = dma.done.wait [#allocation6], 576  }
 0x119   :  { %13965 = vsyncadd [#allocation6], 4294966720 }
 0x11a   :  { %13966 = dma.done.wait [#allocation9], 576  }
 0x11b   :  { %13967 = vsyncadd [#allocation9], 4294966720 }
 0x11c   :  { %13968 = dma.done.wait [#allocation12], 101376  }
 0x11d   :  { %13969 = vsyncadd [#allocation12], 4294865920 }
 0x11e   :  { %13970 = dma.done.wait [#allocation15], 12288  }
 0x11f   :  { %13971 = vsyncadd [#allocation15], 4294955008 }
 0x120   :  { %13972 = dma.done.wait [#allocation18], 16704  }
 0x121   :  { %13973 = vsyncadd [#allocation18], 4294950592 }
 0x122   :  { %13974 = dma.done.wait [#allocation21], 144  }
 0x123   :  { %13975 = vsyncadd [#allocation21], 4294967152 }
 0x124   :  { %13976 = dma.done.wait [#allocation24], 16  }
 0x125   :  { %13977 = vsyncadd [#allocation24], 4294967280  ;;  %s15024_s12 = sld [smem:[#allocation38_spill]]  ;;  %vm275_vm0 = vcmask 261120   ;;  %v12022_v6 = vld [vmem:[#allocation2] sm:$0xff]   ;;  %v12023_v9 = vld [vmem:[#allocation2 + $0x8] sm:$0xff]   ;;  %v738_v47 = vlaneseq }
 0x126   :  { %11869 = vmatprep.mubr.msk.bf16.mxu1 %vm275_vm0, %v12022_v6  ;;  %v12024_v7 = vld [vmem:[#allocation2 + $0x20] sm:$0xff]   ;;  %v12025_v10 = vld [vmem:[#allocation2 + $0x28] sm:$0xff]   ;;  %v14002_v15 = vmov 0   ;;  %vm390_vm1 = vcmask 523264   ;;  %v260_v50 = vld [vmem:[#allocation19] sm:$0x3] }
 0x127   :  { %11877 = vmatprep.mubr.msk.bf16.mxu0 %vm275_vm0, %v12024_v7  ;;  %v12028_v8 = vld [vmem:[#allocation11 + $0x44] ss:$8 sps:$4 sm:$0xff]   ;;  %v12026_v11 = vld [vmem:[#allocation11 + $0x40] ss:$8 sps:$4 sm:$0xff]   ;;  %v12031_v12 = vld [vmem:[#allocation11 + $0x54] ss:$8 sps:$4 sm:$0xff]  }
 0x128   :  { %v12029_v13 = vld [vmem:[#allocation11 + $0x50] ss:$8 sps:$4 sm:$0xff]   ;;  %v12034_v14 = vld [vmem:[#allocation11 + $0x64] ss:$8 sps:$4 sm:$0xff]   ;;  %v12032_v16 = vld [vmem:[#allocation11 + $0x60] ss:$8 sps:$4 sm:$0xff]  }
 0x129   :  { %v12037_v17 = vld [vmem:[#allocation11 + $0x74] ss:$8 sps:$4 sm:$0xff]   ;;  %v12035_v18 = vld [vmem:[#allocation11 + $0x70] ss:$8 sps:$4 sm:$0xff]   ;;  %v12040_v19 = vld [vmem:[#allocation11 + $0x4] ss:$8 sps:$4 sm:$0xff]  }
 0x12a   :  { %v12038_v20 = vld [vmem:[#allocation11] ss:$8 sps:$4 sm:$0xff]   ;;  %v12043_v21 = vld [vmem:[#allocation11 + $0x14] ss:$8 sps:$4 sm:$0xff]   ;;  %v12041_v22 = vld [vmem:[#allocation11 + $0x10] ss:$8 sps:$4 sm:$0xff]  }
 0x12b   :  { %v254_v0 = vld [vmem:[%s15024_s12] sm:$0xff]  ;;  %v255_v1 = vld [vmem:[%s15024_s12 + $0x8] sm:$0xff]  ;;  %v256_v2 = vld [vmem:[%s15024_s12 + $0x10] sm:$0xff]  ;;  %v14357_v48 = vshrl.u32 %v738_v47, 7  ;;  %vm3707_vm2 = vcmask 130048   ;;  %vm5656_vm3 = vcmask 1043456  }
 0x12c   :  { %v258_v3 = vpack.c.bf16 %v255_v1, %v254_v0  ;;  %v257_v4 = vld [vmem:[%s15024_s12 + $0x18] sm:$0xff]  ;;  %v12049_v25 = vld [vmem:[#allocation11 + $0x34] ss:$8 sps:$4 sm:$0xff]   ;;  %v12047_v26 = vld [vmem:[#allocation11 + $0x30] ss:$8 sps:$4 sm:$0xff]   ;;  %vm5652_vm4 = vcmask 64512  }
 0x12d   :  { %v259_v5 = vpack.c.bf16 %v257_v4, %v256_v2  ;;  %v12046_v23 = vld [vmem:[#allocation11 + $0x24] ss:$8 sps:$4 sm:$0xff]   ;;  %v12044_v24 = vld [vmem:[#allocation11 + $0x20] ss:$8 sps:$4 sm:$0xff]   ;;  %v12055_v33 = vld [vmem:[#allocation11 + $0x94] ss:$8 sps:$4 sm:$0xff]  }
 0x12e   :  { %11865 = vmatprep.subr.bf16.mxu1 %v258_v3  ;;  %11873 = vmatprep.subr.bf16.mxu0 %v258_v3  ;;  %v12052_v27 = vld [vmem:[#allocation11 + $0x84] ss:$8 sps:$4 sm:$0xff]   ;;  %v12050_v30 = vld [vmem:[#allocation11 + $0x80] ss:$8 sps:$4 sm:$0xff]   ;;  %v12053_v41 = vld [vmem:[#allocation11 + $0x90] ss:$8 sps:$4 sm:$0xff]  }
 0x12f   :  { %11866 = vmatpush3.bf16.msra.mxu1 %v258_v3  ;;  %11874 = vmatpush3.bf16.msra.mxu0 %v258_v3  ;;  %v12058_v43 = vld [vmem:[#allocation11 + $0xa4] ss:$8 sps:$4 sm:$0xff]   ;;  %v12056_v44 = vld [vmem:[#allocation11 + $0xa0] ss:$8 sps:$4 sm:$0xff]   ;;  %v12061_v45 = vld [vmem:[#allocation11 + $0xb4] ss:$8 sps:$4 sm:$0xff]  }
 0x130   :  { %11867 = vmatprep.subr.bf16.mxu1 %v259_v5  ;;  %11875 = vmatprep.subr.bf16.mxu0 %v259_v5  ;;  %v12059_v46 = vld [vmem:[#allocation11 + $0xb0] ss:$8 sps:$4 sm:$0xff]   ;;  %v14360_v49 = vsub.s32 1, %v14357_v48  ;;  %v14363_v51 = vsub.s32 0, %v14357_v48  ;;  %vm6842_vm5 = vcmask 1040384   ;;  %vm6785_vm7 = vcmask 1041408  }
 0x131   :  { %vm6838_vm9 = vcmask 15360   ;;  %s13942_s0 = scalar_lea.hbm %s14994_s21, 16 }
 0x132   :  { %v745_v52 = vrot.slane %v260_v50, %v14360_v49  ;;  %v741_v53 = vrot.slane %v260_v50, %v14363_v51  ;;  %v12100_v50 = vld [vmem:[#allocation13 + $0x1c4] ss:$8 sps:$4 sm:$0xff]   ;;  %p13943_p0 = scmp.ne.s32.totalorder %s14994_s21, %s13942_s0  ;;  %p13946_p1 = scmp.lt.u32.totalorder %s13942_s0, %s14994_s21 }
 0x133   :  { %11868 = vmatpush3.bf16.msra.mxu1 %v259_v5  ;;  %11876 = vmatpush3.bf16.msra.mxu0 %v259_v5 }
 0x134   :  { %397 = vmatprep.subr.bf16.mxu1 %v12028_v8  ;;  %p13948_p2 = pnand %p13946_p1, %p13943_p0 }
 0x136   :  { %11870 = vmatmul.mubr.msk.bf16.vlgmr.msra.gmra.mrb[0].mxu1 %vm275_vm0, %v12023_v9  ;;  %11878 = vmatmul.mubr.msk.bf16.vlgmr.msra.gmra.mrb[0].mxu0 %vm275_vm0, %v12025_v10 }
 0x137   :  { %398 = vmatpush1.bf16.msra.mxu1 %v12026_v11  ;;  %429 = vmatprep.mubr.bf16.mxu1 %v14002_v15 }
 0x138   :  { %399 = vmatprep.subr.bf16.mxu1 %v12031_v12  ;;  %802 = vmatprep.mubr.bf16.mxu0 %v14002_v15 }
 0x13b   :  { %400 = vmatpush1.bf16.msra.mxu1 %v12029_v13 }
 0x13c   :  { %401 = vmatprep.subr.bf16.mxu1 %v12034_v14 }
 0x13f   :  { %402 = vmatpush1.bf16.msra.mxu1 %v12032_v16 }
 0x140   :  { %403 = vmatprep.subr.bf16.mxu1 %v12037_v17 }
 0x143   :  { %404 = vmatpush1.bf16.msra.mxu1 %v12035_v18  ;;  %v12064_v18 = vld [vmem:[#allocation13 + $0x104] ss:$8 sps:$4 sm:$0xff]  }
 0x144   :  { %496 = vmatprep.subr.bf16.mxu1 %v12040_v19 }
 0x146   :  { %10576 = vmatmul.mubr.msk.bf16.vlgmr.msra.gmra.mrb[4].mxu1 %vm390_vm1, %v258_v3 }
 0x147   :  { %497 = vmatpush1.bf16.msra.mxu1 %v12038_v20  ;;  %439 = vmatprep.mubr.bf16.mxu1 %v14002_v15  ;;  %v12062_v20 = vld [vmem:[#allocation13 + $0x100] ss:$8 sps:$4 sm:$0xff]  }
 0x148   :  { %498 = vmatprep.subr.bf16.mxu1 %v12043_v21  ;;  %v12067_v21 = vld [vmem:[#allocation13 + $0x114] ss:$8 sps:$4 sm:$0xff]  }
 0x14b   :  { %499 = vmatpush1.bf16.msra.mxu1 %v12041_v22  ;;  %v14419_v22 = vld [vmem:[#allocation2] sm:$0xff]  }
 0x14c   :  { %500 = vmatprep.subr.bf16.mxu1 %v12046_v23  ;;  %v14423_v23 = vld [vmem:[#allocation2 + $0x20] sm:$0xff]  }
 0x14e   :  { %10577 = vmatmul.mubr.msk.bf16.gmra.mrb[8].mxu1 %vm390_vm1, %v259_v5 }
 0x14f   :  { %501 = vmatpush1.bf16.msra.mxu1 %v12044_v24  ;;  %528 = vmatprep.mubr.bf16.mxu1 %v14002_v15  ;;  %v12065_v24 = vld [vmem:[#allocation13 + $0x110] ss:$8 sps:$4 sm:$0xff]  }
 0x150   :  { %502 = vmatprep.subr.bf16.mxu1 %v12049_v25  ;;  %v12070_v25 = vld [vmem:[#allocation13 + $0x124] ss:$8 sps:$4 sm:$0xff]  }
 0x153   :  { %503 = vmatpush1.bf16.msra.mxu1 %v12047_v26  ;;  %v12068_v26 = vld [vmem:[#allocation13 + $0x120] ss:$8 sps:$4 sm:$0xff]  }
 0x154   :  { %676 = vmatprep.subr.bf16.mxu1 %v12052_v27  ;;  %v12073_v27 = vld [vmem:[#allocation13 + $0x134] ss:$8 sps:$4 sm:$0xff]  }
 0x209   :  { %v11871_v28 = vpop.f32.mrb[0].mxu1  ;;  %v11879_v31 = vpop.f32.mrb[0].mxu0 }
 0x20a   :  { %v316_v29 = vpop.f32.mrb[1].mxu1  ;;  %v604_v34 = vpop.f32.mrb[1].mxu0 }
 0x20b   :  { %v11872_v32 = vpop.f32.mrb[2].mxu1  ;;  %v11880_v37 = vpop.f32.mrb[2].mxu0 }
 0x20c   :  { %v332_v35 = vpack.c.bf16 %v11872_v32, %v11871_v28  ;;  %v319_v36 = vpop.f32.mrb[3].mxu1  ;;  %v620_v39 = vpack.c.bf16 %v11880_v37, %v11879_v31  ;;  %v607_v40 = vpop.f32.mrb[3].mxu0  ;;  %v14429_v28 = vld [vmem:[#allocation2 + $0x8] sm:$0xff]   ;;  %v12076_v31 = vld [vmem:[#allocation13 + $0x144] ss:$8 sps:$4 sm:$0xff]  }
 0x20d   :  { %v331_v38 = vpack.c.bf16 %v319_v36, %v316_v29  ;;  %v619_v42 = vpack.c.bf16 %v607_v40, %v604_v34  ;;  %v14433_v29 = vld [vmem:[#allocation2 + $0x28] sm:$0xff]   ;;  %v12074_v32 = vld [vmem:[#allocation13 + $0x140] ss:$8 sps:$4 sm:$0xff]  }
 0x20e   :  { %v12077_v34 = vld [vmem:[#allocation13 + $0x150] ss:$8 sps:$4 sm:$0xff]   ;;  %v12080_v36 = vld [vmem:[#allocation13 + $0x160] ss:$8 sps:$4 sm:$0xff]   ;;  %v12085_v37 = vld [vmem:[#allocation13 + $0x174] ss:$8 sps:$4 sm:$0xff]  }
 0x20f   :  { %10586 = vmatmul.mubr.msk.bf16.vlgmr.msra.gmra.mrb[4].mxu1 %vm390_vm1, %v331_v38  ;;  %v12083_v38 = vld [vmem:[#allocation13 + $0x170] ss:$8 sps:$4 sm:$0xff]   ;;  %v12086_v40 = vld [vmem:[#allocation13 + $0x180] ss:$8 sps:$4 sm:$0xff]  }
 0x210   :  { %677 = vmatpush1.bf16.msra.mxu1 %v12050_v30  ;;  %538 = vmatprep.mubr.bf16.mxu1 %v14002_v15  ;;  %v12071_v30 = vld [vmem:[#allocation13 + $0x130] ss:$8 sps:$4 sm:$0xff]  }
 0x211   :  { %678 = vmatprep.subr.bf16.mxu1 %v12055_v33  ;;  %v12079_v33 = vld [vmem:[#allocation13 + $0x154] ss:$8 sps:$4 sm:$0xff]  }
 0x214   :  { %679 = vmatpush1.bf16.msra.mxu1 %v12053_v41  ;;  %v12091_v41 = vld [vmem:[#allocation13 + $0x194] ss:$8 sps:$4 sm:$0xff]  }
 0x215   :  { %680 = vmatprep.subr.bf16.mxu1 %v12058_v43  ;;  %v12094_v43 = vld [vmem:[#allocation13 + $0x1a4] ss:$8 sps:$4 sm:$0xff]  }
 0x217   :  { %10587 = vmatmul.mubr.msk.bf16.gmra.mrb[8].mxu1 %vm390_vm1, %v332_v35  ;;  %v12082_v35 = vld [vmem:[#allocation13 + $0x164] ss:$8 sps:$4 sm:$0xff]  }
 0x218   :  { %681 = vmatpush1.bf16.msra.mxu1 %v12056_v44  ;;  %708 = vmatprep.mubr.bf16.mxu1 %v14002_v15  ;;  %v12092_v44 = vld [vmem:[#allocation13 + $0x1a0] ss:$8 sps:$4 sm:$0xff]  }
 0x219   :  { %682 = vmatprep.subr.bf16.mxu1 %v12061_v45  ;;  %v12097_v45 = vld [vmem:[#allocation13 + $0x1b4] ss:$8 sps:$4 sm:$0xff]  }
 0x21c   :  { %683 = vmatpush1.bf16.msra.mxu1 %v12059_v46  ;;  %v12095_v46 = vld [vmem:[#allocation13 + $0x1b0] ss:$8 sps:$4 sm:$0xff]  }
 0x21f   :  { %10600 = vmatmul.mubr.msk.bf16.vlgmr.msra.gmra.mrb[4].mxu1 %vm390_vm1, %v619_v42  ;;  %v12089_v42 = vld [vmem:[#allocation13 + $0x190] ss:$8 sps:$4 sm:$0xff]  }
 0x220   :  { %718 = vmatprep.mubr.bf16.mxu1 %v14002_v15 }
 0x227   :  { %10601 = vmatmul.mubr.msk.bf16.gmra.mrb[8].mxu1 %vm390_vm1, %v620_v39  ;;  %v12088_v39 = vld [vmem:[#allocation13 + $0x184] ss:$8 sps:$4 sm:$0xff]  }
 0x228   :  { %1350 = vmatprep.mubr.bf16.mxu1 %v14002_v15 }
 0x2f2   :  { %v710_v54 = vpop.f32.mrb[4].mxu1 }
 0x2f3   :  { %v712_v55 = vpop.f32.mrb[5].mxu1  ;;  %v14369_v58 = vadd.f32 %v741_v53, %v710_v54  ;;  %v12101_v54 = vld [vmem:[#allocation13 + $0x1d0] ss:$8 sps:$4 sm:$0xff]  }
 0x2f4   :  { %v14367_v56 = vadd.f32 %v745_v52, %v712_v55  ;;  %v714_v57 = vpop.f32.mrb[6].mxu1  ;;  %v12106_v55 = vld [vmem:[#allocation13 + $0x1e4] ss:$8 sps:$4 sm:$0xff]  }
 0x2f5   :  { %v14371_v59 = vadd.f32 %v741_v53, %v714_v57  ;;  %v716_v60 = vpop.f32.mrb[7].mxu1  ;;  %v756_v1 = vmax.f32 %v14369_v58, 0.0  ;;  %v12104_v57 = vld [vmem:[#allocation13 + $0x1e0] ss:$8 sps:$4 sm:$0xff]  }
 0x2f6   :  { %v14373_v61 = vadd.f32 %v745_v52, %v716_v60  ;;  %v757_v63 = vmax.f32 %v14367_v56, 0.0  ;;  %v12109_v60 = vld [vmem:[#allocation13 + $0x1f4] ss:$8 sps:$4 sm:$0xff]  }
 0x2f7   :  { %v758_v62 = vmax.f32 %v14371_v59, 0.0 }
 0x2f8   :  { %v759_v0 = vmax.f32 %v14373_v61, 0.0 }
 0x2f9   :  { %v14387_v4 = vpack.c.bf16 %v758_v62, %v756_v1 }
 0x2fa   :  { %v765_v2 = vpack.c.bf16 %v759_v0, %v757_v63  ;;  %v720_v3 = vpop.f32.mrb[8].mxu1 }
 0x2fb   :  { %v722_v5 = vpop.f32.mrb[9].mxu1  ;;  %v14391_v8 = vadd.f32 %v741_v53, %v720_v3  ;;  %v12112_v3 = vld [vmem:[#allocation13 + $0x4] ss:$8 sps:$4 sm:$0xff]  }
 0x2fc   :  { %v14389_v6 = vadd.f32 %v745_v52, %v722_v5  ;;  %v724_v7 = vpop.f32.mrb[10].mxu1  ;;  %770 = vmatprep.subr.bf16.mxu0 %v765_v2  ;;  %1318 = vmatprep.subr.bf16.mxu1 %v765_v2  ;;  %v12110_v5 = vld [vmem:[#allocation13] ss:$8 sps:$4 sm:$0xff]  }
 0x2fd   :  { %v14393_v9 = vadd.f32 %v741_v53, %v724_v7  ;;  %v726_v10 = vpop.f32.mrb[11].mxu1  ;;  %771 = vmatpush1.bf16.msra.mxu0 %v14387_v4  ;;  %1319 = vmatpush1.bf16.msra.mxu1 %v14387_v4  ;;  %v760_v16 = vmax.f32 %v14391_v8, 0.0  ;;  %v12103_v53 = vld [vmem:[#allocation13 + $0x1d4] ss:$8 sps:$4 sm:$0xff]  }
 0x2fe   :  { %v14397_v11 = vadd.f32 %v745_v52, %v726_v10  ;;  %v761_v13 = vmax.f32 %v14389_v6, 0.0  ;;  %v12098_v52 = vld [vmem:[#allocation13 + $0x1c0] ss:$8 sps:$4 sm:$0xff]   ;;  %v12115_v7 = vld [vmem:[#allocation13 + $0x14] ss:$8 sps:$4 sm:$0xff]  }
 0x2ff   :  { %v762_v12 = vmax.f32 %v14393_v9, 0.0  ;;  %v12113_v10 = vld [vmem:[#allocation13 + $0x10] ss:$8 sps:$4 sm:$0xff]   ;;  %v12350_v6 = vld [vmem:[#allocation8 + $0x8] sm:$0xff]  }
 0x300   :  { %v763_v14 = vmax.f32 %v14397_v11, 0.0  ;;  %v12353_v9 = vld [vmem:[#allocation13 + $0x700] ss:$8 sps:$4 sm:$0xff]   ;;  %v12358_v11 = vld [vmem:[#allocation14 + $0x4] ss:$8 sps:$4 sm:$0xff]  }
 0x301   :  { %v14413_v19 = vpack.c.bf16 %v762_v12, %v760_v16 }
 0x302   :  { %v14407_v17 = vpack.c.bf16 %v763_v14, %v761_v13 }
 0x304   :  { %772 = vmatprep.subr.bf16.mxu0 %v14407_v17  ;;  %1320 = vmatprep.subr.bf16.mxu1 %v14407_v17 }
 0x305   :  { %773 = vmatpush1.bf16.msra.mxu0 %v14413_v19  ;;  %1321 = vmatpush1.bf16.msra.mxu1 %v14413_v19 }
 0x306   :  { %1052 = vmatprep.subr.bf16.mxu0 %v12064_v18  ;;  %v12118_v18 = vld [vmem:[#allocation13 + $0x24] ss:$8 sps:$4 sm:$0xff]  }
 0x308   :  { %10602 = vmatmul.mubr.msk.bf16.vlgmr.msra.gmra.mrb[4].mxu0 %vm275_vm0, %v14419_v22  ;;  %10668 = vmatmul.mubr.msk.bf16.vlgmr.msra.gmra.mrb[12].mxu1 %vm275_vm0, %v14423_v23 }
 0x309   :  { %1053 = vmatpush1.bf16.msra.mxu0 %v12062_v20  ;;  %812 = vmatprep.mubr.bf16.mxu0 %v14002_v15  ;;  %v12116_v20 = vld [vmem:[#allocation13 + $0x20] ss:$8 sps:$4 sm:$0xff]  }
 0x30a   :  { %1054 = vmatprep.subr.bf16.mxu0 %v12067_v21  ;;  %1360 = vmatprep.mubr.bf16.mxu1 %v14002_v15  ;;  %v12121_v21 = vld [vmem:[#allocation13 + $0x34] ss:$8 sps:$4 sm:$0xff]  }
 0x30d   :  { %1055 = vmatpush1.bf16.msra.mxu0 %v12065_v24  ;;  %v12119_v24 = vld [vmem:[#allocation13 + $0x30] ss:$8 sps:$4 sm:$0xff]  }
 0x30e   :  { %1056 = vmatprep.subr.bf16.mxu0 %v12070_v25  ;;  %v12124_v25 = vld [vmem:[#allocation13 + $0x44] ss:$8 sps:$4 sm:$0xff]  }
 0x310   :  { %10603 = vmatmul.mubr.msk.bf16.gmra.mrb[8].mxu0 %vm275_vm0, %v14429_v28  ;;  %10669 = vmatmul.mubr.msk.bf16.gmra.mrb[16].mxu1 %vm275_vm0, %v14433_v29 }
 0x311   :  { %1057 = vmatpush1.bf16.msra.mxu0 %v12068_v26  ;;  %1084 = vmatprep.mubr.bf16.mxu0 %v765_v2  ;;  %v12107_v2 = vld [vmem:[#allocation13 + $0x1f0] ss:$8 sps:$4 sm:$0xff]   ;;  %v12122_v26 = vld [vmem:[#allocation13 + $0x40] ss:$8 sps:$4 sm:$0xff]  }
 0x312   :  { %1058 = vmatprep.subr.bf16.mxu0 %v12073_v27  ;;  %1694 = vmatprep.mubr.bf16.mxu1 %v14002_v15  ;;  %v12130_v27 = vld [vmem:[#allocation13 + $0x64] ss:$8 sps:$4 sm:$0xff]  }
 0x315   :  { %1059 = vmatpush1.bf16.msra.mxu0 %v12071_v30  ;;  %v12128_v30 = vld [vmem:[#allocation13 + $0x60] ss:$8 sps:$4 sm:$0xff]  }
 0x316   :  { %1060 = vmatprep.subr.bf16.mxu0 %v12076_v31  ;;  %v12133_v31 = vld [vmem:[#allocation13 + $0x74] ss:$8 sps:$4 sm:$0xff]  }
 0x319   :  { %1061 = vmatpush1.bf16.msra.mxu0 %v12074_v32  ;;  %v12131_v32 = vld [vmem:[#allocation13 + $0x70] ss:$8 sps:$4 sm:$0xff]  }
 0x31a   :  { %1062 = vmatprep.subr.bf16.mxu0 %v12079_v33  ;;  %v12134_v33 = vld [vmem:[#allocation13 + $0x80] ss:$8 sps:$4 sm:$0xff]  }
 0x31d   :  { %1063 = vmatpush1.bf16.msra.mxu0 %v12077_v34  ;;  %v12139_v34 = vld [vmem:[#allocation13 + $0x94] ss:$8 sps:$4 sm:$0xff]  }
 0x31e   :  { %1064 = vmatprep.subr.bf16.mxu0 %v12082_v35  ;;  %v12137_v35 = vld [vmem:[#allocation13 + $0x90] ss:$8 sps:$4 sm:$0xff]  }
 0x321   :  { %1065 = vmatpush1.bf16.msra.mxu0 %v12080_v36  ;;  %v12142_v36 = vld [vmem:[#allocation13 + $0xa4] ss:$8 sps:$4 sm:$0xff]  }
 0x322   :  { %1066 = vmatprep.subr.bf16.mxu0 %v12085_v37  ;;  %v12140_v37 = vld [vmem:[#allocation13 + $0xa0] ss:$8 sps:$4 sm:$0xff]  }
 0x325   :  { %1067 = vmatpush1.bf16.msra.mxu0 %v12083_v38  ;;  %v12145_v38 = vld [vmem:[#allocation13 + $0xb4] ss:$8 sps:$4 sm:$0xff]  }
 0x326   :  { %1068 = vmatprep.subr.bf16.mxu0 %v12088_v39  ;;  %v12143_v39 = vld [vmem:[#allocation13 + $0xb0] ss:$8 sps:$4 sm:$0xff]  }
 0x329   :  { %1069 = vmatpush1.bf16.msra.mxu0 %v12086_v40  ;;  %v12148_v40 = vld [vmem:[#allocation13 + $0xc4] ss:$8 sps:$4 sm:$0xff]  }
 0x32a   :  { %1070 = vmatprep.subr.bf16.mxu0 %v12091_v41  ;;  %v12146_v41 = vld [vmem:[#allocation13 + $0xc0] ss:$8 sps:$4 sm:$0xff]  }
 0x32d   :  { %1071 = vmatpush1.bf16.msra.mxu0 %v12089_v42  ;;  %v12151_v42 = vld [vmem:[#allocation13 + $0xd4] ss:$8 sps:$4 sm:$0xff]  }
 0x32e   :  { %1072 = vmatprep.subr.bf16.mxu0 %v12094_v43  ;;  %v12149_v43 = vld [vmem:[#allocation13 + $0xd0] ss:$8 sps:$4 sm:$0xff]  }
 0x331   :  { %1073 = vmatpush1.bf16.msra.mxu0 %v12092_v44  ;;  %v12154_v44 = vld [vmem:[#allocation13 + $0xe4] ss:$8 sps:$4 sm:$0xff]  }
 0x332   :  { %1074 = vmatprep.subr.bf16.mxu0 %v12097_v45  ;;  %v12152_v45 = vld [vmem:[#allocation13 + $0xe0] ss:$8 sps:$4 sm:$0xff]  }
 0x335   :  { %1075 = vmatpush1.bf16.msra.mxu0 %v12095_v46  ;;  %v12157_v46 = vld [vmem:[#allocation13 + $0xf4] ss:$8 sps:$4 sm:$0xff]  }
 0x336   :  { %1076 = vmatprep.subr.bf16.mxu0 %v12100_v50  ;;  %v12155_v50 = vld [vmem:[#allocation13 + $0xf0] ss:$8 sps:$4 sm:$0xff]  }
 0x339   :  { %1077 = vmatpush1.bf16.msra.mxu0 %v12098_v52  ;;  %v12160_v52 = vld [vmem:[#allocation13 + $0x204] ss:$8 sps:$4 sm:$0xff]  }
 0x33a   :  { %1078 = vmatprep.subr.bf16.mxu0 %v12103_v53 }
 0x33d   :  { %1079 = vmatpush1.bf16.msra.mxu0 %v12101_v54 }
 0x33e   :  { %1080 = vmatprep.subr.bf16.mxu0 %v12106_v55 }
 0x341   :  { %1081 = vmatpush1.bf16.msra.mxu0 %v12104_v57 }
 0x342   :  { %1082 = vmatprep.subr.bf16.mxu0 %v12109_v60 }
 0x345   :  { %1083 = vmatpush1.bf16.msra.mxu0 %v12107_v2 }
 0x346   :  { %1265 = vmatprep.subr.bf16.mxu0 %v12112_v3 }
 0x348   :  { %1085 = vmatmul.mubr.bf16.vlgmr.msra.gmra.mrb[12].mxu0 %v14387_v4  ;;  %v12127_v4 = vld [vmem:[#allocation13 + $0x54] ss:$8 sps:$4 sm:$0xff]  }
 0x349   :  { %1094 = vmatprep.mubr.bf16.mxu0 %v14407_v17  ;;  %1266 = vmatpush1.bf16.msra.mxu0 %v12110_v5  ;;  %v12125_v17 = vld [vmem:[#allocation13 + $0x50] ss:$8 sps:$4 sm:$0xff]  }
 0x34a   :  { %1267 = vmatprep.subr.bf16.mxu0 %v12115_v7 }
 0x34d   :  { %1268 = vmatpush1.bf16.msra.mxu0 %v12113_v10 }
 0x34e   :  { %1269 = vmatprep.subr.bf16.mxu0 %v12118_v18 }
 0x350   :  { %1095 = vmatmul.mubr.bf16.gmra.mrb[16].mxu0 %v14413_v19  ;;  %v12136_v19 = vld [vmem:[#allocation13 + $0x84] ss:$8 sps:$4 sm:$0xff]  }
 0x351   :  { %1270 = vmatpush1.bf16.msra.mxu0 %v12116_v20  ;;  %v12158_v20 = vld [vmem:[#allocation13 + $0x200] ss:$8 sps:$4 sm:$0xff]  }
 0x352   :  { %1271 = vmatprep.subr.bf16.mxu0 %v12121_v21 }
 0x355   :  { %1272 = vmatpush1.bf16.msra.mxu0 %v12119_v24  ;;  %v12163_v24 = vld [vmem:[#allocation13 + $0x214] ss:$8 sps:$4 sm:$0xff]  }
 0x356   :  { %1273 = vmatprep.subr.bf16.mxu0 %v12124_v25  ;;  %v12161_v25 = vld [vmem:[#allocation13 + $0x210] ss:$8 sps:$4 sm:$0xff]  }
 0x359   :  { %1274 = vmatpush1.bf16.msra.mxu0 %v12122_v26 }
 0x35a   :  { %1275 = vmatprep.subr.bf16.mxu0 %v12127_v4 }
 0x35d   :  { %1276 = vmatpush1.bf16.msra.mxu0 %v12125_v17  ;;  %v12166_v17 = vld [vmem:[#allocation13 + $0x224] ss:$8 sps:$4 sm:$0xff]  }
 0x35e   :  { %1277 = vmatprep.subr.bf16.mxu0 %v12130_v27 }
 0x361   :  { %1278 = vmatpush1.bf16.msra.mxu0 %v12128_v30 }
 0x362   :  { %1279 = vmatprep.subr.bf16.mxu0 %v12133_v31 }
 0x365   :  { %1280 = vmatpush1.bf16.msra.mxu0 %v12131_v32 }
 0x366   :  { %1281 = vmatprep.subr.bf16.mxu0 %v12136_v19 }
 0x369   :  { %1282 = vmatpush1.bf16.msra.mxu0 %v12134_v33 }
 0x36a   :  { %1283 = vmatprep.subr.bf16.mxu0 %v12139_v34 }
 0x36d   :  { %1284 = vmatpush1.bf16.msra.mxu0 %v12137_v35 }
 0x36e   :  { %1285 = vmatprep.subr.bf16.mxu0 %v12142_v36  ;;  %v12164_v36 = vld [vmem:[#allocation13 + $0x220] ss:$8 sps:$4 sm:$0xff]  }
 0x371   :  { %1286 = vmatpush1.bf16.msra.mxu0 %v12140_v37 }
 0x372   :  { %1287 = vmatprep.subr.bf16.mxu0 %v12145_v38 }
 0x375   :  { %1288 = vmatpush1.bf16.msra.mxu0 %v12143_v39  ;;  %v12169_v39 = vld [vmem:[#allocation13 + $0x234] ss:$8 sps:$4 sm:$0xff]  }
 0x376   :  { %1289 = vmatprep.subr.bf16.mxu0 %v12148_v40  ;;  %v12167_v40 = vld [vmem:[#allocation13 + $0x230] ss:$8 sps:$4 sm:$0xff]  }
 0x379   :  { %1290 = vmatpush1.bf16.msra.mxu0 %v12146_v41  ;;  %v12172_v41 = vld [vmem:[#allocation13 + $0x244] ss:$8 sps:$4 sm:$0xff]  }
 0x37a   :  { %1291 = vmatprep.subr.bf16.mxu0 %v12151_v42  ;;  %v12170_v42 = vld [vmem:[#allocation13 + $0x240] ss:$8 sps:$4 sm:$0xff]  }
 0x37d   :  { %1292 = vmatpush1.bf16.msra.mxu0 %v12149_v43  ;;  %v12175_v43 = vld [vmem:[#allocation13 + $0x254] ss:$8 sps:$4 sm:$0xff]  }
 0x37e   :  { %1293 = vmatprep.subr.bf16.mxu0 %v12154_v44  ;;  %v12173_v44 = vld [vmem:[#allocation13 + $0x250] ss:$8 sps:$4 sm:$0xff]  }
 0x381   :  { %1294 = vmatpush1.bf16.msra.mxu0 %v12152_v45  ;;  %v12178_v45 = vld [vmem:[#allocation13 + $0x264] ss:$8 sps:$4 sm:$0xff]  }
 0x382   :  { %1295 = vmatprep.subr.bf16.mxu0 %v12157_v46  ;;  %v12176_v46 = vld [vmem:[#allocation13 + $0x260] ss:$8 sps:$4 sm:$0xff]  }
 0x385   :  { %1296 = vmatpush1.bf16.msra.mxu0 %v12155_v50  ;;  %v12181_v50 = vld [vmem:[#allocation13 + $0x274] ss:$8 sps:$4 sm:$0xff]  }
 0x386   :  { %1568 = vmatprep.subr.bf16.mxu0 %v12160_v52  ;;  %v12179_v52 = vld [vmem:[#allocation13 + $0x270] ss:$8 sps:$4 sm:$0xff]  }
 0x3db   :  { %v804_v53 = vpop.f32.mrb[4].mxu0  ;;  %v14441_v54 = vpop.f32.mrb[12].mxu1 }
 0x3dc   :  { %v806_v55 = vpop.f32.mrb[5].mxu0  ;;  %v1354_v57 = vpop.f32.mrb[13].mxu1 }
 0x3dd   :  { %v808_v60 = vpop.f32.mrb[6].mxu0  ;;  %v14443_v2 = vpop.f32.mrb[14].mxu1 }
 0x3de   :  { %v823_v3 = vpack.c.bf16 %v808_v60, %v804_v53  ;;  %v810_v5 = vpop.f32.mrb[7].mxu0  ;;  %v1371_v7 = vpack.c.bf16 %v14443_v2, %v14441_v54  ;;  %v1358_v10 = vpop.f32.mrb[15].mxu1  ;;  %v12184_v53 = vld [vmem:[#allocation13 + $0x284] ss:$8 sps:$4 sm:$0xff]   ;;  %v12185_v60 = vld [vmem:[#allocation13 + $0x290] ss:$8 sps:$4 sm:$0xff]  }
 0x3df   :  { %v824_v18 = vpack.c.bf16 %v810_v5, %v806_v55  ;;  %v1372_v21 = vpack.c.bf16 %v1358_v10, %v1354_v57  ;;  %v12182_v55 = vld [vmem:[#allocation13 + $0x280] ss:$8 sps:$4 sm:$0xff]   ;;  %v12187_v57 = vld [vmem:[#allocation13 + $0x294] ss:$8 sps:$4 sm:$0xff]  }
 0x3e0   :  { %v12188_v5 = vld [vmem:[#allocation13 + $0x2a0] ss:$8 sps:$4 sm:$0xff]   ;;  %v12193_v10 = vld [vmem:[#allocation13 + $0x2b4] ss:$8 sps:$4 sm:$0xff]  }
 0x3e1   :  { %1297 = vmatprep.mubr.bf16.mxu0 %v824_v18  ;;  %v12191_v18 = vld [vmem:[#allocation13 + $0x2b0] ss:$8 sps:$4 sm:$0xff]  }
 0x3e2   :  { %1298 = vmatmul.mubr.bf16.vlgmr.msra.gmra.mrb[12].mxu0 %v823_v3  ;;  %v12190_v3 = vld [vmem:[#allocation13 + $0x2a4] ss:$8 sps:$4 sm:$0xff]  }
 0x3e3   :  { %1569 = vmatpush1.bf16.msra.mxu0 %v12158_v20  ;;  %v814_v26 = vpop.f32.mrb[8].mxu0  ;;  %v14447_v4 = vpop.f32.mrb[16].mxu1  ;;  %v12196_v20 = vld [vmem:[#allocation13 + $0x2c4] ss:$8 sps:$4 sm:$0xff]  }
 0x3e4   :  { %1570 = vmatprep.subr.bf16.mxu0 %v12163_v24  ;;  %v816_v27 = vpop.f32.mrb[9].mxu0  ;;  %v14449_v30 = vpop.f32.mrb[17].mxu1  ;;  %v12199_v24 = vld [vmem:[#allocation13 + $0x2d4] ss:$8 sps:$4 sm:$0xff]  }
 0x3e5   :  { %v818_v31 = vpop.f32.mrb[10].mxu0  ;;  %v14451_v32 = vpop.f32.mrb[18].mxu1 }
 0x3e6   :  { %v825_v19 = vpack.c.bf16 %v818_v31, %v814_v26  ;;  %v820_v33 = vpop.f32.mrb[11].mxu0  ;;  %v1373_v34 = vpack.c.bf16 %v14451_v32, %v14447_v4  ;;  %v14455_v35 = vpop.f32.mrb[19].mxu1  ;;  %v12202_v26 = vld [vmem:[#allocation13 + $0x2e4] ss:$8 sps:$4 sm:$0xff]   ;;  %v769_v31 = vld [vmem:[#allocation19 + $0x2] sm:$0x3] }
 0x3e7   :  { %1571 = vmatpush1.bf16.msra.mxu0 %v12161_v25  ;;  %v826_v37 = vpack.c.bf16 %v820_v33, %v816_v27  ;;  %v1374_v38 = vpack.c.bf16 %v14455_v35, %v14449_v30  ;;  %v12197_v25 = vld [vmem:[#allocation13 + $0x2d0] ss:$8 sps:$4 sm:$0xff]   ;;  %v12205_v27 = vld [vmem:[#allocation13 + $0x2f4] ss:$8 sps:$4 sm:$0xff]   ;;  %v1637_v33 = vrot.slane %v769_v31, %v14360_v49 }
 0x3e8   :  { %1572 = vmatprep.subr.bf16.mxu0 %v12166_v17  ;;  %v12200_v17 = vld [vmem:[#allocation13 + $0x2e0] ss:$8 sps:$4 sm:$0xff]   ;;  %v12203_v30 = vld [vmem:[#allocation13 + $0x2f0] ss:$8 sps:$4 sm:$0xff]  }
 0x3e9   :  { %1307 = vmatprep.mubr.bf16.mxu0 %v826_v37 }
 0x3ea   :  { %1308 = vmatmul.mubr.bf16.gmra.mrb[16].mxu0 %v825_v19  ;;  %v1633_v19 = vrot.slane %v769_v31, %v14363_v51  ;;  %v12220_v31 = vld [vmem:[#allocation13 + $0x444] ss:$8 sps:$4 sm:$0xff]  }
 0x3eb   :  { %1573 = vmatpush1.bf16.msra.mxu0 %v12164_v36  ;;  %1600 = vmatprep.mubr.bf16.mxu0 %v1372_v21  ;;  %v12194_v21 = vld [vmem:[#allocation13 + $0x2c0] ss:$8 sps:$4 sm:$0xff]  }
 0x3ec   :  { %1574 = vmatprep.subr.bf16.mxu0 %v12169_v39 }
 0x3ef   :  { %1575 = vmatpush1.bf16.msra.mxu0 %v12167_v40 }
 0x3f0   :  { %1576 = vmatprep.subr.bf16.mxu0 %v12172_v41 }
 0x3f3   :  { %1577 = vmatpush1.bf16.msra.mxu0 %v12170_v42 }
 0x3f4   :  { %1578 = vmatprep.subr.bf16.mxu0 %v12175_v43 }
 0x3f7   :  { %1579 = vmatpush1.bf16.msra.mxu0 %v12173_v44 }
 0x3f8   :  { %1580 = vmatprep.subr.bf16.mxu0 %v12178_v45 }
 0x3fb   :  { %1581 = vmatpush1.bf16.msra.mxu0 %v12176_v46 }
 0x3fc   :  { %1582 = vmatprep.subr.bf16.mxu0 %v12181_v50 }
 0x3ff   :  { %1583 = vmatpush1.bf16.msra.mxu0 %v12179_v52 }
 0x400   :  { %1584 = vmatprep.subr.bf16.mxu0 %v12184_v53 }
 0x403   :  { %1585 = vmatpush1.bf16.msra.mxu0 %v12182_v55 }
 0x404   :  { %1586 = vmatprep.subr.bf16.mxu0 %v12187_v57 }
 0x407   :  { %1587 = vmatpush1.bf16.msra.mxu0 %v12185_v60 }
 0x408   :  { %1588 = vmatprep.subr.bf16.mxu0 %v12190_v3 }
 0x40b   :  { %1589 = vmatpush1.bf16.msra.mxu0 %v12188_v5 }
 0x40c   :  { %1590 = vmatprep.subr.bf16.mxu0 %v12193_v10 }
 0x40f   :  { %1591 = vmatpush1.bf16.msra.mxu0 %v12191_v18 }
 0x410   :  { %1592 = vmatprep.subr.bf16.mxu0 %v12196_v20  ;;  %v12208_v20 = vld [vmem:[#allocation13 + $0x404] ss:$8 sps:$4 sm:$0xff]  }
 0x413   :  { %1593 = vmatpush1.bf16.msra.mxu0 %v12194_v21  ;;  %v12206_v21 = vld [vmem:[#allocation13 + $0x400] ss:$8 sps:$4 sm:$0xff]  }
 0x414   :  { %1594 = vmatprep.subr.bf16.mxu0 %v12199_v24  ;;  %v12211_v24 = vld [vmem:[#allocation13 + $0x414] ss:$8 sps:$4 sm:$0xff]  }
 0x417   :  { %1595 = vmatpush1.bf16.msra.mxu0 %v12197_v25  ;;  %v12209_v25 = vld [vmem:[#allocation13 + $0x410] ss:$8 sps:$4 sm:$0xff]  }
 0x418   :  { %1596 = vmatprep.subr.bf16.mxu0 %v12202_v26  ;;  %v12214_v26 = vld [vmem:[#allocation13 + $0x424] ss:$8 sps:$4 sm:$0xff]  }
 0x41b   :  { %1597 = vmatpush1.bf16.msra.mxu0 %v12200_v17  ;;  %v12212_v17 = vld [vmem:[#allocation13 + $0x420] ss:$8 sps:$4 sm:$0xff]  }
 0x41c   :  { %1598 = vmatprep.subr.bf16.mxu0 %v12205_v27  ;;  %v12217_v27 = vld [vmem:[#allocation13 + $0x434] ss:$8 sps:$4 sm:$0xff]  }
 0x41f   :  { %1599 = vmatpush1.bf16.msra.mxu0 %v12203_v30  ;;  %v12215_v30 = vld [vmem:[#allocation13 + $0x430] ss:$8 sps:$4 sm:$0xff]  }
 0x422   :  { %1601 = vmatmul.mubr.bf16.vlgmr.msra.gmra.mrb[12].mxu0 %v1371_v7 }
 0x423   :  { %1610 = vmatprep.mubr.bf16.mxu0 %v1374_v38 }
 0x42a   :  { %1611 = vmatmul.mubr.bf16.gmra.mrb[16].mxu0 %v1373_v34 }
 0x42b   :  { %2694 = vmatprep.mubr.bf16.mxu0 %v14002_v15 }
 0x4f5   :  { %v1602_v35 = vpop.f32.mrb[12].mxu0 }
 0x4f6   :  { %v1640_v36 = vadd.f32 %v1633_v19, %v1602_v35  ;;  %v1604_v37 = vpop.f32.mrb[13].mxu0  ;;  %v12226_v35 = vld [vmem:[#allocation13 + $0x464] ss:$8 sps:$4 sm:$0xff]  }
 0x4f7   :  { %v1641_v39 = vadd.f32 %v1637_v33, %v1604_v37  ;;  %v1606_v40 = vpop.f32.mrb[14].mxu0  ;;  %v12229_v37 = vld [vmem:[#allocation13 + $0x474] ss:$8 sps:$4 sm:$0xff]  }
 0x4f8   :  { %v1642_v41 = vadd.f32 %v1633_v19, %v1606_v40  ;;  %v1608_v54 = vpop.f32.mrb[15].mxu0  ;;  %v1648_v7 = vmax.f32 %v1640_v36, 0.0  ;;  %v12224_v36 = vld [vmem:[#allocation13 + $0x460] ss:$8 sps:$4 sm:$0xff]  }
 0x4f9   :  { %v1643_v2 = vadd.f32 %v1637_v33, %v1608_v54  ;;  %v1649_v42 = vmax.f32 %v1641_v39, 0.0  ;;  %v12232_v39 = vld [vmem:[#allocation13 + $0x484] ss:$8 sps:$4 sm:$0xff]   ;;  %v12230_v40 = vld [vmem:[#allocation13 + $0x480] ss:$8 sps:$4 sm:$0xff]  }
 0x4fa   :  { %v1650_v38 = vmax.f32 %v1642_v41, 0.0  ;;  %v12235_v41 = vld [vmem:[#allocation13 + $0x494] ss:$8 sps:$4 sm:$0xff]   ;;  %v12233_v54 = vld [vmem:[#allocation13 + $0x490] ss:$8 sps:$4 sm:$0xff]  }
 0x4fb   :  { %v1651_v4 = vmax.f32 %v1643_v2, 0.0  ;;  %v12238_v2 = vld [vmem:[#allocation13 + $0x4a4] ss:$8 sps:$4 sm:$0xff]  }
 0x4fc   :  { %v14468_v32 = vpack.c.bf16 %v1650_v38, %v1648_v7  ;;  %v12236_v7 = vld [vmem:[#allocation13 + $0x4a0] ss:$8 sps:$4 sm:$0xff]   ;;  %v12241_v38 = vld [vmem:[#allocation13 + $0x4b4] ss:$8 sps:$4 sm:$0xff]  }
 0x4fd   :  { %v14470_v34 = vpack.c.bf16 %v1651_v4, %v1649_v42  ;;  %v1612_v43 = vpop.f32.mrb[16].mxu0  ;;  %v12239_v42 = vld [vmem:[#allocation13 + $0x4b0] ss:$8 sps:$4 sm:$0xff]   ;;  %v12244_v4 = vld [vmem:[#allocation13 + $0x4c4] ss:$8 sps:$4 sm:$0xff]  }
 0x4fe   :  { %v1644_v44 = vadd.f32 %v1633_v19, %v1612_v43  ;;  %v1614_v45 = vpop.f32.mrb[17].mxu0  ;;  %v12242_v43 = vld [vmem:[#allocation13 + $0x4c0] ss:$8 sps:$4 sm:$0xff]  }
 0x4ff   :  { %v1645_v46 = vadd.f32 %v1637_v33, %v1614_v45  ;;  %v1616_v50 = vpop.f32.mrb[18].mxu0  ;;  %1662 = vmatprep.subr.bf16.mxu1 %v14470_v34  ;;  %v12245_v45 = vld [vmem:[#allocation13 + $0x4d0] ss:$8 sps:$4 sm:$0xff]  }
 0x500   :  { %v1646_v52 = vadd.f32 %v1633_v19, %v1616_v50  ;;  %v1618_v53 = vpop.f32.mrb[19].mxu0  ;;  %1663 = vmatpush1.bf16.msra.mxu1 %v14468_v32  ;;  %v1652_v57 = vmax.f32 %v1644_v44, 0.0  ;;  %v12223_v19 = vld [vmem:[#allocation13 + $0x454] ss:$8 sps:$4 sm:$0xff]   ;;  %v12248_v50 = vld [vmem:[#allocation13 + $0x4e0] ss:$8 sps:$4 sm:$0xff]  }
 0x501   :  { %v1647_v55 = vadd.f32 %v1637_v33, %v1618_v53  ;;  %v1653_v3 = vmax.f32 %v1645_v46, 0.0  ;;  %v12221_v33 = vld [vmem:[#allocation13 + $0x450] ss:$8 sps:$4 sm:$0xff]   ;;  %v12247_v44 = vld [vmem:[#allocation13 + $0x4d4] ss:$8 sps:$4 sm:$0xff]  }
 0x502   :  { %v1654_v60 = vmax.f32 %v1646_v52, 0.0  ;;  %v12250_v46 = vld [vmem:[#allocation13 + $0x4e4] ss:$8 sps:$4 sm:$0xff]   ;;  %v12253_v52 = vld [vmem:[#allocation13 + $0x4f4] ss:$8 sps:$4 sm:$0xff]  }
 0x503   :  { %v1655_v5 = vmax.f32 %v1647_v55, 0.0  ;;  %v12251_v53 = vld [vmem:[#allocation13 + $0x4f0] ss:$8 sps:$4 sm:$0xff]   ;;  %v12256_v55 = vld [vmem:[#allocation13 + $0x304] ss:$8 sps:$4 sm:$0xff]  }
 0x504   :  { %v14474_v10 = vpack.c.bf16 %v1654_v60, %v1652_v57  ;;  %v12254_v57 = vld [vmem:[#allocation13 + $0x300] ss:$8 sps:$4 sm:$0xff]   ;;  %v12259_v60 = vld [vmem:[#allocation13 + $0x314] ss:$8 sps:$4 sm:$0xff]  }
 0x505   :  { %v14476_v18 = vpack.c.bf16 %v1655_v5, %v1653_v3  ;;  %v12257_v3 = vld [vmem:[#allocation13 + $0x310] ss:$8 sps:$4 sm:$0xff]   ;;  %v12262_v5 = vld [vmem:[#allocation13 + $0x324] ss:$8 sps:$4 sm:$0xff]  }
 0x507   :  { %1664 = vmatprep.subr.bf16.mxu1 %v14476_v18 }
 0x508   :  { %1665 = vmatpush1.bf16.msra.mxu1 %v14474_v10 }
 0x509   :  { %1945 = vmatprep.subr.bf16.mxu1 %v12208_v20  ;;  %v12260_v20 = vld [vmem:[#allocation13 + $0x320] ss:$8 sps:$4 sm:$0xff]  }
 0x50b   :  { %10702 = vmatmul.mubr.msk.bf16.vlgmr.msra.gmra.mrb[20].mxu1 %vm275_vm0, %v14419_v22  ;;  %v12218_v22 = vld [vmem:[#allocation13 + $0x440] ss:$8 sps:$4 sm:$0xff]  }
 0x50c   :  { %1946 = vmatpush1.bf16.msra.mxu1 %v12206_v21  ;;  %1704 = vmatprep.mubr.bf16.mxu1 %v14002_v15  ;;  %v12265_v21 = vld [vmem:[#allocation13 + $0x334] ss:$8 sps:$4 sm:$0xff]  }
 0x50d   :  { %1947 = vmatprep.subr.bf16.mxu1 %v12211_v24  ;;  %v12263_v24 = vld [vmem:[#allocation13 + $0x330] ss:$8 sps:$4 sm:$0xff]  }
 0x510   :  { %1948 = vmatpush1.bf16.msra.mxu1 %v12209_v25  ;;  %v12268_v25 = vld [vmem:[#allocation13 + $0x344] ss:$8 sps:$4 sm:$0xff]  }
 0x511   :  { %1949 = vmatprep.subr.bf16.mxu1 %v12214_v26  ;;  %v12266_v26 = vld [vmem:[#allocation13 + $0x340] ss:$8 sps:$4 sm:$0xff]  }
 0x513   :  { %10703 = vmatmul.mubr.msk.bf16.gmra.mrb[24].mxu1 %vm275_vm0, %v14429_v28  ;;  %v12227_v28 = vld [vmem:[#allocation13 + $0x470] ss:$8 sps:$4 sm:$0xff]  }
 0x514   :  { %1950 = vmatpush1.bf16.msra.mxu1 %v12212_v17  ;;  %1977 = vmatprep.mubr.bf16.mxu1 %v14470_v34  ;;  %v12271_v17 = vld [vmem:[#allocation13 + $0x354] ss:$8 sps:$4 sm:$0xff]  }
 0x515   :  { %1951 = vmatprep.subr.bf16.mxu1 %v12217_v27  ;;  %v12269_v27 = vld [vmem:[#allocation13 + $0x350] ss:$8 sps:$4 sm:$0xff]  }
 0x518   :  { %1952 = vmatpush1.bf16.msra.mxu1 %v12215_v30  ;;  %v12274_v30 = vld [vmem:[#allocation13 + $0x364] ss:$8 sps:$4 sm:$0xff]  }
 0x519   :  { %1953 = vmatprep.subr.bf16.mxu1 %v12220_v31  ;;  %v12272_v31 = vld [vmem:[#allocation13 + $0x360] ss:$8 sps:$4 sm:$0xff]  }
 0x51c   :  { %1954 = vmatpush1.bf16.msra.mxu1 %v12218_v22  ;;  %v12277_v22 = vld [vmem:[#allocation13 + $0x374] ss:$8 sps:$4 sm:$0xff]  }
 0x51d   :  { %1955 = vmatprep.subr.bf16.mxu1 %v12223_v19  ;;  %v12275_v19 = vld [vmem:[#allocation13 + $0x370] ss:$8 sps:$4 sm:$0xff]  }
 0x520   :  { %1956 = vmatpush1.bf16.msra.mxu1 %v12221_v33  ;;  %v12280_v33 = vld [vmem:[#allocation13 + $0x384] ss:$8 sps:$4 sm:$0xff]  }
 0x521   :  { %1957 = vmatprep.subr.bf16.mxu1 %v12226_v35  ;;  %v12278_v35 = vld [vmem:[#allocation13 + $0x380] ss:$8 sps:$4 sm:$0xff]  }
 0x524   :  { %1958 = vmatpush1.bf16.msra.mxu1 %v12224_v36  ;;  %v12283_v36 = vld [vmem:[#allocation13 + $0x394] ss:$8 sps:$4 sm:$0xff]  }
 0x525   :  { %1959 = vmatprep.subr.bf16.mxu1 %v12229_v37  ;;  %v12281_v37 = vld [vmem:[#allocation13 + $0x390] ss:$8 sps:$4 sm:$0xff]  }
 0x528   :  { %1960 = vmatpush1.bf16.msra.mxu1 %v12227_v28  ;;  %v12286_v28 = vld [vmem:[#allocation13 + $0x3a4] ss:$8 sps:$4 sm:$0xff]  }
 0x529   :  { %1961 = vmatprep.subr.bf16.mxu1 %v12232_v39  ;;  %v12284_v39 = vld [vmem:[#allocation13 + $0x3a0] ss:$8 sps:$4 sm:$0xff]  }
 0x52c   :  { %1962 = vmatpush1.bf16.msra.mxu1 %v12230_v40  ;;  %v12289_v40 = vld [vmem:[#allocation13 + $0x3b4] ss:$8 sps:$4 sm:$0xff]  }
 0x52d   :  { %1963 = vmatprep.subr.bf16.mxu1 %v12235_v41  ;;  %v12287_v41 = vld [vmem:[#allocation13 + $0x3b0] ss:$8 sps:$4 sm:$0xff]  }
 0x530   :  { %1964 = vmatpush1.bf16.msra.mxu1 %v12233_v54  ;;  %v12292_v54 = vld [vmem:[#allocation13 + $0x3c4] ss:$8 sps:$4 sm:$0xff]  }
 0x531   :  { %1965 = vmatprep.subr.bf16.mxu1 %v12238_v2  ;;  %v12290_v2 = vld [vmem:[#allocation13 + $0x3c0] ss:$8 sps:$4 sm:$0xff]  }
 0x534   :  { %1966 = vmatpush1.bf16.msra.mxu1 %v12236_v7  ;;  %v12295_v7 = vld [vmem:[#allocation13 + $0x3d4] ss:$8 sps:$4 sm:$0xff]  }
 0x535   :  { %1967 = vmatprep.subr.bf16.mxu1 %v12241_v38  ;;  %v12293_v38 = vld [vmem:[#allocation13 + $0x3d0] ss:$8 sps:$4 sm:$0xff]  }
 0x538   :  { %1968 = vmatpush1.bf16.msra.mxu1 %v12239_v42  ;;  %v12298_v42 = vld [vmem:[#allocation13 + $0x3e4] ss:$8 sps:$4 sm:$0xff]  }
 0x539   :  { %1969 = vmatprep.subr.bf16.mxu1 %v12244_v4  ;;  %v12296_v4 = vld [vmem:[#allocation13 + $0x3e0] ss:$8 sps:$4 sm:$0xff]  }
 0x53c   :  { %1970 = vmatpush1.bf16.msra.mxu1 %v12242_v43  ;;  %v12301_v43 = vld [vmem:[#allocation13 + $0x3f4] ss:$8 sps:$4 sm:$0xff]  }
 0x53d   :  { %1971 = vmatprep.subr.bf16.mxu1 %v12247_v44  ;;  %v12299_v44 = vld [vmem:[#allocation13 + $0x3f0] ss:$8 sps:$4 sm:$0xff]  }
 0x540   :  { %1972 = vmatpush1.bf16.msra.mxu1 %v12245_v45 }
 0x541   :  { %1973 = vmatprep.subr.bf16.mxu1 %v12250_v46 }
 0x544   :  { %1974 = vmatpush1.bf16.msra.mxu1 %v12248_v50 }
 0x545   :  { %1975 = vmatprep.subr.bf16.mxu1 %v12253_v52 }
 0x548   :  { %1976 = vmatpush1.bf16.msra.mxu1 %v12251_v53 }
 0x549   :  { %2158 = vmatprep.subr.bf16.mxu1 %v12256_v55 }
 0x54b   :  { %1978 = vmatmul.mubr.bf16.vlgmr.msra.gmra.mrb[28].mxu1 %v14468_v32 }
 0x54c   :  { %1987 = vmatprep.mubr.bf16.mxu1 %v14476_v18  ;;  %2159 = vmatpush1.bf16.msra.mxu1 %v12254_v57 }
 0x54d   :  { %2160 = vmatprep.subr.bf16.mxu1 %v12259_v60 }
 0x550   :  { %2161 = vmatpush1.bf16.msra.mxu1 %v12257_v3  ;;  %v12304_v3 = vld [vmem:[#allocation13 + $0x504] ss:$8 sps:$4 sm:$0xff]  }
 0x551   :  { %2162 = vmatprep.subr.bf16.mxu1 %v12262_v5 }
 0x553   :  { %1988 = vmatmul.mubr.bf16.gmra.mrb[32].mxu1 %v14474_v10 }
 0x554   :  { %2163 = vmatpush1.bf16.msra.mxu1 %v12260_v20 }
 0x555   :  { %2164 = vmatprep.subr.bf16.mxu1 %v12265_v21 }
 0x558   :  { %2165 = vmatpush1.bf16.msra.mxu1 %v12263_v24 }
 0x559   :  { %2166 = vmatprep.subr.bf16.mxu1 %v12268_v25  ;;  %v12307_v25 = vld [vmem:[#allocation13 + $0x514] ss:$8 sps:$4 sm:$0xff]  }
 0x55c   :  { %2167 = vmatpush1.bf16.msra.mxu1 %v12266_v26  ;;  %v12308_v26 = vld [vmem:[#allocation13 + $0x520] ss:$8 sps:$4 sm:$0xff]  }
 0x55d   :  { %2168 = vmatprep.subr.bf16.mxu1 %v12271_v17  ;;  %v12311_v17 = vld [vmem:[#allocation13 + $0x530] ss:$8 sps:$4 sm:$0xff]  }
 0x560   :  { %2169 = vmatpush1.bf16.msra.mxu1 %v12269_v27  ;;  %v12316_v27 = vld [vmem:[#allocation13 + $0x544] ss:$8 sps:$4 sm:$0xff]  }
 0x561   :  { %2170 = vmatprep.subr.bf16.mxu1 %v12274_v30  ;;  %v12314_v30 = vld [vmem:[#allocation13 + $0x540] ss:$8 sps:$4 sm:$0xff]  }
 0x564   :  { %2171 = vmatpush1.bf16.msra.mxu1 %v12272_v31  ;;  %v12317_v31 = vld [vmem:[#allocation13 + $0x550] ss:$8 sps:$4 sm:$0xff]  }
 0x565   :  { %2172 = vmatprep.subr.bf16.mxu1 %v12277_v22  ;;  %v12322_v22 = vld [vmem:[#allocation13 + $0x564] ss:$8 sps:$4 sm:$0xff]  }
 0x568   :  { %2173 = vmatpush1.bf16.msra.mxu1 %v12275_v19  ;;  %v12320_v19 = vld [vmem:[#allocation13 + $0x560] ss:$8 sps:$4 sm:$0xff]  }
 0x569   :  { %2174 = vmatprep.subr.bf16.mxu1 %v12280_v33  ;;  %v12325_v33 = vld [vmem:[#allocation13 + $0x574] ss:$8 sps:$4 sm:$0xff]  }
 0x56c   :  { %2175 = vmatpush1.bf16.msra.mxu1 %v12278_v35  ;;  %v12323_v35 = vld [vmem:[#allocation13 + $0x570] ss:$8 sps:$4 sm:$0xff]  }
 0x56d   :  { %2176 = vmatprep.subr.bf16.mxu1 %v12283_v36  ;;  %v12326_v36 = vld [vmem:[#allocation13 + $0x580] ss:$8 sps:$4 sm:$0xff]  }
 0x570   :  { %2177 = vmatpush1.bf16.msra.mxu1 %v12281_v37  ;;  %v12331_v37 = vld [vmem:[#allocation13 + $0x594] ss:$8 sps:$4 sm:$0xff]  }
 0x571   :  { %2178 = vmatprep.subr.bf16.mxu1 %v12286_v28  ;;  %v12329_v28 = vld [vmem:[#allocation13 + $0x590] ss:$8 sps:$4 sm:$0xff]  }
 0x574   :  { %2179 = vmatpush1.bf16.msra.mxu1 %v12284_v39  ;;  %v12334_v39 = vld [vmem:[#allocation13 + $0x5a4] ss:$8 sps:$4 sm:$0xff]  }
 0x575   :  { %2180 = vmatprep.subr.bf16.mxu1 %v12289_v40  ;;  %v12332_v40 = vld [vmem:[#allocation13 + $0x5a0] ss:$8 sps:$4 sm:$0xff]  }
 0x578   :  { %2181 = vmatpush1.bf16.msra.mxu1 %v12287_v41  ;;  %v12337_v41 = vld [vmem:[#allocation13 + $0x5b4] ss:$8 sps:$4 sm:$0xff]  }
 0x579   :  { %2182 = vmatprep.subr.bf16.mxu1 %v12292_v54  ;;  %v12335_v54 = vld [vmem:[#allocation13 + $0x5b0] ss:$8 sps:$4 sm:$0xff]  }
 0x57c   :  { %2183 = vmatpush1.bf16.msra.mxu1 %v12290_v2  ;;  %v12340_v2 = vld [vmem:[#allocation13 + $0x5c4] ss:$8 sps:$4 sm:$0xff]  }
 0x57d   :  { %2184 = vmatprep.subr.bf16.mxu1 %v12295_v7  ;;  %v12338_v7 = vld [vmem:[#allocation13 + $0x5c0] ss:$8 sps:$4 sm:$0xff]  }
 0x580   :  { %2185 = vmatpush1.bf16.msra.mxu1 %v12293_v38  ;;  %v12343_v38 = vld [vmem:[#allocation13 + $0x5d4] ss:$8 sps:$4 sm:$0xff]  }
 0x581   :  { %2186 = vmatprep.subr.bf16.mxu1 %v12298_v42  ;;  %v12341_v42 = vld [vmem:[#allocation13 + $0x5d0] ss:$8 sps:$4 sm:$0xff]  }
 0x584   :  { %2187 = vmatpush1.bf16.msra.mxu1 %v12296_v4  ;;  %v12346_v4 = vld [vmem:[#allocation13 + $0x5e4] ss:$8 sps:$4 sm:$0xff]  }
 0x585   :  { %2188 = vmatprep.subr.bf16.mxu1 %v12301_v43  ;;  %v12344_v43 = vld [vmem:[#allocation13 + $0x5e0] ss:$8 sps:$4 sm:$0xff]  }
 0x588   :  { %2189 = vmatpush1.bf16.msra.mxu1 %v12299_v44  ;;  %v12349_v44 = vld [vmem:[#allocation13 + $0x5f4] ss:$8 sps:$4 sm:$0xff]  }
 0x589   :  { %2211 = vmatprep.subr.bf16.mxu1 %v14470_v34  ;;  %v12302_v34 = vld [vmem:[#allocation13 + $0x500] ss:$8 sps:$4 sm:$0xff]  }
 0x5de   :  { %v1696_v45 = vpop.f32.mrb[20].mxu1 }
 0x5df   :  { %v1698_v46 = vpop.f32.mrb[21].mxu1 }
 0x5e0   :  { %v1700_v50 = vpop.f32.mrb[22].mxu1 }
 0x5e1   :  { %v1715_v52 = vpack.c.bf16 %v1700_v50, %v1696_v45  ;;  %v1702_v53 = vpop.f32.mrb[23].mxu1  ;;  %v12347_v45 = vld [vmem:[#allocation13 + $0x5f0] ss:$8 sps:$4 sm:$0xff]  }
 0x5e2   :  { %v1716_v55 = vpack.c.bf16 %v1702_v53, %v1698_v46 }
 0x5e4   :  { %2190 = vmatprep.mubr.bf16.mxu1 %v1716_v55 }
 0x5e5   :  { %2191 = vmatmul.mubr.bf16.vlgmr.msra.gmra.mrb[28].mxu1 %v1715_v52 }
 0x5e6   :  { %2212 = vmatpush1.bf16.msra.mxu1 %v14468_v32  ;;  %v1706_v57 = vpop.f32.mrb[24].mxu1  ;;  %v12305_v32 = vld [vmem:[#allocation13 + $0x510] ss:$8 sps:$4 sm:$0xff]  }
 0x5e7   :  { %2213 = vmatprep.subr.bf16.mxu1 %v14476_v18  ;;  %v1708_v60 = vpop.f32.mrb[25].mxu1  ;;  %v12310_v18 = vld [vmem:[#allocation13 + $0x524] ss:$8 sps:$4 sm:$0xff]  }
 0x5e8   :  { %v1710_v5 = vpop.f32.mrb[26].mxu1 }
 0x5e9   :  { %v1717_v20 = vpack.c.bf16 %v1710_v5, %v1706_v57  ;;  %v1712_v21 = vpop.f32.mrb[27].mxu1 }
 0x5ea   :  { %v1718_v24 = vpack.c.bf16 %v1712_v21, %v1708_v60  ;;  %2214 = vmatpush1.bf16.msra.mxu1 %v14474_v10  ;;  %v12313_v10 = vld [vmem:[#allocation13 + $0x534] ss:$8 sps:$4 sm:$0xff]  }
 0x5eb   :  { %2461 = vmatprep.subr.bf16.mxu1 %v12304_v3 }
 0x5ec   :  { %2200 = vmatprep.mubr.bf16.mxu1 %v1718_v24 }
 0x5ed   :  { %2201 = vmatmul.mubr.bf16.gmra.mrb[32].mxu1 %v1717_v20 }
 0x5ee   :  { %2243 = vmatprep.mubr.bf16.mxu1 %v14002_v15 }
 0x5f5   :  { %10768 = vmatmul.mubr.msk.bf16.vlgmr.msra.gmra.mrb[36].mxu1 %vm275_vm0, %v14423_v23  ;;  %v12319_v23 = vld [vmem:[#allocation13 + $0x554] ss:$8 sps:$4 sm:$0xff]  }
 0x5f6   :  { %2253 = vmatprep.mubr.bf16.mxu1 %v14002_v15  ;;  %2462 = vmatpush1.bf16.msra.mxu1 %v12302_v34  ;;  %v1661_v34 = vld [vmem:[#allocation19 + $0x4] sm:$0x3] }
 0x5f7   :  { %2463 = vmatprep.subr.bf16.mxu1 %v12307_v25  ;;  %v2526_v25 = vrot.slane %v1661_v34, %v14363_v51 }
 0x5fa   :  { %2464 = vmatpush1.bf16.msra.mxu1 %v12305_v32  ;;  %v2530_v32 = vrot.slane %v1661_v34, %v14360_v49  ;;  %v12385_v34 = vld [vmem:[#allocation13 + $0x754] ss:$8 sps:$4 sm:$0xff]  }
 0x5fb   :  { %2465 = vmatprep.subr.bf16.mxu1 %v12310_v18 }
 0x5fd   :  { %10769 = vmatmul.mubr.msk.bf16.gmra.mrb[40].mxu1 %vm275_vm0, %v14433_v29  ;;  %v12328_v29 = vld [vmem:[#allocation13 + $0x584] ss:$8 sps:$4 sm:$0xff]  }
 0x5fe   :  { %2466 = vmatpush1.bf16.msra.mxu1 %v12308_v26 }
 0x5ff   :  { %2467 = vmatprep.subr.bf16.mxu1 %v12313_v10 }
 0x602   :  { %2468 = vmatpush1.bf16.msra.mxu1 %v12311_v17 }
 0x603   :  { %2469 = vmatprep.subr.bf16.mxu1 %v12316_v27 }
 0x606   :  { %2470 = vmatpush1.bf16.msra.mxu1 %v12314_v30 }
 0x607   :  { %2471 = vmatprep.subr.bf16.mxu1 %v12319_v23 }
 0x60a   :  { %2472 = vmatpush1.bf16.msra.mxu1 %v12317_v31 }
 0x60b   :  { %2473 = vmatprep.subr.bf16.mxu1 %v12322_v22 }
 0x60e   :  { %2474 = vmatpush1.bf16.msra.mxu1 %v12320_v19 }
 0x60f   :  { %2475 = vmatprep.subr.bf16.mxu1 %v12325_v33 }
 0x612   :  { %2476 = vmatpush1.bf16.msra.mxu1 %v12323_v35 }
 0x613   :  { %2477 = vmatprep.subr.bf16.mxu1 %v12328_v29 }
 0x616   :  { %2478 = vmatpush1.bf16.msra.mxu1 %v12326_v36 }
 0x617   :  { %2479 = vmatprep.subr.bf16.mxu1 %v12331_v37 }
 0x61a   :  { %2480 = vmatpush1.bf16.msra.mxu1 %v12329_v28 }
 0x61b   :  { %2481 = vmatprep.subr.bf16.mxu1 %v12334_v39 }
 0x61e   :  { %2482 = vmatpush1.bf16.msra.mxu1 %v12332_v40 }
 0x61f   :  { %2483 = vmatprep.subr.bf16.mxu1 %v12337_v41 }
 0x622   :  { %2484 = vmatpush1.bf16.msra.mxu1 %v12335_v54 }
 0x623   :  { %2485 = vmatprep.subr.bf16.mxu1 %v12340_v2 }
 0x626   :  { %2486 = vmatpush1.bf16.msra.mxu1 %v12338_v7 }
 0x627   :  { %2487 = vmatprep.subr.bf16.mxu1 %v12343_v38 }
 0x62a   :  { %2488 = vmatpush1.bf16.msra.mxu1 %v12341_v42 }
 0x62b   :  { %2489 = vmatprep.subr.bf16.mxu1 %v12346_v4 }
 0x62e   :  { %2490 = vmatpush1.bf16.msra.mxu1 %v12344_v43 }
 0x62f   :  { %2491 = vmatprep.subr.bf16.mxu1 %v12349_v44  ;;  %v12355_v44 = vld [vmem:[#allocation13 + $0x704] ss:$8 sps:$4 sm:$0xff]  }
 0x632   :  { %2492 = vmatpush1.bf16.msra.mxu1 %v12347_v45  ;;  %v12367_v45 = vld [vmem:[#allocation13 + $0x724] ss:$8 sps:$4 sm:$0xff]  }
 0x6c8   :  { %v2245_v46 = vpop.f32.mrb[36].mxu1 }
 0x6c9   :  { %v2247_v50 = vpop.f32.mrb[37].mxu1 }
 0x6ca   :  { %v2249_v52 = vpop.f32.mrb[38].mxu1 }
 0x6cb   :  { %v2264_v53 = vpack.c.bf16 %v2249_v52, %v2245_v46  ;;  %v2251_v55 = vpop.f32.mrb[39].mxu1  ;;  %v12352_v46 = vld [vmem:[#allocation8 + $0x10] sm:$0xff]   ;;  %v12364_v52 = vld [vmem:[#allocation14 + $0x14] ss:$8 sps:$4 sm:$0xff]  }
 0x6cc   :  { %v2265_v57 = vpack.c.bf16 %v2251_v55, %v2247_v50  ;;  %v12356_v50 = vld [vmem:[#allocation14] ss:$8 sps:$4 sm:$0xff]   ;;  %v12373_v55 = vld [vmem:[#allocation13 + $0x734] ss:$8 sps:$4 sm:$0xff]  }
 0x6ce   :  { %2493 = vmatprep.mubr.bf16.mxu1 %v2265_v57  ;;  %v12362_v57 = vld [vmem:[#allocation14 + $0x10] ss:$8 sps:$4 sm:$0xff]  }
 0x6cf   :  { %2494 = vmatmul.mubr.bf16.vlgmr.msra.gmra.mrb[28].mxu1 %v2264_v53  ;;  %v12365_v53 = vld [vmem:[#allocation13 + $0x720] ss:$8 sps:$4 sm:$0xff]  }
 0x6d0   :  { %v2255_v60 = vpop.f32.mrb[40].mxu1 }
 0x6d1   :  { %v2257_v3 = vpop.f32.mrb[41].mxu1 }
 0x6d2   :  { %v2259_v5 = vpop.f32.mrb[42].mxu1 }
 0x6d3   :  { %v2266_v20 = vpack.c.bf16 %v2259_v5, %v2255_v60  ;;  %v2261_v21 = vpop.f32.mrb[43].mxu1  ;;  %v12370_v60 = vld [vmem:[#allocation14 + $0x24] ss:$8 sps:$4 sm:$0xff]  }
 0x6d4   :  { %v2267_v24 = vpack.c.bf16 %v2261_v21, %v2257_v3  ;;  %v12371_v3 = vld [vmem:[#allocation13 + $0x730] ss:$8 sps:$4 sm:$0xff]   ;;  %v12379_v5 = vld [vmem:[#allocation13 + $0x744] ss:$8 sps:$4 sm:$0xff]   ;;  %v12376_v21 = vld [vmem:[#allocation14 + $0x34] ss:$8 sps:$4 sm:$0xff]  }
 0x6d6   :  { %2503 = vmatprep.mubr.bf16.mxu1 %v2267_v24  ;;  %v12377_v24 = vld [vmem:[#allocation13 + $0x740] ss:$8 sps:$4 sm:$0xff]  }
 0x6d7   :  { %2504 = vmatmul.mubr.bf16.gmra.mrb[32].mxu1 %v2266_v20  ;;  %v12368_v20 = vld [vmem:[#allocation14 + $0x20] ss:$8 sps:$4 sm:$0xff]  }
 0x6d8   :  { %2605 = vmatprep.mubr.bf16.mxu1 %v14002_v15 }
 0x7a2   :  { %v2495_v18 = vpop.f32.mrb[28].mxu1 }
 0x7a3   :  { %v2533_v26 = vadd.f32 %v2526_v25, %v2495_v18  ;;  %v2497_v10 = vpop.f32.mrb[29].mxu1  ;;  %v12383_v18 = vld [vmem:[#allocation13 + $0x750] ss:$8 sps:$4 sm:$0xff]  }
 0x7a4   :  { %v2534_v17 = vadd.f32 %v2530_v32, %v2497_v10  ;;  %v2499_v27 = vpop.f32.mrb[30].mxu1  ;;  %v12380_v10 = vld [vmem:[#allocation14 + $0x40] ss:$8 sps:$4 sm:$0xff]  }
 0x7a5   :  { %v2541_v30 = vadd.f32 %v2533_v26, %v756_v1  ;;  %v2535_v23 = vadd.f32 %v2526_v25, %v2499_v27  ;;  %v2501_v31 = vpop.f32.mrb[31].mxu1  ;;  %v12391_v26 = vld [vmem:[#allocation13 + $0x764] ss:$8 sps:$4 sm:$0xff]   ;;  %v12389_v27 = vld [vmem:[#allocation13 + $0x760] ss:$8 sps:$4 sm:$0xff]  }
 0x7a6   :  { %v2542_v22 = vadd.f32 %v2534_v17, %v757_v63  ;;  %v2536_v19 = vadd.f32 %v2530_v32, %v2501_v31  ;;  %v12388_v17 = vld [vmem:[#allocation14 + $0x54] ss:$8 sps:$4 sm:$0xff]   ;;  %v12394_v31 = vld [vmem:[#allocation14 + $0x64] ss:$8 sps:$4 sm:$0xff]  }
 0x7a7   :  { %v2543_v33 = vadd.f32 %v2535_v23, %v758_v62  ;;  %v2549_v29 = vmax.f32 %v2541_v30, 0.0  ;;  %v12397_v30 = vld [vmem:[#allocation13 + $0x774] ss:$8 sps:$4 sm:$0xff]   ;;  %v12386_v23 = vld [vmem:[#allocation14 + $0x50] ss:$8 sps:$4 sm:$0xff]  }
 0x7a8   :  { %v2544_v35 = vadd.f32 %v2536_v19, %v759_v0  ;;  %v2550_v37 = vmax.f32 %v2542_v22, 0.0  ;;  %v12395_v22 = vld [vmem:[#allocation13 + $0x770] ss:$8 sps:$4 sm:$0xff]   ;;  %v12403_v19 = vld [vmem:[#allocation13 + $0x784] ss:$8 sps:$4 sm:$0xff]  }
 0x7a9   :  { %v2551_v36 = vmax.f32 %v2543_v33, 0.0  ;;  %v12392_v33 = vld [vmem:[#allocation14 + $0x60] ss:$8 sps:$4 sm:$0xff]  }
 0x7aa   :  { %v2552_v28 = vmax.f32 %v2544_v35, 0.0  ;;  %v2505_v39 = vpop.f32.mrb[32].mxu1  ;;  %v12400_v35 = vld [vmem:[#allocation14 + $0x74] ss:$8 sps:$4 sm:$0xff]  }
 0x7ab   :  { %v2557_v40 = vpack.c.bf16 %v2551_v36, %v2549_v29  ;;  %v2537_v58 = vadd.f32 %v2526_v25, %v2505_v39  ;;  %v2507_v1 = vpop.f32.mrb[33].mxu1  ;;  %v12401_v29 = vld [vmem:[#allocation13 + $0x780] ss:$8 sps:$4 sm:$0xff]   ;;  %v12409_v36 = vld [vmem:[#allocation13 + $0x794] ss:$8 sps:$4 sm:$0xff]  }
 0x7ac   :  { %v2538_v41 = vadd.f32 %v2530_v32, %v2507_v1  ;;  %v2509_v54 = vpop.f32.mrb[34].mxu1  ;;  %v2558_v2 = vpack.c.bf16 %v2552_v28, %v2550_v37  ;;  %v12398_v37 = vld [vmem:[#allocation14 + $0x70] ss:$8 sps:$4 sm:$0xff]   ;;  %v12406_v28 = vld [vmem:[#allocation14 + $0x84] ss:$8 sps:$4 sm:$0xff]  }
 0x7ad   :  { %v2545_v56 = vadd.f32 %v2537_v58, %v760_v16  ;;  %v2539_v63 = vadd.f32 %v2526_v25, %v2509_v54  ;;  %v2511_v59 = vpop.f32.mrb[35].mxu1  ;;  %v12374_v25 = vld [vmem:[#allocation14 + $0x30] ss:$8 sps:$4 sm:$0xff]   ;;  %v12404_v58 = vld [vmem:[#allocation14 + $0x80] ss:$8 sps:$4 sm:$0xff]  }
 0x7ae   :  { %v2546_v61 = vadd.f32 %v2538_v41, %v761_v13  ;;  %v2540_v62 = vadd.f32 %v2530_v32, %v2511_v59  ;;  %2573 = vmatprep.subr.bf16.mxu1 %v2558_v2  ;;  %2662 = vmatprep.subr.bf16.mxu0 %v2558_v2  ;;  %v12351_v13 = vld [vmem:[#allocation8] sm:$0xff]   ;;  %v12382_v32 = vld [vmem:[#allocation14 + $0x44] ss:$8 sps:$4 sm:$0xff]   ;;  %v12407_v39 = vld [vmem:[#allocation13 + $0x790] ss:$8 sps:$4 sm:$0xff]  }
 0x7af   :  { %v2547_v0 = vadd.f32 %v2539_v63, %v762_v12  ;;  %2574 = vmatpush1.bf16.msra.mxu1 %v2557_v40  ;;  %2663 = vmatpush1.bf16.msra.mxu0 %v2557_v40  ;;  %v2553_v38 = vmax.f32 %v2545_v56, 0.0  ;;  %v12361_v12 = vld [vmem:[#allocation13 + $0x714] ss:$8 sps:$4 sm:$0xff]   ;;  %v12413_v41 = vld [vmem:[#allocation13 + $0x7a0] ss:$8 sps:$4 sm:$0xff]  }
 0x7b0   :  { %v2548_v7 = vadd.f32 %v2540_v62, %v763_v14  ;;  %v2554_v8 = vmax.f32 %v2546_v61, 0.0  ;;  %v12359_v14 = vld [vmem:[#allocation13 + $0x710] ss:$8 sps:$4 sm:$0xff]   ;;  %v12412_v1 = vld [vmem:[#allocation14 + $0x94] ss:$8 sps:$4 sm:$0xff]  }
 0x7b1   :  { %v2555_v42 = vmax.f32 %v2547_v0, 0.0  ;;  %v12421_v54 = vld [vmem:[#allocation13 + $0x7b4] ss:$8 sps:$4 sm:$0xff]   ;;  %v12418_v56 = vld [vmem:[#allocation14 + $0xa4] ss:$8 sps:$4 sm:$0xff]  }
 0x7b2   :  { %v2556_v16 = vmax.f32 %v2548_v7, 0.0  ;;  %v12419_v63 = vld [vmem:[#allocation13 + $0x7b0] ss:$8 sps:$4 sm:$0xff]   ;;  %v12427_v59 = vld [vmem:[#allocation13 + $0x7c4] ss:$8 sps:$4 sm:$0xff]  }
 0x7b3   :  { %v2559_v4 = vpack.c.bf16 %v2555_v42, %v2553_v38  ;;  %v12416_v61 = vld [vmem:[#allocation14 + $0xa0] ss:$8 sps:$4 sm:$0xff]   ;;  %v12424_v62 = vld [vmem:[#allocation14 + $0xb4] ss:$8 sps:$4 sm:$0xff]   ;;  %v12422_v38 = vld [vmem:[#allocation14 + $0xb0] ss:$8 sps:$4 sm:$0xff]  }
 0x7b4   :  { %v2560_v43 = vpack.c.bf16 %v2556_v16, %v2554_v8  ;;  %v12425_v0 = vld [vmem:[#allocation13 + $0x7c0] ss:$8 sps:$4 sm:$0xff]   ;;  %v12433_v7 = vld [vmem:[#allocation13 + $0x7d4] ss:$8 sps:$4 sm:$0xff]   ;;  %v12430_v42 = vld [vmem:[#allocation14 + $0xc4] ss:$8 sps:$4 sm:$0xff]  }
 0x7b5   :  { %v12431_v8 = vld [vmem:[#allocation13 + $0x7d0] ss:$8 sps:$4 sm:$0xff]   ;;  %v12439_v16 = vld [vmem:[#allocation13 + $0x7e4] ss:$8 sps:$4 sm:$0xff]  }
 0x7b6   :  { %2575 = vmatprep.subr.bf16.mxu1 %v2560_v43  ;;  %2664 = vmatprep.subr.bf16.mxu0 %v2560_v43 }
 0x7b7   :  { %2576 = vmatpush1.bf16.msra.mxu1 %v2559_v4  ;;  %2665 = vmatpush1.bf16.msra.mxu0 %v2559_v4 }
 0x7b8   :  { %3157 = vmatprep.subr.bf16.mxu1 %v2558_v2  ;;  %2900 = vmatprep.subr.bf16.mxu0 %v12355_v44  ;;  %v12410_v2 = vld [vmem:[#allocation14 + $0x90] ss:$8 sps:$4 sm:$0xff]   ;;  %v12437_v44 = vld [vmem:[#allocation13 + $0x7e0] ss:$8 sps:$4 sm:$0xff]  }
 0x7ba   :  { %10805 = vmatmul.mubr.msk.bf16.vlgmr.msra.gmra.mrb[20].mxu0 %vm275_vm0, %v12350_v6  ;;  %10803 = vmatmul.mubr.msk.bf16.vlgmr.msra.gmra.mrb[44].mxu1 %vm275_vm0, %v12351_v13  ;;  %v12434_v6 = vld [vmem:[#allocation14 + $0xd0] ss:$8 sps:$4 sm:$0xff]   ;;  %v12442_v13 = vld [vmem:[#allocation14 + $0xe4] ss:$8 sps:$4 sm:$0xff]  }
 0x7bb   :  { %3158 = vmatpush1.bf16.msra.mxu1 %v2557_v40  ;;  %3189 = vmatprep.mubr.bf16.mxu1 %v14002_v15  ;;  %v12415_v40 = vld [vmem:[#allocation13 + $0x7a4] ss:$8 sps:$4 sm:$0xff]  }
 0x7bc   :  { %3159 = vmatprep.subr.bf16.mxu1 %v2560_v43  ;;  %2901 = vmatpush1.bf16.msra.mxu0 %v12353_v9  ;;  %v12436_v43 = vld [vmem:[#allocation14 + $0xd4] ss:$8 sps:$4 sm:$0xff]   ;;  %v12440_v9 = vld [vmem:[#allocation14 + $0xe0] ss:$8 sps:$4 sm:$0xff]  }
 0x7bd   :  { %2902 = vmatprep.subr.bf16.mxu0 %v12361_v12  ;;  %v12445_v12 = vld [vmem:[#allocation13 + $0x7f4] ss:$8 sps:$4 sm:$0xff]  }
 0x7bf   :  { %3160 = vmatpush1.bf16.msra.mxu1 %v2559_v4  ;;  %v12428_v4 = vld [vmem:[#allocation14 + $0xc0] ss:$8 sps:$4 sm:$0xff]  }
 0x7c0   :  { %3653 = vmatprep.subr.bf16.mxu1 %v12358_v11  ;;  %2903 = vmatpush1.bf16.msra.mxu0 %v12359_v14  ;;  %v12443_v11 = vld [vmem:[#allocation13 + $0x7f0] ss:$8 sps:$4 sm:$0xff]   ;;  %v12448_v14 = vld [vmem:[#allocation14 + $0xf4] ss:$8 sps:$4 sm:$0xff]  }
 0x7c1   :  { %2904 = vmatprep.subr.bf16.mxu0 %v12367_v45  ;;  %v12446_v45 = vld [vmem:[#allocation14 + $0xf0] ss:$8 sps:$4 sm:$0xff]  }
 0x7c2   :  { %10871 = vmatmul.mubr.msk.bf16.vlgmr.msra.gmra.mrb[48].mxu1 %vm275_vm0, %v12352_v46  ;;  %v12451_v46 = vld [vmem:[#allocation13 + $0x604] ss:$8 sps:$4 sm:$0xff]  }
 0x7c3   :  { %3654 = vmatpush1.bf16.msra.mxu1 %v12356_v50 }
 0x7c4   :  { %3655 = vmatprep.subr.bf16.mxu1 %v12364_v52  ;;  %2905 = vmatpush1.bf16.msra.mxu0 %v12365_v53 }
 0x7c5   :  { %2906 = vmatprep.subr.bf16.mxu0 %v12373_v55 }
 0x7c7   :  { %3656 = vmatpush1.bf16.msra.mxu1 %v12362_v57 }
 0x7c8   :  { %3657 = vmatprep.subr.bf16.mxu1 %v12370_v60  ;;  %2907 = vmatpush1.bf16.msra.mxu0 %v12371_v3 }
 0x7c9   :  { %2908 = vmatprep.subr.bf16.mxu0 %v12379_v5 }
 0x7cb   :  { %3658 = vmatpush1.bf16.msra.mxu1 %v12368_v20 }
 0x7cc   :  { %3659 = vmatprep.subr.bf16.mxu1 %v12376_v21  ;;  %2909 = vmatpush1.bf16.msra.mxu0 %v12377_v24 }
 0x7cd   :  { %2910 = vmatprep.subr.bf16.mxu0 %v12385_v34  ;;  %v12449_v34 = vld [vmem:[#allocation13 + $0x600] ss:$8 sps:$4 sm:$0xff]  }
 0x7cf   :  { %3660 = vmatpush1.bf16.msra.mxu1 %v12374_v25 }
 0x7d0   :  { %3661 = vmatprep.subr.bf16.mxu1 %v12382_v32  ;;  %2911 = vmatpush1.bf16.msra.mxu0 %v12383_v18  ;;  %v12454_v32 = vld [vmem:[#allocation13 + $0x614] ss:$8 sps:$4 sm:$0xff]   ;;  %v12452_v18 = vld [vmem:[#allocation13 + $0x610] ss:$8 sps:$4 sm:$0xff]  }
 0x7d1   :  { %2912 = vmatprep.subr.bf16.mxu0 %v12391_v26 }
 0x7d3   :  { %3662 = vmatpush1.bf16.msra.mxu1 %v12380_v10  ;;  %v12457_v10 = vld [vmem:[#allocation13 + $0x624] ss:$8 sps:$4 sm:$0xff]  }
 0x7d4   :  { %3663 = vmatprep.subr.bf16.mxu1 %v12388_v17  ;;  %2913 = vmatpush1.bf16.msra.mxu0 %v12389_v27 }
 0x7d5   :  { %2914 = vmatprep.subr.bf16.mxu0 %v12397_v30 }
 0x7d7   :  { %3664 = vmatpush1.bf16.msra.mxu1 %v12386_v23 }
 0x7d8   :  { %3665 = vmatprep.subr.bf16.mxu1 %v12394_v31  ;;  %2915 = vmatpush1.bf16.msra.mxu0 %v12395_v22  ;;  %v12455_v31 = vld [vmem:[#allocation13 + $0x620] ss:$8 sps:$4 sm:$0xff]  }
 0x7d9   :  { %2916 = vmatprep.subr.bf16.mxu0 %v12403_v19  ;;  %v12460_v19 = vld [vmem:[#allocation13 + $0x634] ss:$8 sps:$4 sm:$0xff]  }
 0x7db   :  { %3666 = vmatpush1.bf16.msra.mxu1 %v12392_v33  ;;  %v12458_v33 = vld [vmem:[#allocation13 + $0x630] ss:$8 sps:$4 sm:$0xff]  }
 0x7dc   :  { %3667 = vmatprep.subr.bf16.mxu1 %v12400_v35  ;;  %2917 = vmatpush1.bf16.msra.mxu0 %v12401_v29  ;;  %v12463_v35 = vld [vmem:[#allocation13 + $0x644] ss:$8 sps:$4 sm:$0xff]   ;;  %v12461_v29 = vld [vmem:[#allocation13 + $0x640] ss:$8 sps:$4 sm:$0xff]  }
 0x7dd   :  { %2918 = vmatprep.subr.bf16.mxu0 %v12409_v36  ;;  %v12466_v36 = vld [vmem:[#allocation13 + $0x654] ss:$8 sps:$4 sm:$0xff]  }
 0x7df   :  { %3668 = vmatpush1.bf16.msra.mxu1 %v12398_v37  ;;  %v12464_v37 = vld [vmem:[#allocation13 + $0x650] ss:$8 sps:$4 sm:$0xff]  }
 0x7e0   :  { %3669 = vmatprep.subr.bf16.mxu1 %v12406_v28  ;;  %2919 = vmatpush1.bf16.msra.mxu0 %v12407_v39  ;;  %v12469_v28 = vld [vmem:[#allocation13 + $0x664] ss:$8 sps:$4 sm:$0xff]   ;;  %v12467_v39 = vld [vmem:[#allocation13 + $0x660] ss:$8 sps:$4 sm:$0xff]  }
 0x7e1   :  { %2920 = vmatprep.subr.bf16.mxu0 %v12415_v40  ;;  %v12472_v40 = vld [vmem:[#allocation13 + $0x674] ss:$8 sps:$4 sm:$0xff]  }
 0x7e3   :  { %3670 = vmatpush1.bf16.msra.mxu1 %v12404_v58  ;;  %v12470_v58 = vld [vmem:[#allocation13 + $0x670] ss:$8 sps:$4 sm:$0xff]  }
 0x7e4   :  { %3671 = vmatprep.subr.bf16.mxu1 %v12412_v1  ;;  %2921 = vmatpush1.bf16.msra.mxu0 %v12413_v41  ;;  %v12475_v1 = vld [vmem:[#allocation13 + $0x684] ss:$8 sps:$4 sm:$0xff]   ;;  %v12473_v41 = vld [vmem:[#allocation13 + $0x680] ss:$8 sps:$4 sm:$0xff]  }
 0x7e5   :  { %2922 = vmatprep.subr.bf16.mxu0 %v12421_v54  ;;  %v12478_v54 = vld [vmem:[#allocation13 + $0x694] ss:$8 sps:$4 sm:$0xff]  }
 0x7e7   :  { %3672 = vmatpush1.bf16.msra.mxu1 %v12410_v2  ;;  %v12476_v2 = vld [vmem:[#allocation13 + $0x690] ss:$8 sps:$4 sm:$0xff]  }
 0x7e8   :  { %3673 = vmatprep.subr.bf16.mxu1 %v12418_v56  ;;  %2923 = vmatpush1.bf16.msra.mxu0 %v12419_v63  ;;  %v12481_v56 = vld [vmem:[#allocation13 + $0x6a4] ss:$8 sps:$4 sm:$0xff]   ;;  %v12479_v63 = vld [vmem:[#allocation13 + $0x6a0] ss:$8 sps:$4 sm:$0xff]  }
 0x7e9   :  { %2924 = vmatprep.subr.bf16.mxu0 %v12427_v59  ;;  %v12484_v59 = vld [vmem:[#allocation13 + $0x6b4] ss:$8 sps:$4 sm:$0xff]  }
 0x7eb   :  { %3674 = vmatpush1.bf16.msra.mxu1 %v12416_v61  ;;  %v12482_v61 = vld [vmem:[#allocation13 + $0x6b0] ss:$8 sps:$4 sm:$0xff]  }
 0x7ec   :  { %3675 = vmatprep.subr.bf16.mxu1 %v12424_v62  ;;  %2925 = vmatpush1.bf16.msra.mxu0 %v12425_v0  ;;  %v12487_v62 = vld [vmem:[#allocation13 + $0x6c4] ss:$8 sps:$4 sm:$0xff]   ;;  %v12485_v0 = vld [vmem:[#allocation13 + $0x6c0] ss:$8 sps:$4 sm:$0xff]  }
 0x7ed   :  { %2926 = vmatprep.subr.bf16.mxu0 %v12433_v7  ;;  %v12490_v7 = vld [vmem:[#allocation13 + $0x6d4] ss:$8 sps:$4 sm:$0xff]  }
 0x7ef   :  { %3676 = vmatpush1.bf16.msra.mxu1 %v12422_v38  ;;  %v12488_v38 = vld [vmem:[#allocation13 + $0x6d0] ss:$8 sps:$4 sm:$0xff]  }
 0x7f0   :  { %3677 = vmatprep.subr.bf16.mxu1 %v12430_v42  ;;  %2927 = vmatpush1.bf16.msra.mxu0 %v12431_v8  ;;  %v12493_v42 = vld [vmem:[#allocation13 + $0x6e4] ss:$8 sps:$4 sm:$0xff]   ;;  %v12491_v8 = vld [vmem:[#allocation13 + $0x6e0] ss:$8 sps:$4 sm:$0xff]  }
 0x7f1   :  { %2928 = vmatprep.subr.bf16.mxu0 %v12439_v16  ;;  %v12496_v16 = vld [vmem:[#allocation13 + $0x6f4] ss:$8 sps:$4 sm:$0xff]  }
 0x7f3   :  { %3678 = vmatpush1.bf16.msra.mxu1 %v12428_v4  ;;  %v12494_v4 = vld [vmem:[#allocation13 + $0x6f0] ss:$8 sps:$4 sm:$0xff]  }
 0x7f4   :  { %3679 = vmatprep.subr.bf16.mxu1 %v12436_v43  ;;  %2929 = vmatpush1.bf16.msra.mxu0 %v12437_v44  ;;  %v12499_v43 = vld [vmem:[#allocation13 + $0x804] ss:$8 sps:$4 sm:$0xff]   ;;  %v12497_v44 = vld [vmem:[#allocation13 + $0x800] ss:$8 sps:$4 sm:$0xff]  }
 0x7f5   :  { %2930 = vmatprep.subr.bf16.mxu0 %v12445_v12  ;;  %v12503_v12 = vld [vmem:[#allocation13 + $0x820] ss:$8 sps:$4 sm:$0xff]  }
 0x7f7   :  { %3680 = vmatpush1.bf16.msra.mxu1 %v12434_v6  ;;  %v12502_v6 = vld [vmem:[#allocation13 + $0x814] ss:$8 sps:$4 sm:$0xff]  }
 0x7f8   :  { %3681 = vmatprep.subr.bf16.mxu1 %v12442_v13  ;;  %2931 = vmatpush1.bf16.msra.mxu0 %v12443_v11  ;;  %v12500_v13 = vld [vmem:[#allocation13 + $0x810] ss:$8 sps:$4 sm:$0xff]   ;;  %v12508_v11 = vld [vmem:[#allocation13 + $0x834] ss:$8 sps:$4 sm:$0xff]  }
 0x7f9   :  { %3103 = vmatprep.subr.bf16.mxu0 %v12451_v46  ;;  %v12509_v46 = vld [vmem:[#allocation13 + $0x840] ss:$8 sps:$4 sm:$0xff]  }
 0x7fb   :  { %3682 = vmatpush1.bf16.msra.mxu1 %v12440_v9  ;;  %v12505_v9 = vld [vmem:[#allocation13 + $0x824] ss:$8 sps:$4 sm:$0xff]  }
 0x7fc   :  { %3683 = vmatprep.subr.bf16.mxu1 %v12448_v14  ;;  %v12506_v14 = vld [vmem:[#allocation13 + $0x830] ss:$8 sps:$4 sm:$0xff]  }
 0x7ff   :  { %3684 = vmatpush1.bf16.msra.mxu1 %v12446_v45  ;;  %v12511_v45 = vld [vmem:[#allocation13 + $0x844] ss:$8 sps:$4 sm:$0xff]  }
 0x88d   :  { %v2696_v50 = vpop.f32.mrb[20].mxu0  ;;  %v14522_v52 = vpop.f32.mrb[44].mxu1 }
 0x88e   :  { %v2698_v53 = vpop.f32.mrb[21].mxu0  ;;  %v2609_v55 = vpop.f32.mrb[45].mxu1 }
 0x88f   :  { %v2700_v57 = vpop.f32.mrb[22].mxu0  ;;  %v14524_v60 = vpop.f32.mrb[46].mxu1 }
 0x890   :  { %v2705_v3 = vpack.c.bf16 %v2700_v57, %v2696_v50  ;;  %v2702_v5 = vpop.f32.mrb[23].mxu0  ;;  %v2616_v20 = vpack.c.bf16 %v14524_v60, %v14522_v52  ;;  %v2613_v21 = vpop.f32.mrb[47].mxu1  ;;  %v12514_v50 = vld [vmem:[#allocation13 + $0x854] ss:$8 sps:$4 sm:$0xff]   ;;  %v12512_v52 = vld [vmem:[#allocation13 + $0x850] ss:$8 sps:$4 sm:$0xff]  }
 0x891   :  { %v2706_v24 = vpack.c.bf16 %v2702_v5, %v2698_v53  ;;  %v2617_v25 = vpack.c.bf16 %v2613_v21, %v2609_v55  ;;  %v12517_v53 = vld [vmem:[#allocation13 + $0x864] ss:$8 sps:$4 sm:$0xff]   ;;  %v12515_v55 = vld [vmem:[#allocation13 + $0x860] ss:$8 sps:$4 sm:$0xff]   ;;  %v12520_v57 = vld [vmem:[#allocation13 + $0x874] ss:$8 sps:$4 sm:$0xff]  }
 0x892   :  { %v12518_v60 = vld [vmem:[#allocation13 + $0x870] ss:$8 sps:$4 sm:$0xff]   ;;  %v12521_v5 = vld [vmem:[#allocation13 + $0x880] ss:$8 sps:$4 sm:$0xff]  }
 0x893   :  { %2932 = vmatprep.mubr.bf16.mxu0 %v2706_v24  ;;  %3685 = vmatprep.mubr.bf16.mxu1 %v2706_v24  ;;  %v12524_v21 = vld [vmem:[#allocation13 + $0x890] ss:$8 sps:$4 sm:$0xff]   ;;  %v12529_v24 = vld [vmem:[#allocation13 + $0x8a4] ss:$8 sps:$4 sm:$0xff]  }
 0x894   :  { %2933 = vmatmul.mubr.bf16.vlgmr.msra.gmra.mrb[24].mxu0 %v2705_v3  ;;  %3686 = vmatmul.mubr.bf16.vlgmr.msra.gmra.mrb[52].mxu1 %v2705_v3  ;;  %v12523_v3 = vld [vmem:[#allocation13 + $0x884] ss:$8 sps:$4 sm:$0xff]  }
 0x895   :  { %3104 = vmatpush1.bf16.msra.mxu0 %v12449_v34  ;;  %3135 = vmatprep.mubr.bf16.mxu0 %v2617_v25  ;;  %v14528_v26 = vpop.f32.mrb[48].mxu1  ;;  %v12527_v34 = vld [vmem:[#allocation13 + $0x8a0] ss:$8 sps:$4 sm:$0xff]   ;;  %v12532_v25 = vld [vmem:[#allocation13 + $0x8b4] ss:$8 sps:$4 sm:$0xff]  }
 0x896   :  { %3105 = vmatprep.subr.bf16.mxu0 %v12454_v32  ;;  %v14530_v17 = vpop.f32.mrb[49].mxu1  ;;  %3743 = vmatprep.mubr.bf16.mxu1 %v14002_v15  ;;  %v12530_v32 = vld [vmem:[#allocation13 + $0x8b0] ss:$8 sps:$4 sm:$0xff]  }
 0x897   :  { %v14533_v27 = vpop.f32.mrb[50].mxu1 }
 0x898   :  { %v3200_v30 = vpack.c.bf16 %v14533_v27, %v14528_v26  ;;  %v14537_v23 = vpop.f32.mrb[51].mxu1 }
 0x899   :  { %3106 = vmatpush1.bf16.msra.mxu0 %v12452_v18  ;;  %v3201_v22 = vpack.c.bf16 %v14537_v23, %v14530_v17  ;;  %v12535_v18 = vld [vmem:[#allocation13 + $0x8c4] ss:$8 sps:$4 sm:$0xff]   ;;  %v12538_v17 = vld [vmem:[#allocation13 + $0x8d4] ss:$8 sps:$4 sm:$0xff]   ;;  %v12536_v23 = vld [vmem:[#allocation13 + $0x8d0] ss:$8 sps:$4 sm:$0xff]  }
 0x89a   :  { %3107 = vmatprep.subr.bf16.mxu0 %v12457_v10  ;;  %v12533_v10 = vld [vmem:[#allocation13 + $0x8c0] ss:$8 sps:$4 sm:$0xff]  }
 0x89d   :  { %3108 = vmatpush1.bf16.msra.mxu0 %v12455_v31  ;;  %v12541_v31 = vld [vmem:[#allocation13 + $0x8e4] ss:$8 sps:$4 sm:$0xff]  }
 0x89e   :  { %3109 = vmatprep.subr.bf16.mxu0 %v12460_v19  ;;  %v12544_v19 = vld [vmem:[#allocation13 + $0x8f4] ss:$8 sps:$4 sm:$0xff]  }
 0x8a1   :  { %3110 = vmatpush1.bf16.msra.mxu0 %v12458_v33  ;;  %v12542_v33 = vld [vmem:[#allocation13 + $0x8f0] ss:$8 sps:$4 sm:$0xff]  }
 0x8a2   :  { %3111 = vmatprep.subr.bf16.mxu0 %v12463_v35  ;;  %v2562_v35 = vld [vmem:[#allocation19 + $0x6] sm:$0x3] }
 0x8a5   :  { %3112 = vmatpush1.bf16.msra.mxu0 %v12461_v29  ;;  %v3446_v29 = vrot.slane %v2562_v35, %v14363_v51 }
 0x8a6   :  { %3113 = vmatprep.subr.bf16.mxu0 %v12466_v36  ;;  %v3450_v36 = vrot.slane %v2562_v35, %v14360_v49  ;;  %v12609_v35 = vld [vmem:[#allocation13 + $0x944] ss:$8 sps:$4 sm:$0xff]  }
 0x8a9   :  { %3114 = vmatpush1.bf16.msra.mxu0 %v12464_v37 }
 0x8aa   :  { %3115 = vmatprep.subr.bf16.mxu0 %v12469_v28 }
 0x8ad   :  { %3116 = vmatpush1.bf16.msra.mxu0 %v12467_v39 }
 0x8ae   :  { %3117 = vmatprep.subr.bf16.mxu0 %v12472_v40 }
 0x8b1   :  { %3118 = vmatpush1.bf16.msra.mxu0 %v12470_v58 }
 0x8b2   :  { %3119 = vmatprep.subr.bf16.mxu0 %v12475_v1 }
 0x8b5   :  { %3120 = vmatpush1.bf16.msra.mxu0 %v12473_v41 }
 0x8b6   :  { %3121 = vmatprep.subr.bf16.mxu0 %v12478_v54 }
 0x8b9   :  { %3122 = vmatpush1.bf16.msra.mxu0 %v12476_v2 }
 0x8ba   :  { %3123 = vmatprep.subr.bf16.mxu0 %v12481_v56 }
 0x8bd   :  { %3124 = vmatpush1.bf16.msra.mxu0 %v12479_v63 }
 0x8be   :  { %3125 = vmatprep.subr.bf16.mxu0 %v12484_v59  ;;  %v12548_v59 = vld [vmem:[#allocation13 + $0xa04] ss:$8 sps:$4 sm:$0xff]  }
 0x8c1   :  { %3126 = vmatpush1.bf16.msra.mxu0 %v12482_v61  ;;  %v12545_v61 = vld [vmem:[#allocation5] sm:$0xff]  }
 0x8c2   :  { %3127 = vmatprep.subr.bf16.mxu0 %v12487_v62  ;;  %v12594_v62 = vld [vmem:[#allocation5 + $0x10] sm:$0xff]  }
 0x8c5   :  { %3128 = vmatpush1.bf16.msra.mxu0 %v12485_v0  ;;  %v12546_v0 = vld [vmem:[#allocation13 + $0xa00] ss:$8 sps:$4 sm:$0xff]  }
 0x8c6   :  { %3129 = vmatprep.subr.bf16.mxu0 %v12490_v7  ;;  %v12551_v7 = vld [vmem:[#allocation13 + $0xa14] ss:$8 sps:$4 sm:$0xff]  }
 0x8c9   :  { %3130 = vmatpush1.bf16.msra.mxu0 %v12488_v38  ;;  %v12549_v38 = vld [vmem:[#allocation13 + $0xa10] ss:$8 sps:$4 sm:$0xff]  }
 0x8ca   :  { %3131 = vmatprep.subr.bf16.mxu0 %v12493_v42  ;;  %v12554_v42 = vld [vmem:[#allocation13 + $0xa24] ss:$8 sps:$4 sm:$0xff]  }
 0x8cd   :  { %3132 = vmatpush1.bf16.msra.mxu0 %v12491_v8  ;;  %v12552_v8 = vld [vmem:[#allocation13 + $0xa20] ss:$8 sps:$4 sm:$0xff]  }
 0x8ce   :  { %3133 = vmatprep.subr.bf16.mxu0 %v12496_v16  ;;  %v12557_v16 = vld [vmem:[#allocation13 + $0xa34] ss:$8 sps:$4 sm:$0xff]  }
 0x8d1   :  { %3134 = vmatpush1.bf16.msra.mxu0 %v12494_v4  ;;  %v12555_v4 = vld [vmem:[#allocation13 + $0xa30] ss:$8 sps:$4 sm:$0xff]  }
 0x8d2   :  { %3395 = vmatprep.subr.bf16.mxu0 %v12499_v43  ;;  %v12560_v43 = vld [vmem:[#allocation13 + $0xa44] ss:$8 sps:$4 sm:$0xff]  }
 0x8d4   :  { %3136 = vmatmul.mubr.bf16.vlgmr.msra.gmra.mrb[24].mxu0 %v2616_v20  ;;  %v12526_v20 = vld [vmem:[#allocation13 + $0x894] ss:$8 sps:$4 sm:$0xff]  }
 0x8d5   :  { %3396 = vmatpush1.bf16.msra.mxu0 %v12497_v44  ;;  %3427 = vmatprep.mubr.bf16.mxu0 %v3201_v22  ;;  %v12539_v22 = vld [vmem:[#allocation13 + $0x8e0] ss:$8 sps:$4 sm:$0xff]  }
 0x8d6   :  { %3397 = vmatprep.subr.bf16.mxu0 %v12502_v6  ;;  %v12558_v44 = vld [vmem:[#allocation13 + $0xa40] ss:$8 sps:$4 sm:$0xff]   ;;  %v12563_v6 = vld [vmem:[#allocation13 + $0xa54] ss:$8 sps:$4 sm:$0xff]  }
 0x8d9   :  { %3398 = vmatpush1.bf16.msra.mxu0 %v12500_v13  ;;  %v12561_v13 = vld [vmem:[#allocation13 + $0xa50] ss:$8 sps:$4 sm:$0xff]  }
 0x8da   :  { %3399 = vmatprep.subr.bf16.mxu0 %v12505_v9  ;;  %v12566_v9 = vld [vmem:[#allocation13 + $0xa64] ss:$8 sps:$4 sm:$0xff]  }
 0x8dd   :  { %3400 = vmatpush1.bf16.msra.mxu0 %v12503_v12  ;;  %v12564_v12 = vld [vmem:[#allocation13 + $0xa60] ss:$8 sps:$4 sm:$0xff]  }
 0x8de   :  { %3401 = vmatprep.subr.bf16.mxu0 %v12508_v11  ;;  %v12569_v11 = vld [vmem:[#allocation13 + $0xa74] ss:$8 sps:$4 sm:$0xff]  }
 0x8e1   :  { %3402 = vmatpush1.bf16.msra.mxu0 %v12506_v14  ;;  %v12567_v14 = vld [vmem:[#allocation13 + $0xa70] ss:$8 sps:$4 sm:$0xff]  }
 0x8e2   :  { %3403 = vmatprep.subr.bf16.mxu0 %v12511_v45  ;;  %v12572_v45 = vld [vmem:[#allocation13 + $0xa84] ss:$8 sps:$4 sm:$0xff]  }
 0x8e5   :  { %3404 = vmatpush1.bf16.msra.mxu0 %v12509_v46  ;;  %v12570_v46 = vld [vmem:[#allocation13 + $0xa80] ss:$8 sps:$4 sm:$0xff]  }
 0x8e6   :  { %3405 = vmatprep.subr.bf16.mxu0 %v12514_v50  ;;  %v12575_v50 = vld [vmem:[#allocation13 + $0xa94] ss:$8 sps:$4 sm:$0xff]  }
 0x8e9   :  { %3406 = vmatpush1.bf16.msra.mxu0 %v12512_v52  ;;  %v12573_v52 = vld [vmem:[#allocation13 + $0xa90] ss:$8 sps:$4 sm:$0xff]  }
 0x8ea   :  { %3407 = vmatprep.subr.bf16.mxu0 %v12517_v53  ;;  %v12578_v53 = vld [vmem:[#allocation13 + $0xaa4] ss:$8 sps:$4 sm:$0xff]  }
 0x8ed   :  { %3408 = vmatpush1.bf16.msra.mxu0 %v12515_v55  ;;  %v12576_v55 = vld [vmem:[#allocation13 + $0xaa0] ss:$8 sps:$4 sm:$0xff]  }
 0x8ee   :  { %3409 = vmatprep.subr.bf16.mxu0 %v12520_v57  ;;  %v12581_v57 = vld [vmem:[#allocation13 + $0xab4] ss:$8 sps:$4 sm:$0xff]  }
 0x8f1   :  { %3410 = vmatpush1.bf16.msra.mxu0 %v12518_v60  ;;  %v12579_v60 = vld [vmem:[#allocation13 + $0xab0] ss:$8 sps:$4 sm:$0xff]  }
 0x8f2   :  { %3411 = vmatprep.subr.bf16.mxu0 %v12523_v3  ;;  %v12584_v3 = vld [vmem:[#allocation13 + $0xac4] ss:$8 sps:$4 sm:$0xff]  }
 0x8f5   :  { %3412 = vmatpush1.bf16.msra.mxu0 %v12521_v5  ;;  %v12582_v5 = vld [vmem:[#allocation13 + $0xac0] ss:$8 sps:$4 sm:$0xff]  }
 0x8f6   :  { %3413 = vmatprep.subr.bf16.mxu0 %v12526_v20  ;;  %v12587_v20 = vld [vmem:[#allocation13 + $0xad4] ss:$8 sps:$4 sm:$0xff]  }
 0x8f9   :  { %3414 = vmatpush1.bf16.msra.mxu0 %v12524_v21  ;;  %v12585_v21 = vld [vmem:[#allocation13 + $0xad0] ss:$8 sps:$4 sm:$0xff]  }
 0x8fa   :  { %3415 = vmatprep.subr.bf16.mxu0 %v12529_v24  ;;  %v12590_v24 = vld [vmem:[#allocation13 + $0xae4] ss:$8 sps:$4 sm:$0xff]  }
 0x8fd   :  { %3416 = vmatpush1.bf16.msra.mxu0 %v12527_v34  ;;  %v12588_v34 = vld [vmem:[#allocation13 + $0xae0] ss:$8 sps:$4 sm:$0xff]  }
 0x8fe   :  { %3417 = vmatprep.subr.bf16.mxu0 %v12532_v25  ;;  %v12593_v25 = vld [vmem:[#allocation13 + $0xaf4] ss:$8 sps:$4 sm:$0xff]  }
 0x901   :  { %3418 = vmatpush1.bf16.msra.mxu0 %v12530_v32  ;;  %v12591_v32 = vld [vmem:[#allocation13 + $0xaf0] ss:$8 sps:$4 sm:$0xff]  }
 0x902   :  { %3419 = vmatprep.subr.bf16.mxu0 %v12535_v18  ;;  %v12597_v18 = vld [vmem:[#allocation13 + $0x904] ss:$8 sps:$4 sm:$0xff]  }
 0x905   :  { %3420 = vmatpush1.bf16.msra.mxu0 %v12533_v10  ;;  %v12595_v10 = vld [vmem:[#allocation13 + $0x900] ss:$8 sps:$4 sm:$0xff]  }
 0x906   :  { %3421 = vmatprep.subr.bf16.mxu0 %v12538_v17  ;;  %v12600_v17 = vld [vmem:[#allocation13 + $0x914] ss:$8 sps:$4 sm:$0xff]  }
 0x909   :  { %3422 = vmatpush1.bf16.msra.mxu0 %v12536_v23  ;;  %v12598_v23 = vld [vmem:[#allocation13 + $0x910] ss:$8 sps:$4 sm:$0xff]  }
 0x90a   :  { %3423 = vmatprep.subr.bf16.mxu0 %v12541_v31  ;;  %v12603_v31 = vld [vmem:[#allocation13 + $0x924] ss:$8 sps:$4 sm:$0xff]  }
 0x90d   :  { %3424 = vmatpush1.bf16.msra.mxu0 %v12539_v22  ;;  %v12601_v22 = vld [vmem:[#allocation13 + $0x920] ss:$8 sps:$4 sm:$0xff]  }
 0x90e   :  { %3425 = vmatprep.subr.bf16.mxu0 %v12544_v19  ;;  %v12606_v19 = vld [vmem:[#allocation13 + $0x934] ss:$8 sps:$4 sm:$0xff]  }
 0x911   :  { %3426 = vmatpush1.bf16.msra.mxu0 %v12542_v33  ;;  %v12604_v33 = vld [vmem:[#allocation13 + $0x930] ss:$8 sps:$4 sm:$0xff]  }
 0x914   :  { %3428 = vmatmul.mubr.bf16.vlgmr.msra.gmra.mrb[24].mxu0 %v3200_v30 }
 0x915   :  { %4271 = vmatprep.mubr.bf16.mxu0 %v14002_v15 }
 0x9e7   :  { %v3429_v37 = vpop.f32.mrb[24].mxu0 }
 0x9e8   :  { %v3453_v28 = vadd.f32 %v3446_v29, %v3429_v37  ;;  %v3431_v39 = vpop.f32.mrb[25].mxu0  ;;  %v12610_v37 = vld [vmem:[#allocation13 + $0x950] ss:$8 sps:$4 sm:$0xff]  }
 0x9e9   :  { %v3454_v40 = vadd.f32 %v3450_v36, %v3431_v39  ;;  %v3433_v58 = vpop.f32.mrb[26].mxu0  ;;  %v12613_v39 = vld [vmem:[#allocation13 + $0x960] ss:$8 sps:$4 sm:$0xff]  }
 0x9ea   :  { %v3455_v1 = vadd.f32 %v3446_v29, %v3433_v58  ;;  %v3435_v41 = vpop.f32.mrb[27].mxu0  ;;  %v3457_v2 = vmax.f32 %v3453_v28, 0.0  ;;  %v12607_v29 = vld [vmem:[#allocation13 + $0x940] ss:$8 sps:$4 sm:$0xff]   ;;  %v12615_v28 = vld [vmem:[#allocation13 + $0x964] ss:$8 sps:$4 sm:$0xff]  }
 0x9eb   :  { %v3456_v54 = vadd.f32 %v3450_v36, %v3435_v41  ;;  %v3458_v63 = vmax.f32 %v3454_v40, 0.0  ;;  %v12612_v36 = vld [vmem:[#allocation13 + $0x954] ss:$8 sps:$4 sm:$0xff]   ;;  %v12616_v58 = vld [vmem:[#allocation13 + $0x970] ss:$8 sps:$4 sm:$0xff]  }
 0x9ec   :  { %v3459_v56 = vmax.f32 %v3455_v1, 0.0  ;;  %v12618_v40 = vld [vmem:[#allocation13 + $0x974] ss:$8 sps:$4 sm:$0xff]   ;;  %v12621_v1 = vld [vmem:[#allocation13 + $0x984] ss:$8 sps:$4 sm:$0xff]  }
 0x9ed   :  { %v3460_v26 = vmax.f32 %v3456_v54, 0.0  ;;  %v12619_v41 = vld [vmem:[#allocation13 + $0x980] ss:$8 sps:$4 sm:$0xff]   ;;  %v12624_v54 = vld [vmem:[#allocation13 + $0x994] ss:$8 sps:$4 sm:$0xff]  }
 0x9ee   :  { %v14550_v27 = vpack.c.bf16 %v3459_v56, %v3457_v2  ;;  %v12622_v2 = vld [vmem:[#allocation13 + $0x990] ss:$8 sps:$4 sm:$0xff]   ;;  %v12627_v56 = vld [vmem:[#allocation13 + $0x9a4] ss:$8 sps:$4 sm:$0xff]  }
 0x9ef   :  { %v3697_v30 = vpack.c.bf16 %v3460_v26, %v3458_v63  ;;  %v12625_v63 = vld [vmem:[#allocation13 + $0x9a0] ss:$8 sps:$4 sm:$0xff]   ;;  %v12630_v26 = vld [vmem:[#allocation13 + $0x9b4] ss:$8 sps:$4 sm:$0xff]  }
 0x9f1   :  { %3711 = vmatprep.subr.bf16.mxu1 %v3697_v30  ;;  %4239 = vmatprep.subr.bf16.mxu0 %v3697_v30 }
 0x9f2   :  { %3712 = vmatpush1.bf16.msra.mxu1 %v14550_v27  ;;  %4240 = vmatpush1.bf16.msra.mxu0 %v14550_v27 }
 0x9f3   :  { %3982 = vmatprep.subr.bf16.mxu1 %v12548_v59  ;;  %v12631_v59 = vld [vmem:[#allocation13 + $0x9c0] ss:$8 sps:$4 sm:$0xff]  }
 0x9f5   :  { %10937 = vmatmul.mubr.msk.bf16.vlgmr.msra.gmra.mrb[56].mxu1 %vm3707_vm2, %v12545_v61  ;;  %11003 = vmatmul.mubr.msk.bf16.vlgmr.msra.gmra.mrb[28].mxu0 %vm3707_vm2, %v12594_v62  ;;  %v12636_v61 = vld [vmem:[#allocation13 + $0x9d4] ss:$8 sps:$4 sm:$0xff]   ;;  %v12634_v62 = vld [vmem:[#allocation13 + $0x9d0] ss:$8 sps:$4 sm:$0xff]  }
 0x9f6   :  { %3983 = vmatpush1.bf16.msra.mxu1 %v12546_v0  ;;  %4014 = vmatprep.mubr.bf16.mxu1 %v3697_v30  ;;  %v12633_v30 = vld [vmem:[#allocation13 + $0x9c4] ss:$8 sps:$4 sm:$0xff]  }
 0x9f7   :  { %3984 = vmatprep.subr.bf16.mxu1 %v12551_v7  ;;  %4587 = vmatprep.mubr.bf16.mxu0 %v14002_v15  ;;  %v12639_v0 = vld [vmem:[#allocation13 + $0x9e4] ss:$8 sps:$4 sm:$0xff]   ;;  %v12637_v7 = vld [vmem:[#allocation13 + $0x9e0] ss:$8 sps:$4 sm:$0xff]  }
 0x9fa   :  { %3985 = vmatpush1.bf16.msra.mxu1 %v12549_v38  ;;  %v12642_v38 = vld [vmem:[#allocation13 + $0x9f4] ss:$8 sps:$4 sm:$0xff]  }
 0x9fb   :  { %3986 = vmatprep.subr.bf16.mxu1 %v12554_v42  ;;  %v12640_v42 = vld [vmem:[#allocation13 + $0x9f0] ss:$8 sps:$4 sm:$0xff]  }
 0x9fe   :  { %3987 = vmatpush1.bf16.msra.mxu1 %v12552_v8  ;;  %v12645_v8 = vld [vmem:[#allocation13 + $0xb04] ss:$8 sps:$4 sm:$0xff]  }
 0x9ff   :  { %3988 = vmatprep.subr.bf16.mxu1 %v12557_v16 }
 0xa02   :  { %3989 = vmatpush1.bf16.msra.mxu1 %v12555_v4 }
 0xa03   :  { %3990 = vmatprep.subr.bf16.mxu1 %v12560_v43 }
 0xa06   :  { %3991 = vmatpush1.bf16.msra.mxu1 %v12558_v44 }
 0xa07   :  { %3992 = vmatprep.subr.bf16.mxu1 %v12563_v6 }
 0xa0a   :  { %3993 = vmatpush1.bf16.msra.mxu1 %v12561_v13 }
 0xa0b   :  { %3994 = vmatprep.subr.bf16.mxu1 %v12566_v9 }
 0xa0e   :  { %3995 = vmatpush1.bf16.msra.mxu1 %v12564_v12 }
 0xa0f   :  { %3996 = vmatprep.subr.bf16.mxu1 %v12569_v11 }
 0xa12   :  { %3997 = vmatpush1.bf16.msra.mxu1 %v12567_v14 }
 0xa13   :  { %3998 = vmatprep.subr.bf16.mxu1 %v12572_v45 }
 0xa16   :  { %3999 = vmatpush1.bf16.msra.mxu1 %v12570_v46  ;;  %v12643_v46 = vld [vmem:[#allocation13 + $0xb00] ss:$8 sps:$4 sm:$0xff]  }
 0xa17   :  { %4000 = vmatprep.subr.bf16.mxu1 %v12575_v50 }
 0xa1a   :  { %4001 = vmatpush1.bf16.msra.mxu1 %v12573_v52  ;;  %v12648_v52 = vld [vmem:[#allocation13 + $0xb14] ss:$8 sps:$4 sm:$0xff]  }
 0xa1b   :  { %4002 = vmatprep.subr.bf16.mxu1 %v12578_v53  ;;  %v12646_v53 = vld [vmem:[#allocation13 + $0xb10] ss:$8 sps:$4 sm:$0xff]  }
 0xa1e   :  { %4003 = vmatpush1.bf16.msra.mxu1 %v12576_v55  ;;  %v12651_v55 = vld [vmem:[#allocation13 + $0xb24] ss:$8 sps:$4 sm:$0xff]  }
 0xa1f   :  { %4004 = vmatprep.subr.bf16.mxu1 %v12581_v57  ;;  %v12649_v57 = vld [vmem:[#allocation13 + $0xb20] ss:$8 sps:$4 sm:$0xff]  }
 0xa22   :  { %4005 = vmatpush1.bf16.msra.mxu1 %v12579_v60  ;;  %v12654_v60 = vld [vmem:[#allocation13 + $0xb34] ss:$8 sps:$4 sm:$0xff]  }
 0xa23   :  { %4006 = vmatprep.subr.bf16.mxu1 %v12584_v3  ;;  %v12652_v3 = vld [vmem:[#allocation13 + $0xb30] ss:$8 sps:$4 sm:$0xff]  }
 0xa26   :  { %4007 = vmatpush1.bf16.msra.mxu1 %v12582_v5  ;;  %v12657_v5 = vld [vmem:[#allocation13 + $0xb44] ss:$8 sps:$4 sm:$0xff]  }
 0xa27   :  { %4008 = vmatprep.subr.bf16.mxu1 %v12587_v20  ;;  %v12655_v20 = vld [vmem:[#allocation13 + $0xb40] ss:$8 sps:$4 sm:$0xff]  }
 0xa2a   :  { %4009 = vmatpush1.bf16.msra.mxu1 %v12585_v21  ;;  %v12660_v21 = vld [vmem:[#allocation13 + $0xb54] ss:$8 sps:$4 sm:$0xff]  }
 0xa2b   :  { %4010 = vmatprep.subr.bf16.mxu1 %v12590_v24  ;;  %v12658_v24 = vld [vmem:[#allocation13 + $0xb50] ss:$8 sps:$4 sm:$0xff]  }
 0xa2e   :  { %4011 = vmatpush1.bf16.msra.mxu1 %v12588_v34  ;;  %v12663_v34 = vld [vmem:[#allocation13 + $0xb64] ss:$8 sps:$4 sm:$0xff]  }
 0xa2f   :  { %4012 = vmatprep.subr.bf16.mxu1 %v12593_v25  ;;  %v12661_v25 = vld [vmem:[#allocation13 + $0xb60] ss:$8 sps:$4 sm:$0xff]  }
 0xa32   :  { %4013 = vmatpush1.bf16.msra.mxu1 %v12591_v32  ;;  %v12666_v32 = vld [vmem:[#allocation13 + $0xb74] ss:$8 sps:$4 sm:$0xff]  }
 0xa33   :  { %4185 = vmatprep.subr.bf16.mxu1 %v12597_v18  ;;  %v12664_v18 = vld [vmem:[#allocation13 + $0xb70] ss:$8 sps:$4 sm:$0xff]  }
 0xa35   :  { %4015 = vmatmul.mubr.bf16.vlgmr.msra.gmra.mrb[52].mxu1 %v14550_v27  ;;  %v12628_v27 = vld [vmem:[#allocation13 + $0x9b0] ss:$8 sps:$4 sm:$0xff]  }
 0xa36   :  { %4186 = vmatpush1.bf16.msra.mxu1 %v12595_v10  ;;  %v12669_v10 = vld [vmem:[#allocation13 + $0xb84] ss:$8 sps:$4 sm:$0xff]  }
 0xa37   :  { %4187 = vmatprep.subr.bf16.mxu1 %v12600_v17  ;;  %v12667_v17 = vld [vmem:[#allocation13 + $0xb80] ss:$8 sps:$4 sm:$0xff]  }
 0xa3a   :  { %4188 = vmatpush1.bf16.msra.mxu1 %v12598_v23  ;;  %v12672_v23 = vld [vmem:[#allocation13 + $0xb94] ss:$8 sps:$4 sm:$0xff]  }
 0xa3b   :  { %4189 = vmatprep.subr.bf16.mxu1 %v12603_v31  ;;  %v12670_v31 = vld [vmem:[#allocation13 + $0xb90] ss:$8 sps:$4 sm:$0xff]  }
 0xa3e   :  { %4190 = vmatpush1.bf16.msra.mxu1 %v12601_v22  ;;  %v12675_v22 = vld [vmem:[#allocation13 + $0xba4] ss:$8 sps:$4 sm:$0xff]  }
 0xa3f   :  { %4191 = vmatprep.subr.bf16.mxu1 %v12606_v19  ;;  %v12673_v19 = vld [vmem:[#allocation13 + $0xba0] ss:$8 sps:$4 sm:$0xff]  }
 0xa42   :  { %4192 = vmatpush1.bf16.msra.mxu1 %v12604_v33  ;;  %v12678_v33 = vld [vmem:[#allocation13 + $0xbb4] ss:$8 sps:$4 sm:$0xff]  }
 0xa43   :  { %4193 = vmatprep.subr.bf16.mxu1 %v12609_v35  ;;  %v12676_v35 = vld [vmem:[#allocation13 + $0xbb0] ss:$8 sps:$4 sm:$0xff]  }
 0xa46   :  { %4194 = vmatpush1.bf16.msra.mxu1 %v12607_v29  ;;  %v12681_v29 = vld [vmem:[#allocation13 + $0xbc4] ss:$8 sps:$4 sm:$0xff]  }
 0xa47   :  { %4195 = vmatprep.subr.bf16.mxu1 %v12612_v36  ;;  %v12679_v36 = vld [vmem:[#allocation13 + $0xbc0] ss:$8 sps:$4 sm:$0xff]  }
 0xa4a   :  { %4196 = vmatpush1.bf16.msra.mxu1 %v12610_v37  ;;  %v12684_v37 = vld [vmem:[#allocation13 + $0xbd4] ss:$8 sps:$4 sm:$0xff]  }
 0xa4b   :  { %4197 = vmatprep.subr.bf16.mxu1 %v12615_v28  ;;  %v12682_v28 = vld [vmem:[#allocation13 + $0xbd0] ss:$8 sps:$4 sm:$0xff]  }
 0xa4e   :  { %4198 = vmatpush1.bf16.msra.mxu1 %v12613_v39  ;;  %v12687_v39 = vld [vmem:[#allocation13 + $0xbe4] ss:$8 sps:$4 sm:$0xff]  }
 0xa4f   :  { %4199 = vmatprep.subr.bf16.mxu1 %v12618_v40  ;;  %v12685_v40 = vld [vmem:[#allocation13 + $0xbe0] ss:$8 sps:$4 sm:$0xff]  }
 0xa52   :  { %4200 = vmatpush1.bf16.msra.mxu1 %v12616_v58  ;;  %v12690_v58 = vld [vmem:[#allocation13 + $0xbf4] ss:$8 sps:$4 sm:$0xff]  }
 0xa53   :  { %4201 = vmatprep.subr.bf16.mxu1 %v12621_v1  ;;  %v12688_v1 = vld [vmem:[#allocation13 + $0xbf0] ss:$8 sps:$4 sm:$0xff]  }
 0xa56   :  { %4202 = vmatpush1.bf16.msra.mxu1 %v12619_v41  ;;  %v3699_v41 = vld [vmem:[#allocation19 + $0x8] sm:$0x3] }
 0xa57   :  { %4203 = vmatprep.subr.bf16.mxu1 %v12624_v54  ;;  %v4528_v54 = vrot.slane %v3699_v41, %v14363_v51 }
 0xa5a   :  { %4204 = vmatpush1.bf16.msra.mxu1 %v12622_v2  ;;  %v4532_v2 = vrot.slane %v3699_v41, %v14360_v49  ;;  %v12759_v41 = vld [vmem:[#allocation13 + $0xe34] ss:$8 sps:$4 sm:$0xff]  }
 0xa5b   :  { %4205 = vmatprep.subr.bf16.mxu1 %v12627_v56 }
 0xa5e   :  { %4206 = vmatpush1.bf16.msra.mxu1 %v12625_v63 }
 0xa5f   :  { %4207 = vmatprep.subr.bf16.mxu1 %v12630_v26 }
 0xa62   :  { %4208 = vmatpush1.bf16.msra.mxu1 %v12628_v27 }
 0xa63   :  { %4209 = vmatprep.subr.bf16.mxu1 %v12633_v30 }
 0xa66   :  { %4210 = vmatpush1.bf16.msra.mxu1 %v12631_v59 }
 0xa67   :  { %4211 = vmatprep.subr.bf16.mxu1 %v12636_v61 }
 0xa6a   :  { %4212 = vmatpush1.bf16.msra.mxu1 %v12634_v62 }
 0xa6b   :  { %4213 = vmatprep.subr.bf16.mxu1 %v12639_v0 }
 0xa6e   :  { %4214 = vmatpush1.bf16.msra.mxu1 %v12637_v7 }
 0xa6f   :  { %4215 = vmatprep.subr.bf16.mxu1 %v12642_v38 }
 0xa72   :  { %4216 = vmatpush1.bf16.msra.mxu1 %v12640_v42 }
 0xa73   :  { %4477 = vmatprep.subr.bf16.mxu1 %v12645_v8 }
 0xac8   :  { %v3745_v16 = vpop.f32.mrb[56].mxu1  ;;  %v14558_v4 = vpop.f32.mrb[28].mxu0 }
 0xac9   :  { %v3747_v43 = vpop.f32.mrb[57].mxu1  ;;  %v4275_v44 = vpop.f32.mrb[29].mxu0 }
 0xaca   :  { %v3749_v6 = vpop.f32.mrb[58].mxu1  ;;  %v14560_v13 = vpop.f32.mrb[30].mxu0 }
 0xacb   :  { %v3754_v9 = vpack.c.bf16 %v3749_v6, %v3745_v16  ;;  %v3751_v12 = vpop.f32.mrb[59].mxu1  ;;  %v4282_v11 = vpack.c.bf16 %v14560_v13, %v14558_v4  ;;  %v4279_v14 = vpop.f32.mrb[31].mxu0  ;;  %v4551_v4 = vld [vmem:[#allocation10] sm:$0xf]  ;;  %v4632_v6 = vld [vmem:[#allocation10 + $0x4] sm:$0xf] }
 0xacc   :  { %v3755_v45 = vpack.c.bf16 %v3751_v12, %v3747_v43  ;;  %v4283_v50 = vpack.c.bf16 %v4279_v14, %v4275_v44  ;;  %v5115_v43 = vld [vmem:[#allocation10 + $0x8] sm:$0xf]  ;;  %v12693_v44 = vld [vmem:[#allocation13 + $0xd04] ss:$8 sps:$4 sm:$0xff]   ;;  %v12691_v13 = vld [vmem:[#allocation13 + $0xd00] ss:$8 sps:$4 sm:$0xff]  }
 0xacd   :  { %v12694_v12 = vld [vmem:[#allocation13 + $0xd10] ss:$8 sps:$4 sm:$0xff]   ;;  %v12697_v14 = vld [vmem:[#allocation13 + $0xd20] ss:$8 sps:$4 sm:$0xff]  }
 0xace   :  { %4217 = vmatprep.mubr.bf16.mxu1 %v3755_v45  ;;  %v12702_v45 = vld [vmem:[#allocation13 + $0xd34] ss:$8 sps:$4 sm:$0xff]  }
 0xacf   :  { %4218 = vmatmul.mubr.bf16.vlgmr.msra.gmra.mrb[52].mxu1 %v3754_v9  ;;  %v12696_v9 = vld [vmem:[#allocation13 + $0xd14] ss:$8 sps:$4 sm:$0xff]  }
 0xad0   :  { %4478 = vmatpush1.bf16.msra.mxu1 %v12643_v46  ;;  %4509 = vmatprep.mubr.bf16.mxu1 %v4283_v50  ;;  %v12700_v46 = vld [vmem:[#allocation13 + $0xd30] ss:$8 sps:$4 sm:$0xff]   ;;  %v12705_v50 = vld [vmem:[#allocation13 + $0xd44] ss:$8 sps:$4 sm:$0xff]  }
 0xad1   :  { %4479 = vmatprep.subr.bf16.mxu1 %v12648_v52  ;;  %v12703_v52 = vld [vmem:[#allocation13 + $0xd40] ss:$8 sps:$4 sm:$0xff]  }
 0xad4   :  { %4480 = vmatpush1.bf16.msra.mxu1 %v12646_v53  ;;  %v12708_v53 = vld [vmem:[#allocation13 + $0xd54] ss:$8 sps:$4 sm:$0xff]  }
 0xad5   :  { %4481 = vmatprep.subr.bf16.mxu1 %v12651_v55  ;;  %v12706_v55 = vld [vmem:[#allocation13 + $0xd50] ss:$8 sps:$4 sm:$0xff]  }
 0xad8   :  { %4482 = vmatpush1.bf16.msra.mxu1 %v12649_v57  ;;  %v12711_v57 = vld [vmem:[#allocation13 + $0xd64] ss:$8 sps:$4 sm:$0xff]  }
 0xad9   :  { %4483 = vmatprep.subr.bf16.mxu1 %v12654_v60  ;;  %v12709_v60 = vld [vmem:[#allocation13 + $0xd60] ss:$8 sps:$4 sm:$0xff]  }
 0xadc   :  { %4484 = vmatpush1.bf16.msra.mxu1 %v12652_v3  ;;  %v12714_v3 = vld [vmem:[#allocation13 + $0xd74] ss:$8 sps:$4 sm:$0xff]  }
 0xadd   :  { %4485 = vmatprep.subr.bf16.mxu1 %v12657_v5  ;;  %v12712_v5 = vld [vmem:[#allocation13 + $0xd70] ss:$8 sps:$4 sm:$0xff]  }
 0xae0   :  { %4486 = vmatpush1.bf16.msra.mxu1 %v12655_v20  ;;  %v12717_v20 = vld [vmem:[#allocation13 + $0xd84] ss:$8 sps:$4 sm:$0xff]  }
 0xae1   :  { %4487 = vmatprep.subr.bf16.mxu1 %v12660_v21  ;;  %v12715_v21 = vld [vmem:[#allocation13 + $0xd80] ss:$8 sps:$4 sm:$0xff]  }
 0xae4   :  { %4488 = vmatpush1.bf16.msra.mxu1 %v12658_v24  ;;  %v12720_v24 = vld [vmem:[#allocation13 + $0xd94] ss:$8 sps:$4 sm:$0xff]  }
 0xae5   :  { %4489 = vmatprep.subr.bf16.mxu1 %v12663_v34  ;;  %v12718_v34 = vld [vmem:[#allocation13 + $0xd90] ss:$8 sps:$4 sm:$0xff]  }
 0xae8   :  { %4490 = vmatpush1.bf16.msra.mxu1 %v12661_v25  ;;  %v12723_v25 = vld [vmem:[#allocation13 + $0xda4] ss:$8 sps:$4 sm:$0xff]  }
 0xae9   :  { %4491 = vmatprep.subr.bf16.mxu1 %v12666_v32  ;;  %v12721_v32 = vld [vmem:[#allocation13 + $0xda0] ss:$8 sps:$4 sm:$0xff]  }
 0xaec   :  { %4492 = vmatpush1.bf16.msra.mxu1 %v12664_v18  ;;  %v12726_v18 = vld [vmem:[#allocation13 + $0xdb4] ss:$8 sps:$4 sm:$0xff]  }
 0xaed   :  { %4493 = vmatprep.subr.bf16.mxu1 %v12669_v10  ;;  %v12724_v10 = vld [vmem:[#allocation13 + $0xdb0] ss:$8 sps:$4 sm:$0xff]  }
 0xaf0   :  { %4494 = vmatpush1.bf16.msra.mxu1 %v12667_v17  ;;  %v12729_v17 = vld [vmem:[#allocation13 + $0xdc4] ss:$8 sps:$4 sm:$0xff]  }
 0xaf1   :  { %4495 = vmatprep.subr.bf16.mxu1 %v12672_v23  ;;  %v12727_v23 = vld [vmem:[#allocation13 + $0xdc0] ss:$8 sps:$4 sm:$0xff]  }
 0xaf4   :  { %4496 = vmatpush1.bf16.msra.mxu1 %v12670_v31  ;;  %v12732_v31 = vld [vmem:[#allocation13 + $0xdd4] ss:$8 sps:$4 sm:$0xff]  }
 0xaf5   :  { %4497 = vmatprep.subr.bf16.mxu1 %v12675_v22  ;;  %v12730_v22 = vld [vmem:[#allocation13 + $0xdd0] ss:$8 sps:$4 sm:$0xff]  }
 0xaf8   :  { %4498 = vmatpush1.bf16.msra.mxu1 %v12673_v19  ;;  %v12735_v19 = vld [vmem:[#allocation13 + $0xde4] ss:$8 sps:$4 sm:$0xff]  }
 0xaf9   :  { %4499 = vmatprep.subr.bf16.mxu1 %v12678_v33  ;;  %v12733_v33 = vld [vmem:[#allocation13 + $0xde0] ss:$8 sps:$4 sm:$0xff]  }
 0xafc   :  { %4500 = vmatpush1.bf16.msra.mxu1 %v12676_v35  ;;  %v12738_v35 = vld [vmem:[#allocation13 + $0xdf4] ss:$8 sps:$4 sm:$0xff]  }
 0xafd   :  { %4501 = vmatprep.subr.bf16.mxu1 %v12681_v29  ;;  %v12736_v29 = vld [vmem:[#allocation13 + $0xdf0] ss:$8 sps:$4 sm:$0xff]  }
 0xb00   :  { %4502 = vmatpush1.bf16.msra.mxu1 %v12679_v36  ;;  %v12741_v36 = vld [vmem:[#allocation13 + $0xe04] ss:$8 sps:$4 sm:$0xff]  }
 0xb01   :  { %4503 = vmatprep.subr.bf16.mxu1 %v12684_v37  ;;  %v12739_v37 = vld [vmem:[#allocation13 + $0xe00] ss:$8 sps:$4 sm:$0xff]  }
 0xb04   :  { %4504 = vmatpush1.bf16.msra.mxu1 %v12682_v28  ;;  %v12744_v28 = vld [vmem:[#allocation13 + $0xc04] ss:$8 sps:$4 sm:$0xff]  }
 0xb05   :  { %4505 = vmatprep.subr.bf16.mxu1 %v12687_v39  ;;  %v12747_v39 = vld [vmem:[#allocation13 + $0xe14] ss:$8 sps:$4 sm:$0xff]  }
 0xb08   :  { %4506 = vmatpush1.bf16.msra.mxu1 %v12685_v40  ;;  %v12745_v40 = vld [vmem:[#allocation13 + $0xe10] ss:$8 sps:$4 sm:$0xff]  }
 0xb09   :  { %4507 = vmatprep.subr.bf16.mxu1 %v12690_v58  ;;  %v12753_v58 = vld [vmem:[#allocation13 + $0xe24] ss:$8 sps:$4 sm:$0xff]  }
 0xb0c   :  { %4508 = vmatpush1.bf16.msra.mxu1 %v12688_v1  ;;  %v12751_v1 = vld [vmem:[#allocation13 + $0xe20] ss:$8 sps:$4 sm:$0xff]  }
 0xb0f   :  { %4510 = vmatmul.mubr.bf16.vlgmr.msra.gmra.mrb[52].mxu1 %v4282_v11  ;;  %v12699_v11 = vld [vmem:[#allocation13 + $0xd24] ss:$8 sps:$4 sm:$0xff]  }
 0xb10   :  { %5151 = vmatprep.mubr.bf16.mxu1 %v14002_v15 }
 0xbe2   :  { %v4511_v56 = vpop.f32.mrb[52].mxu1 }
 0xbe3   :  { %v11881_v63 = vadd.f32 %v4528_v54, %v4511_v56  ;;  %v4513_v26 = vpop.f32.mrb[53].mxu1  ;;  %v12763_v56 = vld [vmem:[#allocation13 + $0xe40] ss:$8 sps:$4 sm:$0xff]  }
 0xbe4   :  { %v11882_v27 = vadd.f32 %v4532_v2, %v4513_v26  ;;  %v4515_v30 = vpop.f32.mrb[54].mxu1  ;;  %v12769_v26 = vld [vmem:[#allocation13 + $0xe50] ss:$8 sps:$4 sm:$0xff]  }
 0xbe5   :  { %v11883_v59 = vadd.f32 %v4528_v54, %v4515_v30  ;;  %v4517_v61 = vpop.f32.mrb[55].mxu1  ;;  %v4543_v0 = vmax.f32 %v11881_v63, 0.0  ;;  %v12757_v54 = vld [vmem:[#allocation13 + $0xe30] ss:$8 sps:$4 sm:$0xff]   ;;  %v12771_v63 = vld [vmem:[#allocation13 + $0xe54] ss:$8 sps:$4 sm:$0xff]  }
 0xbe6   :  { %v11884_v62 = vadd.f32 %v4532_v2, %v4517_v61  ;;  %v4544_v38 = vmax.f32 %v11882_v27, 0.0  ;;  %v12765_v2 = vld [vmem:[#allocation13 + $0xe44] ss:$8 sps:$4 sm:$0xff]   ;;  %v12775_v30 = vld [vmem:[#allocation13 + $0xe60] ss:$8 sps:$4 sm:$0xff]  }
 0xbe7   :  { %v4545_v7 = vmax.f32 %v11883_v59, 0.0  ;;  %v12777_v27 = vld [vmem:[#allocation13 + $0xe64] ss:$8 sps:$4 sm:$0xff]   ;;  %v12783_v59 = vld [vmem:[#allocation13 + $0xe74] ss:$8 sps:$4 sm:$0xff]  }
 0xbe8   :  { %v4546_v42 = vmax.f32 %v11884_v62, 0.0  ;;  %v12781_v61 = vld [vmem:[#allocation13 + $0xe70] ss:$8 sps:$4 sm:$0xff]   ;;  %v12789_v62 = vld [vmem:[#allocation13 + $0xe84] ss:$8 sps:$4 sm:$0xff]  }
 0xbe9   :  { %v4547_v8 = vpack.c.bf16 %v4545_v7, %v4543_v0  ;;  %v12787_v0 = vld [vmem:[#allocation13 + $0xe80] ss:$8 sps:$4 sm:$0xff]   ;;  %v12795_v7 = vld [vmem:[#allocation13 + $0xe94] ss:$8 sps:$4 sm:$0xff]  }
 0xbea   :  { %v4548_v16 = vpack.c.bf16 %v4546_v42, %v4544_v38  ;;  %v12793_v38 = vld [vmem:[#allocation13 + $0xe90] ss:$8 sps:$4 sm:$0xff]   ;;  %v12801_v42 = vld [vmem:[#allocation13 + $0xea4] ss:$8 sps:$4 sm:$0xff]  }
 0xbec   :  { %4555 = vmatprep.subr.bf16.mxu0 %v4548_v16  ;;  %5119 = vmatprep.subr.bf16.mxu1 %v4548_v16 }
 0xbed   :  { %4556 = vmatpush1.bf16.msra.mxu0 %v4547_v8  ;;  %5120 = vmatpush1.bf16.msra.mxu1 %v4547_v8 }
 0xbee   :  { %4636 = vmatprep.subr.bf16.mxu0 %v4548_v16  ;;  %5355 = vmatprep.subr.bf16.mxu1 %v12741_v36  ;;  %v12807_v16 = vld [vmem:[#allocation13 + $0xeb4] ss:$8 sps:$4 sm:$0xff]  }
 0xbef   :  { %v12774_v36 = vld [vmem:[#allocation13 + $0xc54] ss:$8 sps:$4 sm:$0xff]  }
 0xbf0   :  { %11036 = vmatmul.mubr.msk.bf16.vlgmr.msra.gmra.mrb[32].mxu0 %vm3707_vm2, %v4551_v4  ;;  %11102 = vmatmul.mubr.msk.bf16.vlgmr.msra.gmra.mrb[60].mxu1 %vm3707_vm2, %v5115_v43  ;;  %v12805_v4 = vld [vmem:[#allocation13 + $0xeb0] ss:$8 sps:$4 sm:$0xff]   ;;  %v12813_v43 = vld [vmem:[#allocation13 + $0xec4] ss:$8 sps:$4 sm:$0xff]  }
 0xbf1   :  { %4637 = vmatpush1.bf16.msra.mxu0 %v4547_v8  ;;  %4668 = vmatprep.mubr.bf16.mxu0 %v14002_v15  ;;  %v12799_v8 = vld [vmem:[#allocation13 + $0xea0] ss:$8 sps:$4 sm:$0xff]  }
 0xbf2   :  { %4872 = vmatprep.subr.bf16.mxu0 %v12693_v44  ;;  %5356 = vmatpush1.bf16.msra.mxu1 %v12739_v37  ;;  %v12811_v44 = vld [vmem:[#allocation13 + $0xec0] ss:$8 sps:$4 sm:$0xff]   ;;  %v12772_v37 = vld [vmem:[#allocation13 + $0xc50] ss:$8 sps:$4 sm:$0xff]  }
 0xbf3   :  { %5357 = vmatprep.subr.bf16.mxu1 %v12747_v39  ;;  %v12778_v39 = vld [vmem:[#allocation13 + $0xc60] ss:$8 sps:$4 sm:$0xff]  }
 0xbf6   :  { %5358 = vmatpush1.bf16.msra.mxu1 %v12745_v40  ;;  %v12786_v40 = vld [vmem:[#allocation13 + $0xc74] ss:$8 sps:$4 sm:$0xff]  }
 0xbf7   :  { %5359 = vmatprep.subr.bf16.mxu1 %v12753_v58  ;;  %v12784_v58 = vld [vmem:[#allocation13 + $0xc70] ss:$8 sps:$4 sm:$0xff]  }
 0xbf8   :  { %11037 = vmatmul.mubr.msk.bf16.vlgmr.msra.gmra.mrb[36].mxu0 %vm3707_vm2, %v4632_v6  ;;  %v12819_v6 = vld [vmem:[#allocation13 + $0xed4] ss:$8 sps:$4 sm:$0xff]  }
 0xbf9   :  { %4873 = vmatpush1.bf16.msra.mxu0 %v12691_v13  ;;  %v12817_v13 = vld [vmem:[#allocation13 + $0xed0] ss:$8 sps:$4 sm:$0xff]  }
 0xbfa   :  { %4874 = vmatprep.subr.bf16.mxu0 %v12696_v9  ;;  %5360 = vmatpush1.bf16.msra.mxu1 %v12751_v1  ;;  %v12825_v9 = vld [vmem:[#allocation13 + $0xee4] ss:$8 sps:$4 sm:$0xff]  }
 0xbfb   :  { %5361 = vmatprep.subr.bf16.mxu1 %v12759_v41  ;;  %v12792_v1 = vld [vmem:[#allocation13 + $0xc84] ss:$8 sps:$4 sm:$0xff]   ;;  %v12790_v41 = vld [vmem:[#allocation13 + $0xc80] ss:$8 sps:$4 sm:$0xff]  }
 0xbfd   :  { %4875 = vmatpush1.bf16.msra.mxu0 %v12694_v12  ;;  %v12823_v12 = vld [vmem:[#allocation13 + $0xee0] ss:$8 sps:$4 sm:$0xff]  }
 0xbfe   :  { %4876 = vmatprep.subr.bf16.mxu0 %v12699_v11  ;;  %5362 = vmatpush1.bf16.msra.mxu1 %v12757_v54  ;;  %v12831_v11 = vld [vmem:[#allocation13 + $0xef4] ss:$8 sps:$4 sm:$0xff]  }
 0xbff   :  { %5363 = vmatprep.subr.bf16.mxu1 %v12765_v2  ;;  %v12798_v54 = vld [vmem:[#allocation13 + $0xc94] ss:$8 sps:$4 sm:$0xff]   ;;  %v12796_v2 = vld [vmem:[#allocation13 + $0xc90] ss:$8 sps:$4 sm:$0xff]  }
 0xc01   :  { %4877 = vmatpush1.bf16.msra.mxu0 %v12697_v14  ;;  %v12829_v14 = vld [vmem:[#allocation13 + $0xef0] ss:$8 sps:$4 sm:$0xff]  }
 0xc02   :  { %4878 = vmatprep.subr.bf16.mxu0 %v12702_v45  ;;  %5364 = vmatpush1.bf16.msra.mxu1 %v12763_v56  ;;  %v12804_v56 = vld [vmem:[#allocation13 + $0xca4] ss:$8 sps:$4 sm:$0xff]  }
 0xc03   :  { %5365 = vmatprep.subr.bf16.mxu1 %v12771_v63  ;;  %v12802_v63 = vld [vmem:[#allocation13 + $0xca0] ss:$8 sps:$4 sm:$0xff]  }
 0xc05   :  { %4879 = vmatpush1.bf16.msra.mxu0 %v12700_v46 }
 0xc06   :  { %4880 = vmatprep.subr.bf16.mxu0 %v12705_v50  ;;  %5366 = vmatpush1.bf16.msra.mxu1 %v12769_v26  ;;  %v12810_v26 = vld [vmem:[#allocation13 + $0xcb4] ss:$8 sps:$4 sm:$0xff]  }
 0xc07   :  { %5367 = vmatprep.subr.bf16.mxu1 %v12777_v27  ;;  %v12808_v27 = vld [vmem:[#allocation13 + $0xcb0] ss:$8 sps:$4 sm:$0xff]  }
 0xc09   :  { %4881 = vmatpush1.bf16.msra.mxu0 %v12703_v52 }
 0xc0a   :  { %4882 = vmatprep.subr.bf16.mxu0 %v12708_v53  ;;  %5368 = vmatpush1.bf16.msra.mxu1 %v12775_v30  ;;  %v12816_v30 = vld [vmem:[#allocation13 + $0xcc4] ss:$8 sps:$4 sm:$0xff]  }
 0xc0b   :  { %5369 = vmatprep.subr.bf16.mxu1 %v12783_v59  ;;  %v12814_v59 = vld [vmem:[#allocation13 + $0xcc0] ss:$8 sps:$4 sm:$0xff]  }
 0xc0d   :  { %4883 = vmatpush1.bf16.msra.mxu0 %v12706_v55 }
 0xc0e   :  { %4884 = vmatprep.subr.bf16.mxu0 %v12711_v57  ;;  %5370 = vmatpush1.bf16.msra.mxu1 %v12781_v61  ;;  %v12822_v61 = vld [vmem:[#allocation13 + $0xcd4] ss:$8 sps:$4 sm:$0xff]  }
 0xc0f   :  { %5371 = vmatprep.subr.bf16.mxu1 %v12789_v62  ;;  %v12820_v62 = vld [vmem:[#allocation13 + $0xcd0] ss:$8 sps:$4 sm:$0xff]  }
 0xc11   :  { %4885 = vmatpush1.bf16.msra.mxu0 %v12709_v60 }
 0xc12   :  { %4886 = vmatprep.subr.bf16.mxu0 %v12714_v3  ;;  %5372 = vmatpush1.bf16.msra.mxu1 %v12787_v0  ;;  %v12828_v0 = vld [vmem:[#allocation13 + $0xce4] ss:$8 sps:$4 sm:$0xff]  }
 0xc13   :  { %5373 = vmatprep.subr.bf16.mxu1 %v12795_v7  ;;  %v12826_v7 = vld [vmem:[#allocation13 + $0xce0] ss:$8 sps:$4 sm:$0xff]  }
 0xc15   :  { %4887 = vmatpush1.bf16.msra.mxu0 %v12712_v5 }
 0xc16   :  { %4888 = vmatprep.subr.bf16.mxu0 %v12717_v20  ;;  %5374 = vmatpush1.bf16.msra.mxu1 %v12793_v38  ;;  %v12834_v38 = vld [vmem:[#allocation13 + $0xcf4] ss:$8 sps:$4 sm:$0xff]  }
 0xc17   :  { %5375 = vmatprep.subr.bf16.mxu1 %v12801_v42  ;;  %v12832_v42 = vld [vmem:[#allocation13 + $0xcf0] ss:$8 sps:$4 sm:$0xff]  }
 0xc19   :  { %4889 = vmatpush1.bf16.msra.mxu0 %v12715_v21 }
 0xc1a   :  { %4890 = vmatprep.subr.bf16.mxu0 %v12720_v24  ;;  %5376 = vmatpush1.bf16.msra.mxu1 %v12799_v8  ;;  %v12837_v8 = vld [vmem:[#allocation14 + $0x104] ss:$8 sps:$4 sm:$0xff]  }
 0xc1b   :  { %5377 = vmatprep.subr.bf16.mxu1 %v12807_v16  ;;  %v12835_v16 = vld [vmem:[#allocation14 + $0x100] ss:$8 sps:$4 sm:$0xff]  }
 0xc1d   :  { %4891 = vmatpush1.bf16.msra.mxu0 %v12718_v34 }
 0xc1e   :  { %4892 = vmatprep.subr.bf16.mxu0 %v12723_v25  ;;  %5378 = vmatpush1.bf16.msra.mxu1 %v12805_v4  ;;  %v12742_v25 = vld [vmem:[#allocation13 + $0xc00] ss:$8 sps:$4 sm:$0xff]  }
 0xc1f   :  { %5379 = vmatprep.subr.bf16.mxu1 %v12813_v43  ;;  %v12840_v43 = vld [vmem:[#allocation14 + $0x114] ss:$8 sps:$4 sm:$0xff]  }
 0xc21   :  { %4893 = vmatpush1.bf16.msra.mxu0 %v12721_v32 }
 0xc22   :  { %4894 = vmatprep.subr.bf16.mxu0 %v12726_v18  ;;  %5380 = vmatpush1.bf16.msra.mxu1 %v12811_v44  ;;  %v12838_v44 = vld [vmem:[#allocation14 + $0x110] ss:$8 sps:$4 sm:$0xff]  }
 0xc23   :  { %5381 = vmatprep.subr.bf16.mxu1 %v12819_v6  ;;  %v12843_v6 = vld [vmem:[#allocation14 + $0x124] ss:$8 sps:$4 sm:$0xff]  }
 0xc25   :  { %4895 = vmatpush1.bf16.msra.mxu0 %v12724_v10  ;;  %v12750_v10 = vld [vmem:[#allocation13 + $0xc14] ss:$8 sps:$4 sm:$0xff]  }
 0xc26   :  { %4896 = vmatprep.subr.bf16.mxu0 %v12729_v17  ;;  %5382 = vmatpush1.bf16.msra.mxu1 %v12817_v13  ;;  %v12841_v13 = vld [vmem:[#allocation14 + $0x120] ss:$8 sps:$4 sm:$0xff]  }
 0xc27   :  { %5383 = vmatprep.subr.bf16.mxu1 %v12825_v9  ;;  %v12846_v9 = vld [vmem:[#allocation14 + $0x134] ss:$8 sps:$4 sm:$0xff]  }
 0xc29   :  { %4897 = vmatpush1.bf16.msra.mxu0 %v12727_v23  ;;  %v12748_v23 = vld [vmem:[#allocation13 + $0xc10] ss:$8 sps:$4 sm:$0xff]  }
 0xc2a   :  { %4898 = vmatprep.subr.bf16.mxu0 %v12732_v31  ;;  %5384 = vmatpush1.bf16.msra.mxu1 %v12823_v12  ;;  %v12756_v31 = vld [vmem:[#allocation13 + $0xc24] ss:$8 sps:$4 sm:$0xff]   ;;  %v12844_v12 = vld [vmem:[#allocation14 + $0x130] ss:$8 sps:$4 sm:$0xff]  }
 0xc2b   :  { %5385 = vmatprep.subr.bf16.mxu1 %v12831_v11  ;;  %v12849_v11 = vld [vmem:[#allocation14 + $0x144] ss:$8 sps:$4 sm:$0xff]  }
 0xc2d   :  { %4899 = vmatpush1.bf16.msra.mxu0 %v12730_v22  ;;  %v12754_v22 = vld [vmem:[#allocation13 + $0xc20] ss:$8 sps:$4 sm:$0xff]  }
 0xc2e   :  { %4900 = vmatprep.subr.bf16.mxu0 %v12735_v19  ;;  %5386 = vmatpush1.bf16.msra.mxu1 %v12829_v14  ;;  %v12762_v19 = vld [vmem:[#allocation13 + $0xc34] ss:$8 sps:$4 sm:$0xff]   ;;  %v12847_v14 = vld [vmem:[#allocation14 + $0x140] ss:$8 sps:$4 sm:$0xff]  }
 0xc31   :  { %4901 = vmatpush1.bf16.msra.mxu0 %v12733_v33  ;;  %v12760_v33 = vld [vmem:[#allocation13 + $0xc30] ss:$8 sps:$4 sm:$0xff]  }
 0xc32   :  { %4902 = vmatprep.subr.bf16.mxu0 %v12738_v35  ;;  %v12768_v35 = vld [vmem:[#allocation13 + $0xc44] ss:$8 sps:$4 sm:$0xff]  }
 0xc35   :  { %4903 = vmatpush1.bf16.msra.mxu0 %v12736_v29  ;;  %v12766_v29 = vld [vmem:[#allocation13 + $0xc40] ss:$8 sps:$4 sm:$0xff]  }
 0xc36   :  { %5073 = vmatprep.subr.bf16.mxu0 %v12744_v28  ;;  %v12780_v28 = vld [vmem:[#allocation13 + $0xc64] ss:$8 sps:$4 sm:$0xff]  }
 0xcc3   :  { %v14574_v45 = vpop.f32.mrb[32].mxu0  ;;  %v5153_v46 = vpop.f32.mrb[60].mxu1 }
 0xcc4   :  { %v4591_v50 = vpop.f32.mrb[33].mxu0  ;;  %v5160_v52 = vpack.c.bf16 %v5153_v46, %v5153_v46  ;;  %v5155_v53 = vpop.f32.mrb[61].mxu1  ;;  %v4596_v4 = vpack.c.bf16 %v14574_v45, %v14574_v45  ;;  %v12852_v45 = vld [vmem:[#allocation14 + $0x154] ss:$8 sps:$4 sm:$0xff]   ;;  %v12850_v46 = vld [vmem:[#allocation14 + $0x150] ss:$8 sps:$4 sm:$0xff]  }
 0xcc5   :  { %v4593_v55 = vpop.f32.mrb[34].mxu0  ;;  %v5161_v57 = vpack.c.bf16 %v5155_v53, %v5155_v53  ;;  %v5157_v60 = vpop.f32.mrb[62].mxu1  ;;  %v4597_v17 = vpack.c.bf16 %v4591_v50, %v4591_v50  ;;  %v12855_v50 = vld [vmem:[#allocation14 + $0x164] ss:$8 sps:$4 sm:$0xff]   ;;  %v12858_v53 = vld [vmem:[#allocation14 + $0x174] ss:$8 sps:$4 sm:$0xff]  }
 0xcc6   :  { %v4594_v3 = vpop.f32.mrb[35].mxu0  ;;  %v5158_v5 = vpop.f32.mrb[63].mxu1  ;;  %v12856_v55 = vld [vmem:[#allocation14 + $0x170] ss:$8 sps:$4 sm:$0xff]   ;;  %v12859_v60 = vld [vmem:[#allocation14 + $0x180] ss:$8 sps:$4 sm:$0xff]  }
 0xcc7   :  { %5387 = vmatprep.mubr.bf16.mxu1 %v5161_v57  ;;  %v12861_v57 = vld [vmem:[#allocation14 + $0x184] ss:$8 sps:$4 sm:$0xff]   ;;  %v12864_v3 = vld [vmem:[#allocation14 + $0x194] ss:$8 sps:$4 sm:$0xff]   ;;  %v12862_v5 = vld [vmem:[#allocation14 + $0x190] ss:$8 sps:$4 sm:$0xff]  }
 0xcc8   :  { %5388 = vmatmul.mubr.bf16.vlgmr.msra.gmra.mrb[64].mxu1 %v5160_v52  ;;  %v12853_v52 = vld [vmem:[#allocation14 + $0x160] ss:$8 sps:$4 sm:$0xff]  }
 0xcc9   :  { %5695 = vmatprep.mubr.bf16.mxu1 %v14002_v15 }
 0xccb   :  { %v4670_v20 = vpop.f32.mrb[36].mxu0 }
 0xccc   :  { %v4672_v21 = vpop.f32.mrb[37].mxu0  ;;  %v14579_v32 = vpack.c.bf16 %v4670_v20, %v4670_v20  ;;  %v12867_v20 = vld [vmem:[#allocation14 + $0x1a4] ss:$8 sps:$4 sm:$0xff]  }
 0xccd   :  { %v14577_v24 = vpack.c.bf16 %v4672_v21, %v4672_v21  ;;  %v4674_v34 = vpop.f32.mrb[38].mxu0  ;;  %v12865_v21 = vld [vmem:[#allocation14 + $0x1a0] ss:$8 sps:$4 sm:$0xff]  }
 0xcce   :  { %v4675_v18 = vpop.f32.mrb[39].mxu0  ;;  %v12868_v34 = vld [vmem:[#allocation14 + $0x1b0] ss:$8 sps:$4 sm:$0xff]  }
 0xccf   :  { %4904 = vmatprep.mubr.bf16.mxu0 %v14577_v24  ;;  %v12871_v18 = vld [vmem:[#allocation14 + $0x1c0] ss:$8 sps:$4 sm:$0xff]  }
 0xcd0   :  { %4905 = vmatmul.mubr.bf16.vlgmr.msra.gmra.mrb[40].mxu0 %v14579_v32 }
 0xcd1   :  { %5074 = vmatpush1.bf16.msra.mxu0 %v12742_v25  ;;  %5105 = vmatprep.mubr.bf16.mxu0 %v4597_v17  ;;  %v12873_v25 = vld [vmem:[#allocation14 + $0x1c4] ss:$8 sps:$4 sm:$0xff]   ;;  %v12874_v17 = vld [vmem:[#allocation14 + $0x1d0] ss:$8 sps:$4 sm:$0xff]  }
 0xcd2   :  { %5075 = vmatprep.subr.bf16.mxu0 %v12750_v10  ;;  %v12876_v10 = vld [vmem:[#allocation14 + $0x1d4] ss:$8 sps:$4 sm:$0xff]  }
 0xcd5   :  { %5076 = vmatpush1.bf16.msra.mxu0 %v12748_v23  ;;  %v12879_v23 = vld [vmem:[#allocation14 + $0x1e4] ss:$8 sps:$4 sm:$0xff]  }
 0xcd6   :  { %5077 = vmatprep.subr.bf16.mxu0 %v12756_v31  ;;  %v12877_v31 = vld [vmem:[#allocation14 + $0x1e0] ss:$8 sps:$4 sm:$0xff]  }
 0xcd9   :  { %5078 = vmatpush1.bf16.msra.mxu0 %v12754_v22  ;;  %v12882_v22 = vld [vmem:[#allocation14 + $0x1f4] ss:$8 sps:$4 sm:$0xff]  }
 0xcda   :  { %5079 = vmatprep.subr.bf16.mxu0 %v12762_v19  ;;  %v12880_v19 = vld [vmem:[#allocation14 + $0x1f0] ss:$8 sps:$4 sm:$0xff]  }
 0xcdd   :  { %5080 = vmatpush1.bf16.msra.mxu0 %v12760_v33  ;;  %v12885_v33 = vld [vmem:[#allocation13 + $0x1004] ss:$8 sps:$4 sm:$0xff]  }
 0xcde   :  { %5081 = vmatprep.subr.bf16.mxu0 %v12768_v35  ;;  %v12883_v35 = vld [vmem:[#allocation13 + $0x1000] ss:$8 sps:$4 sm:$0xff]  }
 0xce1   :  { %5082 = vmatpush1.bf16.msra.mxu0 %v12766_v29  ;;  %v12888_v29 = vld [vmem:[#allocation13 + $0x1014] ss:$8 sps:$4 sm:$0xff]  }
 0xce2   :  { %5083 = vmatprep.subr.bf16.mxu0 %v12774_v36  ;;  %v12886_v36 = vld [vmem:[#allocation13 + $0x1010] ss:$8 sps:$4 sm:$0xff]  }
 0xce5   :  { %5084 = vmatpush1.bf16.msra.mxu0 %v12772_v37  ;;  %v12891_v37 = vld [vmem:[#allocation13 + $0x1024] ss:$8 sps:$4 sm:$0xff]  }
 0xce6   :  { %5085 = vmatprep.subr.bf16.mxu0 %v12780_v28  ;;  %v12889_v28 = vld [vmem:[#allocation13 + $0x1020] ss:$8 sps:$4 sm:$0xff]  }
 0xce9   :  { %5086 = vmatpush1.bf16.msra.mxu0 %v12778_v39  ;;  %v12894_v39 = vld [vmem:[#allocation13 + $0x1034] ss:$8 sps:$4 sm:$0xff]  }
 0xcea   :  { %5087 = vmatprep.subr.bf16.mxu0 %v12786_v40  ;;  %v12892_v40 = vld [vmem:[#allocation13 + $0x1030] ss:$8 sps:$4 sm:$0xff]  }
 0xced   :  { %5088 = vmatpush1.bf16.msra.mxu0 %v12784_v58  ;;  %v12897_v58 = vld [vmem:[#allocation13 + $0x1044] ss:$8 sps:$4 sm:$0xff]  }
 0xcee   :  { %5089 = vmatprep.subr.bf16.mxu0 %v12792_v1  ;;  %v12895_v1 = vld [vmem:[#allocation13 + $0x1040] ss:$8 sps:$4 sm:$0xff]  }
 0xcf1   :  { %5090 = vmatpush1.bf16.msra.mxu0 %v12790_v41  ;;  %v12900_v41 = vld [vmem:[#allocation13 + $0x1054] ss:$8 sps:$4 sm:$0xff]  }
 0xcf2   :  { %5091 = vmatprep.subr.bf16.mxu0 %v12798_v54  ;;  %v12898_v54 = vld [vmem:[#allocation13 + $0x1050] ss:$8 sps:$4 sm:$0xff]  }
 0xcf5   :  { %5092 = vmatpush1.bf16.msra.mxu0 %v12796_v2  ;;  %v12901_v2 = vld [vmem:[#allocation13 + $0x1060] ss:$8 sps:$4 sm:$0xff]  }
 0xcf6   :  { %5093 = vmatprep.subr.bf16.mxu0 %v12804_v56  ;;  %v12906_v56 = vld [vmem:[#allocation13 + $0x1074] ss:$8 sps:$4 sm:$0xff]  }
 0xcf9   :  { %5094 = vmatpush1.bf16.msra.mxu0 %v12802_v63  ;;  %v12904_v63 = vld [vmem:[#allocation13 + $0x1070] ss:$8 sps:$4 sm:$0xff]  }
 0xcfa   :  { %5095 = vmatprep.subr.bf16.mxu0 %v12810_v26  ;;  %v12909_v26 = vld [vmem:[#allocation13 + $0x1084] ss:$8 sps:$4 sm:$0xff]  }
 0xcfd   :  { %5096 = vmatpush1.bf16.msra.mxu0 %v12808_v27  ;;  %v12907_v27 = vld [vmem:[#allocation13 + $0x1080] ss:$8 sps:$4 sm:$0xff]  }
 0xcfe   :  { %5097 = vmatprep.subr.bf16.mxu0 %v12816_v30  ;;  %v12912_v30 = vld [vmem:[#allocation13 + $0x1094] ss:$8 sps:$4 sm:$0xff]  }
 0xd01   :  { %5098 = vmatpush1.bf16.msra.mxu0 %v12814_v59  ;;  %v12910_v59 = vld [vmem:[#allocation13 + $0x1090] ss:$8 sps:$4 sm:$0xff]  }
 0xd02   :  { %5099 = vmatprep.subr.bf16.mxu0 %v12822_v61  ;;  %v12915_v61 = vld [vmem:[#allocation13 + $0x10a4] ss:$8 sps:$4 sm:$0xff]  }
 0xd05   :  { %5100 = vmatpush1.bf16.msra.mxu0 %v12820_v62  ;;  %v12913_v62 = vld [vmem:[#allocation13 + $0x10a0] ss:$8 sps:$4 sm:$0xff]  }
 0xd06   :  { %5101 = vmatprep.subr.bf16.mxu0 %v12828_v0  ;;  %v12918_v0 = vld [vmem:[#allocation13 + $0x10b4] ss:$8 sps:$4 sm:$0xff]  }
 0xd09   :  { %5102 = vmatpush1.bf16.msra.mxu0 %v12826_v7  ;;  %v12916_v7 = vld [vmem:[#allocation13 + $0x10b0] ss:$8 sps:$4 sm:$0xff]  }
 0xd0a   :  { %5103 = vmatprep.subr.bf16.mxu0 %v12834_v38  ;;  %v12921_v38 = vld [vmem:[#allocation13 + $0x10c4] ss:$8 sps:$4 sm:$0xff]  }
 0xd0d   :  { %5104 = vmatpush1.bf16.msra.mxu0 %v12832_v42  ;;  %v12919_v42 = vld [vmem:[#allocation13 + $0x10c0] ss:$8 sps:$4 sm:$0xff]  }
 0xd0e   :  { %5606 = vmatprep.subr.bf16.mxu0 %v12837_v8  ;;  %v12924_v8 = vld [vmem:[#allocation13 + $0x10d4] ss:$8 sps:$4 sm:$0xff]  }
 0xd10   :  { %5106 = vmatmul.mubr.bf16.vlgmr.msra.gmra.mrb[44].mxu0 %v4596_v4  ;;  %v12927_v4 = vld [vmem:[#allocation13 + $0x10e4] ss:$8 sps:$4 sm:$0xff]  }
 0xd11   :  { %5607 = vmatpush1.bf16.msra.mxu0 %v12835_v16  ;;  %5638 = vmatprep.mubr.bf16.mxu0 %v14577_v24  ;;  %v12870_v24 = vld [vmem:[#allocation14 + $0x1b4] ss:$8 sps:$4 sm:$0xff]   ;;  %v12922_v16 = vld [vmem:[#allocation13 + $0x10d0] ss:$8 sps:$4 sm:$0xff]  }
 0xd12   :  { %5608 = vmatprep.subr.bf16.mxu0 %v12840_v43  ;;  %v12925_v43 = vld [vmem:[#allocation13 + $0x10e0] ss:$8 sps:$4 sm:$0xff]  }
 0xd15   :  { %5609 = vmatpush1.bf16.msra.mxu0 %v12838_v44  ;;  %v12930_v44 = vld [vmem:[#allocation13 + $0x10f4] ss:$8 sps:$4 sm:$0xff]  }
 0xd16   :  { %5610 = vmatprep.subr.bf16.mxu0 %v12843_v6  ;;  %v12928_v6 = vld [vmem:[#allocation13 + $0x10f0] ss:$8 sps:$4 sm:$0xff]  }
 0xd19   :  { %5611 = vmatpush1.bf16.msra.mxu0 %v12841_v13  ;;  %v12933_v13 = vld [vmem:[#allocation13 + $0xf04] ss:$8 sps:$4 sm:$0xff]  }
 0xd1a   :  { %5612 = vmatprep.subr.bf16.mxu0 %v12846_v9 }
 0xd1d   :  { %5613 = vmatpush1.bf16.msra.mxu0 %v12844_v12 }
 0xd1e   :  { %5614 = vmatprep.subr.bf16.mxu0 %v12849_v11 }
 0xd21   :  { %5615 = vmatpush1.bf16.msra.mxu0 %v12847_v14 }
 0xd22   :  { %5616 = vmatprep.subr.bf16.mxu0 %v12852_v45 }
 0xd25   :  { %5617 = vmatpush1.bf16.msra.mxu0 %v12850_v46 }
 0xd26   :  { %5618 = vmatprep.subr.bf16.mxu0 %v12855_v50 }
 0xd29   :  { %5619 = vmatpush1.bf16.msra.mxu0 %v12853_v52 }
 0xd2a   :  { %5620 = vmatprep.subr.bf16.mxu0 %v12858_v53  ;;  %v4550_v53 = vld [vmem:[#allocation19 + $0xa] sm:$0x3] }
 0xd2d   :  { %5621 = vmatpush1.bf16.msra.mxu0 %v12856_v55 }
 0xd2e   :  { %5622 = vmatprep.subr.bf16.mxu0 %v12861_v57 }
 0xd31   :  { %5623 = vmatpush1.bf16.msra.mxu0 %v12859_v60  ;;  %v5402_v60 = vrot.slane %v4550_v53, %v14363_v51 }
 0xd32   :  { %5624 = vmatprep.subr.bf16.mxu0 %v12864_v3 }
 0xd35   :  { %5625 = vmatpush1.bf16.msra.mxu0 %v12862_v5 }
 0xd36   :  { %5626 = vmatprep.subr.bf16.mxu0 %v12867_v20  ;;  %v5406_v20 = vrot.slane %v4550_v53, %v14360_v49  ;;  %v12984_v53 = vld [vmem:[#allocation13 + $0x1114] ss:$8 sps:$4 sm:$0xff]  }
 0xd39   :  { %5627 = vmatpush1.bf16.msra.mxu0 %v12865_v21 }
 0xd3a   :  { %5628 = vmatprep.subr.bf16.mxu0 %v12870_v24 }
 0xd3d   :  { %5629 = vmatpush1.bf16.msra.mxu0 %v12868_v34 }
 0xd3e   :  { %5630 = vmatprep.subr.bf16.mxu0 %v12873_v25 }
 0xd41   :  { %5631 = vmatpush1.bf16.msra.mxu0 %v12871_v18 }
 0xd42   :  { %5632 = vmatprep.subr.bf16.mxu0 %v12876_v10 }
 0xd45   :  { %5633 = vmatpush1.bf16.msra.mxu0 %v12874_v17 }
 0xd46   :  { %5634 = vmatprep.subr.bf16.mxu0 %v12879_v23 }
 0xd49   :  { %5635 = vmatpush1.bf16.msra.mxu0 %v12877_v31 }
 0xd4a   :  { %5636 = vmatprep.subr.bf16.mxu0 %v12882_v22 }
 0xd4d   :  { %5637 = vmatpush1.bf16.msra.mxu0 %v12880_v19  ;;  %v12931_v19 = vld [vmem:[#allocation13 + $0xf00] ss:$8 sps:$4 sm:$0xff]  }
 0xd4e   :  { %5932 = vmatprep.subr.bf16.mxu0 %v12885_v33 }
 0xd50   :  { %5639 = vmatmul.mubr.bf16.vlgmr.msra.gmra.mrb[48].mxu0 %v14579_v32  ;;  %v12903_v32 = vld [vmem:[#allocation13 + $0x1064] ss:$8 sps:$4 sm:$0xff]  }
 0xd51   :  { %5933 = vmatpush1.bf16.msra.mxu0 %v12883_v35  ;;  %v12936_v35 = vld [vmem:[#allocation13 + $0xf14] ss:$8 sps:$4 sm:$0xff]  }
 0xd52   :  { %5934 = vmatprep.subr.bf16.mxu0 %v12888_v29  ;;  %v5651_v29 = vld [vmem:[#allocation7] sm:$0xf] }
 0xd55   :  { %5935 = vmatpush1.bf16.msra.mxu0 %v12886_v36  ;;  %v12934_v36 = vld [vmem:[#allocation13 + $0xf10] ss:$8 sps:$4 sm:$0xff]  }
 0xd56   :  { %5936 = vmatprep.subr.bf16.mxu0 %v12891_v37  ;;  %v12939_v37 = vld [vmem:[#allocation13 + $0xf24] ss:$8 sps:$4 sm:$0xff]  }
 0xd59   :  { %5937 = vmatpush1.bf16.msra.mxu0 %v12889_v28  ;;  %v12937_v28 = vld [vmem:[#allocation13 + $0xf20] ss:$8 sps:$4 sm:$0xff]  }
 0xd5a   :  { %5938 = vmatprep.subr.bf16.mxu0 %v12894_v39  ;;  %v12942_v39 = vld [vmem:[#allocation13 + $0xf34] ss:$8 sps:$4 sm:$0xff]  }
 0xd5d   :  { %5939 = vmatpush1.bf16.msra.mxu0 %v12892_v40  ;;  %v6175_v40 = vld [vmem:[#allocation7 + $0x8] sm:$0xf] }
 0xd5e   :  { %5940 = vmatprep.subr.bf16.mxu0 %v12897_v58  ;;  %v12940_v58 = vld [vmem:[#allocation13 + $0xf30] ss:$8 sps:$4 sm:$0xff]  }
 0xd61   :  { %5941 = vmatpush1.bf16.msra.mxu0 %v12895_v1  ;;  %v12945_v1 = vld [vmem:[#allocation13 + $0xf44] ss:$8 sps:$4 sm:$0xff]  }
 0xd62   :  { %5942 = vmatprep.subr.bf16.mxu0 %v12900_v41  ;;  %v12943_v41 = vld [vmem:[#allocation13 + $0xf40] ss:$8 sps:$4 sm:$0xff]  }
 0xd65   :  { %5943 = vmatpush1.bf16.msra.mxu0 %v12898_v54  ;;  %v12948_v54 = vld [vmem:[#allocation13 + $0xf54] ss:$8 sps:$4 sm:$0xff]  }
 0xd66   :  { %5944 = vmatprep.subr.bf16.mxu0 %v12903_v32  ;;  %v12946_v32 = vld [vmem:[#allocation13 + $0xf50] ss:$8 sps:$4 sm:$0xff]  }
 0xd69   :  { %5945 = vmatpush1.bf16.msra.mxu0 %v12901_v2  ;;  %v12951_v2 = vld [vmem:[#allocation13 + $0xf64] ss:$8 sps:$4 sm:$0xff]  }
 0xd6a   :  { %5946 = vmatprep.subr.bf16.mxu0 %v12906_v56  ;;  %v12949_v56 = vld [vmem:[#allocation13 + $0xf60] ss:$8 sps:$4 sm:$0xff]  }
 0xd6d   :  { %5947 = vmatpush1.bf16.msra.mxu0 %v12904_v63  ;;  %v12954_v63 = vld [vmem:[#allocation13 + $0xf74] ss:$8 sps:$4 sm:$0xff]  }
 0xd6e   :  { %5948 = vmatprep.subr.bf16.mxu0 %v12909_v26  ;;  %v12952_v26 = vld [vmem:[#allocation13 + $0xf70] ss:$8 sps:$4 sm:$0xff]  }
 0xd71   :  { %5949 = vmatpush1.bf16.msra.mxu0 %v12907_v27  ;;  %v12957_v27 = vld [vmem:[#allocation13 + $0xf84] ss:$8 sps:$4 sm:$0xff]  }
 0xd72   :  { %5950 = vmatprep.subr.bf16.mxu0 %v12912_v30  ;;  %v12955_v30 = vld [vmem:[#allocation13 + $0xf80] ss:$8 sps:$4 sm:$0xff]  }
 0xd75   :  { %5951 = vmatpush1.bf16.msra.mxu0 %v12910_v59  ;;  %v12960_v59 = vld [vmem:[#allocation13 + $0xf94] ss:$8 sps:$4 sm:$0xff]  }
 0xd76   :  { %5952 = vmatprep.subr.bf16.mxu0 %v12915_v61  ;;  %v12958_v61 = vld [vmem:[#allocation13 + $0xf90] ss:$8 sps:$4 sm:$0xff]  }
 0xd79   :  { %5953 = vmatpush1.bf16.msra.mxu0 %v12913_v62  ;;  %v12963_v62 = vld [vmem:[#allocation13 + $0xfa4] ss:$8 sps:$4 sm:$0xff]  }
 0xd7a   :  { %5954 = vmatprep.subr.bf16.mxu0 %v12918_v0  ;;  %v12961_v0 = vld [vmem:[#allocation13 + $0xfa0] ss:$8 sps:$4 sm:$0xff]  }
 0xd7d   :  { %5955 = vmatpush1.bf16.msra.mxu0 %v12916_v7  ;;  %v12966_v7 = vld [vmem:[#allocation13 + $0xfb4] ss:$8 sps:$4 sm:$0xff]  }
 0xd7e   :  { %5956 = vmatprep.subr.bf16.mxu0 %v12921_v38  ;;  %v12964_v38 = vld [vmem:[#allocation13 + $0xfb0] ss:$8 sps:$4 sm:$0xff]  }
 0xd81   :  { %5957 = vmatpush1.bf16.msra.mxu0 %v12919_v42  ;;  %v12969_v42 = vld [vmem:[#allocation13 + $0xfc4] ss:$8 sps:$4 sm:$0xff]  }
 0xd82   :  { %5958 = vmatprep.subr.bf16.mxu0 %v12924_v8  ;;  %v12967_v8 = vld [vmem:[#allocation13 + $0xfc0] ss:$8 sps:$4 sm:$0xff]  }
 0xd85   :  { %5959 = vmatpush1.bf16.msra.mxu0 %v12922_v16  ;;  %v12972_v16 = vld [vmem:[#allocation13 + $0xfd4] ss:$8 sps:$4 sm:$0xff]  }
 0xd86   :  { %5960 = vmatprep.subr.bf16.mxu0 %v12927_v4  ;;  %v12970_v4 = vld [vmem:[#allocation13 + $0xfd0] ss:$8 sps:$4 sm:$0xff]  }
 0xd89   :  { %5961 = vmatpush1.bf16.msra.mxu0 %v12925_v43  ;;  %v12975_v43 = vld [vmem:[#allocation13 + $0xfe4] ss:$8 sps:$4 sm:$0xff]  }
 0xd8a   :  { %5962 = vmatprep.subr.bf16.mxu0 %v12930_v44  ;;  %v12973_v44 = vld [vmem:[#allocation13 + $0xfe0] ss:$8 sps:$4 sm:$0xff]  }
 0xd8d   :  { %5963 = vmatpush1.bf16.msra.mxu0 %v12928_v6  ;;  %v12978_v6 = vld [vmem:[#allocation13 + $0xff4] ss:$8 sps:$4 sm:$0xff]  }
 0xd8e   :  { %6133 = vmatprep.subr.bf16.mxu0 %v12933_v13  ;;  %v12976_v13 = vld [vmem:[#allocation13 + $0xff0] ss:$8 sps:$4 sm:$0xff]  }
 0xd9b   :  { %v5389_v9 = vpop.f32.mrb[64].mxu1 }
 0xd9c   :  { %v5391_v12 = vpop.f32.mrb[65].mxu1 }
 0xd9d   :  { %v5393_v11 = vpop.f32.mrb[66].mxu1 }
 0xd9e   :  { %v5394_v14 = vpop.f32.mrb[67].mxu1 }
 0xda3   :  { %v4906_v45 = vpop.f32.mrb[40].mxu0 }
 0xda4   :  { %v4908_v46 = vpop.f32.mrb[41].mxu0 }
 0xda5   :  { %v4910_v50 = vpop.f32.mrb[42].mxu0 }
 0xda6   :  { %v4911_v52 = vpop.f32.mrb[43].mxu0 }
 0xde3   :  { %v5107_v55 = vpop.f32.mrb[44].mxu0 }
 0xde4   :  { %v5108_v57 = vadd.f32 %v5107_v55, %v4906_v45  ;;  %v5109_v3 = vpop.f32.mrb[45].mxu0  ;;  %v12982_v55 = vld [vmem:[#allocation13 + $0x1110] ss:$8 sps:$4 sm:$0xff]  }
 0xde5   :  { %v5110_v5 = vadd.f32 %v5109_v3, %v4908_v46  ;;  %v5111_v21 = vpop.f32.mrb[46].mxu0  ;;  %v12979_v46 = vld [vmem:[#allocation13 + $0x1100] ss:$8 sps:$4 sm:$0xff]  }
 0xde6   :  { %v5396_v24 = vadd.f32 %v5389_v9, %v5108_v57  ;;  %v5112_v34 = vpop.f32.mrb[47].mxu0  ;;  %v12981_v9 = vld [vmem:[#allocation13 + $0x1104] ss:$8 sps:$4 sm:$0xff]  }
 0xde7   :  { %v5397_v25 = vadd.f32 %v5391_v12, %v5110_v5  ;;  %v12987_v57 = vld [vmem:[#allocation13 + $0x1124] ss:$8 sps:$4 sm:$0xff]   ;;  %v12985_v5 = vld [vmem:[#allocation13 + $0x1120] ss:$8 sps:$4 sm:$0xff]  }
 0xde8   :  { %v5409_v18 = vadd.f32 %v5402_v60, %v5396_v24  ;;  %v12990_v24 = vld [vmem:[#allocation13 + $0x1134] ss:$8 sps:$4 sm:$0xff]  }
 0xde9   :  { %v5410_v10 = vadd.f32 %v5406_v20, %v5397_v25  ;;  %v12988_v25 = vld [vmem:[#allocation13 + $0x1130] ss:$8 sps:$4 sm:$0xff]  }
 0xdea   :  { %v5411_v17 = vmax.f32 %v5409_v18, 0.0  ;;  %v12993_v18 = vld [vmem:[#allocation13 + $0x1144] ss:$8 sps:$4 sm:$0xff]  }
 0xdeb   :  { %v5412_v23 = vmax.f32 %v5410_v10, 0.0  ;;  %v12991_v10 = vld [vmem:[#allocation13 + $0x1140] ss:$8 sps:$4 sm:$0xff]  }
 0xdec   :  { %v5647_v31 = vpack.c.bf16 %v5411_v17, %v5411_v17  ;;  %v12996_v17 = vld [vmem:[#allocation13 + $0x1154] ss:$8 sps:$4 sm:$0xff]  }
 0xded   :  { %v5648_v22 = vpack.c.bf16 %v5412_v23, %v5412_v23  ;;  %v12994_v23 = vld [vmem:[#allocation13 + $0x1150] ss:$8 sps:$4 sm:$0xff]  }
 0xdee   :  { %v5658_v33 = vsel %vm5656_vm3, %v5647_v31, 0 }
 0xdef   :  { %11167 = vmatprep.subr.msk.bf16.mxu1 %vm5656_vm3, %v5648_v22  ;;  %5964 = vmatprep.mubr.bf16.mxu0 %v5648_v22 }
 0xdf0   :  { %5664 = vmatpush1.bf16.msra.mxu1 %v5658_v33  ;;  %5965 = vmatmul.mubr.bf16.vlgmr.msra.gmra.mrb[48].mxu0 %v5647_v31  ;;  %v12999_v31 = vld [vmem:[#allocation13 + $0x1164] ss:$8 sps:$4 sm:$0xff]  }
 0xdf1   :  { %11233 = vmatprep.subr.msk.bf16.mxu1 %vm5656_vm3, %v5648_v22  ;;  %6134 = vmatpush1.bf16.msra.mxu0 %v12931_v19  ;;  %v12997_v22 = vld [vmem:[#allocation13 + $0x1160] ss:$8 sps:$4 sm:$0xff]   ;;  %v13002_v19 = vld [vmem:[#allocation13 + $0x1174] ss:$8 sps:$4 sm:$0xff]  }
 0xdf2   :  { %6135 = vmatprep.subr.bf16.mxu0 %v12936_v35  ;;  %v13005_v35 = vld [vmem:[#allocation13 + $0x1184] ss:$8 sps:$4 sm:$0xff]  }
 0xdf3   :  { %11168 = vmatmul.mubr.msk.bf16.vlgmr.msra.gmra.mrb[68].mxu1 %vm5652_vm4, %v5651_v29  ;;  %v13003_v29 = vld [vmem:[#allocation13 + $0x1180] ss:$8 sps:$4 sm:$0xff]  }
 0xdf4   :  { %6180 = vmatpush1.bf16.msra.mxu1 %v5658_v33  ;;  %6211 = vmatprep.mubr.bf16.mxu1 %v14002_v15  ;;  %v13000_v33 = vld [vmem:[#allocation13 + $0x1170] ss:$8 sps:$4 sm:$0xff]  }
 0xdf5   :  { %6136 = vmatpush1.bf16.msra.mxu0 %v12934_v36  ;;  %v13008_v36 = vld [vmem:[#allocation13 + $0x1194] ss:$8 sps:$4 sm:$0xff]  }
 0xdf6   :  { %6137 = vmatprep.subr.bf16.mxu0 %v12939_v37  ;;  %v13006_v37 = vld [vmem:[#allocation13 + $0x1190] ss:$8 sps:$4 sm:$0xff]  }
 0xdf9   :  { %6138 = vmatpush1.bf16.msra.mxu0 %v12937_v28  ;;  %v13011_v28 = vld [vmem:[#allocation13 + $0x11a4] ss:$8 sps:$4 sm:$0xff]  }
 0xdfa   :  { %6139 = vmatprep.subr.bf16.mxu0 %v12942_v39  ;;  %v13009_v39 = vld [vmem:[#allocation13 + $0x11a0] ss:$8 sps:$4 sm:$0xff]  }
 0xdfb   :  { %11234 = vmatmul.mubr.msk.bf16.vlgmr.msra.gmra.mrb[72].mxu1 %vm5652_vm4, %v6175_v40  ;;  %v13014_v40 = vld [vmem:[#allocation13 + $0x11b4] ss:$8 sps:$4 sm:$0xff]  }
 0xdfc   :  { %6519 = vmatprep.mubr.bf16.mxu1 %v14002_v15 }
 0xdfd   :  { %6140 = vmatpush1.bf16.msra.mxu0 %v12940_v58  ;;  %v13012_v58 = vld [vmem:[#allocation13 + $0x11b0] ss:$8 sps:$4 sm:$0xff]  }
 0xdfe   :  { %6141 = vmatprep.subr.bf16.mxu0 %v12945_v1  ;;  %v13017_v1 = vld [vmem:[#allocation13 + $0x11c4] ss:$8 sps:$4 sm:$0xff]  }
 0xe01   :  { %6142 = vmatpush1.bf16.msra.mxu0 %v12943_v41  ;;  %v13015_v41 = vld [vmem:[#allocation13 + $0x11c0] ss:$8 sps:$4 sm:$0xff]  }
 0xe02   :  { %6143 = vmatprep.subr.bf16.mxu0 %v12948_v54  ;;  %v13020_v54 = vld [vmem:[#allocation13 + $0x11d4] ss:$8 sps:$4 sm:$0xff]  }
 0xe05   :  { %6144 = vmatpush1.bf16.msra.mxu0 %v12946_v32  ;;  %v13018_v32 = vld [vmem:[#allocation13 + $0x11d0] ss:$8 sps:$4 sm:$0xff]  }
 0xe06   :  { %6145 = vmatprep.subr.bf16.mxu0 %v12951_v2  ;;  %v13023_v2 = vld [vmem:[#allocation13 + $0x11e4] ss:$8 sps:$4 sm:$0xff]  }
 0xe09   :  { %6146 = vmatpush1.bf16.msra.mxu0 %v12949_v56  ;;  %v13021_v56 = vld [vmem:[#allocation13 + $0x11e0] ss:$8 sps:$4 sm:$0xff]  }
 0xe0a   :  { %6147 = vmatprep.subr.bf16.mxu0 %v12954_v63  ;;  %v13026_v63 = vld [vmem:[#allocation13 + $0x11f4] ss:$8 sps:$4 sm:$0xff]  }
 0xe0d   :  { %6148 = vmatpush1.bf16.msra.mxu0 %v12952_v26  ;;  %v13024_v26 = vld [vmem:[#allocation13 + $0x11f0] ss:$8 sps:$4 sm:$0xff]  }
 0xe0e   :  { %6149 = vmatprep.subr.bf16.mxu0 %v12957_v27 }
 0xe11   :  { %6150 = vmatpush1.bf16.msra.mxu0 %v12955_v30  ;;  %v5650_v30 = vld [vmem:[#allocation19 + $0xc] sm:$0x3] }
 0xe12   :  { %6151 = vmatprep.subr.bf16.mxu0 %v12960_v59  ;;  %v6462_v59 = vrot.slane %v5650_v30, %v14363_v51 }
 0xe15   :  { %6152 = vmatpush1.bf16.msra.mxu0 %v12958_v61  ;;  %v6466_v61 = vrot.slane %v5650_v30, %v14360_v49 }
 0xe16   :  { %6153 = vmatprep.subr.bf16.mxu0 %v12963_v62 }
 0xe19   :  { %6154 = vmatpush1.bf16.msra.mxu0 %v12961_v0 }
 0xe1a   :  { %6155 = vmatprep.subr.bf16.mxu0 %v12966_v7 }
 0xe1d   :  { %6156 = vmatpush1.bf16.msra.mxu0 %v12964_v38 }
 0xe1e   :  { %6157 = vmatprep.subr.bf16.mxu0 %v12969_v42 }
 0xe21   :  { %6158 = vmatpush1.bf16.msra.mxu0 %v12967_v8 }
 0xe22   :  { %6159 = vmatprep.subr.bf16.mxu0 %v12972_v16 }
 0xe25   :  { %6160 = vmatpush1.bf16.msra.mxu0 %v12970_v4 }
 0xe26   :  { %6161 = vmatprep.subr.bf16.mxu0 %v12975_v43 }
 0xe29   :  { %6162 = vmatpush1.bf16.msra.mxu0 %v12973_v44 }
 0xe2a   :  { %6163 = vmatprep.subr.bf16.mxu0 %v12978_v6  ;;  %v13029_v6 = vld [vmem:[#allocation16 + $0x4] ss:$8 sps:$4 sm:$0xff]  }
 0xe2d   :  { %6164 = vmatpush1.bf16.msra.mxu0 %v12976_v13 }
 0xe2e   :  { %6415 = vmatprep.subr.bf16.mxu0 %v12981_v9  ;;  %v6477_v9 = vld [vmem:[#allocation23] sm:$0x1] }
 0xec6   :  { %v5697_v12 = vpop.f32.mrb[68].mxu1 }
 0xec7   :  { %v5699_v11 = vpop.f32.mrb[69].mxu1  ;;  %v5704_v50 = vpack.c.bf16 %v5697_v12, %v5697_v12  ;;  %v13027_v12 = vld [vmem:[#allocation16] ss:$8 sps:$4 sm:$0xff]  }
 0xec8   :  { %v5705_v14 = vpack.c.bf16 %v5699_v11, %v5699_v11  ;;  %v5701_v45 = vpop.f32.mrb[70].mxu1  ;;  %v13032_v11 = vld [vmem:[#allocation16 + $0x14] ss:$8 sps:$4 sm:$0xff]  }
 0xec9   :  { %v5702_v52 = vpop.f32.mrb[71].mxu1  ;;  %v13035_v45 = vld [vmem:[#allocation16 + $0x24] ss:$8 sps:$4 sm:$0xff]  }
 0xeca   :  { %6165 = vmatprep.mubr.bf16.mxu0 %v5705_v14  ;;  %v13030_v14 = vld [vmem:[#allocation16 + $0x10] ss:$8 sps:$4 sm:$0xff]  }
 0xecb   :  { %6166 = vmatmul.mubr.bf16.vlgmr.msra.gmra.mrb[48].mxu0 %v5704_v50  ;;  %v13038_v50 = vld [vmem:[#allocation16 + $0x34] ss:$8 sps:$4 sm:$0xff]   ;;  %v13036_v52 = vld [vmem:[#allocation16 + $0x30] ss:$8 sps:$4 sm:$0xff]  }
 0xecc   :  { %6416 = vmatpush1.bf16.msra.mxu0 %v12979_v46  ;;  %v13033_v46 = vld [vmem:[#allocation16 + $0x20] ss:$8 sps:$4 sm:$0xff]  }
 0xecd   :  { %6417 = vmatprep.subr.bf16.mxu0 %v12984_v53  ;;  %v13041_v53 = vld [vmem:[#allocation16 + $0x44] ss:$8 sps:$4 sm:$0xff]  }
 0xece   :  { %v14596_v60 = vpop.f32.mrb[72].mxu1 }
 0xecf   :  { %v6215_v3 = vpop.f32.mrb[73].mxu1  ;;  %v6220_v27 = vpack.c.bf16 %v14596_v60, %v14596_v60  ;;  %v13042_v60 = vld [vmem:[#allocation16 + $0x50] ss:$8 sps:$4 sm:$0xff]  }
 0xed0   :  { %6418 = vmatpush1.bf16.msra.mxu0 %v12982_v55  ;;  %v6221_v20 = vpack.c.bf16 %v6215_v3, %v6215_v3  ;;  %v6217_v21 = vpop.f32.mrb[74].mxu1  ;;  %v13039_v55 = vld [vmem:[#allocation16 + $0x40] ss:$8 sps:$4 sm:$0xff]   ;;  %v13047_v3 = vld [vmem:[#allocation16 + $0x64] ss:$8 sps:$4 sm:$0xff]  }
 0xed1   :  { %6419 = vmatprep.subr.bf16.mxu0 %v12987_v57  ;;  %v6218_v34 = vpop.f32.mrb[75].mxu1  ;;  %v13044_v57 = vld [vmem:[#allocation16 + $0x54] ss:$8 sps:$4 sm:$0xff]   ;;  %v13048_v21 = vld [vmem:[#allocation16 + $0x70] ss:$8 sps:$4 sm:$0xff]  }
 0xed2   :  { %6447 = vmatprep.mubr.bf16.mxu0 %v6221_v20  ;;  %v13050_v20 = vld [vmem:[#allocation16 + $0x74] ss:$8 sps:$4 sm:$0xff]   ;;  %v13051_v34 = vld [vmem:[#allocation16 + $0x80] ss:$8 sps:$4 sm:$0xff]  }
 0xed4   :  { %6420 = vmatpush1.bf16.msra.mxu0 %v12985_v5  ;;  %v13045_v5 = vld [vmem:[#allocation16 + $0x60] ss:$8 sps:$4 sm:$0xff]  }
 0xed5   :  { %6421 = vmatprep.subr.bf16.mxu0 %v12990_v24  ;;  %v13053_v24 = vld [vmem:[#allocation16 + $0x84] ss:$8 sps:$4 sm:$0xff]  }
 0xed8   :  { %6422 = vmatpush1.bf16.msra.mxu0 %v12988_v25  ;;  %v13056_v25 = vld [vmem:[#allocation16 + $0x94] ss:$8 sps:$4 sm:$0xff]  }
 0xed9   :  { %6423 = vmatprep.subr.bf16.mxu0 %v12993_v18  ;;  %v13054_v18 = vld [vmem:[#allocation16 + $0x90] ss:$8 sps:$4 sm:$0xff]  }
 0xedc   :  { %6424 = vmatpush1.bf16.msra.mxu0 %v12991_v10  ;;  %v13059_v10 = vld [vmem:[#allocation16 + $0xa4] ss:$8 sps:$4 sm:$0xff]  }
 0xedd   :  { %6425 = vmatprep.subr.bf16.mxu0 %v12996_v17  ;;  %v13057_v17 = vld [vmem:[#allocation16 + $0xa0] ss:$8 sps:$4 sm:$0xff]  }
 0xee0   :  { %6426 = vmatpush1.bf16.msra.mxu0 %v12994_v23  ;;  %v13062_v23 = vld [vmem:[#allocation16 + $0xb4] ss:$8 sps:$4 sm:$0xff]  }
 0xee1   :  { %6427 = vmatprep.subr.bf16.mxu0 %v12999_v31  ;;  %v13060_v31 = vld [vmem:[#allocation16 + $0xb0] ss:$8 sps:$4 sm:$0xff]  }
 0xee4   :  { %6428 = vmatpush1.bf16.msra.mxu0 %v12997_v22  ;;  %v13065_v22 = vld [vmem:[#allocation16 + $0xc4] ss:$8 sps:$4 sm:$0xff]  }
 0xee5   :  { %6429 = vmatprep.subr.bf16.mxu0 %v13002_v19  ;;  %v13063_v19 = vld [vmem:[#allocation16 + $0xc0] ss:$8 sps:$4 sm:$0xff]  }
 0xee8   :  { %6430 = vmatpush1.bf16.msra.mxu0 %v13000_v33  ;;  %v13068_v33 = vld [vmem:[#allocation16 + $0xd4] ss:$8 sps:$4 sm:$0xff]  }
 0xee9   :  { %6431 = vmatprep.subr.bf16.mxu0 %v13005_v35  ;;  %v13066_v35 = vld [vmem:[#allocation16 + $0xd0] ss:$8 sps:$4 sm:$0xff]  }
 0xeec   :  { %6432 = vmatpush1.bf16.msra.mxu0 %v13003_v29  ;;  %v13071_v29 = vld [vmem:[#allocation16 + $0xe4] ss:$8 sps:$4 sm:$0xff]  }
 0xeed   :  { %6433 = vmatprep.subr.bf16.mxu0 %v13008_v36  ;;  %v13069_v36 = vld [vmem:[#allocation16 + $0xe0] ss:$8 sps:$4 sm:$0xff]  }
 0xef0   :  { %6434 = vmatpush1.bf16.msra.mxu0 %v13006_v37  ;;  %v13074_v37 = vld [vmem:[#allocation16 + $0xf4] ss:$8 sps:$4 sm:$0xff]  }
 0xef1   :  { %6435 = vmatprep.subr.bf16.mxu0 %v13011_v28  ;;  %v13072_v28 = vld [vmem:[#allocation16 + $0xf0] ss:$8 sps:$4 sm:$0xff]  }
 0xef4   :  { %6436 = vmatpush1.bf16.msra.mxu0 %v13009_v39 }
 0xef5   :  { %6437 = vmatprep.subr.bf16.mxu0 %v13014_v40 }
 0xef8   :  { %6438 = vmatpush1.bf16.msra.mxu0 %v13012_v58 }
 0xef9   :  { %6439 = vmatprep.subr.bf16.mxu0 %v13017_v1 }
 0xefc   :  { %6440 = vmatpush1.bf16.msra.mxu0 %v13015_v41 }
 0xefd   :  { %6441 = vmatprep.subr.bf16.mxu0 %v13020_v54 }
 0xf00   :  { %6442 = vmatpush1.bf16.msra.mxu0 %v13018_v32  ;;  %v6563_v32 = vld [vmem:[#allocation19 + $0xe] sm:$0x3] }
 0xf01   :  { %6443 = vmatprep.subr.bf16.mxu0 %v13023_v2  ;;  %v6568_v2 = vrot.slane %v6563_v32, %v14363_v51 }
 0xf04   :  { %6444 = vmatpush1.bf16.msra.mxu0 %v13021_v56  ;;  %v6572_v56 = vrot.slane %v6563_v32, %v14360_v49  ;;  %v13129_v32 = vld [vmem:[#allocation17 + $0x90] ss:$8 sps:$4 sm:$0xff]  }
 0xf05   :  { %6445 = vmatprep.subr.bf16.mxu0 %v13026_v63  ;;  %v6777_v63 = vand.u32 127, %v738_v47 }
 0xf07   :  { %vm6781_vm6 = vcmp.ge.s32.totalorder %v6777_v63, 8  ;;  %vm6798_vm8 = vcmp.lt.s32.totalorder %v6777_v63, 8  ;;  %v13140_v63 = vld [vmem:[#allocation17 + $0x2a4] ss:$8 sps:$4 sm:$0xff]  }
 0xf08   :  { %6446 = vmatpush1.bf16.msra.mxu0 %v13024_v26 }
 0xf0b   :  { %6448 = vmatmul.mubr.bf16.vlgmr.msra.gmra.mrb[48].mxu0 %v6220_v27 }
 0xfde   :  { %v6449_v62 = vpop.f32.mrb[48].mxu0 }
 0xfdf   :  { %v11885_v0 = vadd.f32 %v6462_v59, %v6449_v62  ;;  %v6451_v7 = vpop.f32.mrb[49].mxu0 }
 0xfe0   :  { %v11886_v38 = vadd.f32 %v6466_v61, %v6451_v7  ;;  %v6453_v42 = vpop.f32.mrb[50].mxu0 }
 0xfe1   :  { %v6473_v8 = vmax.f32 %v11885_v0, 0.0  ;;  %v6454_v16 = vpop.f32.mrb[51].mxu0 }
 0xfe2   :  { %v6474_v4 = vmax.f32 %v11886_v38, 0.0 }
 0xfe3   :  { %v6475_v43 = vpack.c.bf16 %v6473_v8, %v6473_v8 }
 0xfe4   :  { %v6476_v44 = vpack.c.bf16 %v6474_v4, %v6474_v4 }
 0xfe5   :  { %v6482_v13 = vsel %vm5656_vm3, %v6475_v43, 0 }
 0xfe6   :  { %11267 = vmatprep.subr.msk.bf16.mxu1 %vm5656_vm3, %v6476_v44  ;;  %v6837_v44 = vld [vmem:[%s14991_s18] sm:$0xf] }
 0xfe7   :  { %6488 = vmatpush1.bf16.msra.mxu1 %v6482_v13 }
 0xfe8   :  { %6735 = vmatprep.subr.bf16.mxu1 %v13029_v6 }
 0xfea   :  { %11268 = vmatmul.mubr.msk.bf16.vlgmr.msra.gmra.mrb[76].mxu1 %vm5652_vm4, %v6477_v9  ;;  %v13077_v9 = vld [vmem:[#allocation17 + $0x4] ss:$8 sps:$4 sm:$0xff]  }
 0xfeb   :  { %6736 = vmatpush1.bf16.msra.mxu1 %v13027_v12  ;;  %v13075_v12 = vld [vmem:[#allocation17] ss:$8 sps:$4 sm:$0xff]  }
 0xfec   :  { %6737 = vmatprep.subr.bf16.mxu1 %v13032_v11  ;;  %v13080_v11 = vld [vmem:[#allocation17 + $0x204] ss:$8 sps:$4 sm:$0xff]  }
 0xfed   :  { %7603 = vmatprep.subr.bf16.mxu0 %v13080_v11  ;;  %v13170_v11 = vld [vmem:[#allocation17 + $0x2f4] ss:$8 sps:$4 sm:$0xff]  }
 0xfef   :  { %6738 = vmatpush1.bf16.msra.mxu1 %v13030_v14  ;;  %v13078_v14 = vld [vmem:[#allocation17 + $0x200] ss:$8 sps:$4 sm:$0xff]  }
 0xff0   :  { %6739 = vmatprep.subr.bf16.mxu1 %v13035_v45  ;;  %7604 = vmatpush1.bf16.msra.mxu0 %v13078_v14  ;;  %v13081_v45 = vld [vmem:[#allocation17 + $0x10] ss:$8 sps:$4 sm:$0xff]  }
 0xff1   :  { %v13168_v14 = vld [vmem:[#allocation17 + $0x2f0] ss:$8 sps:$4 sm:$0xff]  }
 0xff3   :  { %6740 = vmatpush1.bf16.msra.mxu1 %v13033_v46  ;;  %v13083_v46 = vld [vmem:[#allocation17 + $0x14] ss:$8 sps:$4 sm:$0xff]  }
 0xff4   :  { %6741 = vmatprep.subr.bf16.mxu1 %v13038_v50  ;;  %v13084_v50 = vld [vmem:[#allocation17 + $0x210] ss:$8 sps:$4 sm:$0xff]  }
 0xff7   :  { %6742 = vmatpush1.bf16.msra.mxu1 %v13036_v52  ;;  %v13086_v52 = vld [vmem:[#allocation17 + $0x214] ss:$8 sps:$4 sm:$0xff]  }
 0xff8   :  { %6743 = vmatprep.subr.bf16.mxu1 %v13041_v53  ;;  %7605 = vmatprep.subr.bf16.mxu0 %v13086_v52  ;;  %v13087_v53 = vld [vmem:[#allocation17 + $0x20] ss:$8 sps:$4 sm:$0xff]  }
 0xff9   :  { %7606 = vmatpush1.bf16.msra.mxu0 %v13084_v50 }
 0xffb   :  { %6744 = vmatpush1.bf16.msra.mxu1 %v13039_v55  ;;  %v13089_v55 = vld [vmem:[#allocation17 + $0x24] ss:$8 sps:$4 sm:$0xff]  }
 0xffc   :  { %6745 = vmatprep.subr.bf16.mxu1 %v13044_v57  ;;  %v13090_v57 = vld [vmem:[#allocation17 + $0x220] ss:$8 sps:$4 sm:$0xff]  }
 0xfff   :  { %6746 = vmatpush1.bf16.msra.mxu1 %v13042_v60  ;;  %v13092_v60 = vld [vmem:[#allocation17 + $0x224] ss:$8 sps:$4 sm:$0xff]  }
0x1000   :  { %6747 = vmatprep.subr.bf16.mxu1 %v13047_v3  ;;  %v13095_v3 = vld [vmem:[#allocation17 + $0x34] ss:$8 sps:$4 sm:$0xff]   ;;  %7607 = vmatprep.subr.bf16.mxu0 %v13092_v60 }
0x1001   :  { %7608 = vmatpush1.bf16.msra.mxu0 %v13090_v57 }
0x1003   :  { %6748 = vmatpush1.bf16.msra.mxu1 %v13045_v5  ;;  %v13098_v5 = vld [vmem:[#allocation17 + $0x234] ss:$8 sps:$4 sm:$0xff]  }
0x1004   :  { %6749 = vmatprep.subr.bf16.mxu1 %v13050_v20  ;;  %v13093_v20 = vld [vmem:[#allocation17 + $0x30] ss:$8 sps:$4 sm:$0xff]   ;;  %7609 = vmatprep.subr.bf16.mxu0 %v13098_v5 }
0x1007   :  { %6750 = vmatpush1.bf16.msra.mxu1 %v13048_v21  ;;  %v13096_v21 = vld [vmem:[#allocation17 + $0x230] ss:$8 sps:$4 sm:$0xff]  }
0x1008   :  { %6751 = vmatprep.subr.bf16.mxu1 %v13053_v24  ;;  %v13101_v24 = vld [vmem:[#allocation17 + $0x44] ss:$8 sps:$4 sm:$0xff]   ;;  %7610 = vmatpush1.bf16.msra.mxu0 %v13096_v21 }
0x100b   :  { %6752 = vmatpush1.bf16.msra.mxu1 %v13051_v34  ;;  %v13104_v34 = vld [vmem:[#allocation17 + $0x244] ss:$8 sps:$4 sm:$0xff]  }
0x100c   :  { %6753 = vmatprep.subr.bf16.mxu1 %v13056_v25  ;;  %v13099_v25 = vld [vmem:[#allocation17 + $0x40] ss:$8 sps:$4 sm:$0xff]   ;;  %7611 = vmatprep.subr.bf16.mxu0 %v13104_v34 }
0x100f   :  { %6754 = vmatpush1.bf16.msra.mxu1 %v13054_v18  ;;  %v13102_v18 = vld [vmem:[#allocation17 + $0x240] ss:$8 sps:$4 sm:$0xff]  }
0x1010   :  { %6755 = vmatprep.subr.bf16.mxu1 %v13059_v10  ;;  %v13107_v10 = vld [vmem:[#allocation17 + $0x54] ss:$8 sps:$4 sm:$0xff]   ;;  %7612 = vmatpush1.bf16.msra.mxu0 %v13102_v18 }
0x1013   :  { %6756 = vmatpush1.bf16.msra.mxu1 %v13057_v17  ;;  %v13110_v17 = vld [vmem:[#allocation17 + $0x254] ss:$8 sps:$4 sm:$0xff]  }
0x1014   :  { %6757 = vmatprep.subr.bf16.mxu1 %v13062_v23  ;;  %v13105_v23 = vld [vmem:[#allocation17 + $0x50] ss:$8 sps:$4 sm:$0xff]   ;;  %7613 = vmatprep.subr.bf16.mxu0 %v13110_v17 }
0x1017   :  { %6758 = vmatpush1.bf16.msra.mxu1 %v13060_v31  ;;  %v13108_v31 = vld [vmem:[#allocation17 + $0x250] ss:$8 sps:$4 sm:$0xff]  }
0x1018   :  { %6759 = vmatprep.subr.bf16.mxu1 %v13065_v22  ;;  %v13113_v22 = vld [vmem:[#allocation17 + $0x64] ss:$8 sps:$4 sm:$0xff]   ;;  %7614 = vmatpush1.bf16.msra.mxu0 %v13108_v31 }
0x101b   :  { %6760 = vmatpush1.bf16.msra.mxu1 %v13063_v19  ;;  %v13116_v19 = vld [vmem:[#allocation17 + $0x264] ss:$8 sps:$4 sm:$0xff]  }
0x101c   :  { %6761 = vmatprep.subr.bf16.mxu1 %v13068_v33  ;;  %v13111_v33 = vld [vmem:[#allocation17 + $0x60] ss:$8 sps:$4 sm:$0xff]   ;;  %7615 = vmatprep.subr.bf16.mxu0 %v13116_v19 }
0x101f   :  { %6762 = vmatpush1.bf16.msra.mxu1 %v13066_v35  ;;  %v13114_v35 = vld [vmem:[#allocation17 + $0x260] ss:$8 sps:$4 sm:$0xff]  }
0x1020   :  { %6763 = vmatprep.subr.bf16.mxu1 %v13071_v29  ;;  %v13119_v29 = vld [vmem:[#allocation17 + $0x74] ss:$8 sps:$4 sm:$0xff]   ;;  %7616 = vmatpush1.bf16.msra.mxu0 %v13114_v35 }
0x1023   :  { %6764 = vmatpush1.bf16.msra.mxu1 %v13069_v36  ;;  %v13122_v36 = vld [vmem:[#allocation17 + $0x274] ss:$8 sps:$4 sm:$0xff]  }
0x1024   :  { %6765 = vmatprep.subr.bf16.mxu1 %v13074_v37  ;;  %v13117_v37 = vld [vmem:[#allocation17 + $0x70] ss:$8 sps:$4 sm:$0xff]   ;;  %7617 = vmatprep.subr.bf16.mxu0 %v13122_v36 }
0x1027   :  { %6766 = vmatpush1.bf16.msra.mxu1 %v13072_v28  ;;  %v13120_v28 = vld [vmem:[#allocation17 + $0x270] ss:$8 sps:$4 sm:$0xff]  }
0x1028   :  { %7618 = vmatpush1.bf16.msra.mxu0 %v13120_v28 }
0x10bd   :  { %v6521_v39 = vpop.f32.mrb[76].mxu1 }
0x10be   :  { %v6523_v40 = vpop.f32.mrb[77].mxu1  ;;  %v6528_v41 = vpack.c.bf16 %v6521_v39, %v6521_v39  ;;  %v13125_v39 = vld [vmem:[#allocation17 + $0x84] ss:$8 sps:$4 sm:$0xff]  }
0x10bf   :  { %v6529_v58 = vpack.c.bf16 %v6523_v40, %v6523_v40  ;;  %v6525_v1 = vpop.f32.mrb[78].mxu1  ;;  %v13128_v40 = vld [vmem:[#allocation17 + $0x284] ss:$8 sps:$4 sm:$0xff]  }
0x10c0   :  { %v6526_v54 = vpop.f32.mrb[79].mxu1  ;;  %v13126_v1 = vld [vmem:[#allocation17 + $0x280] ss:$8 sps:$4 sm:$0xff]   ;;  %7619 = vmatprep.subr.bf16.mxu0 %v13128_v40 }
0x10c1   :  { %6767 = vmatprep.mubr.bf16.mxu1 %v6529_v58  ;;  %v13123_v58 = vld [vmem:[#allocation17 + $0x80] ss:$8 sps:$4 sm:$0xff]   ;;  %v13134_v54 = vld [vmem:[#allocation17 + $0x294] ss:$8 sps:$4 sm:$0xff]   ;;  %7620 = vmatpush1.bf16.msra.mxu0 %v13126_v1 }
0x10c2   :  { %6768 = vmatmul.mubr.bf16.vlgmr.msra.gmra.mrb[80].mxu1 %v6528_v41  ;;  %v13131_v41 = vld [vmem:[#allocation17 + $0x94] ss:$8 sps:$4 sm:$0xff]   ;;  %7621 = vmatprep.subr.bf16.mxu0 %v13134_v54  ;;  %v13177_v1 = vld [vmem:[#allocation17 + $0x120] ss:$8 sps:$4 sm:$0xff]   ;;  %v13180_v54 = vld [vmem:[#allocation17 + $0x130] ss:$8 sps:$4 sm:$0xff]  }
0x10c3   :  { %6881 = vmatprep.mubr.bf16.mxu1 %v14002_v15 }
0x1195   :  { %v6769_v26 = vpop.f32.mrb[80].mxu1 }
0x1196   :  { %v6770_v27 = vadd.f32 %v6769_v26, %v6568_v2  ;;  %v6771_v30 = vpop.f32.mrb[81].mxu1  ;;  %v13132_v2 = vld [vmem:[#allocation17 + $0x290] ss:$8 sps:$4 sm:$0xff]   ;;  %v13135_v26 = vld [vmem:[#allocation17 + $0xa0] ss:$8 sps:$4 sm:$0xff]  }
0x1197   :  { %v6772_v59 = vadd.f32 %v6771_v30, %v6572_v56  ;;  %v6773_v61 = vpop.f32.mrb[82].mxu1  ;;  %v13137_v56 = vld [vmem:[#allocation17 + $0xa4] ss:$8 sps:$4 sm:$0xff]   ;;  %7622 = vmatpush1.bf16.msra.mxu0 %v13132_v2  ;;  %v13143_v30 = vld [vmem:[#allocation17 + $0xb4] ss:$8 sps:$4 sm:$0xff]  }
0x1198   :  { %v6779_v62 = vmul.f32 %v6770_v27, %v6770_v27  ;;  %v6835_v0 = vpack.c.bf16 %v6770_v27, %v6770_v27  ;;  %v6774_v7 = vpop.f32.mrb[83].mxu1  ;;  %v13138_v27 = vld [vmem:[#allocation17 + $0x2a0] ss:$8 sps:$4 sm:$0xff]   ;;  %7623 = vmatprep.subr.bf16.mxu0 %v13140_v63  ;;  %v13141_v61 = vld [vmem:[#allocation17 + $0xb0] ss:$8 sps:$4 sm:$0xff]  }
0x1199   :  { %v6780_v38 = vmul.f32 %v6772_v59, %v6772_v59  ;;  %v6836_v42 = vpack.c.bf16 %v6772_v59, %v6772_v59  ;;  %v13146_v59 = vld [vmem:[#allocation17 + $0x2b4] ss:$8 sps:$4 sm:$0xff]   ;;  %v13152_v7 = vld [vmem:[#allocation17 + $0x2c4] ss:$8 sps:$4 sm:$0xff]   ;;  %v13183_v2 = vld [vmem:[#allocation17 + $0x140] ss:$8 sps:$4 sm:$0xff]  }
0x119a   :  { %v6844_v8 = vsel %vm6842_vm5, %v6835_v0, 0  ;;  %v6783_v16 = vsel %vm6781_vm6, %v6779_v62, 0.0  ;;  %v6800_v6 = vsel %vm6798_vm8, %v6779_v62, 0.0  ;;  %v13144_v62 = vld [vmem:[#allocation17 + $0x2b0] ss:$8 sps:$4 sm:$0xff]  }
0x119b   :  { %11301 = vmatprep.subr.msk.bf16.mxu1 %vm6842_vm5, %v6836_v42  ;;  %v6786_v4 = vsel %vm6785_vm7, %v6783_v16, 0.0  ;;  %v6787_v47 = vsel %vm6785_vm7, %v6780_v38, 0.0  ;;  %v6802_v13 = vsel %vm6785_vm7, %v6800_v6, 0.0  ;;  %7624 = vmatpush1.bf16.msra.mxu0 %v13138_v27  ;;  %v13149_v0 = vld [vmem:[#allocation17 + $0xc4] ss:$8 sps:$4 sm:$0xff]  }
0x119c   :  { %6850 = vmatpush1.bf16.msra.mxu1 %v6844_v8  ;;  %v6788_v43 = vadd.f32 %v6787_v47, %v6786_v4  ;;  %7625 = vmatprep.subr.bf16.mxu0 %v13146_v59  ;;  %v13147_v38 = vld [vmem:[#allocation17 + $0xc0] ss:$8 sps:$4 sm:$0xff]   ;;  %v13155_v8 = vld [vmem:[#allocation17 + $0xd4] ss:$8 sps:$4 sm:$0xff]   ;;  %v13153_v16 = vld [vmem:[#allocation17 + $0xd0] ss:$8 sps:$4 sm:$0xff]  }
0x119d   :  { %7099 = vmatprep.subr.bf16.mxu1 %v13077_v9  ;;  %v13150_v42 = vld [vmem:[#allocation17 + $0x2c0] ss:$8 sps:$4 sm:$0xff]   ;;  %v13158_v4 = vld [vmem:[#allocation17 + $0x2d4] ss:$8 sps:$4 sm:$0xff]   ;;  %v13156_v47 = vld [vmem:[#allocation17 + $0x2d0] ss:$8 sps:$4 sm:$0xff]  }
0x119e   :  { %6789 = vadd.xlane.f32.xlu0 %v6788_v43  ;;  %v13161_v43 = vld [vmem:[#allocation17 + $0xe4] ss:$8 sps:$4 sm:$0xff]   ;;  %v13167_v9 = vld [vmem:[#allocation17 + $0xf4] ss:$8 sps:$4 sm:$0xff]   ;;  %v13186_v63 = vld [vmem:[#allocation17 + $0x150] ss:$8 sps:$4 sm:$0xff]  }
0x119f   :  { %11302 = vmatmul.mubr.msk.bf16.vlgmr.msra.gmra.mrb[84].mxu1 %vm6838_vm9, %v6837_v44  ;;  %7626 = vmatpush1.bf16.msra.mxu0 %v13144_v62  ;;  %v13159_v44 = vld [vmem:[#allocation17 + $0xe0] ss:$8 sps:$4 sm:$0xff]   ;;  %v13164_v6 = vld [vmem:[#allocation17 + $0x2e4] ss:$8 sps:$4 sm:$0xff]   ;;  %v13192_v59 = vld [vmem:[#allocation17 + $0x170] ss:$8 sps:$4 sm:$0xff]  }
0x11a0   :  { %7100 = vmatpush1.bf16.msra.mxu1 %v13075_v12  ;;  %7627 = vmatprep.subr.bf16.mxu0 %v13152_v7  ;;  %v13165_v12 = vld [vmem:[#allocation17 + $0xf0] ss:$8 sps:$4 sm:$0xff]   ;;  %v13189_v27 = vld [vmem:[#allocation17 + $0x160] ss:$8 sps:$4 sm:$0xff]  }
0x11a1   :  { %7101 = vmatprep.subr.bf16.mxu1 %v13083_v46  ;;  %v13195_v62 = vld [vmem:[#allocation17 + $0x180] ss:$8 sps:$4 sm:$0xff]   ;;  %v13198_v7 = vld [vmem:[#allocation17 + $0x190] ss:$8 sps:$4 sm:$0xff]  }
0x11a2   :  { %6805 = vadd.xlane.f32.xlu0 %v6802_v13  ;;  %v13162_v13 = vld [vmem:[#allocation17 + $0x2e0] ss:$8 sps:$4 sm:$0xff]  }
0x11a3   :  { %7628 = vmatpush1.bf16.msra.mxu0 %v13150_v42  ;;  %v13201_v42 = vld [vmem:[#allocation17 + $0x1a0] ss:$8 sps:$4 sm:$0xff]  }
0x11a4   :  { %7102 = vmatpush1.bf16.msra.mxu1 %v13081_v45  ;;  %7629 = vmatprep.subr.bf16.mxu0 %v13158_v4  ;;  %v13173_v45 = vld [vmem:[#allocation17 + $0x104] ss:$8 sps:$4 sm:$0xff]  }
0x11a5   :  { %7103 = vmatprep.subr.bf16.mxu1 %v13089_v55  ;;  %v13209_v4 = vld [vmem:[#allocation17 + $0x1c4] ss:$8 sps:$4 sm:$0xff]  }
0x11a7   :  { %7630 = vmatpush1.bf16.msra.mxu0 %v13156_v47  ;;  %v13207_v47 = vld [vmem:[#allocation17 + $0x1c0] ss:$8 sps:$4 sm:$0xff]  }
0x11a8   :  { %7104 = vmatpush1.bf16.msra.mxu1 %v13087_v53  ;;  %7631 = vmatprep.subr.bf16.mxu0 %v13164_v6  ;;  %v13215_v6 = vld [vmem:[#allocation17 + $0x1e4] ss:$8 sps:$4 sm:$0xff]  }
0x11a9   :  { %7105 = vmatprep.subr.bf16.mxu1 %v13095_v3 }
0x11ab   :  { %7632 = vmatpush1.bf16.msra.mxu0 %v13162_v13  ;;  %v13213_v13 = vld [vmem:[#allocation17 + $0x1e0] ss:$8 sps:$4 sm:$0xff]  }
0x11ac   :  { %7106 = vmatpush1.bf16.msra.mxu1 %v13093_v20  ;;  %7633 = vmatprep.subr.bf16.mxu0 %v13170_v11  ;;  %v13221_v11 = vld [vmem:[#allocation17 + $0x304] ss:$8 sps:$4 sm:$0xff]  }
0x11ad   :  { %7107 = vmatprep.subr.bf16.mxu1 %v13101_v24 }
0x11af   :  { %7634 = vmatpush1.bf16.msra.mxu0 %v13168_v14  ;;  %v13219_v14 = vld [vmem:[#allocation17 + $0x300] ss:$8 sps:$4 sm:$0xff]  }
0x11b0   :  { %7108 = vmatpush1.bf16.msra.mxu1 %v13099_v25 }
0x11b1   :  { %7109 = vmatprep.subr.bf16.mxu1 %v13107_v10 }
0x11b4   :  { %7110 = vmatpush1.bf16.msra.mxu1 %v13105_v23 }
0x11b5   :  { %7111 = vmatprep.subr.bf16.mxu1 %v13113_v22  ;;  %v13171_v22 = vld [vmem:[#allocation17 + $0x100] ss:$8 sps:$4 sm:$0xff]  }
0x11b8   :  { %7112 = vmatpush1.bf16.msra.mxu1 %v13111_v33 }
0x11b9   :  { %7113 = vmatprep.subr.bf16.mxu1 %v13119_v29  ;;  %v13176_v29 = vld [vmem:[#allocation17 + $0x114] ss:$8 sps:$4 sm:$0xff]  }
0x11bc   :  { %7114 = vmatpush1.bf16.msra.mxu1 %v13117_v37 }
0x11bd   :  { %7115 = vmatprep.subr.bf16.mxu1 %v13125_v39  ;;  %v13174_v39 = vld [vmem:[#allocation17 + $0x110] ss:$8 sps:$4 sm:$0xff]  }
0x11c0   :  { %7116 = vmatpush1.bf16.msra.mxu1 %v13123_v58  ;;  %v13179_v58 = vld [vmem:[#allocation17 + $0x124] ss:$8 sps:$4 sm:$0xff]  }
0x11c1   :  { %7117 = vmatprep.subr.bf16.mxu1 %v13131_v41  ;;  %v13182_v41 = vld [vmem:[#allocation17 + $0x134] ss:$8 sps:$4 sm:$0xff]  }
0x11c4   :  { %7118 = vmatpush1.bf16.msra.mxu1 %v13129_v32  ;;  %v13185_v32 = vld [vmem:[#allocation17 + $0x144] ss:$8 sps:$4 sm:$0xff]  }
0x11c5   :  { %7119 = vmatprep.subr.bf16.mxu1 %v13137_v56  ;;  %v13188_v56 = vld [vmem:[#allocation17 + $0x154] ss:$8 sps:$4 sm:$0xff]  }
0x11c8   :  { %7120 = vmatpush1.bf16.msra.mxu1 %v13135_v26  ;;  %v13191_v26 = vld [vmem:[#allocation17 + $0x164] ss:$8 sps:$4 sm:$0xff]  }
0x11c9   :  { %7121 = vmatprep.subr.bf16.mxu1 %v13143_v30  ;;  %v13194_v30 = vld [vmem:[#allocation17 + $0x174] ss:$8 sps:$4 sm:$0xff]  }
0x11cc   :  { %7122 = vmatpush1.bf16.msra.mxu1 %v13141_v61  ;;  %v13197_v61 = vld [vmem:[#allocation17 + $0x184] ss:$8 sps:$4 sm:$0xff]  }
0x11cd   :  { %7123 = vmatprep.subr.bf16.mxu1 %v13149_v0  ;;  %v13200_v0 = vld [vmem:[#allocation17 + $0x194] ss:$8 sps:$4 sm:$0xff]  }
0x11d0   :  { %7124 = vmatpush1.bf16.msra.mxu1 %v13147_v38  ;;  %v13203_v38 = vld [vmem:[#allocation17 + $0x1a4] ss:$8 sps:$4 sm:$0xff]  }
0x11d1   :  { %7125 = vmatprep.subr.bf16.mxu1 %v13155_v8  ;;  %v13206_v8 = vld [vmem:[#allocation17 + $0x1b4] ss:$8 sps:$4 sm:$0xff]  }
0x11d4   :  { %7126 = vmatpush1.bf16.msra.mxu1 %v13153_v16  ;;  %v13204_v16 = vld [vmem:[#allocation17 + $0x1b0] ss:$8 sps:$4 sm:$0xff]  }
0x11d5   :  { %7127 = vmatprep.subr.bf16.mxu1 %v13161_v43  ;;  %v13212_v43 = vld [vmem:[#allocation17 + $0x1d4] ss:$8 sps:$4 sm:$0xff]  }
0x11d8   :  { %7128 = vmatpush1.bf16.msra.mxu1 %v13159_v44  ;;  %v13210_v44 = vld [vmem:[#allocation17 + $0x1d0] ss:$8 sps:$4 sm:$0xff]  }
0x11d9   :  { %7129 = vmatprep.subr.bf16.mxu1 %v13167_v9  ;;  %v13218_v9 = vld [vmem:[#allocation17 + $0x1f4] ss:$8 sps:$4 sm:$0xff]  }
0x11dc   :  { %7130 = vmatpush1.bf16.msra.mxu1 %v13165_v12  ;;  %v13216_v12 = vld [vmem:[#allocation17 + $0x1f0] ss:$8 sps:$4 sm:$0xff]  }
0x11dd   :  { %7351 = vmatprep.subr.bf16.mxu1 %v13173_v45  ;;  %v13224_v45 = vld [vmem:[#allocation17 + $0x314] ss:$8 sps:$4 sm:$0xff]  }
0x122b   :  { %v6790_v46 = vpop.xlane.xlu0 %6789 }
0x122c   :  { %v6791_v50 = vrot.slane %v6790_v46, 4 }
0x122e   :  { %v6792_v52 = vadd.f32 %v6791_v50, %v6790_v46  ;;  %v13222_v46 = vld [vmem:[#allocation17 + $0x310] ss:$8 sps:$4 sm:$0xff]   ;;  %v13227_v50 = vld [vmem:[#allocation17 + $0x324] ss:$8 sps:$4 sm:$0xff]  }
0x122f   :  { %v6806_v53 = vpop.xlane.xlu0 %6805 }
0x1230   :  { %v6793_v55 = vrot.slane %v6792_v52, 2  ;;  %v6807_v57 = vrot.slane %v6806_v53, 4 }
0x1232   :  { %v6808_v60 = vadd.f32 %v6807_v57, %v6806_v53  ;;  %v6794_v3 = vadd.f32 %v6793_v55, %v6792_v52  ;;  %v13225_v52 = vld [vmem:[#allocation17 + $0x320] ss:$8 sps:$4 sm:$0xff]   ;;  %v13230_v53 = vld [vmem:[#allocation17 + $0x334] ss:$8 sps:$4 sm:$0xff]   ;;  %v13228_v55 = vld [vmem:[#allocation17 + $0x330] ss:$8 sps:$4 sm:$0xff]  }
0x1233   :  { %v13233_v57 = vld [vmem:[#allocation17 + $0x344] ss:$8 sps:$4 sm:$0xff]  }
0x1234   :  { %v6809_v5 = vrot.slane %v6808_v60, 2  ;;  %v6795_v20 = vrot.slane %v6794_v3, 1 }
0x1236   :  { %v6810_v21 = vadd.f32 %v6809_v5, %v6808_v60  ;;  %v6796_v24 = vadd.f32 %v6795_v20, %v6794_v3  ;;  %v13231_v60 = vld [vmem:[#allocation17 + $0x340] ss:$8 sps:$4 sm:$0xff]   ;;  %v13236_v3 = vld [vmem:[#allocation17 + $0x354] ss:$8 sps:$4 sm:$0xff]   ;;  %v13234_v5 = vld [vmem:[#allocation17 + $0x350] ss:$8 sps:$4 sm:$0xff]  }
0x1237   :  { %v13239_v20 = vld [vmem:[#allocation17 + $0x364] ss:$8 sps:$4 sm:$0xff]  }
0x1238   :  { %11991 = vpush %v6796_v24  ;;  %v6811_v34 = vrot.slane %v6810_v21, 1  ;;  %v13242_v24 = vld [vmem:[#allocation17 + $0x374] ss:$8 sps:$4 sm:$0xff]  }
0x123a   :  { %v6812_v25 = vadd.f32 %v6811_v34, %v6810_v21  ;;  %v13237_v21 = vld [vmem:[#allocation17 + $0x360] ss:$8 sps:$4 sm:$0xff]   ;;  %v13240_v34 = vld [vmem:[#allocation17 + $0x370] ss:$8 sps:$4 sm:$0xff]  }
0x123c   :  { %11993 = vpush %v6812_v25  ;;  %v13245_v25 = vld [vmem:[#allocation17 + $0x384] ss:$8 sps:$4 sm:$0xff]  }
0x1269   :  { %s11992_s18 = spop %11991 }
0x126a   :  { %v6814_v18 = vstv %s11992_s18 }
0x126b   :  { %13612 = vrsqrt.f32 %v6814_v18  ;;  %vm6817_vm10 = vcmp.eq.f32.partialorder %v6814_v18, inf  ;;  %v6820_v37 = vand.u32 2147483648, %v6814_v18  ;;  %vm6819_vm11 = vcmp.eq.f32.partialorder %v6814_v18, 0.0 }
0x126d   :  { %s11994_s3 = spop %11993 }
0x126e   :  { %s6826_s15 = smul.f32 0.5, %s11994_s3 }
0x1270   :  { %s6829_s23 = smul.f32 0.0625, %s6826_s15 }
0x1272   :  { %v6883_v10 = vpop.f32.mrb[84].mxu1  ;;  %s6830_s22 = ssub.f32 -0.9189385, %s6829_s23 }
0x1273   :  { %v6885_v17 = vpop.f32.mrb[85].mxu1  ;;  %v14617_v33 = vpack.c.bf16 %v6883_v10, %v6883_v10  ;;  %v13248_v10 = vld [vmem:[#allocation17 + $0x394] ss:$8 sps:$4 sm:$0xff]  }
0x1274   :  { %v14615_v23 = vpack.c.bf16 %v6885_v17, %v6885_v17  ;;  %v6887_v31 = vpop.f32.mrb[86].mxu1  ;;  %s6833_s20 = smul.f32 0.01, %s6830_s22  ;;  %v13246_v17 = vld [vmem:[#allocation17 + $0x390] ss:$8 sps:$4 sm:$0xff]  }
0x1275   :  { %v13613_v19 = vpop.eup %13612  ;;  %v6888_v35 = vpop.f32.mrb[87].mxu1  ;;  %v13249_v31 = vld [vmem:[#allocation17 + $0x3a0] ss:$8 sps:$4 sm:$0xff]  }
0x1276   :  { %7131 = vmatprep.mubr.bf16.mxu1 %v14615_v23  ;;  %7635 = vmatprep.mubr.bf16.mxu0 %v14615_v23  ;;  %v6816_v36 = vmul.f32 %v13613_v19, %v6814_v18  ;;  %v13252_v19 = vld [vmem:[#allocation17 + $0x3b0] ss:$8 sps:$4 sm:$0xff]   ;;  %v13257_v35 = vld [vmem:[#allocation17 + $0x3c4] ss:$8 sps:$4 sm:$0xff]  }
0x1277   :  { %7132 = vmatmul.mubr.bf16.vlgmr.msra.gmra.mrb[88].mxu1 %v14617_v33  ;;  %7636 = vmatmul.mubr.bf16.vlgmr.msra.gmra.mrb[52].mxu0 %v14617_v33 }
0x1278   :  { %7352 = vmatpush1.bf16.msra.mxu1 %v13171_v22  ;;  %7383 = vmatprep.mubr.bf16.mxu1 %v14615_v23  ;;  %v6818_v28 = vsel %vm6817_vm10, %v6814_v18, %v6816_v36  ;;  %v13243_v18 = vld [vmem:[#allocation17 + $0x380] ss:$8 sps:$4 sm:$0xff]   ;;  %v13254_v22 = vld [vmem:[#allocation17 + $0x3b4] ss:$8 sps:$4 sm:$0xff]  }
0x1279   :  { %v6821_v40 = vsel %vm6819_vm11, %v6820_v37, %v6818_v28  ;;  %7353 = vmatprep.subr.bf16.mxu1 %v13176_v29  ;;  %7955 = vmatprep.mubr.bf16.mxu0 %v14002_v15  ;;  %v13255_v29 = vld [vmem:[#allocation17 + $0x3c0] ss:$8 sps:$4 sm:$0xff]   ;;  %v13260_v36 = vld [vmem:[#allocation17 + $0x3d4] ss:$8 sps:$4 sm:$0xff]   ;;  %v13258_v37 = vld [vmem:[#allocation17 + $0x3d0] ss:$8 sps:$4 sm:$0xff]  }
0x127a   :  { %11995 = vpush %v6821_v40  ;;  %v13263_v28 = vld [vmem:[#allocation17 + $0x3e4] ss:$8 sps:$4 sm:$0xff]   ;;  %v13266_v40 = vld [vmem:[#allocation17 + $0x3f4] ss:$8 sps:$4 sm:$0xff]  }
0x127c   :  { %7354 = vmatpush1.bf16.msra.mxu1 %v13174_v39  ;;  %v13261_v39 = vld [vmem:[#allocation17 + $0x3e0] ss:$8 sps:$4 sm:$0xff]  }
0x127d   :  { %7355 = vmatprep.subr.bf16.mxu1 %v13179_v58  ;;  %v13264_v58 = vld [vmem:[#allocation17 + $0x3f0] ss:$8 sps:$4 sm:$0xff]  }
0x1280   :  { %7356 = vmatpush1.bf16.msra.mxu1 %v13177_v1 }
0x1281   :  { %7357 = vmatprep.subr.bf16.mxu1 %v13182_v41 }
0x1284   :  { %7358 = vmatpush1.bf16.msra.mxu1 %v13180_v54 }
0x1285   :  { %7359 = vmatprep.subr.bf16.mxu1 %v13185_v32 }
0x1288   :  { %7360 = vmatpush1.bf16.msra.mxu1 %v13183_v2 }
0x1289   :  { %7361 = vmatprep.subr.bf16.mxu1 %v13188_v56 }
0x128c   :  { %7362 = vmatpush1.bf16.msra.mxu1 %v13186_v63 }
0x128d   :  { %7363 = vmatprep.subr.bf16.mxu1 %v13191_v26 }
0x1290   :  { %7364 = vmatpush1.bf16.msra.mxu1 %v13189_v27  ;;  %v6927_v27 = vld [vmem:[#allocation20] sm:$0x3] }
0x1291   :  { %7365 = vmatprep.subr.bf16.mxu1 %v13194_v30  ;;  %v7431_v30 = vld [vmem:[#allocation20 + $0x4] sm:$0x3] }
0x1294   :  { %7366 = vmatpush1.bf16.msra.mxu1 %v13192_v59  ;;  %v7179_v59 = vld [vmem:[#allocation20 + $0x2] sm:$0x3] }
0x1295   :  { %7367 = vmatprep.subr.bf16.mxu1 %v13197_v61  ;;  %v6932_v61 = vrot.slane %v6927_v27, %v14363_v51 }
0x1298   :  { %7368 = vmatpush1.bf16.msra.mxu1 %v13195_v62  ;;  %v6894_v62 = vand.u32 3, %v14357_v48 }
0x1299   :  { %7369 = vmatprep.subr.bf16.mxu1 %v13200_v0  ;;  %v6936_v0 = vrot.slane %v6927_v27, %v14360_v49  ;;  %v13287_v27 = vld [vmem:[#allocation13 + $0x1354] ss:$8 sps:$4 sm:$0xff]  }
0x129a   :  { %vm7140_vm12 = vcmp.eq.s32.totalorder %v6894_v62, 0  ;;  %vm7392_vm13 = vcmp.eq.s32.totalorder %v6894_v62, 1  ;;  %vm7644_vm14 = vcmp.eq.s32.totalorder %v6894_v62, 2  ;;  %vm7896_vm15 = vcmp.eq.s32.totalorder %v6894_v62, 3  ;;  %v13293_v62 = vld [vmem:[#allocation13 + $0x1374] ss:$8 sps:$4 sm:$0xff]  }
0x129c   :  { %7370 = vmatpush1.bf16.msra.mxu1 %v13198_v7  ;;  %v7184_v7 = vrot.slane %v7179_v59, %v14363_v51 }
0x129d   :  { %7371 = vmatprep.subr.bf16.mxu1 %v13203_v38  ;;  %v7440_v38 = vrot.slane %v7431_v30, %v14360_v49 }
0x12a0   :  { %7372 = vmatpush1.bf16.msra.mxu1 %v13201_v42  ;;  %v7188_v42 = vrot.slane %v7179_v59, %v14360_v49  ;;  %v13290_v59 = vld [vmem:[#allocation13 + $0x1364] ss:$8 sps:$4 sm:$0xff]  }
0x12a1   :  { %7373 = vmatprep.subr.bf16.mxu1 %v13206_v8 }
0x12a4   :  { %7374 = vmatpush1.bf16.msra.mxu1 %v13204_v16 }
0x12a5   :  { %7375 = vmatprep.subr.bf16.mxu1 %v13209_v4 }
0x12a8   :  { %7376 = vmatpush1.bf16.msra.mxu1 %v13207_v47 }
0x12a9   :  { %7377 = vmatprep.subr.bf16.mxu1 %v13212_v43 }
0x12ab   :  { %s11996_s2 = spop %11995 }
0x12ac   :  { %s6825_s10 = smul.f32 0.004032258, %s11996_s2  ;;  %7378 = vmatpush1.bf16.msra.mxu1 %v13210_v44 }
0x12ad   :  { %7379 = vmatprep.subr.bf16.mxu1 %v13215_v6 }
0x12ae   :  { %s14625_s11 = ssub.f32 %s6825_s10, %s6833_s20 }
0x12b0   :  { %7380 = vmatpush1.bf16.msra.mxu1 %v13213_v13  ;;  %10526 = sst [smem:[#allocation26]] %s14625_s11 }
0x12b1   :  { %7381 = vmatprep.subr.bf16.mxu1 %v13218_v9 }
0x12b4   :  { %7382 = vmatpush1.bf16.msra.mxu1 %v13216_v12 }
0x12b5   :  { %7855 = vmatprep.subr.bf16.mxu1 %v13221_v11 }
0x12b7   :  { %7384 = vmatmul.mubr.bf16.vlgmr.msra.gmra.mrb[92].mxu1 %v14617_v33 }
0x12b8   :  { %7856 = vmatpush1.bf16.msra.mxu1 %v13219_v14  ;;  %7887 = vmatprep.mubr.bf16.mxu1 %v14615_v23  ;;  %v13251_v23 = vld [vmem:[#allocation17 + $0x3a4] ss:$8 sps:$4 sm:$0xff]  }
0x12b9   :  { %7857 = vmatprep.subr.bf16.mxu1 %v13224_v45 }
0x12bc   :  { %7858 = vmatpush1.bf16.msra.mxu1 %v13222_v46 }
0x12bd   :  { %7859 = vmatprep.subr.bf16.mxu1 %v13227_v50 }
0x12c0   :  { %7860 = vmatpush1.bf16.msra.mxu1 %v13225_v52 }
0x12c1   :  { %7861 = vmatprep.subr.bf16.mxu1 %v13230_v53 }
0x12c4   :  { %7862 = vmatpush1.bf16.msra.mxu1 %v13228_v55 }
0x12c5   :  { %7863 = vmatprep.subr.bf16.mxu1 %v13233_v57 }
0x12c8   :  { %7864 = vmatpush1.bf16.msra.mxu1 %v13231_v60  ;;  %v7683_v60 = vld [vmem:[#allocation20 + $0x6] sm:$0x3] }
0x12c9   :  { %7865 = vmatprep.subr.bf16.mxu1 %v13236_v3  ;;  %v7688_v3 = vrot.slane %v7683_v60, %v14363_v51 }
0x12cc   :  { %7866 = vmatpush1.bf16.msra.mxu1 %v13234_v5  ;;  %v7692_v5 = vrot.slane %v7683_v60, %v14360_v49 }
0x12cd   :  { %7867 = vmatprep.subr.bf16.mxu1 %v13239_v20 }
0x12d0   :  { %7868 = vmatpush1.bf16.msra.mxu1 %v13237_v21 }
0x12d1   :  { %7869 = vmatprep.subr.bf16.mxu1 %v13242_v24 }
0x12d4   :  { %7870 = vmatpush1.bf16.msra.mxu1 %v13240_v34 }
0x12d5   :  { %7871 = vmatprep.subr.bf16.mxu1 %v13245_v25 }
0x12d8   :  { %7872 = vmatpush1.bf16.msra.mxu1 %v13243_v18 }
0x12d9   :  { %7873 = vmatprep.subr.bf16.mxu1 %v13248_v10 }
0x12dc   :  { %7874 = vmatpush1.bf16.msra.mxu1 %v13246_v17 }
0x12dd   :  { %7875 = vmatprep.subr.bf16.mxu1 %v13251_v23 }
0x12e0   :  { %7876 = vmatpush1.bf16.msra.mxu1 %v13249_v31 }
0x12e1   :  { %7877 = vmatprep.subr.bf16.mxu1 %v13254_v22 }
0x12e4   :  { %7878 = vmatpush1.bf16.msra.mxu1 %v13252_v19 }
0x12e5   :  { %7879 = vmatprep.subr.bf16.mxu1 %v13257_v35 }
0x12e8   :  { %7880 = vmatpush1.bf16.msra.mxu1 %v13255_v29 }
0x12e9   :  { %7881 = vmatprep.subr.bf16.mxu1 %v13260_v36 }
0x12ec   :  { %7882 = vmatpush1.bf16.msra.mxu1 %v13258_v37  ;;  %v13267_v37 = vld [vmem:[%s14979_s6] sm:$0xff]  }
0x12ed   :  { %7883 = vmatprep.subr.bf16.mxu1 %v13263_v28  ;;  %v13269_v28 = vld [vmem:[%s14979_s6 + $0x10] sm:$0xff]  }
0x12f0   :  { %7884 = vmatpush1.bf16.msra.mxu1 %v13261_v39  ;;  %v13272_v39 = vld [vmem:[#allocation13 + $0x1304] ss:$8 sps:$4 sm:$0xff]  }
0x12f1   :  { %7885 = vmatprep.subr.bf16.mxu1 %v13266_v40  ;;  %v13268_v40 = vld [vmem:[%s14979_s6 + $0x8] sm:$0xff]  }
0x12f4   :  { %7886 = vmatpush1.bf16.msra.mxu1 %v13264_v58  ;;  %v13270_v58 = vld [vmem:[#allocation13 + $0x1300] ss:$8 sps:$4 sm:$0xff]  }
0x12f7   :  { %7888 = vmatmul.mubr.bf16.vlgmr.msra.gmra.mrb[96].mxu1 %v14617_v33  ;;  %v7436_v33 = vrot.slane %v7431_v30, %v14363_v51  ;;  %v13285_v30 = vld [vmem:[#allocation13 + $0x1350] ss:$8 sps:$4 sm:$0xff]  }
0x12f8   :  { %8539 = vmatprep.mubr.bf16.mxu1 %v14002_v15 }
0x134a   :  { %v7133_v1 = vpop.f32.mrb[88].mxu1  ;;  %v7637_v41 = vpop.f32.mrb[52].mxu0 }
0x134b   :  { %v7135_v54 = vpop.f32.mrb[89].mxu1  ;;  %v7639_v32 = vpop.f32.mrb[53].mxu0  ;;  %v7134_v8 = vadd.f32 %v7133_v1, %v6932_v61  ;;  %v7638_v47 = vadd.f32 %v7637_v41, %v7436_v33  ;;  %v13275_v1 = vld [vmem:[#allocation13 + $0x1314] ss:$8 sps:$4 sm:$0xff]   ;;  %v13273_v41 = vld [vmem:[#allocation13 + $0x1310] ss:$8 sps:$4 sm:$0xff]  }
0x134c   :  { %v7137_v2 = vpop.f32.mrb[90].mxu1  ;;  %v7641_v56 = vpop.f32.mrb[54].mxu0  ;;  %v7136_v16 = vadd.f32 %v7135_v54, %v6936_v0  ;;  %v7640_v48 = vadd.f32 %v7639_v32, %v7440_v38  ;;  %v13278_v54 = vld [vmem:[#allocation13 + $0x1324] ss:$8 sps:$4 sm:$0xff]   ;;  %v13276_v32 = vld [vmem:[#allocation13 + $0x1320] ss:$8 sps:$4 sm:$0xff]  }
0x134d   :  { %v7138_v63 = vpop.f32.mrb[91].mxu1  ;;  %v7642_v26 = vpop.f32.mrb[55].mxu0  ;;  %v7141_v9 = vsel %vm7140_vm12, %v7134_v8, 0.0  ;;  %v7645_v50 = vsel %vm7644_vm14, %v7638_v47, 0.0  ;;  %v13281_v2 = vld [vmem:[#allocation13 + $0x1334] ss:$8 sps:$4 sm:$0xff]  }
0x134e   :  { %v7142_v14 = vsel %vm7140_vm12, %v7136_v16, 0.0  ;;  %v7646_v53 = vsel %vm7644_vm14, %v7640_v48, 0.0  ;;  %v13279_v56 = vld [vmem:[#allocation13 + $0x1330] ss:$8 sps:$4 sm:$0xff]   ;;  %v13284_v63 = vld [vmem:[#allocation13 + $0x1344] ss:$8 sps:$4 sm:$0xff]  }
0x134f   :  { %v13282_v26 = vld [vmem:[#allocation13 + $0x1340] ss:$8 sps:$4 sm:$0xff]   ;;  %v13291_v0 = vld [vmem:[#allocation13 + $0x1370] ss:$8 sps:$4 sm:$0xff]   ;;  %v13296_v33 = vld [vmem:[#allocation13 + $0x1384] ss:$8 sps:$4 sm:$0xff]  }
0x1350   :  { %v13288_v61 = vld [vmem:[#allocation13 + $0x1360] ss:$8 sps:$4 sm:$0xff]   ;;  %v13299_v38 = vld [vmem:[#allocation13 + $0x1394] ss:$8 sps:$4 sm:$0xff]   ;;  %v13302_v8 = vld [vmem:[#allocation13 + $0x13a4] ss:$8 sps:$4 sm:$0xff]  }
0x1351   :  { %v13300_v16 = vld [vmem:[#allocation13 + $0x13a0] ss:$8 sps:$4 sm:$0xff]   ;;  %v13303_v47 = vld [vmem:[#allocation13 + $0x13b0] ss:$8 sps:$4 sm:$0xff]   ;;  %v13311_v48 = vld [vmem:[#allocation13 + $0x13d4] ss:$8 sps:$4 sm:$0xff]  }
0x138a   :  { %v7385_v4 = vpop.f32.mrb[92].mxu1 }
0x138b   :  { %v7386_v43 = vadd.f32 %v7385_v4, %v7184_v7  ;;  %v7387_v44 = vpop.f32.mrb[93].mxu1  ;;  %v13294_v7 = vld [vmem:[#allocation13 + $0x1380] ss:$8 sps:$4 sm:$0xff]   ;;  %v13305_v4 = vld [vmem:[#allocation13 + $0x13b4] ss:$8 sps:$4 sm:$0xff]  }
0x138c   :  { %v7388_v6 = vadd.f32 %v7387_v44, %v7188_v42  ;;  %v7389_v13 = vpop.f32.mrb[94].mxu1  ;;  %v13297_v42 = vld [vmem:[#allocation13 + $0x1390] ss:$8 sps:$4 sm:$0xff]   ;;  %v13306_v44 = vld [vmem:[#allocation13 + $0x13c0] ss:$8 sps:$4 sm:$0xff]  }
0x138d   :  { %v7393_v12 = vsel %vm7392_vm13, %v7386_v43, 0.0  ;;  %v7390_v11 = vpop.f32.mrb[95].mxu1  ;;  %v13308_v43 = vld [vmem:[#allocation13 + $0x13c4] ss:$8 sps:$4 sm:$0xff]   ;;  %v13312_v13 = vld [vmem:[#allocation13 + $0x13e0] ss:$8 sps:$4 sm:$0xff]  }
0x138e   :  { %v7395_v45 = vadd.f32 %v7393_v12, %v7141_v9  ;;  %v7394_v46 = vsel %vm7392_vm13, %v7388_v6, 0.0  ;;  %v13309_v6 = vld [vmem:[#allocation13 + $0x13d0] ss:$8 sps:$4 sm:$0xff]   ;;  %v13314_v9 = vld [vmem:[#allocation13 + $0x13e4] ss:$8 sps:$4 sm:$0xff]  }
0x138f   :  { %v7396_v52 = vadd.f32 %v7394_v46, %v7142_v14  ;;  %v13317_v12 = vld [vmem:[#allocation13 + $0x13f4] ss:$8 sps:$4 sm:$0xff]   ;;  %v13315_v11 = vld [vmem:[#allocation13 + $0x13f0] ss:$8 sps:$4 sm:$0xff]   ;;  %v13320_v14 = vld [vmem:[#allocation13 + $0x1204] ss:$8 sps:$4 sm:$0xff]  }
0x1390   :  { %v7647_v55 = vadd.f32 %v7645_v50, %v7395_v45 }
0x1391   :  { %v7648_v57 = vadd.f32 %v7646_v53, %v7396_v52 }
0x13ca   :  { %v7889_v20 = vpop.f32.mrb[96].mxu1 }
0x13cb   :  { %v7890_v21 = vadd.f32 %v7889_v20, %v7688_v3  ;;  %v7891_v24 = vpop.f32.mrb[97].mxu1 }
0x13cc   :  { %v7892_v34 = vadd.f32 %v7891_v24, %v7692_v5  ;;  %v7893_v25 = vpop.f32.mrb[98].mxu1 }
0x13cd   :  { %v7897_v18 = vsel %vm7896_vm15, %v7890_v21, 0.0  ;;  %v7894_v10 = vpop.f32.mrb[99].mxu1 }
0x13ce   :  { %v7899_v17 = vadd.f32 %v7897_v18, %v7647_v55  ;;  %v7898_v23 = vsel %vm7896_vm15, %v7892_v34, 0.0 }
0x13cf   :  { %v7900_v31 = vadd.f32 %v7898_v23, %v7648_v57  ;;  %v13318_v23 = vld [vmem:[#allocation13 + $0x1200] ss:$8 sps:$4 sm:$0xff]  }
0x13d0   :  { %v7901_v22 = vmax.f32 %v7899_v17, 0.0 }
0x13d1   :  { %v7902_v19 = vmax.f32 %v7900_v31, 0.0  ;;  %v13323_v31 = vld [vmem:[#allocation13 + $0x1214] ss:$8 sps:$4 sm:$0xff]  }
0x13d2   :  { %v7903_v35 = vpack.c.bf16 %v7901_v22, %v7901_v22  ;;  %v13321_v22 = vld [vmem:[#allocation13 + $0x1210] ss:$8 sps:$4 sm:$0xff]  }
0x13d3   :  { %v7904_v29 = vpack.c.bf16 %v7902_v19, %v7902_v19  ;;  %v13326_v19 = vld [vmem:[#allocation13 + $0x1224] ss:$8 sps:$4 sm:$0xff]  }
0x13d4   :  { %v7918_v36 = vsel %vm5656_vm3, %v7903_v35, 0  ;;  %v13324_v35 = vld [vmem:[#allocation13 + $0x1220] ss:$8 sps:$4 sm:$0xff]  }
0x13d5   :  { %11432 = vmatprep.subr.msk.bf16.mxu0 %vm5656_vm3, %v7904_v29  ;;  %11506 = vmatprep.subr.msk.bf16.mxu1 %vm5656_vm3, %v7904_v29 }
0x13d6   :  { %7924 = vmatpush1.bf16.msra.mxu0 %v7918_v36  ;;  %8508 = vmatpush1.bf16.msra.mxu1 %v7918_v36 }
0x13d7   :  { %11437 = vmatprep.subr.msk.bf16.mxu0 %vm5656_vm3, %v7904_v29  ;;  %v13329_v29 = vld [vmem:[#allocation13 + $0x1234] ss:$8 sps:$4 sm:$0xff]  }
0x13d9   :  { %11433 = vmatmul.mubr.msk.bf16.vlgmr.msra.gmra.mrb[56].mxu0 %vm5652_vm4, %v13267_v37  ;;  %11507 = vmatmul.mubr.msk.bf16.vlgmr.msra.gmra.mrb[100].mxu1 %vm5652_vm4, %v13269_v28  ;;  %v13332_v37 = vld [vmem:[#allocation13 + $0x1244] ss:$8 sps:$4 sm:$0xff]   ;;  %v13330_v28 = vld [vmem:[#allocation13 + $0x1240] ss:$8 sps:$4 sm:$0xff]  }
0x13da   :  { %8013 = vmatpush1.bf16.msra.mxu0 %v7918_v36  ;;  %8044 = vmatprep.mubr.bf16.mxu0 %v14002_v15  ;;  %v13327_v36 = vld [vmem:[#allocation13 + $0x1230] ss:$8 sps:$4 sm:$0xff]  }
0x13db   :  { %8250 = vmatprep.subr.bf16.mxu0 %v13272_v39  ;;  %8867 = vmatprep.mubr.bf16.mxu1 %v14002_v15  ;;  %v13335_v39 = vld [vmem:[#allocation13 + $0x1254] ss:$8 sps:$4 sm:$0xff]  }
0x13e1   :  { %11438 = vmatmul.mubr.msk.bf16.vlgmr.msra.gmra.mrb[60].mxu0 %vm5652_vm4, %v13268_v40  ;;  %v13333_v40 = vld [vmem:[#allocation13 + $0x1250] ss:$8 sps:$4 sm:$0xff]  }
0x13e2   :  { %8251 = vmatpush1.bf16.msra.mxu0 %v13270_v58  ;;  %v13338_v58 = vld [vmem:[#allocation13 + $0x1264] ss:$8 sps:$4 sm:$0xff]  }
0x13e3   :  { %8252 = vmatprep.subr.bf16.mxu0 %v13275_v1  ;;  %v13336_v1 = vld [vmem:[#allocation13 + $0x1260] ss:$8 sps:$4 sm:$0xff]  }
0x13e6   :  { %8253 = vmatpush1.bf16.msra.mxu0 %v13273_v41  ;;  %v13341_v41 = vld [vmem:[#allocation13 + $0x1274] ss:$8 sps:$4 sm:$0xff]  }
0x13e7   :  { %8254 = vmatprep.subr.bf16.mxu0 %v13278_v54  ;;  %v13339_v54 = vld [vmem:[#allocation13 + $0x1270] ss:$8 sps:$4 sm:$0xff]  }
0x13ea   :  { %8255 = vmatpush1.bf16.msra.mxu0 %v13276_v32  ;;  %v13344_v32 = vld [vmem:[#allocation13 + $0x1284] ss:$8 sps:$4 sm:$0xff]  }
0x13eb   :  { %8256 = vmatprep.subr.bf16.mxu0 %v13281_v2  ;;  %v13342_v2 = vld [vmem:[#allocation13 + $0x1280] ss:$8 sps:$4 sm:$0xff]  }
0x13ee   :  { %8257 = vmatpush1.bf16.msra.mxu0 %v13279_v56  ;;  %v13347_v56 = vld [vmem:[#allocation13 + $0x1294] ss:$8 sps:$4 sm:$0xff]  }
0x13ef   :  { %8258 = vmatprep.subr.bf16.mxu0 %v13284_v63  ;;  %v13345_v63 = vld [vmem:[#allocation13 + $0x1290] ss:$8 sps:$4 sm:$0xff]  }
0x13f2   :  { %8259 = vmatpush1.bf16.msra.mxu0 %v13282_v26  ;;  %v13350_v26 = vld [vmem:[#allocation13 + $0x12a4] ss:$8 sps:$4 sm:$0xff]  }
0x13f3   :  { %8260 = vmatprep.subr.bf16.mxu0 %v13287_v27  ;;  %v13348_v27 = vld [vmem:[#allocation13 + $0x12a0] ss:$8 sps:$4 sm:$0xff]  }
0x13f6   :  { %8261 = vmatpush1.bf16.msra.mxu0 %v13285_v30  ;;  %v13353_v30 = vld [vmem:[#allocation13 + $0x12b4] ss:$8 sps:$4 sm:$0xff]  }
0x13f7   :  { %8262 = vmatprep.subr.bf16.mxu0 %v13290_v59  ;;  %v13351_v59 = vld [vmem:[#allocation13 + $0x12b0] ss:$8 sps:$4 sm:$0xff]  }
0x13fa   :  { %8263 = vmatpush1.bf16.msra.mxu0 %v13288_v61  ;;  %v13356_v61 = vld [vmem:[#allocation13 + $0x12c4] ss:$8 sps:$4 sm:$0xff]  }
0x13fb   :  { %8264 = vmatprep.subr.bf16.mxu0 %v13293_v62  ;;  %v13354_v62 = vld [vmem:[#allocation13 + $0x12c0] ss:$8 sps:$4 sm:$0xff]  }
0x13fe   :  { %8265 = vmatpush1.bf16.msra.mxu0 %v13291_v0  ;;  %v13359_v0 = vld [vmem:[#allocation13 + $0x12d4] ss:$8 sps:$4 sm:$0xff]  }
0x13ff   :  { %8266 = vmatprep.subr.bf16.mxu0 %v13296_v33  ;;  %v13357_v33 = vld [vmem:[#allocation13 + $0x12d0] ss:$8 sps:$4 sm:$0xff]  }
0x1402   :  { %8267 = vmatpush1.bf16.msra.mxu0 %v13294_v7  ;;  %v13362_v7 = vld [vmem:[#allocation13 + $0x12e4] ss:$8 sps:$4 sm:$0xff]  }
0x1403   :  { %8268 = vmatprep.subr.bf16.mxu0 %v13299_v38  ;;  %v13360_v38 = vld [vmem:[#allocation13 + $0x12e0] ss:$8 sps:$4 sm:$0xff]  }
0x1406   :  { %8269 = vmatpush1.bf16.msra.mxu0 %v13297_v42  ;;  %v13365_v42 = vld [vmem:[#allocation13 + $0x12f4] ss:$8 sps:$4 sm:$0xff]  }
0x1407   :  { %8270 = vmatprep.subr.bf16.mxu0 %v13302_v8  ;;  %v13363_v8 = vld [vmem:[#allocation13 + $0x12f0] ss:$8 sps:$4 sm:$0xff]  }
0x140a   :  { %8271 = vmatpush1.bf16.msra.mxu0 %v13300_v16  ;;  %v13368_v16 = vld [vmem:[#allocation13 + $0x1404] ss:$8 sps:$4 sm:$0xff]  }
0x140b   :  { %8272 = vmatprep.subr.bf16.mxu0 %v13305_v4  ;;  %v13366_v4 = vld [vmem:[#allocation13 + $0x1400] ss:$8 sps:$4 sm:$0xff]  }
0x140e   :  { %8273 = vmatpush1.bf16.msra.mxu0 %v13303_v47  ;;  %v13371_v47 = vld [vmem:[#allocation13 + $0x1414] ss:$8 sps:$4 sm:$0xff]  }
0x140f   :  { %8274 = vmatprep.subr.bf16.mxu0 %v13308_v43  ;;  %v13369_v43 = vld [vmem:[#allocation13 + $0x1410] ss:$8 sps:$4 sm:$0xff]  }
0x1412   :  { %8275 = vmatpush1.bf16.msra.mxu0 %v13306_v44  ;;  %v13374_v44 = vld [vmem:[#allocation13 + $0x1424] ss:$8 sps:$4 sm:$0xff]  }
0x1413   :  { %8276 = vmatprep.subr.bf16.mxu0 %v13311_v48  ;;  %v13372_v48 = vld [vmem:[#allocation13 + $0x1420] ss:$8 sps:$4 sm:$0xff]  }
0x1416   :  { %8277 = vmatpush1.bf16.msra.mxu0 %v13309_v6  ;;  %v13377_v6 = vld [vmem:[#allocation13 + $0x1434] ss:$8 sps:$4 sm:$0xff]  }
0x1417   :  { %8278 = vmatprep.subr.bf16.mxu0 %v13314_v9  ;;  %v13380_v9 = vld [vmem:[#allocation13 + $0x1444] ss:$8 sps:$4 sm:$0xff]  }
0x141a   :  { %8279 = vmatpush1.bf16.msra.mxu0 %v13312_v13  ;;  %v13375_v13 = vld [vmem:[#allocation13 + $0x1430] ss:$8 sps:$4 sm:$0xff]  }
0x141b   :  { %8280 = vmatprep.subr.bf16.mxu0 %v13317_v12  ;;  %v13378_v12 = vld [vmem:[#allocation13 + $0x1440] ss:$8 sps:$4 sm:$0xff]  }
0x141e   :  { %8281 = vmatpush1.bf16.msra.mxu0 %v13315_v11  ;;  %v13383_v11 = vld [vmem:[#allocation13 + $0x1454] ss:$8 sps:$4 sm:$0xff]  }
0x141f   :  { %8453 = vmatprep.subr.bf16.mxu0 %v13320_v14  ;;  %v13381_v14 = vld [vmem:[#allocation13 + $0x1450] ss:$8 sps:$4 sm:$0xff]  }
0x14ac   :  { %v14659_v45 = vpop.f32.mrb[56].mxu0  ;;  %v14665_v57 = vpop.f32.mrb[100].mxu1 }
0x14ad   :  { %v7959_v46 = vpop.f32.mrb[57].mxu0  ;;  %v14667_v60 = vpop.f32.mrb[101].mxu1 }
0x14ae   :  { %v14661_v50 = vpop.f32.mrb[58].mxu0  ;;  %v14669_v3 = vpop.f32.mrb[102].mxu1 }
0x14af   :  { %v7966_v52 = vpack.c.bf16 %v14661_v50, %v14659_v45  ;;  %v7963_v53 = vpop.f32.mrb[59].mxu0  ;;  %v8550_v5 = vpack.c.bf16 %v14669_v3, %v14665_v57  ;;  %v14673_v20 = vpop.f32.mrb[103].mxu1  ;;  %v13386_v45 = vld [vmem:[#allocation13 + $0x1464] ss:$8 sps:$4 sm:$0xff]   ;;  %v13389_v50 = vld [vmem:[#allocation13 + $0x1474] ss:$8 sps:$4 sm:$0xff]  }
0x14b0   :  { %v7967_v55 = vpack.c.bf16 %v7963_v53, %v7959_v46  ;;  %v8551_v24 = vpack.c.bf16 %v14673_v20, %v14667_v60  ;;  %v13384_v46 = vld [vmem:[#allocation13 + $0x1460] ss:$8 sps:$4 sm:$0xff]   ;;  %v13392_v53 = vld [vmem:[#allocation13 + $0x1484] ss:$8 sps:$4 sm:$0xff]   ;;  %v13395_v60 = vld [vmem:[#allocation13 + $0x1494] ss:$8 sps:$4 sm:$0xff]  }
0x14b1   :  { %v13393_v20 = vld [vmem:[#allocation13 + $0x1490] ss:$8 sps:$4 sm:$0xff]  }
0x14b4   :  { %v8046_v21 = vpop.f32.mrb[60].mxu0 }
0x14b5   :  { %v8048_v34 = vpop.f32.mrb[61].mxu0 }
0x14b6   :  { %v8050_v25 = vpop.f32.mrb[62].mxu0 }
0x14b7   :  { %v8055_v18 = vpack.c.bf16 %v8050_v25, %v8046_v21  ;;  %v8052_v10 = vpop.f32.mrb[63].mxu0  ;;  %v13398_v21 = vld [vmem:[#allocation13 + $0x14a4] ss:$8 sps:$4 sm:$0xff]   ;;  %v13399_v25 = vld [vmem:[#allocation13 + $0x14b0] ss:$8 sps:$4 sm:$0xff]  }
0x14b8   :  { %v8056_v17 = vpack.c.bf16 %v8052_v10, %v8048_v34  ;;  %v13401_v34 = vld [vmem:[#allocation13 + $0x14b4] ss:$8 sps:$4 sm:$0xff]   ;;  %v13402_v10 = vld [vmem:[#allocation13 + $0x14c0] ss:$8 sps:$4 sm:$0xff]  }
0x14ba   :  { %8282 = vmatprep.mubr.bf16.mxu0 %v8056_v17  ;;  %v13407_v17 = vld [vmem:[#allocation13 + $0x14d4] ss:$8 sps:$4 sm:$0xff]  }
0x14bb   :  { %8283 = vmatmul.mubr.bf16.vlgmr.msra.gmra.mrb[64].mxu0 %v8055_v18  ;;  %v13404_v18 = vld [vmem:[#allocation13 + $0x14c4] ss:$8 sps:$4 sm:$0xff]  }
0x14bc   :  { %8454 = vmatpush1.bf16.msra.mxu0 %v13318_v23  ;;  %8485 = vmatprep.mubr.bf16.mxu0 %v7967_v55  ;;  %v13390_v55 = vld [vmem:[#allocation13 + $0x1480] ss:$8 sps:$4 sm:$0xff]   ;;  %v13405_v23 = vld [vmem:[#allocation13 + $0x14d0] ss:$8 sps:$4 sm:$0xff]  }
0x14bd   :  { %8455 = vmatprep.subr.bf16.mxu0 %v13323_v31  ;;  %v13410_v31 = vld [vmem:[#allocation13 + $0x14e4] ss:$8 sps:$4 sm:$0xff]  }
0x14c0   :  { %8456 = vmatpush1.bf16.msra.mxu0 %v13321_v22  ;;  %v13408_v22 = vld [vmem:[#allocation13 + $0x14e0] ss:$8 sps:$4 sm:$0xff]  }
0x14c1   :  { %8457 = vmatprep.subr.bf16.mxu0 %v13326_v19  ;;  %v13413_v19 = vld [vmem:[#allocation13 + $0x14f4] ss:$8 sps:$4 sm:$0xff]  }
0x14c4   :  { %8458 = vmatpush1.bf16.msra.mxu0 %v13324_v35  ;;  %v13411_v35 = vld [vmem:[#allocation13 + $0x14f0] ss:$8 sps:$4 sm:$0xff]  }
0x14c5   :  { %8459 = vmatprep.subr.bf16.mxu0 %v13329_v29  ;;  %v7906_v29 = vld [vmem:[#allocation19 + $0x10] sm:$0x3] }
0x14c8   :  { %8460 = vmatpush1.bf16.msra.mxu0 %v13327_v36  ;;  %v8796_v36 = vrot.slane %v7906_v29, %v14363_v51 }
0x14c9   :  { %8461 = vmatprep.subr.bf16.mxu0 %v13332_v37  ;;  %v8800_v37 = vrot.slane %v7906_v29, %v14360_v49 }
0x14cc   :  { %8462 = vmatpush1.bf16.msra.mxu0 %v13330_v28 }
0x14cd   :  { %8463 = vmatprep.subr.bf16.mxu0 %v13335_v39 }
0x14d0   :  { %8464 = vmatpush1.bf16.msra.mxu0 %v13333_v40 }
0x14d1   :  { %8465 = vmatprep.subr.bf16.mxu0 %v13338_v58 }
0x14d4   :  { %8466 = vmatpush1.bf16.msra.mxu0 %v13336_v1 }
0x14d5   :  { %8467 = vmatprep.subr.bf16.mxu0 %v13341_v41 }
0x14d8   :  { %8468 = vmatpush1.bf16.msra.mxu0 %v13339_v54 }
0x14d9   :  { %8469 = vmatprep.subr.bf16.mxu0 %v13344_v32 }
0x14dc   :  { %8470 = vmatpush1.bf16.msra.mxu0 %v13342_v2 }
0x14dd   :  { %8471 = vmatprep.subr.bf16.mxu0 %v13347_v56 }
0x14e0   :  { %8472 = vmatpush1.bf16.msra.mxu0 %v13345_v63 }
0x14e1   :  { %8473 = vmatprep.subr.bf16.mxu0 %v13350_v26  ;;  %v13414_v26 = vld [vmem:[%s14980_s7] sm:$0xff]  }
0x14e4   :  { %8474 = vmatpush1.bf16.msra.mxu0 %v13348_v27  ;;  %v13420_v27 = vld [vmem:[#allocation13 + $0x1604] ss:$8 sps:$4 sm:$0xff]  }
0x14e5   :  { %8475 = vmatprep.subr.bf16.mxu0 %v13353_v30  ;;  %v13415_v30 = vld [vmem:[%s14980_s7 + $0x8] sm:$0xff]  }
0x14e8   :  { %8476 = vmatpush1.bf16.msra.mxu0 %v13351_v59  ;;  %v13416_v59 = vld [vmem:[%s14980_s7 + $0x10] sm:$0xff]  }
0x14e9   :  { %8477 = vmatprep.subr.bf16.mxu0 %v13356_v61  ;;  %v13418_v61 = vld [vmem:[#allocation13 + $0x1600] ss:$8 sps:$4 sm:$0xff]  }
0x14ec   :  { %8478 = vmatpush1.bf16.msra.mxu0 %v13354_v62  ;;  %v13423_v62 = vld [vmem:[#allocation13 + $0x1614] ss:$8 sps:$4 sm:$0xff]  }
0x14ed   :  { %8479 = vmatprep.subr.bf16.mxu0 %v13359_v0  ;;  %v13421_v0 = vld [vmem:[#allocation13 + $0x1610] ss:$8 sps:$4 sm:$0xff]  }
0x14f0   :  { %8480 = vmatpush1.bf16.msra.mxu0 %v13357_v33  ;;  %v13426_v33 = vld [vmem:[#allocation13 + $0x1624] ss:$8 sps:$4 sm:$0xff]  }
0x14f1   :  { %8481 = vmatprep.subr.bf16.mxu0 %v13362_v7  ;;  %v13417_v7 = vld [vmem:[%s14980_s7 + $0x18] sm:$0xff]  }
0x14f4   :  { %8482 = vmatpush1.bf16.msra.mxu0 %v13360_v38  ;;  %v13424_v38 = vld [vmem:[#allocation13 + $0x1620] ss:$8 sps:$4 sm:$0xff]  }
0x14f5   :  { %8483 = vmatprep.subr.bf16.mxu0 %v13365_v42  ;;  %v13429_v42 = vld [vmem:[#allocation13 + $0x1634] ss:$8 sps:$4 sm:$0xff]  }
0x14f8   :  { %8484 = vmatpush1.bf16.msra.mxu0 %v13363_v8  ;;  %v13427_v8 = vld [vmem:[#allocation13 + $0x1630] ss:$8 sps:$4 sm:$0xff]  }
0x14f9   :  { %8745 = vmatprep.subr.bf16.mxu0 %v13368_v16  ;;  %v13432_v16 = vld [vmem:[#allocation13 + $0x1644] ss:$8 sps:$4 sm:$0xff]  }
0x14fb   :  { %8486 = vmatmul.mubr.bf16.vlgmr.msra.gmra.mrb[64].mxu0 %v7966_v52  ;;  %v13387_v52 = vld [vmem:[#allocation13 + $0x1470] ss:$8 sps:$4 sm:$0xff]  }
0x14fc   :  { %8746 = vmatpush1.bf16.msra.mxu0 %v13366_v4  ;;  %8777 = vmatprep.mubr.bf16.mxu0 %v8551_v24  ;;  %v13396_v24 = vld [vmem:[#allocation13 + $0x14a0] ss:$8 sps:$4 sm:$0xff]  }
0x14fd   :  { %8747 = vmatprep.subr.bf16.mxu0 %v13371_v47  ;;  %v13430_v4 = vld [vmem:[#allocation13 + $0x1640] ss:$8 sps:$4 sm:$0xff]   ;;  %v13435_v47 = vld [vmem:[#allocation13 + $0x1654] ss:$8 sps:$4 sm:$0xff]  }
0x1500   :  { %8748 = vmatpush1.bf16.msra.mxu0 %v13369_v43  ;;  %v13433_v43 = vld [vmem:[#allocation13 + $0x1650] ss:$8 sps:$4 sm:$0xff]  }
0x1501   :  { %8749 = vmatprep.subr.bf16.mxu0 %v13374_v44  ;;  %v13438_v44 = vld [vmem:[#allocation13 + $0x1664] ss:$8 sps:$4 sm:$0xff]  }
0x1504   :  { %8750 = vmatpush1.bf16.msra.mxu0 %v13372_v48  ;;  %v13436_v48 = vld [vmem:[#allocation13 + $0x1660] ss:$8 sps:$4 sm:$0xff]  }
0x1505   :  { %8751 = vmatprep.subr.bf16.mxu0 %v13377_v6  ;;  %v13441_v6 = vld [vmem:[#allocation13 + $0x1674] ss:$8 sps:$4 sm:$0xff]  }
0x1508   :  { %8752 = vmatpush1.bf16.msra.mxu0 %v13375_v13  ;;  %v13439_v13 = vld [vmem:[#allocation13 + $0x1670] ss:$8 sps:$4 sm:$0xff]  }
0x1509   :  { %8753 = vmatprep.subr.bf16.mxu0 %v13380_v9  ;;  %v13444_v9 = vld [vmem:[#allocation13 + $0x1684] ss:$8 sps:$4 sm:$0xff]  }
0x150c   :  { %8754 = vmatpush1.bf16.msra.mxu0 %v13378_v12  ;;  %v13442_v12 = vld [vmem:[#allocation13 + $0x1680] ss:$8 sps:$4 sm:$0xff]  }
0x150d   :  { %8755 = vmatprep.subr.bf16.mxu0 %v13383_v11  ;;  %v13447_v11 = vld [vmem:[#allocation13 + $0x1694] ss:$8 sps:$4 sm:$0xff]  }
0x1510   :  { %8756 = vmatpush1.bf16.msra.mxu0 %v13381_v14  ;;  %v13445_v14 = vld [vmem:[#allocation13 + $0x1690] ss:$8 sps:$4 sm:$0xff]  }
0x1511   :  { %8757 = vmatprep.subr.bf16.mxu0 %v13386_v45  ;;  %v13450_v45 = vld [vmem:[#allocation13 + $0x16a4] ss:$8 sps:$4 sm:$0xff]  }
0x1514   :  { %8758 = vmatpush1.bf16.msra.mxu0 %v13384_v46  ;;  %v13448_v46 = vld [vmem:[#allocation13 + $0x16a0] ss:$8 sps:$4 sm:$0xff]  }
0x1515   :  { %8759 = vmatprep.subr.bf16.mxu0 %v13389_v50  ;;  %v13453_v50 = vld [vmem:[#allocation13 + $0x16b4] ss:$8 sps:$4 sm:$0xff]  }
0x1518   :  { %8760 = vmatpush1.bf16.msra.mxu0 %v13387_v52  ;;  %v13451_v52 = vld [vmem:[#allocation13 + $0x16b0] ss:$8 sps:$4 sm:$0xff]  }
0x1519   :  { %8761 = vmatprep.subr.bf16.mxu0 %v13392_v53  ;;  %v13454_v53 = vld [vmem:[#allocation13 + $0x16c0] ss:$8 sps:$4 sm:$0xff]  }
0x151c   :  { %8762 = vmatpush1.bf16.msra.mxu0 %v13390_v55  ;;  %v13456_v55 = vld [vmem:[#allocation13 + $0x16c4] ss:$8 sps:$4 sm:$0xff]  }
0x151d   :  { %8763 = vmatprep.subr.bf16.mxu0 %v13395_v60  ;;  %v13459_v60 = vld [vmem:[#allocation13 + $0x16d4] ss:$8 sps:$4 sm:$0xff]  }
0x1520   :  { %8764 = vmatpush1.bf16.msra.mxu0 %v13393_v20  ;;  %v13457_v20 = vld [vmem:[#allocation13 + $0x16d0] ss:$8 sps:$4 sm:$0xff]  }
0x1521   :  { %8765 = vmatprep.subr.bf16.mxu0 %v13398_v21  ;;  %v13460_v21 = vld [vmem:[#allocation13 + $0x16e0] ss:$8 sps:$4 sm:$0xff]  }
0x1524   :  { %8766 = vmatpush1.bf16.msra.mxu0 %v13396_v24  ;;  %v13462_v24 = vld [vmem:[#allocation13 + $0x16e4] ss:$8 sps:$4 sm:$0xff]  }
0x1525   :  { %8767 = vmatprep.subr.bf16.mxu0 %v13401_v34  ;;  %v13465_v34 = vld [vmem:[#allocation13 + $0x16f4] ss:$8 sps:$4 sm:$0xff]  }
0x1528   :  { %8768 = vmatpush1.bf16.msra.mxu0 %v13399_v25  ;;  %v13463_v25 = vld [vmem:[#allocation13 + $0x16f0] ss:$8 sps:$4 sm:$0xff]  }
0x1529   :  { %8769 = vmatprep.subr.bf16.mxu0 %v13404_v18  ;;  %v13468_v18 = vld [vmem:[#allocation13 + $0x1504] ss:$8 sps:$4 sm:$0xff]  }
0x152c   :  { %8770 = vmatpush1.bf16.msra.mxu0 %v13402_v10 }
0x152d   :  { %8771 = vmatprep.subr.bf16.mxu0 %v13407_v17 }
0x1530   :  { %8772 = vmatpush1.bf16.msra.mxu0 %v13405_v23 }
0x1531   :  { %8773 = vmatprep.subr.bf16.mxu0 %v13410_v31 }
0x1534   :  { %8774 = vmatpush1.bf16.msra.mxu0 %v13408_v22 }
0x1535   :  { %8775 = vmatprep.subr.bf16.mxu0 %v13413_v19 }
0x1538   :  { %8776 = vmatpush1.bf16.msra.mxu0 %v13411_v35 }
0x153b   :  { %8778 = vmatmul.mubr.bf16.vlgmr.msra.gmra.mrb[64].mxu0 %v8550_v5 }
0x153c   :  { %9858 = vmatprep.mubr.bf16.mxu0 %v14002_v15 }
0x160e   :  { %v8779_v28 = vpop.f32.mrb[64].mxu0 }
0x160f   :  { %v8803_v39 = vadd.f32 %v8796_v36, %v8779_v28  ;;  %v8781_v40 = vpop.f32.mrb[65].mxu0 }
0x1610   :  { %v8804_v58 = vadd.f32 %v8800_v37, %v8781_v40  ;;  %v8783_v1 = vpop.f32.mrb[66].mxu0 }
0x1611   :  { %v8805_v41 = vadd.f32 %v8796_v36, %v8783_v1  ;;  %v8785_v54 = vpop.f32.mrb[67].mxu0  ;;  %v8807_v2 = vmax.f32 %v8803_v39, 0.0 }
0x1612   :  { %v8806_v32 = vadd.f32 %v8800_v37, %v8785_v54  ;;  %v8808_v63 = vmax.f32 %v8804_v58, 0.0 }
0x1613   :  { %v8809_v56 = vmax.f32 %v8805_v41, 0.0 }
0x1614   :  { %v8810_v57 = vmax.f32 %v8806_v32, 0.0 }
0x1615   :  { %v14689_v3 = vpack.c.bf16 %v8809_v56, %v8807_v2  ;;  %v13466_v2 = vld [vmem:[#allocation13 + $0x1500] ss:$8 sps:$4 sm:$0xff]   ;;  %v13471_v56 = vld [vmem:[#allocation13 + $0x1514] ss:$8 sps:$4 sm:$0xff]  }
0x1616   :  { %v14691_v5 = vpack.c.bf16 %v8810_v57, %v8808_v63  ;;  %v13469_v57 = vld [vmem:[#allocation13 + $0x1510] ss:$8 sps:$4 sm:$0xff]  }
0x1618   :  { %8835 = vmatprep.subr.bf16.mxu1 %v14691_v5 }
0x1619   :  { %8836 = vmatpush1.bf16.msra.mxu1 %v14689_v3 }
0x161a   :  { %8946 = vmatprep.subr.bf16.mxu1 %v14691_v5 }
0x161c   :  { %11542 = vmatmul.mubr.msk.bf16.vlgmr.msra.gmra.mrb[104].mxu1 %vm3707_vm2, %v13414_v26 }
0x161d   :  { %8947 = vmatpush1.bf16.msra.mxu1 %v14689_v3  ;;  %8877 = vmatprep.mubr.bf16.mxu1 %v14002_v15 }
0x161e   :  { %9196 = vmatprep.subr.bf16.mxu1 %v13420_v27  ;;  %v13474_v27 = vld [vmem:[#allocation13 + $0x1524] ss:$8 sps:$4 sm:$0xff]  }
0x1624   :  { %11543 = vmatmul.mubr.msk.bf16.gmra.mrb[108].mxu1 %vm3707_vm2, %v13415_v30 }
0x1625   :  { %8978 = vmatprep.mubr.bf16.mxu1 %v14002_v15 }
0x162c   :  { %11550 = vmatmul.mubr.msk.bf16.vlgmr.msra.gmra.mrb[112].mxu1 %vm3707_vm2, %v13416_v59 }
0x162d   :  { %8988 = vmatprep.mubr.bf16.mxu1 %v14002_v15  ;;  %9197 = vmatpush1.bf16.msra.mxu1 %v13418_v61 }
0x162e   :  { %9198 = vmatprep.subr.bf16.mxu1 %v13423_v62 }
0x1631   :  { %9199 = vmatpush1.bf16.msra.mxu1 %v13421_v0  ;;  %v13472_v0 = vld [vmem:[#allocation13 + $0x1520] ss:$8 sps:$4 sm:$0xff]  }
0x1632   :  { %9200 = vmatprep.subr.bf16.mxu1 %v13426_v33  ;;  %v13477_v33 = vld [vmem:[#allocation13 + $0x1534] ss:$8 sps:$4 sm:$0xff]  }
0x1634   :  { %11551 = vmatmul.mubr.msk.bf16.gmra.mrb[116].mxu1 %vm3707_vm2, %v13417_v7  ;;  %v13475_v7 = vld [vmem:[#allocation13 + $0x1530] ss:$8 sps:$4 sm:$0xff]  }
0x1635   :  { %9201 = vmatpush1.bf16.msra.mxu1 %v13424_v38  ;;  %v13480_v38 = vld [vmem:[#allocation13 + $0x1544] ss:$8 sps:$4 sm:$0xff]  }
0x1636   :  { %9202 = vmatprep.subr.bf16.mxu1 %v13429_v42  ;;  %v13478_v42 = vld [vmem:[#allocation13 + $0x1540] ss:$8 sps:$4 sm:$0xff]  }
0x1639   :  { %9203 = vmatpush1.bf16.msra.mxu1 %v13427_v8  ;;  %v13483_v8 = vld [vmem:[#allocation13 + $0x1554] ss:$8 sps:$4 sm:$0xff]  }
0x163a   :  { %9204 = vmatprep.subr.bf16.mxu1 %v13432_v16  ;;  %v13481_v16 = vld [vmem:[#allocation13 + $0x1550] ss:$8 sps:$4 sm:$0xff]  }
0x163d   :  { %9205 = vmatpush1.bf16.msra.mxu1 %v13430_v4  ;;  %v13486_v4 = vld [vmem:[#allocation13 + $0x1564] ss:$8 sps:$4 sm:$0xff]  }
0x163e   :  { %9206 = vmatprep.subr.bf16.mxu1 %v13435_v47  ;;  %v13484_v47 = vld [vmem:[#allocation13 + $0x1560] ss:$8 sps:$4 sm:$0xff]  }
0x1641   :  { %9207 = vmatpush1.bf16.msra.mxu1 %v13433_v43  ;;  %v13489_v43 = vld [vmem:[#allocation13 + $0x1574] ss:$8 sps:$4 sm:$0xff]  }
0x1642   :  { %9208 = vmatprep.subr.bf16.mxu1 %v13438_v44  ;;  %v13487_v44 = vld [vmem:[#allocation13 + $0x1570] ss:$8 sps:$4 sm:$0xff]  }
0x1645   :  { %9209 = vmatpush1.bf16.msra.mxu1 %v13436_v48  ;;  %v13492_v48 = vld [vmem:[#allocation13 + $0x1584] ss:$8 sps:$4 sm:$0xff]  }
0x1646   :  { %9210 = vmatprep.subr.bf16.mxu1 %v13441_v6  ;;  %v13490_v6 = vld [vmem:[#allocation13 + $0x1580] ss:$8 sps:$4 sm:$0xff]  }
0x1649   :  { %9211 = vmatpush1.bf16.msra.mxu1 %v13439_v13  ;;  %v13495_v13 = vld [vmem:[#allocation13 + $0x1594] ss:$8 sps:$4 sm:$0xff]  }
0x164a   :  { %9212 = vmatprep.subr.bf16.mxu1 %v13444_v9  ;;  %v13493_v9 = vld [vmem:[#allocation13 + $0x1590] ss:$8 sps:$4 sm:$0xff]  }
0x164d   :  { %9213 = vmatpush1.bf16.msra.mxu1 %v13442_v12  ;;  %v13498_v12 = vld [vmem:[#allocation13 + $0x15a4] ss:$8 sps:$4 sm:$0xff]  }
0x164e   :  { %9214 = vmatprep.subr.bf16.mxu1 %v13447_v11  ;;  %v13496_v11 = vld [vmem:[#allocation13 + $0x15a0] ss:$8 sps:$4 sm:$0xff]  }
0x1651   :  { %9215 = vmatpush1.bf16.msra.mxu1 %v13445_v14  ;;  %v13501_v14 = vld [vmem:[#allocation13 + $0x15b4] ss:$8 sps:$4 sm:$0xff]  }
0x1652   :  { %9216 = vmatprep.subr.bf16.mxu1 %v13450_v45  ;;  %v13499_v45 = vld [vmem:[#allocation13 + $0x15b0] ss:$8 sps:$4 sm:$0xff]  }
0x1655   :  { %9217 = vmatpush1.bf16.msra.mxu1 %v13448_v46  ;;  %v13504_v46 = vld [vmem:[#allocation13 + $0x15c4] ss:$8 sps:$4 sm:$0xff]  }
0x1656   :  { %9218 = vmatprep.subr.bf16.mxu1 %v13453_v50  ;;  %v13502_v50 = vld [vmem:[#allocation13 + $0x15c0] ss:$8 sps:$4 sm:$0xff]  }
0x1659   :  { %9219 = vmatpush1.bf16.msra.mxu1 %v13451_v52  ;;  %v13507_v52 = vld [vmem:[#allocation13 + $0x15d4] ss:$8 sps:$4 sm:$0xff]  }
0x165a   :  { %9220 = vmatprep.subr.bf16.mxu1 %v13456_v55  ;;  %v13510_v55 = vld [vmem:[#allocation13 + $0x15e4] ss:$8 sps:$4 sm:$0xff]  }
0x165d   :  { %9221 = vmatpush1.bf16.msra.mxu1 %v13454_v53  ;;  %v13505_v53 = vld [vmem:[#allocation13 + $0x15d0] ss:$8 sps:$4 sm:$0xff]  }
0x165e   :  { %9222 = vmatprep.subr.bf16.mxu1 %v13459_v60  ;;  %v13508_v60 = vld [vmem:[#allocation13 + $0x15e0] ss:$8 sps:$4 sm:$0xff]  }
0x1661   :  { %9223 = vmatpush1.bf16.msra.mxu1 %v13457_v20  ;;  %v13513_v20 = vld [vmem:[#allocation13 + $0x15f4] ss:$8 sps:$4 sm:$0xff]  }
0x1662   :  { %9224 = vmatprep.subr.bf16.mxu1 %v13462_v24  ;;  %v13518_v24 = vld [vmem:[#allocation13 + $0x1704] ss:$8 sps:$4 sm:$0xff]  }
0x1665   :  { %9225 = vmatpush1.bf16.msra.mxu1 %v13460_v21  ;;  %v13511_v21 = vld [vmem:[#allocation13 + $0x15f0] ss:$8 sps:$4 sm:$0xff]  }
0x1666   :  { %9226 = vmatprep.subr.bf16.mxu1 %v13465_v34  ;;  %v13516_v34 = vld [vmem:[#allocation13 + $0x1700] ss:$8 sps:$4 sm:$0xff]  }
0x1669   :  { %9227 = vmatpush1.bf16.msra.mxu1 %v13463_v25  ;;  %v13521_v25 = vld [vmem:[#allocation13 + $0x1714] ss:$8 sps:$4 sm:$0xff]  }
0x166a   :  { %9409 = vmatprep.subr.bf16.mxu1 %v13468_v18  ;;  %v13519_v18 = vld [vmem:[#allocation13 + $0x1710] ss:$8 sps:$4 sm:$0xff]  }
0x16ef   :  { %v14716_v10 = vpop.f32.mrb[104].mxu1 }
0x16f0   :  { %v8871_v17 = vpop.f32.mrb[105].mxu1 }
0x16f1   :  { %v14718_v23 = vpop.f32.mrb[106].mxu1 }
0x16f2   :  { %v8888_v31 = vpack.c.bf16 %v14718_v23, %v14716_v10  ;;  %v8875_v22 = vpop.f32.mrb[107].mxu1  ;;  %v13515_v10 = vld [vmem:[%s14980_s7 + $0x28] sm:$0xff]  }
0x16f3   :  { %v8889_v19 = vpack.c.bf16 %v8875_v22, %v8871_v17  ;;  %v13522_v17 = vld [vmem:[#allocation13 + $0x1720] ss:$8 sps:$4 sm:$0xff]   ;;  %v13527_v23 = vld [vmem:[#allocation13 + $0x1734] ss:$8 sps:$4 sm:$0xff]   ;;  %v13530_v22 = vld [vmem:[#allocation13 + $0x1744] ss:$8 sps:$4 sm:$0xff]  }
0x16f7   :  { %v14722_v35 = vpop.f32.mrb[108].mxu1 }
0x16f8   :  { %v14724_v29 = vpop.f32.mrb[109].mxu1 }
0x16f9   :  { %v14726_v36 = vpop.f32.mrb[110].mxu1 }
0x16fa   :  { %v8890_v37 = vpack.c.bf16 %v14726_v36, %v14722_v35  ;;  %v14730_v28 = vpop.f32.mrb[111].mxu1  ;;  %v13533_v35 = vld [vmem:[#allocation13 + $0x1754] ss:$8 sps:$4 sm:$0xff]   ;;  %v13536_v36 = vld [vmem:[#allocation13 + $0x1764] ss:$8 sps:$4 sm:$0xff]  }
0x16fb   :  { %v8891_v39 = vpack.c.bf16 %v14730_v28, %v14724_v29  ;;  %v13531_v29 = vld [vmem:[#allocation13 + $0x1750] ss:$8 sps:$4 sm:$0xff]   ;;  %v13539_v28 = vld [vmem:[#allocation13 + $0x1774] ss:$8 sps:$4 sm:$0xff]  }
0x16ff   :  { %v8980_v40 = vpop.f32.mrb[112].mxu1 }
0x1700   :  { %v8982_v58 = vpop.f32.mrb[113].mxu1 }
0x1701   :  { %v8984_v1 = vpop.f32.mrb[114].mxu1 }
0x1702   :  { %v8999_v41 = vpack.c.bf16 %v8984_v1, %v8980_v40  ;;  %v8986_v54 = vpop.f32.mrb[115].mxu1  ;;  %v13542_v40 = vld [vmem:[#allocation13 + $0x1784] ss:$8 sps:$4 sm:$0xff]   ;;  %v13545_v1 = vld [vmem:[#allocation13 + $0x1794] ss:$8 sps:$4 sm:$0xff]  }
0x1703   :  { %v9000_v32 = vpack.c.bf16 %v8986_v54, %v8982_v58  ;;  %v13540_v58 = vld [vmem:[#allocation13 + $0x1780] ss:$8 sps:$4 sm:$0xff]   ;;  %v13548_v54 = vld [vmem:[#allocation13 + $0x17a4] ss:$8 sps:$4 sm:$0xff]  }
0x1705   :  { %9228 = vmatprep.mubr.bf16.mxu1 %v9000_v32  ;;  %v13546_v32 = vld [vmem:[#allocation13 + $0x17a0] ss:$8 sps:$4 sm:$0xff]  }
0x1706   :  { %9229 = vmatmul.mubr.bf16.vlgmr.msra.gmra.mrb[120].mxu1 %v8999_v41  ;;  %v13543_v41 = vld [vmem:[#allocation13 + $0x1790] ss:$8 sps:$4 sm:$0xff]  }
0x1707   :  { %9410 = vmatpush1.bf16.msra.mxu1 %v13466_v2  ;;  %v8990_v63 = vpop.f32.mrb[116].mxu1  ;;  %v13551_v2 = vld [vmem:[#allocation13 + $0x17b4] ss:$8 sps:$4 sm:$0xff]  }
0x1708   :  { %v8992_v26 = vpop.f32.mrb[117].mxu1  ;;  %9411 = vmatprep.subr.bf16.mxu1 %v13471_v56  ;;  %v13549_v56 = vld [vmem:[#allocation13 + $0x17b0] ss:$8 sps:$4 sm:$0xff]  }
0x1709   :  { %v8994_v30 = vpop.f32.mrb[118].mxu1 }
0x170a   :  { %v9001_v59 = vpack.c.bf16 %v8994_v30, %v8990_v63  ;;  %v8996_v61 = vpop.f32.mrb[119].mxu1  ;;  %v13554_v63 = vld [vmem:[#allocation13 + $0x17c4] ss:$8 sps:$4 sm:$0xff]  }
0x170b   :  { %v9002_v62 = vpack.c.bf16 %v8996_v61, %v8992_v26  ;;  %9412 = vmatpush1.bf16.msra.mxu1 %v13469_v57  ;;  %v13552_v57 = vld [vmem:[#allocation13 + $0x17c0] ss:$8 sps:$4 sm:$0xff]   ;;  %v13557_v26 = vld [vmem:[#allocation13 + $0x17d4] ss:$8 sps:$4 sm:$0xff]   ;;  %v13560_v30 = vld [vmem:[#allocation13 + $0x17e4] ss:$8 sps:$4 sm:$0xff]  }
0x170c   :  { %9413 = vmatprep.subr.bf16.mxu1 %v13474_v27  ;;  %v13555_v27 = vld [vmem:[#allocation13 + $0x17d0] ss:$8 sps:$4 sm:$0xff]   ;;  %v13563_v61 = vld [vmem:[#allocation13 + $0x17f4] ss:$8 sps:$4 sm:$0xff]  }
0x170d   :  { %9238 = vmatprep.mubr.bf16.mxu1 %v9002_v62  ;;  %v13561_v62 = vld [vmem:[#allocation13 + $0x17f0] ss:$8 sps:$4 sm:$0xff]  }
0x170e   :  { %9239 = vmatmul.mubr.bf16.gmra.mrb[124].mxu1 %v9001_v59  ;;  %v13558_v59 = vld [vmem:[#allocation13 + $0x17e0] ss:$8 sps:$4 sm:$0xff]  }
0x170f   :  { %9414 = vmatpush1.bf16.msra.mxu1 %v13472_v0  ;;  %9441 = vmatprep.mubr.bf16.mxu1 %v8889_v19  ;;  %v13528_v19 = vld [vmem:[#allocation13 + $0x1740] ss:$8 sps:$4 sm:$0xff]  }
0x1710   :  { %9415 = vmatprep.subr.bf16.mxu1 %v13477_v33 }
0x1713   :  { %9416 = vmatpush1.bf16.msra.mxu1 %v13475_v7 }
0x1714   :  { %9417 = vmatprep.subr.bf16.mxu1 %v13480_v38 }
0x1717   :  { %9418 = vmatpush1.bf16.msra.mxu1 %v13478_v42 }
0x1718   :  { %9419 = vmatprep.subr.bf16.mxu1 %v13483_v8 }
0x171b   :  { %9420 = vmatpush1.bf16.msra.mxu1 %v13481_v16 }
0x171c   :  { %9421 = vmatprep.subr.bf16.mxu1 %v13486_v4 }
0x171f   :  { %9422 = vmatpush1.bf16.msra.mxu1 %v13484_v47 }
0x1720   :  { %9423 = vmatprep.subr.bf16.mxu1 %v13489_v43 }
0x1723   :  { %9424 = vmatpush1.bf16.msra.mxu1 %v13487_v44 }
0x1724   :  { %9425 = vmatprep.subr.bf16.mxu1 %v13492_v48 }
0x1727   :  { %9426 = vmatpush1.bf16.msra.mxu1 %v13490_v6  ;;  %v8814_v6 = vld [vmem:[#allocation19 + $0x12] sm:$0x3] }
0x1728   :  { %9427 = vmatprep.subr.bf16.mxu1 %v13495_v13  ;;  %v9798_v13 = vrot.slane %v8814_v6, %v14363_v51 }
0x172b   :  { %9428 = vmatpush1.bf16.msra.mxu1 %v13493_v9  ;;  %v9802_v9 = vrot.slane %v8814_v6, %v14360_v49  ;;  %v13593_v6 = vld [vmem:[%s14986_s13 + $0x30] sm:$0xff]  }
0x172c   :  { %9429 = vmatprep.subr.bf16.mxu1 %v13498_v12 }
0x172f   :  { %9430 = vmatpush1.bf16.msra.mxu1 %v13496_v11 }
0x1730   :  { %9431 = vmatprep.subr.bf16.mxu1 %v13501_v14 }
0x1733   :  { %9432 = vmatpush1.bf16.msra.mxu1 %v13499_v45 }
0x1734   :  { %9433 = vmatprep.subr.bf16.mxu1 %v13504_v46 }
0x1737   :  { %9434 = vmatpush1.bf16.msra.mxu1 %v13502_v50 }
0x1738   :  { %9435 = vmatprep.subr.bf16.mxu1 %v13507_v52 }
0x173b   :  { %9436 = vmatpush1.bf16.msra.mxu1 %v13505_v53 }
0x173c   :  { %9437 = vmatprep.subr.bf16.mxu1 %v13510_v55 }
0x173f   :  { %9438 = vmatpush1.bf16.msra.mxu1 %v13508_v60 }
0x1740   :  { %9439 = vmatprep.subr.bf16.mxu1 %v13513_v20 }
0x1743   :  { %9440 = vmatpush1.bf16.msra.mxu1 %v13511_v21 }
0x1744   :  { %9483 = vmatprep.subr.bf16.mxu1 %v14691_v5  ;;  %v13514_v5 = vld [vmem:[%s14980_s7 + $0x20] sm:$0xff]  }
0x1746   :  { %9442 = vmatmul.mubr.bf16.vlgmr.msra.gmra.mrb[120].mxu1 %v8888_v31  ;;  %v13525_v31 = vld [vmem:[#allocation13 + $0x1730] ss:$8 sps:$4 sm:$0xff]  }
0x1747   :  { %9451 = vmatprep.mubr.bf16.mxu1 %v8891_v39  ;;  %9484 = vmatpush1.bf16.msra.mxu1 %v14689_v3  ;;  %v13524_v3 = vld [vmem:[#allocation13 + $0x1724] ss:$8 sps:$4 sm:$0xff]   ;;  %v13537_v39 = vld [vmem:[#allocation13 + $0x1770] ss:$8 sps:$4 sm:$0xff]  }
0x1748   :  { %9733 = vmatprep.subr.bf16.mxu1 %v13518_v24 }
0x174e   :  { %9452 = vmatmul.mubr.bf16.gmra.mrb[124].mxu1 %v8890_v37  ;;  %v13534_v37 = vld [vmem:[#allocation13 + $0x1760] ss:$8 sps:$4 sm:$0xff]  }
0x174f   :  { %9515 = vmatprep.mubr.bf16.mxu1 %v14002_v15 }
0x1756   :  { %11622 = vmatmul.mubr.msk.bf16.vlgmr.msra.gmra.mrb[128].mxu1 %vm3707_vm2, %v13514_v5 }
0x1757   :  { %9525 = vmatprep.mubr.bf16.mxu1 %v14002_v15  ;;  %9734 = vmatpush1.bf16.msra.mxu1 %v13516_v34 }
0x1758   :  { %9735 = vmatprep.subr.bf16.mxu1 %v13521_v25 }
0x175b   :  { %9736 = vmatpush1.bf16.msra.mxu1 %v13519_v18 }
0x175c   :  { %9737 = vmatprep.subr.bf16.mxu1 %v13524_v3 }
0x175e   :  { %11623 = vmatmul.mubr.msk.bf16.gmra.mrb[132].mxu1 %vm3707_vm2, %v13515_v10 }
0x175f   :  { %9738 = vmatpush1.bf16.msra.mxu1 %v13522_v17 }
0x1760   :  { %9739 = vmatprep.subr.bf16.mxu1 %v13527_v23 }
0x1763   :  { %9740 = vmatpush1.bf16.msra.mxu1 %v13525_v31 }
0x1764   :  { %9741 = vmatprep.subr.bf16.mxu1 %v13530_v22 }
0x1767   :  { %9742 = vmatpush1.bf16.msra.mxu1 %v13528_v19 }
0x1768   :  { %9743 = vmatprep.subr.bf16.mxu1 %v13533_v35 }
0x176b   :  { %9744 = vmatpush1.bf16.msra.mxu1 %v13531_v29 }
0x176c   :  { %9745 = vmatprep.subr.bf16.mxu1 %v13536_v36  ;;  %v13564_v36 = vld [vmem:[%s14986_s13 + $0xc0] sm:$0xff]  }
0x176f   :  { %9746 = vmatpush1.bf16.msra.mxu1 %v13534_v37  ;;  %v13565_v37 = vld [vmem:[%s14986_s13 + $0x80] sm:$0xff]  }
0x1770   :  { %9747 = vmatprep.subr.bf16.mxu1 %v13539_v28  ;;  %v13566_v28 = vld [vmem:[%s14986_s13 + $0xc8] sm:$0xff]  }
0x1773   :  { %9748 = vmatpush1.bf16.msra.mxu1 %v13537_v39  ;;  %v13626_v39 = vld [vmem:[#allocation2] sm:$0xff]  }
0x1774   :  { %9749 = vmatprep.subr.bf16.mxu1 %v13542_v40  ;;  %v13627_v40 = vld [vmem:[#allocation2 + $0x20] sm:$0xff]  }
0x1777   :  { %9750 = vmatpush1.bf16.msra.mxu1 %v13540_v58  ;;  %v13567_v58 = vld [vmem:[%s14986_s13 + $0x88] sm:$0xff]  }
0x1778   :  { %9751 = vmatprep.subr.bf16.mxu1 %v13545_v1  ;;  %v13568_v1 = vld [vmem:[%s14986_s13 + $0xd0] sm:$0xff]  }
0x177b   :  { %9752 = vmatpush1.bf16.msra.mxu1 %v13543_v41  ;;  %v13569_v41 = vld [vmem:[%s14986_s13 + $0x90] sm:$0xff]  }
0x177c   :  { %9753 = vmatprep.subr.bf16.mxu1 %v13548_v54  ;;  %v13570_v54 = vld [vmem:[%s14986_s13 + $0xd8] sm:$0xff]  }
0x177f   :  { %9754 = vmatpush1.bf16.msra.mxu1 %v13546_v32  ;;  %v13628_v32 = vld [vmem:[#allocation2 + $0x8] sm:$0xff]  }
0x1780   :  { %9755 = vmatprep.subr.bf16.mxu1 %v13551_v2  ;;  %v13629_v2 = vld [vmem:[#allocation2 + $0x28] sm:$0xff]  }
0x1783   :  { %9756 = vmatpush1.bf16.msra.mxu1 %v13549_v56  ;;  %v13572_v56 = vld [vmem:[%s14986_s13 + $0xe0] sm:$0xff]  }
0x1784   :  { %9757 = vmatprep.subr.bf16.mxu1 %v13554_v63  ;;  %v13573_v63 = vld [vmem:[%s14986_s13 + $0xa0] sm:$0xff]  }
0x1787   :  { %9758 = vmatpush1.bf16.msra.mxu1 %v13552_v57  ;;  %v13574_v57 = vld [vmem:[%s14986_s13 + $0xe8] sm:$0xff]  }
0x1788   :  { %9759 = vmatprep.subr.bf16.mxu1 %v13557_v26  ;;  %v13575_v26 = vld [vmem:[%s14986_s13 + $0xa8] sm:$0xff]  }
0x178b   :  { %9760 = vmatpush1.bf16.msra.mxu1 %v13555_v27  ;;  %v13576_v27 = vld [vmem:[%s14986_s13 + $0xf0] sm:$0xff]  }
0x178c   :  { %9761 = vmatprep.subr.bf16.mxu1 %v13560_v30  ;;  %v13577_v30 = vld [vmem:[%s14986_s13 + $0xb0] sm:$0xff]  }
0x178f   :  { %9762 = vmatpush1.bf16.msra.mxu1 %v13558_v59  ;;  %v13578_v59 = vld [vmem:[%s14986_s13 + $0xf8] sm:$0xff]  }
0x1790   :  { %9763 = vmatprep.subr.bf16.mxu1 %v13563_v61  ;;  %v13579_v61 = vld [vmem:[%s14986_s13 + $0xb8] sm:$0xff]  }
0x1793   :  { %9764 = vmatpush1.bf16.msra.mxu1 %v13561_v62  ;;  %v13580_v62 = vld [vmem:[%s14986_s13 + $0x40] sm:$0xff]  }
0x1829   :  { %v9517_v0 = vpop.f32.mrb[128].mxu1 }
0x182a   :  { %v9519_v33 = vpop.f32.mrb[129].mxu1 }
0x182b   :  { %v9521_v7 = vpop.f32.mrb[130].mxu1 }
0x182c   :  { %v9536_v38 = vpack.c.bf16 %v9521_v7, %v9517_v0  ;;  %v9523_v42 = vpop.f32.mrb[131].mxu1  ;;  %v13581_v0 = vld [vmem:[%s14986_s13] sm:$0xff]   ;;  %v13583_v7 = vld [vmem:[%s14986_s13 + $0x8] sm:$0xff]  }
0x182d   :  { %v9537_v8 = vpack.c.bf16 %v9523_v42, %v9519_v33  ;;  %v13582_v33 = vld [vmem:[%s14986_s13 + $0x48] sm:$0xff]   ;;  %v13585_v42 = vld [vmem:[%s14986_s13 + $0x10] sm:$0xff]  }
0x182f   :  { %9765 = vmatprep.mubr.bf16.mxu1 %v9537_v8  ;;  %v13586_v8 = vld [vmem:[%s14986_s13 + $0x58] sm:$0xff]  }
0x1830   :  { %9766 = vmatmul.mubr.bf16.vlgmr.msra.gmra.mrb[120].mxu1 %v9536_v38  ;;  %v13584_v38 = vld [vmem:[%s14986_s13 + $0x50] sm:$0xff]  }
0x1831   :  { %v9527_v16 = vpop.f32.mrb[132].mxu1 }
0x1832   :  { %v9529_v4 = vpop.f32.mrb[133].mxu1 }
0x1833   :  { %v9531_v47 = vpop.f32.mrb[134].mxu1 }
0x1834   :  { %v9538_v43 = vpack.c.bf16 %v9531_v47, %v9527_v16  ;;  %v9533_v44 = vpop.f32.mrb[135].mxu1  ;;  %v13587_v16 = vld [vmem:[%s14986_s13 + $0x18] sm:$0xff]   ;;  %v13589_v47 = vld [vmem:[%s14986_s13 + $0x20] sm:$0xff]  }
0x1835   :  { %v9539_v48 = vpack.c.bf16 %v9533_v44, %v9529_v4  ;;  %v13588_v4 = vld [vmem:[%s14986_s13 + $0x60] sm:$0xff]   ;;  %v13591_v44 = vld [vmem:[%s14986_s13 + $0x28] sm:$0xff]  }
0x1837   :  { %9775 = vmatprep.mubr.bf16.mxu1 %v9539_v48  ;;  %v13592_v48 = vld [vmem:[%s14986_s13 + $0x70] sm:$0xff]  }
0x1838   :  { %9776 = vmatmul.mubr.bf16.gmra.mrb[124].mxu1 %v9538_v43  ;;  %v13590_v43 = vld [vmem:[%s14986_s13 + $0x68] sm:$0xff]  }
0x1839   :  { %10270 = vmatprep.mubr.bf16.mxu1 %v14002_v15 }
0x1903   :  { %v9767_v12 = vpop.f32.mrb[120].mxu1 }
0x1904   :  { %v9805_v11 = vadd.f32 %v9798_v13, %v9767_v12  ;;  %v9769_v14 = vpop.f32.mrb[121].mxu1  ;;  %v13596_v12 = vld [vmem:[%s14986_s13 + $0x140] sm:$0xff]  }
0x1905   :  { %v9806_v45 = vadd.f32 %v9802_v9, %v9769_v14  ;;  %v9771_v46 = vpop.f32.mrb[122].mxu1 }
0x1906   :  { %v9807_v50 = vadd.f32 %v9798_v13, %v9771_v46  ;;  %v9773_v52 = vpop.f32.mrb[123].mxu1  ;;  %v9813_v55 = vmax.f32 %v9805_v11, 0.0 }
0x1907   :  { %v9808_v53 = vadd.f32 %v9802_v9, %v9773_v52  ;;  %v9814_v20 = vmax.f32 %v9806_v45, 0.0 }
0x1908   :  { %v9815_v60 = vmax.f32 %v9807_v50, 0.0 }
0x1909   :  { %v9816_v21 = vmax.f32 %v9808_v53, 0.0 }
0x190a   :  { %v14758_v24 = vpack.c.bf16 %v9815_v60, %v9813_v55 }
0x190b   :  { %v9822_v5 = vpack.c.bf16 %v9816_v21, %v9814_v20  ;;  %v9777_v34 = vpop.f32.mrb[124].mxu1 }
0x190c   :  { %v9809_v25 = vadd.f32 %v9798_v13, %v9777_v34  ;;  %v9779_v51 = vpop.f32.mrb[125].mxu1  ;;  %v13598_v34 = vld [vmem:[%s14986_s13 + $0x148] sm:$0xff]  }
0x190d   :  { %v9810_v18 = vadd.f32 %v9802_v9, %v9779_v51  ;;  %v9781_v49 = vpop.f32.mrb[126].mxu1  ;;  %9826 = vmatprep.subr.bf16.mxu0 %v9822_v5  ;;  %10238 = vmatprep.subr.bf16.mxu1 %v9822_v5  ;;  %v13599_v51 = vld [vmem:[%s14986_s13 + $0x108] sm:$0xff]  }
0x190e   :  { %v9811_v3 = vadd.f32 %v9798_v13, %v9781_v49  ;;  %v9783_v10 = vpop.f32.mrb[127].mxu1  ;;  %9827 = vmatpush1.bf16.msra.mxu0 %v14758_v24  ;;  %10239 = vmatpush1.bf16.msra.mxu1 %v14758_v24  ;;  %v9817_v23 = vmax.f32 %v9809_v25, 0.0  ;;  %v13594_v13 = vld [vmem:[%s14986_s13 + $0x78] sm:$0xff]  }
0x190f   :  { %v9812_v17 = vadd.f32 %v9802_v9, %v9783_v10  ;;  %v9818_v22 = vmax.f32 %v9810_v18, 0.0  ;;  %v13595_v9 = vld [vmem:[%s14986_s13 + $0x38] sm:$0xff]  }
0x1910   :  { %v9819_v31 = vmax.f32 %v9811_v3, 0.0  ;;  %v13600_v3 = vld [vmem:[%s14986_s13 + $0x150] sm:$0xff]  }
0x1911   :  { %v9820_v19 = vmax.f32 %v9812_v17, 0.0 }
0x1912   :  { %v9823_v35 = vpack.c.bf16 %v9819_v31, %v9817_v23 }
0x1913   :  { %v9824_v29 = vpack.c.bf16 %v9820_v19, %v9818_v22 }
0x1915   :  { %9828 = vmatprep.subr.bf16.mxu0 %v9824_v29  ;;  %10240 = vmatprep.subr.bf16.mxu1 %v9824_v29 }
0x1916   :  { %9829 = vmatpush1.bf16.msra.mxu0 %v9823_v35  ;;  %10241 = vmatpush1.bf16.msra.mxu1 %v9823_v35 }
0x1917   :  { %11781 = vmatprep.subr.bf16.mxu0 %v13564_v36  ;;  %v13601_v36 = vld [vmem:[%s14986_s13 + $0x110] sm:$0xff]  }
0x1919   :  { %11656 = vmatmul.mubr.msk.bf16.vlgmr.msra.gmra.mrb[68].mxu0 %vm275_vm0, %v13626_v39  ;;  %11722 = vmatmul.mubr.msk.bf16.vlgmr.msra.gmra.mrb[136].mxu1 %vm275_vm0, %v13627_v40  ;;  %v13603_v39 = vld [vmem:[%s14986_s13 + $0x118] sm:$0xff]   ;;  %v13604_v40 = vld [vmem:[%s14986_s13 + $0x160] sm:$0xff]  }
0x191a   :  { %11782 = vmatpush3.bf16.msra.mxu0 %v13565_v37  ;;  %9868 = vmatprep.mubr.bf16.mxu0 %v14002_v15 }
0x191b   :  { %11783 = vmatprep.subr.bf16.mxu0 %v13566_v28  ;;  %10280 = vmatprep.mubr.bf16.mxu1 %v14002_v15  ;;  %v13571_v15 = vld [vmem:[%s14986_s13 + $0x98] sm:$0xff]  }
0x191c   :  { %v13602_v28 = vld [vmem:[%s14986_s13 + $0x158] sm:$0xff]  }
0x191e   :  { %11784 = vmatpush3.bf16.msra.mxu0 %v13567_v58  ;;  %v13605_v58 = vld [vmem:[%s14986_s13 + $0x120] sm:$0xff]  }
0x191f   :  { %11785 = vmatprep.subr.bf16.mxu0 %v13568_v1  ;;  %v13606_v1 = vld [vmem:[%s14986_s13 + $0x168] sm:$0xff]  }
0x1921   :  { %11657 = vmatmul.mubr.msk.bf16.gmra.mrb[72].mxu0 %vm275_vm0, %v13628_v32  ;;  %11723 = vmatmul.mubr.msk.bf16.gmra.mrb[140].mxu1 %vm275_vm0, %v13629_v2  ;;  %v13609_v32 = vld [vmem:[%s14986_s13 + $0x130] sm:$0xff]   ;;  %v13610_v2 = vld [vmem:[%s14986_s13 + $0x178] sm:$0xff]  }
0x1922   :  { %11786 = vmatpush3.bf16.msra.mxu0 %v13569_v41  ;;  %10076 = vmatprep.mubr.bf16.mxu0 %v9822_v5  ;;  %v13607_v41 = vld [vmem:[%s14986_s13 + $0x128] sm:$0xff]  }
0x1923   :  { %11787 = vmatprep.subr.bf16.mxu0 %v13570_v54  ;;  %v13608_v54 = vld [vmem:[%s14986_s13 + $0x170] sm:$0xff]  }
0x1926   :  { %11788 = vmatpush3.bf16.msra.mxu0 %v13571_v15 }
0x1927   :  { %11789 = vmatprep.subr.bf16.mxu0 %v13572_v56  ;;  %v13611_v56 = vld [vmem:[%s14986_s13 + $0x138] sm:$0xff]  }
0x192a   :  { %11790 = vmatpush3.bf16.msra.mxu0 %v13573_v63 }
0x192b   :  { %11791 = vmatprep.subr.bf16.mxu0 %v13574_v57 }
0x192e   :  { %11792 = vmatpush3.bf16.msra.mxu0 %v13575_v26 }
0x192f   :  { %11793 = vmatprep.subr.bf16.mxu0 %v13576_v27 }
0x1932   :  { %11794 = vmatpush3.bf16.msra.mxu0 %v13577_v30 }
0x1933   :  { %11795 = vmatprep.subr.bf16.mxu0 %v13578_v59 }
0x1936   :  { %11796 = vmatpush3.bf16.msra.mxu0 %v13579_v61 }
0x1937   :  { %11809 = vmatprep.subr.bf16.mxu0 %v13580_v62 }
0x1939   :  { %10077 = vmatmul.mubr.bf16.vlgmr.msra.gmra.mrb[76].mxu0 %v14758_v24  ;;  %v13597_v24 = vld [vmem:[%s14986_s13 + $0x100] sm:$0xff]  }
0x193a   :  { %10084 = vmatprep.mubr.bf16.mxu0 %v9824_v29  ;;  %11810 = vmatpush3.bf16.msra.mxu0 %v13581_v0 }
0x193b   :  { %11811 = vmatprep.subr.bf16.mxu0 %v13582_v33 }
0x193e   :  { %11812 = vmatpush3.bf16.msra.mxu0 %v13583_v7 }
0x193f   :  { %11813 = vmatprep.subr.bf16.mxu0 %v13584_v38 }
0x1941   :  { %10085 = vmatmul.mubr.bf16.gmra.mrb[80].mxu0 %v9823_v35 }
0x1942   :  { %11814 = vmatpush3.bf16.msra.mxu0 %v13585_v42 }
0x1943   :  { %11815 = vmatprep.subr.bf16.mxu0 %v13586_v8 }
0x1946   :  { %11816 = vmatpush3.bf16.msra.mxu0 %v13587_v16 }
0x1947   :  { %11817 = vmatprep.subr.bf16.mxu0 %v13588_v4 }
0x194a   :  { %11818 = vmatpush3.bf16.msra.mxu0 %v13589_v47 }
0x194b   :  { %11819 = vmatprep.subr.bf16.mxu0 %v13590_v43 }
0x194e   :  { %11820 = vmatpush3.bf16.msra.mxu0 %v13591_v44 }
0x194f   :  { %11821 = vmatprep.subr.bf16.mxu0 %v13592_v48 }
0x1952   :  { %11822 = vmatpush3.bf16.msra.mxu0 %v13593_v6 }
0x1953   :  { %11823 = vmatprep.subr.bf16.mxu0 %v13594_v13 }
0x1956   :  { %11824 = vmatpush3.bf16.msra.mxu0 %v13595_v9 }
0x1957   :  { %11837 = vmatprep.subr.bf16.mxu0 %v13596_v12 }
0x19ec   :  { %v9860_v11 = vpop.f32.mrb[68].mxu0  ;;  %v14868_v14 = vpop.f32.mrb[136].mxu1 }
0x19ed   :  { %v9862_v45 = vpop.f32.mrb[69].mxu0  ;;  %v10274_v46 = vpop.f32.mrb[137].mxu1 }
0x19ee   :  { %v9864_v50 = vpop.f32.mrb[70].mxu0  ;;  %v10276_v52 = vpop.f32.mrb[138].mxu1 }
0x19ef   :  { %v9879_v53 = vpack.c.bf16 %v9864_v50, %v9860_v11  ;;  %v9866_v55 = vpop.f32.mrb[71].mxu0  ;;  %v10291_v60 = vpack.c.bf16 %v10276_v52, %v14868_v14  ;;  %v10278_v20 = vpop.f32.mrb[139].mxu1 }
0x19f0   :  { %v9880_v21 = vpack.c.bf16 %v9866_v55, %v9862_v45  ;;  %v10292_v5 = vpack.c.bf16 %v10278_v20, %v10274_v46  ;;  %v11772_v55 = vld [vmem:[#allocation22] ss:$0 sm:$0xff] }
0x19f2   :  { %10221 = vmatprep.mubr.bf16.mxu0 %v9880_v21 }
0x19f3   :  { %10222 = vmatmul.mubr.bf16.vlgmr.msra.gmra.mrb[84].mxu0 %v9879_v53 }
0x19f4   :  { %11838 = vmatpush3.bf16.msra.mxu0 %v13597_v24  ;;  %v9870_v25 = vpop.f32.mrb[72].mxu0  ;;  %v10282_v18 = vpop.f32.mrb[140].mxu1 }
0x19f5   :  { %v9872_v49 = vpop.f32.mrb[73].mxu0  ;;  %11839 = vmatprep.subr.bf16.mxu0 %v13598_v34  ;;  %v10284_v10 = vpop.f32.mrb[141].mxu1 }
0x19f6   :  { %v9874_v17 = vpop.f32.mrb[74].mxu0  ;;  %v10286_v23 = vpop.f32.mrb[142].mxu1 }
0x19f7   :  { %v9881_v31 = vpack.c.bf16 %v9874_v17, %v9870_v25  ;;  %v9876_v22 = vpop.f32.mrb[75].mxu0  ;;  %v10293_v19 = vpack.c.bf16 %v10286_v23, %v10282_v18  ;;  %v10288_v35 = vpop.f32.mrb[143].mxu1 }
0x19f8   :  { %v9882_v29 = vpack.c.bf16 %v9876_v22, %v9872_v49  ;;  %11840 = vmatpush3.bf16.msra.mxu0 %v13599_v51  ;;  %v10294_v37 = vpack.c.bf16 %v10288_v35, %v10284_v10  ;;  %v13630_v35 = vld [vmem:[%s15024_s12] sm:$0xff] }
0x19f9   :  { %11841 = vmatprep.subr.bf16.mxu0 %v13600_v3 }
0x19fa   :  { %10229 = vmatprep.mubr.bf16.mxu0 %v9882_v29 }
0x19fb   :  { %10230 = vmatmul.mubr.bf16.gmra.mrb[88].mxu0 %v9881_v31 }
0x19fc   :  { %11842 = vmatpush3.bf16.msra.mxu0 %v13601_v36  ;;  %10456 = vmatprep.mubr.bf16.mxu0 %v10292_v5 }
0x19fd   :  { %11843 = vmatprep.subr.bf16.mxu0 %v13602_v28 }
0x1a00   :  { %11844 = vmatpush3.bf16.msra.mxu0 %v13603_v39 }
0x1a01   :  { %11845 = vmatprep.subr.bf16.mxu0 %v13604_v40 }
0x1a04   :  { %11846 = vmatpush3.bf16.msra.mxu0 %v13605_v58 }
0x1a05   :  { %11847 = vmatprep.subr.bf16.mxu0 %v13606_v1 }
0x1a08   :  { %11848 = vmatpush3.bf16.msra.mxu0 %v13607_v41 }
0x1a09   :  { %11849 = vmatprep.subr.bf16.mxu0 %v13608_v54 }
0x1a0c   :  { %11850 = vmatpush3.bf16.msra.mxu0 %v13609_v32  ;;  %v11797_v15 = vpop.f32.mrb[76].mxu0  ;;  %v13632_v32 = vld [vmem:[%s15024_s12 + $0x10] sm:$0xff] }
0x1a0d   :  { %v11798_v63 = vpop.f32.mrb[77].mxu0  ;;  %11851 = vmatprep.subr.bf16.mxu0 %v13610_v2 }
0x1a0e   :  { %v11799_v57 = vadd.f32 %v11798_v63, %v11797_v15  ;;  %v11800_v26 = vpop.f32.mrb[78].mxu0 }
0x1a0f   :  { %v11801_v27 = vpop.f32.mrb[79].mxu0 }
0x1a10   :  { %v11802_v30 = vadd.f32 %v11801_v27, %v11800_v26  ;;  %11852 = vmatpush3.bf16.msra.mxu0 %v13611_v56  ;;  %v13633_v56 = vld [vmem:[%s15024_s12 + $0x18] sm:$0xff] }
0x1a13   :  { %10457 = vmatmul.mubr.bf16.vlgmr.msra.gmra.mrb[92].mxu0 %v10291_v60 }
0x1a14   :  { %v11803_v59 = vpop.f32.mrb[80].mxu0  ;;  %10464 = vmatprep.mubr.bf16.mxu0 %v10294_v37  ;;  %v13631_v37 = vld [vmem:[%s15024_s12 + $0x8] sm:$0xff] }
0x1a15   :  { %v11804_v61 = vpop.f32.mrb[81].mxu0 }
0x1a16   :  { %v11805_v62 = vadd.f32 %v11804_v61, %v11803_v59  ;;  %v11806_v0 = vpop.f32.mrb[82].mxu0 }
0x1a17   :  { %v11807_v33 = vpop.f32.mrb[83].mxu0 }
0x1a18   :  { %v11808_v7 = vadd.f32 %v11807_v33, %v11806_v0 }
0x1a1b   :  { %10465 = vmatmul.mubr.bf16.gmra.mrb[96].mxu0 %v10293_v19 }
0x1ac6   :  { %v11825_v38 = vpop.f32.mrb[84].mxu0 }
0x1ac7   :  { %v11826_v42 = vpop.f32.mrb[85].mxu0 }
0x1ac8   :  { %v11827_v8 = vadd.f32 %v11826_v42, %v11825_v38  ;;  %v11828_v16 = vpop.f32.mrb[86].mxu0 }
0x1ac9   :  { %v11829_v4 = vpop.f32.mrb[87].mxu0 }
0x1aca   :  { %v10224_v47 = vadd.f32 %v11827_v8, %v11799_v57  ;;  %v11830_v43 = vadd.f32 %v11829_v4, %v11828_v16 }
0x1acc   :  { %v10227_v44 = vadd.f32 %v11830_v43, %v11802_v30 }
0x1ace   :  { %v11831_v48 = vpop.f32.mrb[88].mxu0 }
0x1acf   :  { %v11832_v6 = vpop.f32.mrb[89].mxu0 }
0x1ad0   :  { %v11833_v13 = vadd.f32 %v11832_v6, %v11831_v48  ;;  %v11834_v9 = vpop.f32.mrb[90].mxu0 }
0x1ad1   :  { %v11835_v12 = vpop.f32.mrb[91].mxu0 }
0x1ad2   :  { %v10232_v11 = vadd.f32 %v11833_v13, %v11805_v62  ;;  %v11836_v14 = vadd.f32 %v11835_v12, %v11834_v9 }
0x1ad4   :  { %v10235_v45 = vadd.f32 %v11836_v14, %v11808_v7 }
0x1ae6   :  { %v11853_v46 = vpop.f32.mrb[92].mxu0 }
0x1ae7   :  { %v11854_v50 = vpop.f32.mrb[93].mxu0 }
0x1ae8   :  { %v11855_v52 = vadd.f32 %v11854_v50, %v11853_v46  ;;  %v11856_v53 = vpop.f32.mrb[94].mxu0 }
0x1ae9   :  { %v11857_v60 = vpop.f32.mrb[95].mxu0 }
0x1aea   :  { %v10473_v20 = vadd.f32 %v11855_v52, %v10224_v47  ;;  %v11858_v21 = vadd.f32 %v11857_v60, %v11856_v53 }
0x1aec   :  { %v10483_v24 = vadd.f32 %v11772_v55, %v10473_v20  ;;  %v10474_v5 = vadd.f32 %v11858_v21, %v10227_v44 }
0x1aee   :  { %13614 = vtanh.f32 %v10483_v24  ;;  %v10484_v34 = vadd.f32 %v11772_v55, %v10474_v5  ;;  %v11859_v25 = vpop.f32.mrb[96].mxu0 }
0x1aef   :  { %v11860_v51 = vpop.f32.mrb[97].mxu0 }
0x1af0   :  { %13616 = vtanh.f32 %v10484_v34  ;;  %v11861_v18 = vadd.f32 %v11860_v51, %v11859_v25  ;;  %v11862_v49 = vpop.f32.mrb[98].mxu0 }
0x1af1   :  { %v11863_v3 = vpop.f32.mrb[99].mxu0 }
0x1af2   :  { %v10475_v10 = vadd.f32 %v11861_v18, %v10232_v11  ;;  %v11864_v17 = vadd.f32 %v11863_v3, %v11862_v49 }
0x1af4   :  { %v10485_v23 = vadd.f32 %v11772_v55, %v10475_v10  ;;  %v10476_v31 = vadd.f32 %v11864_v17, %v10235_v45 }
0x1af6   :  { %13618 = vtanh.f32 %v10485_v23  ;;  %v10486_v22 = vadd.f32 %v11772_v55, %v10476_v31 }
0x1af8   :  { %v13615_v19 = vpop.eup %13614  ;;  %13620 = vtanh.f32 %v10486_v22 }
0x1af9   :  { %10519 = vst.msk [vmem:[%s14992_s19] sm:$0xff] %vm390_vm1, %v13615_v19  ;;  %v10491_v29 = vsub.f32 %v13630_v35, %v13615_v19 }
0x1afa   :  { %v13617_v36 = vpop.eup %13616 }
0x1afb   :  { %10520 = vst.msk [vmem:[%s14992_s19 + $0x8] sm:$0xff] %vm390_vm1, %v13617_v36  ;;  %v10492_v28 = vsub.f32 %v13631_v37, %v13617_v36  ;;  %v10495_v39 = vmul.f32 %v10491_v29, %v10491_v29 }
0x1afd   :  { %v10496_v40 = vmul.f32 %v10492_v28, %v10492_v28  ;;  %v10499_v58 = vsel %vm390_vm1, %v10495_v39, 0.0 }
0x1aff   :  { %v10500_v1 = vsel %vm390_vm1, %v10496_v40, 0.0 }
0x1b00   :  { %v13619_v41 = vpop.eup %13618  ;;  %v10501_v54 = vadd.f32 %v10500_v1, %v10499_v58 }
0x1b01   :  { %10521 = vst.msk [vmem:[%s14992_s19 + $0x10] sm:$0xff] %vm390_vm1, %v13619_v41  ;;  %v10493_v2 = vsub.f32 %v13632_v32, %v13619_v41 }
0x1b02   :  { %v13621_v15 = vpop.eup %13620 }
0x1b03   :  { %10522 = vst.msk [vmem:[%s14992_s19 + $0x18] sm:$0xff] %vm390_vm1, %v13621_v15  ;;  %v10494_v63 = vsub.f32 %v13633_v56, %v13621_v15  ;;  %v10497_v57 = vmul.f32 %v10493_v2, %v10493_v2 }
0x1b05   :  { %v10498_v26 = vmul.f32 %v10494_v63, %v10494_v63  ;;  %v10502_v27 = vsel %vm390_vm1, %v10497_v57, 0.0 }
0x1b06   :  { %v10503_v30 = vadd.f32 %v10502_v27, %v10501_v54 }
0x1b07   :  { %v10504_v59 = vsel %vm390_vm1, %v10498_v26, 0.0 }
0x1b08   :  { %v10505_v61 = vadd.f32 %v10504_v59, %v10503_v30 }
0x1b0a   :  { %10506 = vadd.xlane.f32.xlu1 %v10505_v61 }
0x1b0b   :  { %13951 = shalt.err (!%p13948_p2)
}
0x1b0c   :  { %s14003_s29 = smov [#allocation26]   ;;  %s15025_s9 = sld [smem:[#allocation44_spill]] }
0x1b0d   :  { %10544 = dma.smem_to_hbm %s14003_s29, 16, %s14994_s21, [#allocation27]  }
0x1b12   :  { %s13952_s26 = scalar_lea.hbm %s15025_s9, 16 }
0x1b13   :  { %p13953_p3 = scmp.ne.s32.totalorder %s15025_s9, %s13952_s26  ;;  %p13956_p4 = scmp.lt.u32.totalorder %s13952_s26, %s15025_s9 }
0x1b15   :  { %p13958_p5 = pnand %p13956_p4, %p13953_p3 }
0x1b97   :  { %v10507_v62 = vpop.xlane.xlu1 %10506 }
0x1b98   :  { %v10508_v0 = vrot.slane %v10507_v62, 4 }
0x1b9a   :  { %v10509_v33 = vadd.f32 %v10508_v0, %v10507_v62 }
0x1b9c   :  { %v10510_v7 = vrot.slane %v10509_v33, 2 }
0x1b9e   :  { %v10511_v38 = vadd.f32 %v10510_v7, %v10509_v33 }
0x1ba0   :  { %v10512_v42 = vrot.slane %v10511_v38, 1 }
0x1ba2   :  { %v10513_v8 = vadd.f32 %v10512_v42, %v10511_v38 }
0x1ba4   :  { %11997 = vpush %v10513_v8 }
0x1bd5   :  { %s11998_s28 = spop %11997 }
0x1bd6   :  { %s10517_s8 = smul.f32 0.00048828125, %s11998_s28 }
0x1bd8   :  { %s10518_s17 = sadd.f32 %s10517_s8, %s14625_s11 }
0x1bda   :  { %10524 = sst [smem:[#allocation25]] %s10518_s17 }
0x1bdb   :  { %13961 = shalt.err (!%p13958_p5)
}
0x1bdc   :  { %s14004_s14 = smov [#allocation25]  }
0x1bdd   :  { %10536 = dma.smem_to_hbm %s14004_s14, 16, %s15025_s9, [#allocation4]  }
0x1bde   :  { %13978 = dma.done.wait [#allocation4], 16  }
0x1bdf   :  { %13979 = vsyncadd [#allocation4], 4294967280 }
0x1be0   :  { %13980 = dma.done.wait [#allocation27], 16  }
0x1be1   :  { %13981 = vsyncadd [#allocation27], 4294967280 }
0x1be2   :  { %10553 = sfence }
0x1be3   :  { %10554 = vsyncpa [#allocation3], 1 }
0x1be4   :  { %10555 = vsyncpa [#allocation6], 1 }
0x1be5   :  { %10556 = vsyncpa [#allocation9], 1 }
0x1be6   :  { %10557 = vsyncpa [#allocation12], 1 }
0x1be7   :  { %10558 = vsyncpa [#allocation15], 1 }
0x1be8   :  { %10559 = vsyncpa [#allocation18], 1 }
0x1be9   :  { %10560 = vsyncpa [#allocation21], 1 }
0x1bea   :  { %10561 = vsyncpa [#allocation24], 1 }
0x1beb   :  { %10562 = vsyncpa [#allocation4], 1 }
0x1bec   :  { %10563 = vsyncpa [#allocation27], 1 }

</bundles_post_ra>
